<compile_context>
chip_gen: v7x
topology: tpu7x:2x2x1
jax: 0.10.0
libtpu: 0.0.40
codegen_flags: <defaults>
</compile_context>

<pallas_src>
import functools

import jax
import jax.numpy as jnp
from jax import lax
from jax.experimental import pallas as pl
from jax.experimental.pallas import tpu as pltpu


def _round_up(n: int, m: int) -> int:
    return ((n + m - 1) // m) * m


# ---------------- fused Conv3d(3,1,1) + bias + ReLU + MaxPool3d(2) ------------

def _conv_relu_pool_kernel(z_ref, w_ref, o_ref, patch_ref, *,
                           cin, hw1, w1, l2pad):
    """One batch element of Conv3d(k=3,s=1,p=1) + bias + ReLU + MaxPool3d(2).

    z_ref:     (1, 8, cin, Lpad) bf16  zero-padded input, space-to-depth by 2
                                       (8 parity grids), spatial flattened.
    w_ref:     (8, Cout, K1)     bf16  per-pooling-tap weights; K1 = 64*cin + 8,
                                       column 64*cin carries the bias.
    o_ref:     (1, Cout, l2pad)  f32   pooled output on the flat
                                       (D2, H2+1, W2+1) grid (+ lane padding).
    patch_ref: (K1, l2pad)             VMEM scratch: stride-2 4x4x4 im2col.
    """
    # In-kernel im2col (no 27x HBM traffic): row block t <-> offset (u, v, s) in
    # the 4x4x4 receptive field of one 2x2x2 pooling window; its values are a
    # contiguous lane slice of parity grid (u%2, v%2, s%2) at offset
    # (u//2)*hw1 + (v//2)*w1 + (s//2).
    t = 0
    for u in range(4):
        for v in range(4):
            for s in range(4):
                rz = (u % 2) * 4 + (v % 2) * 2 + (s % 2)
                off = (u // 2) * hw1 + (v // 2) * w1 + (s // 2)
                patch_ref[t * cin:(t + 1) * cin, :] = (
                    z_ref[0, rz, :, off:off + l2pad].astype(patch_ref.dtype))
                t += 1
    # Ones rows carry the bias (column 64*cin of w_ref) through the matmul.
    patch_ref[64 * cin:64 * cin + 8, :] = jnp.ones((8, l2pad), patch_ref.dtype)

    patches = patch_ref[...].astype(jnp.bfloat16)       # bf16 MXU operands
    # 8 pooling taps = 8 MXU matmuls; MaxPool is a running VPU max; ReLU epilogue.
    acc = jnp.dot(w_ref[0], patches, preferred_element_type=jnp.float32)
    for p in range(1, 8):
        acc = jnp.maximum(
            acc, jnp.dot(w_ref[p], patches, preferred_element_type=jnp.float32))
    o_ref[0] = jnp.maximum(acc, 0.0)


def _prep_conv_weights(w, b, dtype):
    """(Cout,Cin,3,3,3),(Cout,) -> (8, Cout, 64*Cin+8).

    One zero-scattered weight matrix per pooling tap p=(pd,ph,pw): entry for
    receptive-field offset (u,v,s) and channel ci is w[co,ci,u-pd,v-ph,s-pw]
    (0 outside the 3x3x3 window).  Column 64*Cin carries the bias, the 7
    remaining columns are zero (they pair with the in-kernel ones rows).
    """
    cout, cin = w.shape[0], w.shape[1]
    mats = []
    for pd in (0, 1):
        for ph in (0, 1):
            for pw in (0, 1):
                wp = jnp.pad(w, ((0, 0), (0, 0),
                                 (pd, 1 - pd), (ph, 1 - ph), (pw, 1 - pw)))
                wp = jnp.transpose(wp, (0, 2, 3, 4, 1)).reshape(cout, 64 * cin)
                mats.append(jnp.concatenate(
                    [wp, b[:, None], jnp.zeros((cout, 7), w.dtype)], axis=1))
    return jnp.stack(mats, axis=0).astype(dtype)


def conv3d_relu_pool(x, w, b):
    """Fused Conv3d(k=3,s=1,p=1) + bias + ReLU + MaxPool3d(2).

    x: (B, Cin, D, H, W) f32 with even D, H, W  ->  (B, Cout, D/2, H/2, W/2) f32.
    """
    B, Cin, D, H, W = x.shape
    Cout = w.shape[0]
    assert D % 2 == 0 and H % 2 == 0 and W % 2 == 0, (D, H, W)
    D2, H2, W2 = D // 2, H // 2, W // 2
    W1 = W2 + 1
    HW1 = (H2 + 1) * W1
    L2 = D2 * HW1                        # pooled flat grid incl. garbage cols
    L2pad = _round_up(L2, 128)           # lane-dense (unmasked) output block
    Lp = (D2 + 1) * HW1                  # flattened parity-grid length
    max_off = HW1 + W1 + 1               # largest in-kernel slice start
    Lpad = _round_up(max_off + L2pad, 128)
    K1 = 64 * Cin + 8                    # 4x4x4 stride-2 taps + bias/ones rows

    # O(input)-sized glue (no 27x im2col): zero-pad, space-to-depth by 2, flatten.
    xp = jnp.pad(x, ((0, 0), (0, 0), (1, 1), (1, 1), (1, 1)))
    z = xp.reshape(B, Cin, D2 + 1, 2, H2 + 1, 2, W1, 2)
    z = jnp.transpose(z, (0, 3, 5, 7, 1, 2, 4, 6))   # (B,2,2,2,Cin,D2+1,H2+1,W1)
    z = z.reshape(B, 8, Cin, Lp)
    z = jnp.pad(z, ((0, 0), (0, 0), (0, 0), (0, Lpad - Lp)))
    z = z.astype(jnp.bfloat16)                       # halves the input DMA bytes
    w8 = _prep_conv_weights(w, b, jnp.bfloat16)      # (8, Cout, K1)

    # bf16 scratch keeps the packed-row stores tile-aligned when Cin is even
    # (conv2); for Cin=1 (conv1, tiny) use f32 rows and cast at the dot.
    patch_dtype = jnp.bfloat16 if Cin % 2 == 0 else jnp.float32
    kernel = functools.partial(_conv_relu_pool_kernel,
                               cin=Cin, hw1=HW1, w1=W1, l2pad=L2pad)

    out = pl.pallas_call(
        kernel,
        out_shape=jax.ShapeDtypeStruct((B, Cout, L2pad), jnp.float32),
        grid=(B,),
        in_specs=[pl.BlockSpec((1, 8, Cin, Lpad), lambda i: (i, 0, 0, 0)),
                  pl.BlockSpec((8, Cout, K1), lambda i: (0, 0, 0))],
        out_specs=pl.BlockSpec((1, Cout, L2pad), lambda i: (i, 0, 0)),
        scratch_shapes=[pltpu.VMEM((K1, L2pad), patch_dtype)],
        compiler_params=pltpu.CompilerParams(
            dimension_semantics=("parallel",),      # megacore sharding on v7x
            vmem_limit_bytes=64 * 1024 * 1024),
    )(z, w8)

    # Drop the garbage columns of the flat pooled grid.
    out = out[:, :, :L2].reshape(B, Cout, D2, H2 + 1, W1)
    return out[:, :, :, :H2, :W2]


# ----------------------------------- Linear -----------------------------------

def _linear_kernel(x_ref, w_ref, b_ref, o_ref):
    # y = x @ w.T + b, contracting F of both operands (no w.T materialization).
    y = lax.dot_general(x_ref[...], w_ref[...],
                        dimension_numbers=(((1,), (1,)), ((), ())),
                        preferred_element_type=jnp.float32)
    o_ref[...] = y + b_ref[...]


def linear(x, w, b):
    """PyTorch Linear: y = x @ w.T + b.  x: (B,F), w: (O,F), b: (O,)."""
    B, F = x.shape
    O = w.shape[0]
    return pl.pallas_call(
        _linear_kernel,
        out_shape=jax.ShapeDtypeStruct((B, O), jnp.float32),
        grid=(1,),
        in_specs=[pl.BlockSpec((B, F), lambda i: (0, 0)),
                  pl.BlockSpec((O, F), lambda i: (0, 0)),
                  pl.BlockSpec((1, O), lambda i: (0, 0))],
        out_specs=pl.BlockSpec((B, O), lambda i: (0, 0)),
    )(x, w, b.reshape(1, O))


# -------------------------------- Full forward --------------------------------

def cnn3d_forward(x, params):
    """Reproduces CNN3D.forward.  x: (B, num_channels, img, img) float32."""
    v = x[:, None]                          # unsqueeze(1): (B,1,C,Him,Wim)
    v = jnp.transpose(v, (0, 1, 3, 2, 4))   # permute(0,1,3,2,4): (B,1,Him,C,Wim)
    y = conv3d_relu_pool(v, params["w1"], params["b1"])
    y = conv3d_relu_pool(y, params["w2"], params["b2"])
    flat = y.reshape(y.shape[0], -1)        # Flatten, NCDHW row-major (as PyTorch)
    return linear(flat, params["wfc"], params["bfc"])


def reference_forward(x, params, operand_dtype=jnp.float32):
    """Pure-JAX reference.  With operand_dtype=bfloat16 the conv operands are
    rounded exactly like the Pallas MXU path (accumulation stays f32)."""
    rnd = lambda a: a.astype(operand_dtype).astype(jnp.float32)
    v = x[:, None]
    v = jnp.transpose(v, (0, 1, 3, 2, 4))

    def conv(inp, w, b):
        y = lax.conv_general_dilated(
            rnd(inp), rnd(w), window_strides=(1, 1, 1),
            padding=((1, 1), (1, 1), (1, 1)),
            dimension_numbers=("NCDHW", "OIDHW", "NCDHW"),
            preferred_element_type=jnp.float32)
        return jax.nn.relu(y + rnd(b)[None, :, None, None, None])

    def pool(t):
        return lax.reduce_window(t, -jnp.inf, lax.max,
                                 (1, 1, 2, 2, 2), (1, 1, 2, 2, 2), "VALID")

    y = pool(conv(v, params["w1"], params["b1"]))
    y = pool(conv(y, params["w2"], params["b2"]))
    flat = y.reshape(y.shape[0], -1)
    return flat @ params["wfc"].T + params["bfc"][None, :]


# ------------------------------------ main -------------------------------------

if __name__ == "__main__":
    # Small shapes consistent with the module's forward semantics.
    config = {"num_channels": 4, "img_size": 16, "num_classes": 10}
    B = 2

    key = jax.random.PRNGKey(0)
    kx, k1, k2, k3, k4, k5, k6 = jax.random.split(key, 7)

    x = jax.random.normal(
        kx, (B, config["num_channels"], config["img_size"], config["img_size"]),
        jnp.float32)

    # fc1 in_features: the module hard-codes 25088*num_channels (i.e. img=224);
    # at these small demo shapes the flattened feature count is computed exactly.
    feat = 32 * (config["img_size"] // 4) * (config["num_channels"] // 4) \
              * (config["img_size"] // 4)
    params = {
        "w1": 0.10 * jax.random.normal(k1, (16, 1, 3, 3, 3), jnp.float32),
        "b1": 0.01 * jax.random.normal(k2, (16,), jnp.float32),
        "w2": 0.10 * jax.random.normal(k3, (32, 16, 3, 3, 3), jnp.float32),
        "b2": 0.01 * jax.random.normal(k4, (32,), jnp.float32),
        "wfc": 0.05 * jax.random.normal(k5, (config["num_classes"], feat), jnp.float32),
        "bfc": 0.01 * jax.random.normal(k6, (config["num_classes"],), jnp.float32),
    }

    forward = jax.jit(cnn3d_forward)
    out = jax.block_until_ready(forward(x, params))
    assert out.shape == (B, config["num_classes"]), out.shape

    # Strict check: reference with the same bf16 operand rounding as the MXU path
    # (isolates kernel correctness; both sides accumulate in f32).
    ref_bf16 = jax.block_until_ready(
        reference_forward(x, params, operand_dtype=jnp.bfloat16))
    assert jnp.allclose(out, ref_bf16, rtol=2e-3, atol=2e-3), \
        float(jnp.max(jnp.abs(out - ref_bf16)))

    # Sanity check vs. the pure-f32 reference (bf16 conv operands cost ~1e-2).
    ref_f32 = jax.block_until_ready(reference_forward(x, params))
    assert jnp.allclose(out, ref_f32, rtol=5e-2, atol=5e-2), \
        float(jnp.max(jnp.abs(out - ref_f32)))

    print("KERNEL_OK")
</pallas_src>

<mosaic_0001>
module attributes {stable_mosaic.version = 11 : i64} {
  func.func @_conv_relu_pool_kernel(%arg0: i32, %arg1: memref<1x8x1x384xbf16, #tpu.memory_space<vmem>>, %arg2: memref<8x16x72xbf16, #tpu.memory_space<vmem>>, %arg3: memref<1x16x256xf32, #tpu.memory_space<vmem>>, %arg4: memref<72x256xf32, #tpu.memory_space<vmem>>) attributes {dimension_semantics = [#tpu.dimension_semantics<parallel>], iteration_bounds = array<i64: 2>, scalar_prefetch = 0 : i64, scratch_operands = 1 : i64, tpu.core_type = #tpu.core_type<tc>, window_params = [{transform_indices = @transform_0, window_bounds = array<i64: 1, 8, 1, 384>}, {pipeline_mode = #tpu.pipeline_mode<synchronous>, transform_indices = @transform_1, window_bounds = array<i64: 8, 16, 72>}, {transform_indices = @transform_2, window_bounds = array<i64: 1, 16, 256>}]} {
    %c0 = arith.constant 0 : index
    %c0_0 = arith.constant 0 : index
    %c0_1 = arith.constant 0 : index
    %c0_2 = arith.constant 0 : index
    %0 = vector.load %arg1[%c0, %c0_0, %c0_1, %c0_2] : memref<1x8x1x384xbf16, #tpu.memory_space<vmem>>, vector<1x1x1x256xbf16>
    %1 = vector.shape_cast %0 : vector<1x1x1x256xbf16> to vector<1x256xbf16>
    %2 = arith.extf %1 : vector<1x256xbf16> to vector<1x256xf32>
    %c0_3 = arith.constant 0 : index
    %c0_4 = arith.constant 0 : index
    %3 = vector.load %arg4[%c0_3, %c0_4] : memref<72x256xf32, #tpu.memory_space<vmem>>, vector<1x256xf32>
    tpu.vector_store %arg4[%c0_3, %c0_4], %2 {strides = array<i32>} : memref<72x256xf32, #tpu.memory_space<vmem>>, vector<1x256xf32>,
    %c0_5 = arith.constant 0 : index
    %c1 = arith.constant 1 : index
    %c0_6 = arith.constant 0 : index
    %c0_7 = arith.constant 0 : index
    %4 = vector.load %arg1[%c0_5, %c1, %c0_6, %c0_7] : memref<1x8x1x384xbf16, #tpu.memory_space<vmem>>, vector<1x1x1x256xbf16>
    %5 = vector.shape_cast %4 : vector<1x1x1x256xbf16> to vector<1x256xbf16>
    %6 = arith.extf %5 : vector<1x256xbf16> to vector<1x256xf32>
    %c1_8 = arith.constant 1 : index
    %c0_9 = arith.constant 0 : index
    %7 = vector.load %arg4[%c1_8, %c0_9] : memref<72x256xf32, #tpu.memory_space<vmem>>, vector<1x256xf32>
    tpu.vector_store %arg4[%c1_8, %c0_9], %6 {strides = array<i32>} : memref<72x256xf32, #tpu.memory_space<vmem>>, vector<1x256xf32>,
    %c0_10 = arith.constant 0 : index
    %c0_11 = arith.constant 0 : index
    %c0_12 = arith.constant 0 : index
    %c1_13 = arith.constant 1 : index
    %8 = vector.load %arg1[%c0_10, %c0_11, %c0_12, %c1_13] : memref<1x8x1x384xbf16, #tpu.memory_space<vmem>>, vector<1x1x1x256xbf16>
    %9 = vector.shape_cast %8 : vector<1x1x1x256xbf16> to vector<1x256xbf16>
    %10 = arith.extf %9 : vector<1x256xbf16> to vector<1x256xf32>
    %c2 = arith.constant 2 : index
    %c0_14 = arith.constant 0 : index
    %11 = vector.load %arg4[%c2, %c0_14] : memref<72x256xf32, #tpu.memory_space<vmem>>, vector<1x256xf32>
    tpu.vector_store %arg4[%c2, %c0_14], %10 {strides = array<i32>} : memref<72x256xf32, #tpu.memory_space<vmem>>, vector<1x256xf32>,
    %c0_15 = arith.constant 0 : index
    %c1_16 = arith.constant 1 : index
    %c0_17 = arith.constant 0 : index
    %c1_18 = arith.constant 1 : index
    %12 = vector.load %arg1[%c0_15, %c1_16, %c0_17, %c1_18] : memref<1x8x1x384xbf16, #tpu.memory_space<vmem>>, vector<1x1x1x256xbf16>
    %13 = vector.shape_cast %12 : vector<1x1x1x256xbf16> to vector<1x256xbf16>
    %14 = arith.extf %13 : vector<1x256xbf16> to vector<1x256xf32>
    %c3 = arith.constant 3 : index
    %c0_19 = arith.constant 0 : index
    %15 = vector.load %arg4[%c3, %c0_19] : memref<72x256xf32, #tpu.memory_space<vmem>>, vector<1x256xf32>
    tpu.vector_store %arg4[%c3, %c0_19], %14 {strides = array<i32>} : memref<72x256xf32, #tpu.memory_space<vmem>>, vector<1x256xf32>,
    %c0_20 = arith.constant 0 : index
    %c2_21 = arith.constant 2 : index
    %c0_22 = arith.constant 0 : index
    %c0_23 = arith.constant 0 : index
    %16 = vector.load %arg1[%c0_20, %c2_21, %c0_22, %c0_23] : memref<1x8x1x384xbf16, #tpu.memory_space<vmem>>, vector<1x1x1x256xbf16>
    %17 = vector.shape_cast %16 : vector<1x1x1x256xbf16> to vector<1x256xbf16>
    %18 = arith.extf %17 : vector<1x256xbf16> to vector<1x256xf32>
    %c4 = arith.constant 4 : index
    %c0_24 = arith.constant 0 : index
    %19 = vector.load %arg4[%c4, %c0_24] : memref<72x256xf32, #tpu.memory_space<vmem>>, vector<1x256xf32>
    tpu.vector_store %arg4[%c4, %c0_24], %18 {strides = array<i32>} : memref<72x256xf32, #tpu.memory_space<vmem>>, vector<1x256xf32>,
    %c0_25 = arith.constant 0 : index
    %c3_26 = arith.constant 3 : index
    %c0_27 = arith.constant 0 : index
    %c0_28 = arith.constant 0 : index
    %20 = vector.load %arg1[%c0_25, %c3_26, %c0_27, %c0_28] : memref<1x8x1x384xbf16, #tpu.memory_space<vmem>>, vector<1x1x1x256xbf16>
    %21 = vector.shape_cast %20 : vector<1x1x1x256xbf16> to vector<1x256xbf16>
    %22 = arith.extf %21 : vector<1x256xbf16> to vector<1x256xf32>
    %c5 = arith.constant 5 : index
    %c0_29 = arith.constant 0 : index
    %23 = vector.load %arg4[%c5, %c0_29] : memref<72x256xf32, #tpu.memory_space<vmem>>, vector<1x256xf32>
    tpu.vector_store %arg4[%c5, %c0_29], %22 {strides = array<i32>} : memref<72x256xf32, #tpu.memory_space<vmem>>, vector<1x256xf32>,
    %c0_30 = arith.constant 0 : index
    %c2_31 = arith.constant 2 : index
    %c0_32 = arith.constant 0 : index
    %c1_33 = arith.constant 1 : index
    %24 = vector.load %arg1[%c0_30, %c2_31, %c0_32, %c1_33] : memref<1x8x1x384xbf16, #tpu.memory_space<vmem>>, vector<1x1x1x256xbf16>
    %25 = vector.shape_cast %24 : vector<1x1x1x256xbf16> to vector<1x256xbf16>
    %26 = arith.extf %25 : vector<1x256xbf16> to vector<1x256xf32>
    %c6 = arith.constant 6 : index
    %c0_34 = arith.constant 0 : index
    %27 = vector.load %arg4[%c6, %c0_34] : memref<72x256xf32, #tpu.memory_space<vmem>>, vector<1x256xf32>
    tpu.vector_store %arg4[%c6, %c0_34], %26 {strides = array<i32>} : memref<72x256xf32, #tpu.memory_space<vmem>>, vector<1x256xf32>,
    %c0_35 = arith.constant 0 : index
    %c3_36 = arith.constant 3 : index
    %c0_37 = arith.constant 0 : index
    %c1_38 = arith.constant 1 : index
    %28 = vector.load %arg1[%c0_35, %c3_36, %c0_37, %c1_38] : memref<1x8x1x384xbf16, #tpu.memory_space<vmem>>, vector<1x1x1x256xbf16>
    %29 = vector.shape_cast %28 : vector<1x1x1x256xbf16> to vector<1x256xbf16>
    %30 = arith.extf %29 : vector<1x256xbf16> to vector<1x256xf32>
    %c7 = arith.constant 7 : index
    %c0_39 = arith.constant 0 : index
    %31 = vector.load %arg4[%c7, %c0_39] : memref<72x256xf32, #tpu.memory_space<vmem>>, vector<1x256xf32>
    tpu.vector_store %arg4[%c7, %c0_39], %30 {strides = array<i32>} : memref<72x256xf32, #tpu.memory_space<vmem>>, vector<1x256xf32>,
    %c0_40 = arith.constant 0 : index
    %c0_41 = arith.constant 0 : index
    %c0_42 = arith.constant 0 : index
    %c9 = arith.constant 9 : index
    %32 = vector.load %arg1[%c0_40, %c0_41, %c0_42, %c9] : memref<1x8x1x384xbf16, #tpu.memory_space<vmem>>, vector<1x1x1x256xbf16>
    %33 = vector.shape_cast %32 : vector<1x1x1x256xbf16> to vector<1x256xbf16>
    %34 = arith.extf %33 : vector<1x256xbf16> to vector<1x256xf32>
    %c8 = arith.constant 8 : index
    %c0_43 = arith.constant 0 : index
    %35 = vector.load %arg4[%c8, %c0_43] : memref<72x256xf32, #tpu.memory_space<vmem>>, vector<1x256xf32>
    tpu.vector_store %arg4[%c8, %c0_43], %34 {strides = array<i32>} : memref<72x256xf32, #tpu.memory_space<vmem>>, vector<1x256xf32>,
    %c0_44 = arith.constant 0 : index
    %c1_45 = arith.constant 1 : index
    %c0_46 = arith.constant 0 : index
    %c9_47 = arith.constant 9 : index
    %36 = vector.load %arg1[%c0_44, %c1_45, %c0_46, %c9_47] : memref<1x8x1x384xbf16, #tpu.memory_space<vmem>>, vector<1x1x1x256xbf16>
    %37 = vector.shape_cast %36 : vector<1x1x1x256xbf16> to vector<1x256xbf16>
    %38 = arith.extf %37 : vector<1x256xbf16> to vector<1x256xf32>
    %c9_48 = arith.constant 9 : index
    %c0_49 = arith.constant 0 : index
    %39 = vector.load %arg4[%c9_48, %c0_49] : memref<72x256xf32, #tpu.memory_space<vmem>>, vector<1x256xf32>
    tpu.vector_store %arg4[%c9_48, %c0_49], %38 {strides = array<i32>} : memref<72x256xf32, #tpu.memory_space<vmem>>, vector<1x256xf32>,
    %c0_50 = arith.constant 0 : index
    %c0_51 = arith.constant 0 : index
    %c0_52 = arith.constant 0 : index
    %c10 = arith.constant 10 : index
    %40 = vector.load %arg1[%c0_50, %c0_51, %c0_52, %c10] : memref<1x8x1x384xbf16, #tpu.memory_space<vmem>>, vector<1x1x1x256xbf16>
    %41 = vector.shape_cast %40 : vector<1x1x1x256xbf16> to vector<1x256xbf16>
    %42 = arith.extf %41 : vector<1x256xbf16> to vector<1x256xf32>
    %c10_53 = arith.constant 10 : index
    %c0_54 = arith.constant 0 : index
    %43 = vector.load %arg4[%c10_53, %c0_54] : memref<72x256xf32, #tpu.memory_space<vmem>>, vector<1x256xf32>
    tpu.vector_store %arg4[%c10_53, %c0_54], %42 {strides = array<i32>} : memref<72x256xf32, #tpu.memory_space<vmem>>, vector<1x256xf32>,
    %c0_55 = arith.constant 0 : index
    %c1_56 = arith.constant 1 : index
    %c0_57 = arith.constant 0 : index
    %c10_58 = arith.constant 10 : index
    %44 = vector.load %arg1[%c0_55, %c1_56, %c0_57, %c10_58] : memref<1x8x1x384xbf16, #tpu.memory_space<vmem>>, vector<1x1x1x256xbf16>
    %45 = vector.shape_cast %44 : vector<1x1x1x256xbf16> to vector<1x256xbf16>
    %46 = arith.extf %45 : vector<1x256xbf16> to vector<1x256xf32>
    %c11 = arith.constant 11 : index
    %c0_59 = arith.constant 0 : index
    %47 = vector.load %arg4[%c11, %c0_59] : memref<72x256xf32, #tpu.memory_space<vmem>>, vector<1x256xf32>
    tpu.vector_store %arg4[%c11, %c0_59], %46 {strides = array<i32>} : memref<72x256xf32, #tpu.memory_space<vmem>>, vector<1x256xf32>,
    %c0_60 = arith.constant 0 : index
    %c2_61 = arith.constant 2 : index
    %c0_62 = arith.constant 0 : index
    %c9_63 = arith.constant 9 : index
    %48 = vector.load %arg1[%c0_60, %c2_61, %c0_62, %c9_63] : memref<1x8x1x384xbf16, #tpu.memory_space<vmem>>, vector<1x1x1x256xbf16>
    %49 = vector.shape_cast %48 : vector<1x1x1x256xbf16> to vector<1x256xbf16>
    %50 = arith.extf %49 : vector<1x256xbf16> to vector<1x256xf32>
    %c12 = arith.constant 12 : index
    %c0_64 = arith.constant 0 : index
    %51 = vector.load %arg4[%c12, %c0_64] : memref<72x256xf32, #tpu.memory_space<vmem>>, vector<1x256xf32>
    tpu.vector_store %arg4[%c12, %c0_64], %50 {strides = array<i32>} : memref<72x256xf32, #tpu.memory_space<vmem>>, vector<1x256xf32>,
    %c0_65 = arith.constant 0 : index
    %c3_66 = arith.constant 3 : index
    %c0_67 = arith.constant 0 : index
    %c9_68 = arith.constant 9 : index
    %52 = vector.load %arg1[%c0_65, %c3_66, %c0_67, %c9_68] : memref<1x8x1x384xbf16, #tpu.memory_space<vmem>>, vector<1x1x1x256xbf16>
    %53 = vector.shape_cast %52 : vector<1x1x1x256xbf16> to vector<1x256xbf16>
    %54 = arith.extf %53 : vector<1x256xbf16> to vector<1x256xf32>
    %c13 = arith.constant 13 : index
    %c0_69 = arith.constant 0 : index
    %55 = vector.load %arg4[%c13, %c0_69] : memref<72x256xf32, #tpu.memory_space<vmem>>, vector<1x256xf32>
    tpu.vector_store %arg4[%c13, %c0_69], %54 {strides = array<i32>} : memref<72x256xf32, #tpu.memory_space<vmem>>, vector<1x256xf32>,
    %c0_70 = arith.constant 0 : index
    %c2_71 = arith.constant 2 : index
    %c0_72 = arith.constant 0 : index
    %c10_73 = arith.constant 10 : index
    %56 = vector.load %arg1[%c0_70, %c2_71, %c0_72, %c10_73] : memref<1x8x1x384xbf16, #tpu.memory_space<vmem>>, vector<1x1x1x256xbf16>
    %57 = vector.shape_cast %56 : vector<1x1x1x256xbf16> to vector<1x256xbf16>
    %58 = arith.extf %57 : vector<1x256xbf16> to vector<1x256xf32>
    %c14 = arith.constant 14 : index
    %c0_74 = arith.constant 0 : index
    %59 = vector.load %arg4[%c14, %c0_74] : memref<72x256xf32, #tpu.memory_space<vmem>>, vector<1x256xf32>
    tpu.vector_store %arg4[%c14, %c0_74], %58 {strides = array<i32>} : memref<72x256xf32, #tpu.memory_space<vmem>>, vector<1x256xf32>,
    %c0_75 = arith.constant 0 : index
    %c3_76 = arith.constant 3 : index
    %c0_77 = arith.constant 0 : index
    %c10_78 = arith.constant 10 : index
    %60 = vector.load %arg1[%c0_75, %c3_76, %c0_77, %c10_78] : memref<1x8x1x384xbf16, #tpu.memory_space<vmem>>, vector<1x1x1x256xbf16>
    %61 = vector.shape_cast %60 : vector<1x1x1x256xbf16> to vector<1x256xbf16>
    %62 = arith.extf %61 : vector<1x256xbf16> to vector<1x256xf32>
    %c15 = arith.constant 15 : index
    %c0_79 = arith.constant 0 : index
    %63 = vector.load %arg4[%c15, %c0_79] : memref<72x256xf32, #tpu.memory_space<vmem>>, vector<1x256xf32>
    tpu.vector_store %arg4[%c15, %c0_79], %62 {strides = array<i32>} : memref<72x256xf32, #tpu.memory_space<vmem>>, vector<1x256xf32>,
    %c0_80 = arith.constant 0 : index
    %c4_81 = arith.constant 4 : index
    %c0_82 = arith.constant 0 : index
    %c0_83 = arith.constant 0 : index
    %64 = vector.load %arg1[%c0_80, %c4_81, %c0_82, %c0_83] : memref<1x8x1x384xbf16, #tpu.memory_space<vmem>>, vector<1x1x1x256xbf16>
    %65 = vector.shape_cast %64 : vector<1x1x1x256xbf16> to vector<1x256xbf16>
    %66 = arith.extf %65 : vector<1x256xbf16> to vector<1x256xf32>
    %c16 = arith.constant 16 : index
    %c0_84 = arith.constant 0 : index
    %67 = vector.load %arg4[%c16, %c0_84] : memref<72x256xf32, #tpu.memory_space<vmem>>, vector<1x256xf32>
    tpu.vector_store %arg4[%c16, %c0_84], %66 {strides = array<i32>} : memref<72x256xf32, #tpu.memory_space<vmem>>, vector<1x256xf32>,
    %c0_85 = arith.constant 0 : index
    %c5_86 = arith.constant 5 : index
    %c0_87 = arith.constant 0 : index
    %c0_88 = arith.constant 0 : index
    %68 = vector.load %arg1[%c0_85, %c5_86, %c0_87, %c0_88] : memref<1x8x1x384xbf16, #tpu.memory_space<vmem>>, vector<1x1x1x256xbf16>
    %69 = vector.shape_cast %68 : vector<1x1x1x256xbf16> to vector<1x256xbf16>
    %70 = arith.extf %69 : vector<1x256xbf16> to vector<1x256xf32>
    %c17 = arith.constant 17 : index
    %c0_89 = arith.constant 0 : index
    %71 = vector.load %arg4[%c17, %c0_89] : memref<72x256xf32, #tpu.memory_space<vmem>>, vector<1x256xf32>
    tpu.vector_store %arg4[%c17, %c0_89], %70 {strides = array<i32>} : memref<72x256xf32, #tpu.memory_space<vmem>>, vector<1x256xf32>,
    %c0_90 = arith.constant 0 : index
    %c4_91 = arith.constant 4 : index
    %c0_92 = arith.constant 0 : index
    %c1_93 = arith.constant 1 : index
    %72 = vector.load %arg1[%c0_90, %c4_91, %c0_92, %c1_93] : memref<1x8x1x384xbf16, #tpu.memory_space<vmem>>, vector<1x1x1x256xbf16>
    %73 = vector.shape_cast %72 : vector<1x1x1x256xbf16> to vector<1x256xbf16>
    %74 = arith.extf %73 : vector<1x256xbf16> to vector<1x256xf32>
    %c18 = arith.constant 18 : index
    %c0_94 = arith.constant 0 : index
    %75 = vector.load %arg4[%c18, %c0_94] : memref<72x256xf32, #tpu.memory_space<vmem>>, vector<1x256xf32>
    tpu.vector_store %arg4[%c18, %c0_94], %74 {strides = array<i32>} : memref<72x256xf32, #tpu.memory_space<vmem>>, vector<1x256xf32>,
    %c0_95 = arith.constant 0 : index
    %c5_96 = arith.constant 5 : index
    %c0_97 = arith.constant 0 : index
    %c1_98 = arith.constant 1 : index
    %76 = vector.load %arg1[%c0_95, %c5_96, %c0_97, %c1_98] : memref<1x8x1x384xbf16, #tpu.memory_space<vmem>>, vector<1x1x1x256xbf16>
    %77 = vector.shape_cast %76 : vector<1x1x1x256xbf16> to vector<1x256xbf16>
    %78 = arith.extf %77 : vector<1x256xbf16> to vector<1x256xf32>
    %c19 = arith.constant 19 : index
    %c0_99 = arith.constant 0 : index
    %79 = vector.load %arg4[%c19, %c0_99] : memref<72x256xf32, #tpu.memory_space<vmem>>, vector<1x256xf32>
    tpu.vector_store %arg4[%c19, %c0_99], %78 {strides = array<i32>} : memref<72x256xf32, #tpu.memory_space<vmem>>, vector<1x256xf32>,
    %c0_100 = arith.constant 0 : index
    %c6_101 = arith.constant 6 : index
    %c0_102 = arith.constant 0 : index
    %c0_103 = arith.constant 0 : index
    %80 = vector.load %arg1[%c0_100, %c6_101, %c0_102, %c0_103] : memref<1x8x1x384xbf16, #tpu.memory_space<vmem>>, vector<1x1x1x256xbf16>
    %81 = vector.shape_cast %80 : vector<1x1x1x256xbf16> to vector<1x256xbf16>
    %82 = arith.extf %81 : vector<1x256xbf16> to vector<1x256xf32>
    %c20 = arith.constant 20 : index
    %c0_104 = arith.constant 0 : index
    %83 = vector.load %arg4[%c20, %c0_104] : memref<72x256xf32, #tpu.memory_space<vmem>>, vector<1x256xf32>
    tpu.vector_store %arg4[%c20, %c0_104], %82 {strides = array<i32>} : memref<72x256xf32, #tpu.memory_space<vmem>>, vector<1x256xf32>,
    %c0_105 = arith.constant 0 : index
    %c7_106 = arith.constant 7 : index
    %c0_107 = arith.constant 0 : index
    %c0_108 = arith.constant 0 : index
    %84 = vector.load %arg1[%c0_105, %c7_106, %c0_107, %c0_108] : memref<1x8x1x384xbf16, #tpu.memory_space<vmem>>, vector<1x1x1x256xbf16>
    %85 = vector.shape_cast %84 : vector<1x1x1x256xbf16> to vector<1x256xbf16>
    %86 = arith.extf %85 : vector<1x256xbf16> to vector<1x256xf32>
    %c21 = arith.constant 21 : index
    %c0_109 = arith.constant 0 : index
    %87 = vector.load %arg4[%c21, %c0_109] : memref<72x256xf32, #tpu.memory_space<vmem>>, vector<1x256xf32>
    tpu.vector_store %arg4[%c21, %c0_109], %86 {strides = array<i32>} : memref<72x256xf32, #tpu.memory_space<vmem>>, vector<1x256xf32>,
    %c0_110 = arith.constant 0 : index
    %c6_111 = arith.constant 6 : index
    %c0_112 = arith.constant 0 : index
    %c1_113 = arith.constant 1 : index
    %88 = vector.load %arg1[%c0_110, %c6_111, %c0_112, %c1_113] : memref<1x8x1x384xbf16, #tpu.memory_space<vmem>>, vector<1x1x1x256xbf16>
    %89 = vector.shape_cast %88 : vector<1x1x1x256xbf16> to vector<1x256xbf16>
    %90 = arith.extf %89 : vector<1x256xbf16> to vector<1x256xf32>
    %c22 = arith.constant 22 : index
    %c0_114 = arith.constant 0 : index
    %91 = vector.load %arg4[%c22, %c0_114] : memref<72x256xf32, #tpu.memory_space<vmem>>, vector<1x256xf32>
    tpu.vector_store %arg4[%c22, %c0_114], %90 {strides = array<i32>} : memref<72x256xf32, #tpu.memory_space<vmem>>, vector<1x256xf32>,
    %c0_115 = arith.constant 0 : index
    %c7_116 = arith.constant 7 : index
    %c0_117 = arith.constant 0 : index
    %c1_118 = arith.constant 1 : index
    %92 = vector.load %arg1[%c0_115, %c7_116, %c0_117, %c1_118] : memref<1x8x1x384xbf16, #tpu.memory_space<vmem>>, vector<1x1x1x256xbf16>
    %93 = vector.shape_cast %92 : vector<1x1x1x256xbf16> to vector<1x256xbf16>
    %94 = arith.extf %93 : vector<1x256xbf16> to vector<1x256xf32>
    %c23 = arith.constant 23 : index
    %c0_119 = arith.constant 0 : index
    %95 = vector.load %arg4[%c23, %c0_119] : memref<72x256xf32, #tpu.memory_space<vmem>>, vector<1x256xf32>
    tpu.vector_store %arg4[%c23, %c0_119], %94 {strides = array<i32>} : memref<72x256xf32, #tpu.memory_space<vmem>>, vector<1x256xf32>,
    %c0_120 = arith.constant 0 : index
    %c4_121 = arith.constant 4 : index
    %c0_122 = arith.constant 0 : index
    %c9_123 = arith.constant 9 : index
    %96 = vector.load %arg1[%c0_120, %c4_121, %c0_122, %c9_123] : memref<1x8x1x384xbf16, #tpu.memory_space<vmem>>, vector<1x1x1x256xbf16>
    %97 = vector.shape_cast %96 : vector<1x1x1x256xbf16> to vector<1x256xbf16>
    %98 = arith.extf %97 : vector<1x256xbf16> to vector<1x256xf32>
    %c24 = arith.constant 24 : index
    %c0_124 = arith.constant 0 : index
    %99 = vector.load %arg4[%c24, %c0_124] : memref<72x256xf32, #tpu.memory_space<vmem>>, vector<1x256xf32>
    tpu.vector_store %arg4[%c24, %c0_124], %98 {strides = array<i32>} : memref<72x256xf32, #tpu.memory_space<vmem>>, vector<1x256xf32>,
    %c0_125 = arith.constant 0 : index
    %c5_126 = arith.constant 5 : index
    %c0_127 = arith.constant 0 : index
    %c9_128 = arith.constant 9 : index
    %100 = vector.load %arg1[%c0_125, %c5_126, %c0_127, %c9_128] : memref<1x8x1x384xbf16, #tpu.memory_space<vmem>>, vector<1x1x1x256xbf16>
    %101 = vector.shape_cast %100 : vector<1x1x1x256xbf16> to vector<1x256xbf16>
    %102 = arith.extf %101 : vector<1x256xbf16> to vector<1x256xf32>
    %c25 = arith.constant 25 : index
    %c0_129 = arith.constant 0 : index
    %103 = vector.load %arg4[%c25, %c0_129] : memref<72x256xf32, #tpu.memory_space<vmem>>, vector<1x256xf32>
    tpu.vector_store %arg4[%c25, %c0_129], %102 {strides = array<i32>} : memref<72x256xf32, #tpu.memory_space<vmem>>, vector<1x256xf32>,
    %c0_130 = arith.constant 0 : index
    %c4_131 = arith.constant 4 : index
    %c0_132 = arith.constant 0 : index
    %c10_133 = arith.constant 10 : index
    %104 = vector.load %arg1[%c0_130, %c4_131, %c0_132, %c10_133] : memref<1x8x1x384xbf16, #tpu.memory_space<vmem>>, vector<1x1x1x256xbf16>
    %105 = vector.shape_cast %104 : vector<1x1x1x256xbf16> to vector<1x256xbf16>
    %106 = arith.extf %105 : vector<1x256xbf16> to vector<1x256xf32>
    %c26 = arith.constant 26 : index
    %c0_134 = arith.constant 0 : index
    %107 = vector.load %arg4[%c26, %c0_134] : memref<72x256xf32, #tpu.memory_space<vmem>>, vector<1x256xf32>
    tpu.vector_store %arg4[%c26, %c0_134], %106 {strides = array<i32>} : memref<72x256xf32, #tpu.memory_space<vmem>>, vector<1x256xf32>,
    %c0_135 = arith.constant 0 : index
    %c5_136 = arith.constant 5 : index
    %c0_137 = arith.constant 0 : index
    %c10_138 = arith.constant 10 : index
    %108 = vector.load %arg1[%c0_135, %c5_136, %c0_137, %c10_138] : memref<1x8x1x384xbf16, #tpu.memory_space<vmem>>, vector<1x1x1x256xbf16>
    %109 = vector.shape_cast %108 : vector<1x1x1x256xbf16> to vector<1x256xbf16>
    %110 = arith.extf %109 : vector<1x256xbf16> to vector<1x256xf32>
    %c27 = arith.constant 27 : index
    %c0_139 = arith.constant 0 : index
    %111 = vector.load %arg4[%c27, %c0_139] : memref<72x256xf32, #tpu.memory_space<vmem>>, vector<1x256xf32>
    tpu.vector_store %arg4[%c27, %c0_139], %110 {strides = array<i32>} : memref<72x256xf32, #tpu.memory_space<vmem>>, vector<1x256xf32>,
    %c0_140 = arith.constant 0 : index
    %c6_141 = arith.constant 6 : index
    %c0_142 = arith.constant 0 : index
    %c9_143 = arith.constant 9 : index
    %112 = vector.load %arg1[%c0_140, %c6_141, %c0_142, %c9_143] : memref<1x8x1x384xbf16, #tpu.memory_space<vmem>>, vector<1x1x1x256xbf16>
    %113 = vector.shape_cast %112 : vector<1x1x1x256xbf16> to vector<1x256xbf16>
    %114 = arith.extf %113 : vector<1x256xbf16> to vector<1x256xf32>
    %c28 = arith.constant 28 : index
    %c0_144 = arith.constant 0 : index
    %115 = vector.load %arg4[%c28, %c0_144] : memref<72x256xf32, #tpu.memory_space<vmem>>, vector<1x256xf32>
    tpu.vector_store %arg4[%c28, %c0_144], %114 {strides = array<i32>} : memref<72x256xf32, #tpu.memory_space<vmem>>, vector<1x256xf32>,
    %c0_145 = arith.constant 0 : index
    %c7_146 = arith.constant 7 : index
    %c0_147 = arith.constant 0 : index
    %c9_148 = arith.constant 9 : index
    %116 = vector.load %arg1[%c0_145, %c7_146, %c0_147, %c9_148] : memref<1x8x1x384xbf16, #tpu.memory_space<vmem>>, vector<1x1x1x256xbf16>
    %117 = vector.shape_cast %116 : vector<1x1x1x256xbf16> to vector<1x256xbf16>
    %118 = arith.extf %117 : vector<1x256xbf16> to vector<1x256xf32>
    %c29 = arith.constant 29 : index
    %c0_149 = arith.constant 0 : index
    %119 = vector.load %arg4[%c29, %c0_149] : memref<72x256xf32, #tpu.memory_space<vmem>>, vector<1x256xf32>
    tpu.vector_store %arg4[%c29, %c0_149], %118 {strides = array<i32>} : memref<72x256xf32, #tpu.memory_space<vmem>>, vector<1x256xf32>,
    %c0_150 = arith.constant 0 : index
    %c6_151 = arith.constant 6 : index
    %c0_152 = arith.constant 0 : index
    %c10_153 = arith.constant 10 : index
    %120 = vector.load %arg1[%c0_150, %c6_151, %c0_152, %c10_153] : memref<1x8x1x384xbf16, #tpu.memory_space<vmem>>, vector<1x1x1x256xbf16>
    %121 = vector.shape_cast %120 : vector<1x1x1x256xbf16> to vector<1x256xbf16>
    %122 = arith.extf %121 : vector<1x256xbf16> to vector<1x256xf32>
    %c30 = arith.constant 30 : index
    %c0_154 = arith.constant 0 : index
    %123 = vector.load %arg4[%c30, %c0_154] : memref<72x256xf32, #tpu.memory_space<vmem>>, vector<1x256xf32>
    tpu.vector_store %arg4[%c30, %c0_154], %122 {strides = array<i32>} : memref<72x256xf32, #tpu.memory_space<vmem>>, vector<1x256xf32>,
    %c0_155 = arith.constant 0 : index
    %c7_156 = arith.constant 7 : index
    %c0_157 = arith.constant 0 : index
    %c10_158 = arith.constant 10 : index
    %124 = vector.load %arg1[%c0_155, %c7_156, %c0_157, %c10_158] : memref<1x8x1x384xbf16, #tpu.memory_space<vmem>>, vector<1x1x1x256xbf16>
    %125 = vector.shape_cast %124 : vector<1x1x1x256xbf16> to vector<1x256xbf16>
    %126 = arith.extf %125 : vector<1x256xbf16> to vector<1x256xf32>
    %c31 = arith.constant 31 : index
    %c0_159 = arith.constant 0 : index
    %127 = vector.load %arg4[%c31, %c0_159] : memref<72x256xf32, #tpu.memory_space<vmem>>, vector<1x256xf32>
    tpu.vector_store %arg4[%c31, %c0_159], %126 {strides = array<i32>} : memref<72x256xf32, #tpu.memory_space<vmem>>, vector<1x256xf32>,
    %c0_160 = arith.constant 0 : index
    %c0_161 = arith.constant 0 : index
    %c0_162 = arith.constant 0 : index
    %c27_163 = arith.constant 27 : index
    %128 = vector.load %arg1[%c0_160, %c0_161, %c0_162, %c27_163] : memref<1x8x1x384xbf16, #tpu.memory_space<vmem>>, vector<1x1x1x256xbf16>
    %129 = vector.shape_cast %128 : vector<1x1x1x256xbf16> to vector<1x256xbf16>
    %130 = arith.extf %129 : vector<1x256xbf16> to vector<1x256xf32>
    %c32 = arith.constant 32 : index
    %c0_164 = arith.constant 0 : index
    %131 = vector.load %arg4[%c32, %c0_164] : memref<72x256xf32, #tpu.memory_space<vmem>>, vector<1x256xf32>
    tpu.vector_store %arg4[%c32, %c0_164], %130 {strides = array<i32>} : memref<72x256xf32, #tpu.memory_space<vmem>>, vector<1x256xf32>,
    %c0_165 = arith.constant 0 : index
    %c1_166 = arith.constant 1 : index
    %c0_167 = arith.constant 0 : index
    %c27_168 = arith.constant 27 : index
    %132 = vector.load %arg1[%c0_165, %c1_166, %c0_167, %c27_168] : memref<1x8x1x384xbf16, #tpu.memory_space<vmem>>, vector<1x1x1x256xbf16>
    %133 = vector.shape_cast %132 : vector<1x1x1x256xbf16> to vector<1x256xbf16>
    %134 = arith.extf %133 : vector<1x256xbf16> to vector<1x256xf32>
    %c33 = arith.constant 33 : index
    %c0_169 = arith.constant 0 : index
    %135 = vector.load %arg4[%c33, %c0_169] : memref<72x256xf32, #tpu.memory_space<vmem>>, vector<1x256xf32>
    tpu.vector_store %arg4[%c33, %c0_169], %134 {strides = array<i32>} : memref<72x256xf32, #tpu.memory_space<vmem>>, vector<1x256xf32>,
    %c0_170 = arith.constant 0 : index
    %c0_171 = arith.constant 0 : index
    %c0_172 = arith.constant 0 : index
    %c28_173 = arith.constant 28 : index
    %136 = vector.load %arg1[%c0_170, %c0_171, %c0_172, %c28_173] : memref<1x8x1x384xbf16, #tpu.memory_space<vmem>>, vector<1x1x1x256xbf16>
    %137 = vector.shape_cast %136 : vector<1x1x1x256xbf16> to vector<1x256xbf16>
    %138 = arith.extf %137 : vector<1x256xbf16> to vector<1x256xf32>
    %c34 = arith.constant 34 : index
    %c0_174 = arith.constant 0 : index
    %139 = vector.load %arg4[%c34, %c0_174] : memref<72x256xf32, #tpu.memory_space<vmem>>, vector<1x256xf32>
    tpu.vector_store %arg4[%c34, %c0_174], %138 {strides = array<i32>} : memref<72x256xf32, #tpu.memory_space<vmem>>, vector<1x256xf32>,
    %c0_175 = arith.constant 0 : index
    %c1_176 = arith.constant 1 : index
    %c0_177 = arith.constant 0 : index
    %c28_178 = arith.constant 28 : index
    %140 = vector.load %arg1[%c0_175, %c1_176, %c0_177, %c28_178] : memref<1x8x1x384xbf16, #tpu.memory_space<vmem>>, vector<1x1x1x256xbf16>
    %141 = vector.shape_cast %140 : vector<1x1x1x256xbf16> to vector<1x256xbf16>
    %142 = arith.extf %141 : vector<1x256xbf16> to vector<1x256xf32>
    %c35 = arith.constant 35 : index
    %c0_179 = arith.constant 0 : index
    %143 = vector.load %arg4[%c35, %c0_179] : memref<72x256xf32, #tpu.memory_space<vmem>>, vector<1x256xf32>
    tpu.vector_store %arg4[%c35, %c0_179], %142 {strides = array<i32>} : memref<72x256xf32, #tpu.memory_space<vmem>>, vector<1x256xf32>,
    %c0_180 = arith.constant 0 : index
    %c2_181 = arith.constant 2 : index
    %c0_182 = arith.constant 0 : index
    %c27_183 = arith.constant 27 : index
    %144 = vector.load %arg1[%c0_180, %c2_181, %c0_182, %c27_183] : memref<1x8x1x384xbf16, #tpu.memory_space<vmem>>, vector<1x1x1x256xbf16>
    %145 = vector.shape_cast %144 : vector<1x1x1x256xbf16> to vector<1x256xbf16>
    %146 = arith.extf %145 : vector<1x256xbf16> to vector<1x256xf32>
    %c36 = arith.constant 36 : index
    %c0_184 = arith.constant 0 : index
    %147 = vector.load %arg4[%c36, %c0_184] : memref<72x256xf32, #tpu.memory_space<vmem>>, vector<1x256xf32>
    tpu.vector_store %arg4[%c36, %c0_184], %146 {strides = array<i32>} : memref<72x256xf32, #tpu.memory_space<vmem>>, vector<1x256xf32>,
    %c0_185 = arith.constant 0 : index
    %c3_186 = arith.constant 3 : index
    %c0_187 = arith.constant 0 : index
    %c27_188 = arith.constant 27 : index
    %148 = vector.load %arg1[%c0_185, %c3_186, %c0_187, %c27_188] : memref<1x8x1x384xbf16, #tpu.memory_space<vmem>>, vector<1x1x1x256xbf16>
    %149 = vector.shape_cast %148 : vector<1x1x1x256xbf16> to vector<1x256xbf16>
    %150 = arith.extf %149 : vector<1x256xbf16> to vector<1x256xf32>
    %c37 = arith.constant 37 : index
    %c0_189 = arith.constant 0 : index
    %151 = vector.load %arg4[%c37, %c0_189] : memref<72x256xf32, #tpu.memory_space<vmem>>, vector<1x256xf32>
    tpu.vector_store %arg4[%c37, %c0_189], %150 {strides = array<i32>} : memref<72x256xf32, #tpu.memory_space<vmem>>, vector<1x256xf32>,
    %c0_190 = arith.constant 0 : index
    %c2_191 = arith.constant 2 : index
    %c0_192 = arith.constant 0 : index
    %c28_193 = arith.constant 28 : index
    %152 = vector.load %arg1[%c0_190, %c2_191, %c0_192, %c28_193] : memref<1x8x1x384xbf16, #tpu.memory_space<vmem>>, vector<1x1x1x256xbf16>
    %153 = vector.shape_cast %152 : vector<1x1x1x256xbf16> to vector<1x256xbf16>
    %154 = arith.extf %153 : vector<1x256xbf16> to vector<1x256xf32>
    %c38 = arith.constant 38 : index
    %c0_194 = arith.constant 0 : index
    %155 = vector.load %arg4[%c38, %c0_194] : memref<72x256xf32, #tpu.memory_space<vmem>>, vector<1x256xf32>
    tpu.vector_store %arg4[%c38, %c0_194], %154 {strides = array<i32>} : memref<72x256xf32, #tpu.memory_space<vmem>>, vector<1x256xf32>,
    %c0_195 = arith.constant 0 : index
    %c3_196 = arith.constant 3 : index
    %c0_197 = arith.constant 0 : index
    %c28_198 = arith.constant 28 : index
    %156 = vector.load %arg1[%c0_195, %c3_196, %c0_197, %c28_198] : memref<1x8x1x384xbf16, #tpu.memory_space<vmem>>, vector<1x1x1x256xbf16>
    %157 = vector.shape_cast %156 : vector<1x1x1x256xbf16> to vector<1x256xbf16>
    %158 = arith.extf %157 : vector<1x256xbf16> to vector<1x256xf32>
    %c39 = arith.constant 39 : index
    %c0_199 = arith.constant 0 : index
    %159 = vector.load %arg4[%c39, %c0_199] : memref<72x256xf32, #tpu.memory_space<vmem>>, vector<1x256xf32>
    tpu.vector_store %arg4[%c39, %c0_199], %158 {strides = array<i32>} : memref<72x256xf32, #tpu.memory_space<vmem>>, vector<1x256xf32>,
    %c0_200 = arith.constant 0 : index
    %c0_201 = arith.constant 0 : index
    %c0_202 = arith.constant 0 : index
    %c36_203 = arith.constant 36 : index
    %160 = vector.load %arg1[%c0_200, %c0_201, %c0_202, %c36_203] : memref<1x8x1x384xbf16, #tpu.memory_space<vmem>>, vector<1x1x1x256xbf16>
    %161 = vector.shape_cast %160 : vector<1x1x1x256xbf16> to vector<1x256xbf16>
    %162 = arith.extf %161 : vector<1x256xbf16> to vector<1x256xf32>
    %c40 = arith.constant 40 : index
    %c0_204 = arith.constant 0 : index
    %163 = vector.load %arg4[%c40, %c0_204] : memref<72x256xf32, #tpu.memory_space<vmem>>, vector<1x256xf32>
    tpu.vector_store %arg4[%c40, %c0_204], %162 {strides = array<i32>} : memref<72x256xf32, #tpu.memory_space<vmem>>, vector<1x256xf32>,
    %c0_205 = arith.constant 0 : index
    %c1_206 = arith.constant 1 : index
    %c0_207 = arith.constant 0 : index
    %c36_208 = arith.constant 36 : index
    %164 = vector.load %arg1[%c0_205, %c1_206, %c0_207, %c36_208] : memref<1x8x1x384xbf16, #tpu.memory_space<vmem>>, vector<1x1x1x256xbf16>
    %165 = vector.shape_cast %164 : vector<1x1x1x256xbf16> to vector<1x256xbf16>
    %166 = arith.extf %165 : vector<1x256xbf16> to vector<1x256xf32>
    %c41 = arith.constant 41 : index
    %c0_209 = arith.constant 0 : index
    %167 = vector.load %arg4[%c41, %c0_209] : memref<72x256xf32, #tpu.memory_space<vmem>>, vector<1x256xf32>
    tpu.vector_store %arg4[%c41, %c0_209], %166 {strides = array<i32>} : memref<72x256xf32, #tpu.memory_space<vmem>>, vector<1x256xf32>,
    %c0_210 = arith.constant 0 : index
    %c0_211 = arith.constant 0 : index
    %c0_212 = arith.constant 0 : index
    %c37_213 = arith.constant 37 : index
    %168 = vector.load %arg1[%c0_210, %c0_211, %c0_212, %c37_213] : memref<1x8x1x384xbf16, #tpu.memory_space<vmem>>, vector<1x1x1x256xbf16>
    %169 = vector.shape_cast %168 : vector<1x1x1x256xbf16> to vector<1x256xbf16>
    %170 = arith.extf %169 : vector<1x256xbf16> to vector<1x256xf32>
    %c42 = arith.constant 42 : index
    %c0_214 = arith.constant 0 : index
    %171 = vector.load %arg4[%c42, %c0_214] : memref<72x256xf32, #tpu.memory_space<vmem>>, vector<1x256xf32>
    tpu.vector_store %arg4[%c42, %c0_214], %170 {strides = array<i32>} : memref<72x256xf32, #tpu.memory_space<vmem>>, vector<1x256xf32>,
    %c0_215 = arith.constant 0 : index
    %c1_216 = arith.constant 1 : index
    %c0_217 = arith.constant 0 : index
    %c37_218 = arith.constant 37 : index
    %172 = vector.load %arg1[%c0_215, %c1_216, %c0_217, %c37_218] : memref<1x8x1x384xbf16, #tpu.memory_space<vmem>>, vector<1x1x1x256xbf16>
    %173 = vector.shape_cast %172 : vector<1x1x1x256xbf16> to vector<1x256xbf16>
    %174 = arith.extf %173 : vector<1x256xbf16> to vector<1x256xf32>
    %c43 = arith.constant 43 : index
    %c0_219 = arith.constant 0 : index
    %175 = vector.load %arg4[%c43, %c0_219] : memref<72x256xf32, #tpu.memory_space<vmem>>, vector<1x256xf32>
    tpu.vector_store %arg4[%c43, %c0_219], %174 {strides = array<i32>} : memref<72x256xf32, #tpu.memory_space<vmem>>, vector<1x256xf32>,
    %c0_220 = arith.constant 0 : index
    %c2_221 = arith.constant 2 : index
    %c0_222 = arith.constant 0 : index
    %c36_223 = arith.constant 36 : index
    %176 = vector.load %arg1[%c0_220, %c2_221, %c0_222, %c36_223] : memref<1x8x1x384xbf16, #tpu.memory_space<vmem>>, vector<1x1x1x256xbf16>
    %177 = vector.shape_cast %176 : vector<1x1x1x256xbf16> to vector<1x256xbf16>
    %178 = arith.extf %177 : vector<1x256xbf16> to vector<1x256xf32>
    %c44 = arith.constant 44 : index
    %c0_224 = arith.constant 0 : index
    %179 = vector.load %arg4[%c44, %c0_224] : memref<72x256xf32, #tpu.memory_space<vmem>>, vector<1x256xf32>
    tpu.vector_store %arg4[%c44, %c0_224], %178 {strides = array<i32>} : memref<72x256xf32, #tpu.memory_space<vmem>>, vector<1x256xf32>,
    %c0_225 = arith.constant 0 : index
    %c3_226 = arith.constant 3 : index
    %c0_227 = arith.constant 0 : index
    %c36_228 = arith.constant 36 : index
    %180 = vector.load %arg1[%c0_225, %c3_226, %c0_227, %c36_228] : memref<1x8x1x384xbf16, #tpu.memory_space<vmem>>, vector<1x1x1x256xbf16>
    %181 = vector.shape_cast %180 : vector<1x1x1x256xbf16> to vector<1x256xbf16>
    %182 = arith.extf %181 : vector<1x256xbf16> to vector<1x256xf32>
    %c45 = arith.constant 45 : index
    %c0_229 = arith.constant 0 : index
    %183 = vector.load %arg4[%c45, %c0_229] : memref<72x256xf32, #tpu.memory_space<vmem>>, vector<1x256xf32>
    tpu.vector_store %arg4[%c45, %c0_229], %182 {strides = array<i32>} : memref<72x256xf32, #tpu.memory_space<vmem>>, vector<1x256xf32>,
    %c0_230 = arith.constant 0 : index
    %c2_231 = arith.constant 2 : index
    %c0_232 = arith.constant 0 : index
    %c37_233 = arith.constant 37 : index
    %184 = vector.load %arg1[%c0_230, %c2_231, %c0_232, %c37_233] : memref<1x8x1x384xbf16, #tpu.memory_space<vmem>>, vector<1x1x1x256xbf16>
    %185 = vector.shape_cast %184 : vector<1x1x1x256xbf16> to vector<1x256xbf16>
    %186 = arith.extf %185 : vector<1x256xbf16> to vector<1x256xf32>
    %c46 = arith.constant 46 : index
    %c0_234 = arith.constant 0 : index
    %187 = vector.load %arg4[%c46, %c0_234] : memref<72x256xf32, #tpu.memory_space<vmem>>, vector<1x256xf32>
    tpu.vector_store %arg4[%c46, %c0_234], %186 {strides = array<i32>} : memref<72x256xf32, #tpu.memory_space<vmem>>, vector<1x256xf32>,
    %c0_235 = arith.constant 0 : index
    %c3_236 = arith.constant 3 : index
    %c0_237 = arith.constant 0 : index
    %c37_238 = arith.constant 37 : index
    %188 = vector.load %arg1[%c0_235, %c3_236, %c0_237, %c37_238] : memref<1x8x1x384xbf16, #tpu.memory_space<vmem>>, vector<1x1x1x256xbf16>
    %189 = vector.shape_cast %188 : vector<1x1x1x256xbf16> to vector<1x256xbf16>
    %190 = arith.extf %189 : vector<1x256xbf16> to vector<1x256xf32>
    %c47 = arith.constant 47 : index
    %c0_239 = arith.constant 0 : index
    %191 = vector.load %arg4[%c47, %c0_239] : memref<72x256xf32, #tpu.memory_space<vmem>>, vector<1x256xf32>
    tpu.vector_store %arg4[%c47, %c0_239], %190 {strides = array<i32>} : memref<72x256xf32, #tpu.memory_space<vmem>>, vector<1x256xf32>,
    %c0_240 = arith.constant 0 : index
    %c4_241 = arith.constant 4 : index
    %c0_242 = arith.constant 0 : index
    %c27_243 = arith.constant 27 : index
    %192 = vector.load %arg1[%c0_240, %c4_241, %c0_242, %c27_243] : memref<1x8x1x384xbf16, #tpu.memory_space<vmem>>, vector<1x1x1x256xbf16>
    %193 = vector.shape_cast %192 : vector<1x1x1x256xbf16> to vector<1x256xbf16>
    %194 = arith.extf %193 : vector<1x256xbf16> to vector<1x256xf32>
    %c48 = arith.constant 48 : index
    %c0_244 = arith.constant 0 : index
    %195 = vector.load %arg4[%c48, %c0_244] : memref<72x256xf32, #tpu.memory_space<vmem>>, vector<1x256xf32>
    tpu.vector_store %arg4[%c48, %c0_244], %194 {strides = array<i32>} : memref<72x256xf32, #tpu.memory_space<vmem>>, vector<1x256xf32>,
    %c0_245 = arith.constant 0 : index
    %c5_246 = arith.constant 5 : index
    %c0_247 = arith.constant 0 : index
    %c27_248 = arith.constant 27 : index
    %196 = vector.load %arg1[%c0_245, %c5_246, %c0_247, %c27_248] : memref<1x8x1x384xbf16, #tpu.memory_space<vmem>>, vector<1x1x1x256xbf16>
    %197 = vector.shape_cast %196 : vector<1x1x1x256xbf16> to vector<1x256xbf16>
    %198 = arith.extf %197 : vector<1x256xbf16> to vector<1x256xf32>
    %c49 = arith.constant 49 : index
    %c0_249 = arith.constant 0 : index
    %199 = vector.load %arg4[%c49, %c0_249] : memref<72x256xf32, #tpu.memory_space<vmem>>, vector<1x256xf32>
    tpu.vector_store %arg4[%c49, %c0_249], %198 {strides = array<i32>} : memref<72x256xf32, #tpu.memory_space<vmem>>, vector<1x256xf32>,
    %c0_250 = arith.constant 0 : index
    %c4_251 = arith.constant 4 : index
    %c0_252 = arith.constant 0 : index
    %c28_253 = arith.constant 28 : index
    %200 = vector.load %arg1[%c0_250, %c4_251, %c0_252, %c28_253] : memref<1x8x1x384xbf16, #tpu.memory_space<vmem>>, vector<1x1x1x256xbf16>
    %201 = vector.shape_cast %200 : vector<1x1x1x256xbf16> to vector<1x256xbf16>
    %202 = arith.extf %201 : vector<1x256xbf16> to vector<1x256xf32>
    %c50 = arith.constant 50 : index
    %c0_254 = arith.constant 0 : index
    %203 = vector.load %arg4[%c50, %c0_254] : memref<72x256xf32, #tpu.memory_space<vmem>>, vector<1x256xf32>
    tpu.vector_store %arg4[%c50, %c0_254], %202 {strides = array<i32>} : memref<72x256xf32, #tpu.memory_space<vmem>>, vector<1x256xf32>,
    %c0_255 = arith.constant 0 : index
    %c5_256 = arith.constant 5 : index
    %c0_257 = arith.constant 0 : index
    %c28_258 = arith.constant 28 : index
    %204 = vector.load %arg1[%c0_255, %c5_256, %c0_257, %c28_258] : memref<1x8x1x384xbf16, #tpu.memory_space<vmem>>, vector<1x1x1x256xbf16>
    %205 = vector.shape_cast %204 : vector<1x1x1x256xbf16> to vector<1x256xbf16>
    %206 = arith.extf %205 : vector<1x256xbf16> to vector<1x256xf32>
    %c51 = arith.constant 51 : index
    %c0_259 = arith.constant 0 : index
    %207 = vector.load %arg4[%c51, %c0_259] : memref<72x256xf32, #tpu.memory_space<vmem>>, vector<1x256xf32>
    tpu.vector_store %arg4[%c51, %c0_259], %206 {strides = array<i32>} : memref<72x256xf32, #tpu.memory_space<vmem>>, vector<1x256xf32>,
    %c0_260 = arith.constant 0 : index
    %c6_261 = arith.constant 6 : index
    %c0_262 = arith.constant 0 : index
    %c27_263 = arith.constant 27 : index
    %208 = vector.load %arg1[%c0_260, %c6_261, %c0_262, %c27_263] : memref<1x8x1x384xbf16, #tpu.memory_space<vmem>>, vector<1x1x1x256xbf16>
    %209 = vector.shape_cast %208 : vector<1x1x1x256xbf16> to vector<1x256xbf16>
    %210 = arith.extf %209 : vector<1x256xbf16> to vector<1x256xf32>
    %c52 = arith.constant 52 : index
    %c0_264 = arith.constant 0 : index
    %211 = vector.load %arg4[%c52, %c0_264] : memref<72x256xf32, #tpu.memory_space<vmem>>, vector<1x256xf32>
    tpu.vector_store %arg4[%c52, %c0_264], %210 {strides = array<i32>} : memref<72x256xf32, #tpu.memory_space<vmem>>, vector<1x256xf32>,
    %c0_265 = arith.constant 0 : index
    %c7_266 = arith.constant 7 : index
    %c0_267 = arith.constant 0 : index
    %c27_268 = arith.constant 27 : index
    %212 = vector.load %arg1[%c0_265, %c7_266, %c0_267, %c27_268] : memref<1x8x1x384xbf16, #tpu.memory_space<vmem>>, vector<1x1x1x256xbf16>
    %213 = vector.shape_cast %212 : vector<1x1x1x256xbf16> to vector<1x256xbf16>
    %214 = arith.extf %213 : vector<1x256xbf16> to vector<1x256xf32>
    %c53 = arith.constant 53 : index
    %c0_269 = arith.constant 0 : index
    %215 = vector.load %arg4[%c53, %c0_269] : memref<72x256xf32, #tpu.memory_space<vmem>>, vector<1x256xf32>
    tpu.vector_store %arg4[%c53, %c0_269], %214 {strides = array<i32>} : memref<72x256xf32, #tpu.memory_space<vmem>>, vector<1x256xf32>,
    %c0_270 = arith.constant 0 : index
    %c6_271 = arith.constant 6 : index
    %c0_272 = arith.constant 0 : index
    %c28_273 = arith.constant 28 : index
    %216 = vector.load %arg1[%c0_270, %c6_271, %c0_272, %c28_273] : memref<1x8x1x384xbf16, #tpu.memory_space<vmem>>, vector<1x1x1x256xbf16>
    %217 = vector.shape_cast %216 : vector<1x1x1x256xbf16> to vector<1x256xbf16>
    %218 = arith.extf %217 : vector<1x256xbf16> to vector<1x256xf32>
    %c54 = arith.constant 54 : index
    %c0_274 = arith.constant 0 : index
    %219 = vector.load %arg4[%c54, %c0_274] : memref<72x256xf32, #tpu.memory_space<vmem>>, vector<1x256xf32>
    tpu.vector_store %arg4[%c54, %c0_274], %218 {strides = array<i32>} : memref<72x256xf32, #tpu.memory_space<vmem>>, vector<1x256xf32>,
    %c0_275 = arith.constant 0 : index
    %c7_276 = arith.constant 7 : index
    %c0_277 = arith.constant 0 : index
    %c28_278 = arith.constant 28 : index
    %220 = vector.load %arg1[%c0_275, %c7_276, %c0_277, %c28_278] : memref<1x8x1x384xbf16, #tpu.memory_space<vmem>>, vector<1x1x1x256xbf16>
    %221 = vector.shape_cast %220 : vector<1x1x1x256xbf16> to vector<1x256xbf16>
    %222 = arith.extf %221 : vector<1x256xbf16> to vector<1x256xf32>
    %c55 = arith.constant 55 : index
    %c0_279 = arith.constant 0 : index
    %223 = vector.load %arg4[%c55, %c0_279] : memref<72x256xf32, #tpu.memory_space<vmem>>, vector<1x256xf32>
    tpu.vector_store %arg4[%c55, %c0_279], %222 {strides = array<i32>} : memref<72x256xf32, #tpu.memory_space<vmem>>, vector<1x256xf32>,
    %c0_280 = arith.constant 0 : index
    %c4_281 = arith.constant 4 : index
    %c0_282 = arith.constant 0 : index
    %c36_283 = arith.constant 36 : index
    %224 = vector.load %arg1[%c0_280, %c4_281, %c0_282, %c36_283] : memref<1x8x1x384xbf16, #tpu.memory_space<vmem>>, vector<1x1x1x256xbf16>
    %225 = vector.shape_cast %224 : vector<1x1x1x256xbf16> to vector<1x256xbf16>
    %226 = arith.extf %225 : vector<1x256xbf16> to vector<1x256xf32>
    %c56 = arith.constant 56 : index
    %c0_284 = arith.constant 0 : index
    %227 = vector.load %arg4[%c56, %c0_284] : memref<72x256xf32, #tpu.memory_space<vmem>>, vector<1x256xf32>
    tpu.vector_store %arg4[%c56, %c0_284], %226 {strides = array<i32>} : memref<72x256xf32, #tpu.memory_space<vmem>>, vector<1x256xf32>,
    %c0_285 = arith.constant 0 : index
    %c5_286 = arith.constant 5 : index
    %c0_287 = arith.constant 0 : index
    %c36_288 = arith.constant 36 : index
    %228 = vector.load %arg1[%c0_285, %c5_286, %c0_287, %c36_288] : memref<1x8x1x384xbf16, #tpu.memory_space<vmem>>, vector<1x1x1x256xbf16>
    %229 = vector.shape_cast %228 : vector<1x1x1x256xbf16> to vector<1x256xbf16>
    %230 = arith.extf %229 : vector<1x256xbf16> to vector<1x256xf32>
    %c57 = arith.constant 57 : index
    %c0_289 = arith.constant 0 : index
    %231 = vector.load %arg4[%c57, %c0_289] : memref<72x256xf32, #tpu.memory_space<vmem>>, vector<1x256xf32>
    tpu.vector_store %arg4[%c57, %c0_289], %230 {strides = array<i32>} : memref<72x256xf32, #tpu.memory_space<vmem>>, vector<1x256xf32>,
    %c0_290 = arith.constant 0 : index
    %c4_291 = arith.constant 4 : index
    %c0_292 = arith.constant 0 : index
    %c37_293 = arith.constant 37 : index
    %232 = vector.load %arg1[%c0_290, %c4_291, %c0_292, %c37_293] : memref<1x8x1x384xbf16, #tpu.memory_space<vmem>>, vector<1x1x1x256xbf16>
    %233 = vector.shape_cast %232 : vector<1x1x1x256xbf16> to vector<1x256xbf16>
    %234 = arith.extf %233 : vector<1x256xbf16> to vector<1x256xf32>
    %c58 = arith.constant 58 : index
    %c0_294 = arith.constant 0 : index
    %235 = vector.load %arg4[%c58, %c0_294] : memref<72x256xf32, #tpu.memory_space<vmem>>, vector<1x256xf32>
    tpu.vector_store %arg4[%c58, %c0_294], %234 {strides = array<i32>} : memref<72x256xf32, #tpu.memory_space<vmem>>, vector<1x256xf32>,
    %c0_295 = arith.constant 0 : index
    %c5_296 = arith.constant 5 : index
    %c0_297 = arith.constant 0 : index
    %c37_298 = arith.constant 37 : index
    %236 = vector.load %arg1[%c0_295, %c5_296, %c0_297, %c37_298] : memref<1x8x1x384xbf16, #tpu.memory_space<vmem>>, vector<1x1x1x256xbf16>
    %237 = vector.shape_cast %236 : vector<1x1x1x256xbf16> to vector<1x256xbf16>
    %238 = arith.extf %237 : vector<1x256xbf16> to vector<1x256xf32>
    %c59 = arith.constant 59 : index
    %c0_299 = arith.constant 0 : index
    %239 = vector.load %arg4[%c59, %c0_299] : memref<72x256xf32, #tpu.memory_space<vmem>>, vector<1x256xf32>
    tpu.vector_store %arg4[%c59, %c0_299], %238 {strides = array<i32>} : memref<72x256xf32, #tpu.memory_space<vmem>>, vector<1x256xf32>,
    %c0_300 = arith.constant 0 : index
    %c6_301 = arith.constant 6 : index
    %c0_302 = arith.constant 0 : index
    %c36_303 = arith.constant 36 : index
    %240 = vector.load %arg1[%c0_300, %c6_301, %c0_302, %c36_303] : memref<1x8x1x384xbf16, #tpu.memory_space<vmem>>, vector<1x1x1x256xbf16>
    %241 = vector.shape_cast %240 : vector<1x1x1x256xbf16> to vector<1x256xbf16>
    %242 = arith.extf %241 : vector<1x256xbf16> to vector<1x256xf32>
    %c60 = arith.constant 60 : index
    %c0_304 = arith.constant 0 : index
    %243 = vector.load %arg4[%c60, %c0_304] : memref<72x256xf32, #tpu.memory_space<vmem>>, vector<1x256xf32>
    tpu.vector_store %arg4[%c60, %c0_304], %242 {strides = array<i32>} : memref<72x256xf32, #tpu.memory_space<vmem>>, vector<1x256xf32>,
    %c0_305 = arith.constant 0 : index
    %c7_306 = arith.constant 7 : index
    %c0_307 = arith.constant 0 : index
    %c36_308 = arith.constant 36 : index
    %244 = vector.load %arg1[%c0_305, %c7_306, %c0_307, %c36_308] : memref<1x8x1x384xbf16, #tpu.memory_space<vmem>>, vector<1x1x1x256xbf16>
    %245 = vector.shape_cast %244 : vector<1x1x1x256xbf16> to vector<1x256xbf16>
    %246 = arith.extf %245 : vector<1x256xbf16> to vector<1x256xf32>
    %c61 = arith.constant 61 : index
    %c0_309 = arith.constant 0 : index
    %247 = vector.load %arg4[%c61, %c0_309] : memref<72x256xf32, #tpu.memory_space<vmem>>, vector<1x256xf32>
    tpu.vector_store %arg4[%c61, %c0_309], %246 {strides = array<i32>} : memref<72x256xf32, #tpu.memory_space<vmem>>, vector<1x256xf32>,
    %c0_310 = arith.constant 0 : index
    %c6_311 = arith.constant 6 : index
    %c0_312 = arith.constant 0 : index
    %c37_313 = arith.constant 37 : index
    %248 = vector.load %arg1[%c0_310, %c6_311, %c0_312, %c37_313] : memref<1x8x1x384xbf16, #tpu.memory_space<vmem>>, vector<1x1x1x256xbf16>
    %249 = vector.shape_cast %248 : vector<1x1x1x256xbf16> to vector<1x256xbf16>
    %250 = arith.extf %249 : vector<1x256xbf16> to vector<1x256xf32>
    %c62 = arith.constant 62 : index
    %c0_314 = arith.constant 0 : index
    %251 = vector.load %arg4[%c62, %c0_314] : memref<72x256xf32, #tpu.memory_space<vmem>>, vector<1x256xf32>
    tpu.vector_store %arg4[%c62, %c0_314], %250 {strides = array<i32>} : memref<72x256xf32, #tpu.memory_space<vmem>>, vector<1x256xf32>,
    %c0_315 = arith.constant 0 : index
    %c7_316 = arith.constant 7 : index
    %c0_317 = arith.constant 0 : index
    %c37_318 = arith.constant 37 : index
    %252 = vector.load %arg1[%c0_315, %c7_316, %c0_317, %c37_318] : memref<1x8x1x384xbf16, #tpu.memory_space<vmem>>, vector<1x1x1x256xbf16>
    %253 = vector.shape_cast %252 : vector<1x1x1x256xbf16> to vector<1x256xbf16>
    %254 = arith.extf %253 : vector<1x256xbf16> to vector<1x256xf32>
    %c63 = arith.constant 63 : index
    %c0_319 = arith.constant 0 : index
    %255 = vector.load %arg4[%c63, %c0_319] : memref<72x256xf32, #tpu.memory_space<vmem>>, vector<1x256xf32>
    tpu.vector_store %arg4[%c63, %c0_319], %254 {strides = array<i32>} : memref<72x256xf32, #tpu.memory_space<vmem>>, vector<1x256xf32>,
    %cst = arith.constant 1.000000e+00 : f32
    %256 = vector.broadcast %cst : f32 to vector<8x256xf32>
    %c64 = arith.constant 64 : index
    %c0_320 = arith.constant 0 : index
    %257 = vector.load %arg4[%c64, %c0_320] : memref<72x256xf32, #tpu.memory_space<vmem>>, vector<8x256xf32>
    tpu.vector_store %arg4[%c64, %c0_320], %256 {strides = array<i32>} : memref<72x256xf32, #tpu.memory_space<vmem>>, vector<8x256xf32>,
    %c0_321 = arith.constant 0 : index
    %c0_322 = arith.constant 0 : index
    %258 = vector.load %arg4[%c0_321, %c0_322] : memref<72x256xf32, #tpu.memory_space<vmem>>, vector<72x256xf32>
    %259 = arith.truncf %258 : vector<72x256xf32> to vector<72x256xbf16>
    %c0_323 = arith.constant 0 : index
    %c0_324 = arith.constant 0 : index
    %c0_325 = arith.constant 0 : index
    %260 = vector.load %arg2[%c0_323, %c0_324, %c0_325] : memref<8x16x72xbf16, #tpu.memory_space<vmem>>, vector<1x16x72xbf16>
    %261 = vector.shape_cast %260 : vector<1x16x72xbf16> to vector<16x72xbf16>
    %cst_326 = arith.constant dense<0.000000e+00> : vector<16x256xf32>
    %262 = tpu.matmul %261, %259, %cst_326 {dimension_numbers = #tpu.dot_dimension_numbers<[1], [0], [0], [1], [0, 0, 1, 1], [], []>} : vector<16x72xbf16>, vector<72x256xbf16>, vector<16x256xf32> -> vector<16x256xf32>
    %c1_327 = arith.constant 1 : index
    %c0_328 = arith.constant 0 : index
    %c0_329 = arith.constant 0 : index
    %263 = vector.load %arg2[%c1_327, %c0_328, %c0_329] : memref<8x16x72xbf16, #tpu.memory_space<vmem>>, vector<1x16x72xbf16>
    %264 = vector.shape_cast %263 : vector<1x16x72xbf16> to vector<16x72xbf16>
    %cst_330 = arith.constant dense<0.000000e+00> : vector<16x256xf32>
    %265 = tpu.matmul %264, %259, %cst_330 {dimension_numbers = #tpu.dot_dimension_numbers<[1], [0], [0], [1], [0, 0, 1, 1], [], []>} : vector<16x72xbf16>, vector<72x256xbf16>, vector<16x256xf32> -> vector<16x256xf32>
    %266 = arith.maximumf %262, %265 : vector<16x256xf32>
    %c2_331 = arith.constant 2 : index
    %c0_332 = arith.constant 0 : index
    %c0_333 = arith.constant 0 : index
    %267 = vector.load %arg2[%c2_331, %c0_332, %c0_333] : memref<8x16x72xbf16, #tpu.memory_space<vmem>>, vector<1x16x72xbf16>
    %268 = vector.shape_cast %267 : vector<1x16x72xbf16> to vector<16x72xbf16>
    %cst_334 = arith.constant dense<0.000000e+00> : vector<16x256xf32>
    %269 = tpu.matmul %268, %259, %cst_334 {dimension_numbers = #tpu.dot_dimension_numbers<[1], [0], [0], [1], [0, 0, 1, 1], [], []>} : vector<16x72xbf16>, vector<72x256xbf16>, vector<16x256xf32> -> vector<16x256xf32>
    %270 = arith.maximumf %266, %269 : vector<16x256xf32>
    %c3_335 = arith.constant 3 : index
    %c0_336 = arith.constant 0 : index
    %c0_337 = arith.constant 0 : index
    %271 = vector.load %arg2[%c3_335, %c0_336, %c0_337] : memref<8x16x72xbf16, #tpu.memory_space<vmem>>, vector<1x16x72xbf16>
    %272 = vector.shape_cast %271 : vector<1x16x72xbf16> to vector<16x72xbf16>
    %cst_338 = arith.constant dense<0.000000e+00> : vector<16x256xf32>
    %273 = tpu.matmul %272, %259, %cst_338 {dimension_numbers = #tpu.dot_dimension_numbers<[1], [0], [0], [1], [0, 0, 1, 1], [], []>} : vector<16x72xbf16>, vector<72x256xbf16>, vector<16x256xf32> -> vector<16x256xf32>
    %274 = arith.maximumf %270, %273 : vector<16x256xf32>
    %c4_339 = arith.constant 4 : index
    %c0_340 = arith.constant 0 : index
    %c0_341 = arith.constant 0 : index
    %275 = vector.load %arg2[%c4_339, %c0_340, %c0_341] : memref<8x16x72xbf16, #tpu.memory_space<vmem>>, vector<1x16x72xbf16>
    %276 = vector.shape_cast %275 : vector<1x16x72xbf16> to vector<16x72xbf16>
    %cst_342 = arith.constant dense<0.000000e+00> : vector<16x256xf32>
    %277 = tpu.matmul %276, %259, %cst_342 {dimension_numbers = #tpu.dot_dimension_numbers<[1], [0], [0], [1], [0, 0, 1, 1], [], []>} : vector<16x72xbf16>, vector<72x256xbf16>, vector<16x256xf32> -> vector<16x256xf32>
    %278 = arith.maximumf %274, %277 : vector<16x256xf32>
    %c5_343 = arith.constant 5 : index
    %c0_344 = arith.constant 0 : index
    %c0_345 = arith.constant 0 : index
    %279 = vector.load %arg2[%c5_343, %c0_344, %c0_345] : memref<8x16x72xbf16, #tpu.memory_space<vmem>>, vector<1x16x72xbf16>
    %280 = vector.shape_cast %279 : vector<1x16x72xbf16> to vector<16x72xbf16>
    %cst_346 = arith.constant dense<0.000000e+00> : vector<16x256xf32>
    %281 = tpu.matmul %280, %259, %cst_346 {dimension_numbers = #tpu.dot_dimension_numbers<[1], [0], [0], [1], [0, 0, 1, 1], [], []>} : vector<16x72xbf16>, vector<72x256xbf16>, vector<16x256xf32> -> vector<16x256xf32>
    %282 = arith.maximumf %278, %281 : vector<16x256xf32>
    %c6_347 = arith.constant 6 : index
    %c0_348 = arith.constant 0 : index
    %c0_349 = arith.constant 0 : index
    %283 = vector.load %arg2[%c6_347, %c0_348, %c0_349] : memref<8x16x72xbf16, #tpu.memory_space<vmem>>, vector<1x16x72xbf16>
    %284 = vector.shape_cast %283 : vector<1x16x72xbf16> to vector<16x72xbf16>
    %cst_350 = arith.constant dense<0.000000e+00> : vector<16x256xf32>
    %285 = tpu.matmul %284, %259, %cst_350 {dimension_numbers = #tpu.dot_dimension_numbers<[1], [0], [0], [1], [0, 0, 1, 1], [], []>} : vector<16x72xbf16>, vector<72x256xbf16>, vector<16x256xf32> -> vector<16x256xf32>
    %286 = arith.maximumf %282, %285 : vector<16x256xf32>
    %c7_351 = arith.constant 7 : index
    %c0_352 = arith.constant 0 : index
    %c0_353 = arith.constant 0 : index
    %287 = vector.load %arg2[%c7_351, %c0_352, %c0_353] : memref<8x16x72xbf16, #tpu.memory_space<vmem>>, vector<1x16x72xbf16>
    %288 = vector.shape_cast %287 : vector<1x16x72xbf16> to vector<16x72xbf16>
    %cst_354 = arith.constant dense<0.000000e+00> : vector<16x256xf32>
    %289 = tpu.matmul %288, %259, %cst_354 {dimension_numbers = #tpu.dot_dimension_numbers<[1], [0], [0], [1], [0, 0, 1, 1], [], []>} : vector<16x72xbf16>, vector<72x256xbf16>, vector<16x256xf32> -> vector<16x256xf32>
    %290 = arith.maximumf %286, %289 : vector<16x256xf32>
    %cst_355 = arith.constant 0.000000e+00 : f32
    %291 = vector.broadcast %cst_355 : f32 to vector<16x256xf32>
    %292 = arith.maximumf %290, %291 : vector<16x256xf32>
    %c0_356 = arith.constant 0 : index
    %c0_357 = arith.constant 0 : index
    %c0_358 = arith.constant 0 : index
    %293 = vector.load %arg3[%c0_356, %c0_357, %c0_358] : memref<1x16x256xf32, #tpu.memory_space<vmem>>, vector<1x16x256xf32>
    %294 = vector.shape_cast %293 : vector<1x16x256xf32> to vector<16x256xf32>
    %295 = vector.shape_cast %292 : vector<16x256xf32> to vector<1x16x256xf32>
    tpu.vector_store %arg3[%c0_356, %c0_357, %c0_358], %295 {strides = array<i32>} : memref<1x16x256xf32, #tpu.memory_space<vmem>>, vector<1x16x256xf32>,
    return
  }
  func.func @transform_0(%arg0: i32) -> (i32, i32, i32, i32) {
    %c0_i32 = arith.constant 0 : i32
    %c0_i32_0 = arith.constant 0 : i32
    %c0_i32_1 = arith.constant 0 : i32
    %c0_i32_2 = arith.constant 0 : i32
    return %arg0, %c0_i32, %c0_i32_0, %c0_i32_1 : i32, i32, i32, i32
  }
  func.func @transform_1(%arg0: i32) -> (i32, i32, i32) {
    %c0_i32 = arith.constant 0 : i32
    %c0_i32_0 = arith.constant 0 : i32
    %c0_i32_1 = arith.constant 0 : i32
    %c0_i32_2 = arith.constant 0 : i32
    return %c0_i32, %c0_i32_0, %c0_i32_1 : i32, i32, i32
  }
  func.func @transform_2(%arg0: i32) -> (i32, i32, i32) {
    %c0_i32 = arith.constant 0 : i32
    %c0_i32_0 = arith.constant 0 : i32
    %c0_i32_1 = arith.constant 0 : i32
    return %arg0, %c0_i32, %c0_i32_0 : i32, i32, i32
  }
}

module attributes {stable_mosaic.version = 11 : i64} {
  func.func @_linear_kernel(%arg0: i32, %arg1: memref<2x512xf32, #tpu.memory_space<vmem>>, %arg2: memref<10x512xf32, #tpu.memory_space<vmem>>, %arg3: memref<1x10xf32, #tpu.memory_space<vmem>>, %arg4: memref<2x10xf32, #tpu.memory_space<vmem>>) attributes {dimension_semantics = [#tpu.dimension_semantics<arbitrary>], iteration_bounds = array<i64: 1>, scalar_prefetch = 0 : i64, scratch_operands = 0 : i64, tpu.core_type = #tpu.core_type<tc>, window_params = [{pipeline_mode = #tpu.pipeline_mode<synchronous>, transform_indices = @transform_0, window_bounds = array<i64: 2, 512>}, {pipeline_mode = #tpu.pipeline_mode<synchronous>, transform_indices = @transform_1, window_bounds = array<i64: 10, 512>}, {pipeline_mode = #tpu.pipeline_mode<synchronous>, transform_indices = @transform_2, window_bounds = array<i64: 1, 10>}, {pipeline_mode = #tpu.pipeline_mode<synchronous>, transform_indices = @transform_3, window_bounds = array<i64: 2, 10>}]} {
    %c0 = arith.constant 0 : index
    %c0_0 = arith.constant 0 : index
    %0 = vector.load %arg1[%c0, %c0_0] : memref<2x512xf32, #tpu.memory_space<vmem>>, vector<2x512xf32>
    %c0_1 = arith.constant 0 : index
    %c0_2 = arith.constant 0 : index
    %1 = vector.load %arg2[%c0_1, %c0_2] : memref<10x512xf32, #tpu.memory_space<vmem>>, vector<10x512xf32>
    %cst = arith.constant dense<0.000000e+00> : vector<2x10xf32>
    %2 = tpu.matmul %0, %1, %cst {dimension_numbers = #tpu.dot_dimension_numbers<[1], [1], [0], [0], [0, 0, 1, 0], [], []>} : vector<2x512xf32>, vector<10x512xf32>, vector<2x10xf32> -> vector<2x10xf32>
    %c0_3 = arith.constant 0 : index
    %c0_4 = arith.constant 0 : index
    %3 = vector.load %arg3[%c0_3, %c0_4] : memref<1x10xf32, #tpu.memory_space<vmem>>, vector<1x10xf32>
    %4 = vector.broadcast %3 : vector<1x10xf32> to vector<2x10xf32>
    %5 = arith.addf %2, %4 : vector<2x10xf32>
    %c0_5 = arith.constant 0 : index
    %c0_6 = arith.constant 0 : index
    %6 = vector.load %arg4[%c0_5, %c0_6] : memref<2x10xf32, #tpu.memory_space<vmem>>, vector<2x10xf32>
    tpu.vector_store %arg4[%c0_5, %c0_6], %5 {strides = array<i32>} : memref<2x10xf32, #tpu.memory_space<vmem>>, vector<2x10xf32>,
    return
  }
  func.func @transform_0(%arg0: i32) -> (i32, i32) {
    %c0_i32 = arith.constant 0 : i32
    %c0_i32_0 = arith.constant 0 : i32
    %c0_i32_1 = arith.constant 0 : i32
    return %c0_i32, %c0_i32_0 : i32, i32
  }
  func.func @transform_1(%arg0: i32) -> (i32, i32) {
    %c0_i32 = arith.constant 0 : i32
    %c0_i32_0 = arith.constant 0 : i32
    %c0_i32_1 = arith.constant 0 : i32
    return %c0_i32, %c0_i32_0 : i32, i32
  }
  func.func @transform_2(%arg0: i32) -> (i32, i32) {
    %c0_i32 = arith.constant 0 : i32
    %c0_i32_0 = arith.constant 0 : i32
    %c0_i32_1 = arith.constant 0 : i32
    return %c0_i32, %c0_i32_0 : i32, i32
  }
  func.func @transform_3(%arg0: i32) -> (i32, i32) {
    %c0_i32 = arith.constant 0 : i32
    %c0_i32_0 = arith.constant 0 : i32
    %c0_i32_1 = arith.constant 0 : i32
    return %c0_i32, %c0_i32_0 : i32, i32
  }
}

module attributes {stable_mosaic.version = 11 : i64} {
  func.func @_conv_relu_pool_kernel(%arg0: i32, %arg1: memref<1x8x16x256xbf16, #tpu.memory_space<vmem>>, %arg2: memref<8x32x1032xbf16, #tpu.memory_space<vmem>>, %arg3: memref<1x32x128xf32, #tpu.memory_space<vmem>>, %arg4: memref<1032x128xbf16, #tpu.memory_space<vmem>>) attributes {dimension_semantics = [#tpu.dimension_semantics<parallel>], iteration_bounds = array<i64: 2>, scalar_prefetch = 0 : i64, scratch_operands = 1 : i64, tpu.core_type = #tpu.core_type<tc>, window_params = [{transform_indices = @transform_0, window_bounds = array<i64: 1, 8, 16, 256>}, {pipeline_mode = #tpu.pipeline_mode<synchronous>, transform_indices = @transform_1, window_bounds = array<i64: 8, 32, 1032>}, {transform_indices = @transform_2, window_bounds = array<i64: 1, 32, 128>}]} {
    %c0 = arith.constant 0 : index
    %c0_0 = arith.constant 0 : index
    %c0_1 = arith.constant 0 : index
    %c0_2 = arith.constant 0 : index
    %0 = vector.load %arg1[%c0, %c0_0, %c0_1, %c0_2] : memref<1x8x16x256xbf16, #tpu.memory_space<vmem>>, vector<1x1x16x128xbf16>
    %1 = vector.shape_cast %0 : vector<1x1x16x128xbf16> to vector<16x128xbf16>
    %c0_3 = arith.constant 0 : index
    %c0_4 = arith.constant 0 : index
    %2 = vector.load %arg4[%c0_3, %c0_4] : memref<1032x128xbf16, #tpu.memory_space<vmem>>, vector<16x128xbf16>
    tpu.vector_store %arg4[%c0_3, %c0_4], %1 {strides = array<i32>} : memref<1032x128xbf16, #tpu.memory_space<vmem>>, vector<16x128xbf16>,
    %c0_5 = arith.constant 0 : index
    %c1 = arith.constant 1 : index
    %c0_6 = arith.constant 0 : index
    %c0_7 = arith.constant 0 : index
    %3 = vector.load %arg1[%c0_5, %c1, %c0_6, %c0_7] : memref<1x8x16x256xbf16, #tpu.memory_space<vmem>>, vector<1x1x16x128xbf16>
    %4 = vector.shape_cast %3 : vector<1x1x16x128xbf16> to vector<16x128xbf16>
    %c16 = arith.constant 16 : index
    %c0_8 = arith.constant 0 : index
    %5 = vector.load %arg4[%c16, %c0_8] : memref<1032x128xbf16, #tpu.memory_space<vmem>>, vector<16x128xbf16>
    tpu.vector_store %arg4[%c16, %c0_8], %4 {strides = array<i32>} : memref<1032x128xbf16, #tpu.memory_space<vmem>>, vector<16x128xbf16>,
    %c0_9 = arith.constant 0 : index
    %c0_10 = arith.constant 0 : index
    %c0_11 = arith.constant 0 : index
    %c1_12 = arith.constant 1 : index
    %6 = vector.load %arg1[%c0_9, %c0_10, %c0_11, %c1_12] : memref<1x8x16x256xbf16, #tpu.memory_space<vmem>>, vector<1x1x16x128xbf16>
    %7 = vector.shape_cast %6 : vector<1x1x16x128xbf16> to vector<16x128xbf16>
    %c32 = arith.constant 32 : index
    %c0_13 = arith.constant 0 : index
    %8 = vector.load %arg4[%c32, %c0_13] : memref<1032x128xbf16, #tpu.memory_space<vmem>>, vector<16x128xbf16>
    tpu.vector_store %arg4[%c32, %c0_13], %7 {strides = array<i32>} : memref<1032x128xbf16, #tpu.memory_space<vmem>>, vector<16x128xbf16>,
    %c0_14 = arith.constant 0 : index
    %c1_15 = arith.constant 1 : index
    %c0_16 = arith.constant 0 : index
    %c1_17 = arith.constant 1 : index
    %9 = vector.load %arg1[%c0_14, %c1_15, %c0_16, %c1_17] : memref<1x8x16x256xbf16, #tpu.memory_space<vmem>>, vector<1x1x16x128xbf16>
    %10 = vector.shape_cast %9 : vector<1x1x16x128xbf16> to vector<16x128xbf16>
    %c48 = arith.constant 48 : index
    %c0_18 = arith.constant 0 : index
    %11 = vector.load %arg4[%c48, %c0_18] : memref<1032x128xbf16, #tpu.memory_space<vmem>>, vector<16x128xbf16>
    tpu.vector_store %arg4[%c48, %c0_18], %10 {strides = array<i32>} : memref<1032x128xbf16, #tpu.memory_space<vmem>>, vector<16x128xbf16>,
    %c0_19 = arith.constant 0 : index
    %c2 = arith.constant 2 : index
    %c0_20 = arith.constant 0 : index
    %c0_21 = arith.constant 0 : index
    %12 = vector.load %arg1[%c0_19, %c2, %c0_20, %c0_21] : memref<1x8x16x256xbf16, #tpu.memory_space<vmem>>, vector<1x1x16x128xbf16>
    %13 = vector.shape_cast %12 : vector<1x1x16x128xbf16> to vector<16x128xbf16>
    %c64 = arith.constant 64 : index
    %c0_22 = arith.constant 0 : index
    %14 = vector.load %arg4[%c64, %c0_22] : memref<1032x128xbf16, #tpu.memory_space<vmem>>, vector<16x128xbf16>
    tpu.vector_store %arg4[%c64, %c0_22], %13 {strides = array<i32>} : memref<1032x128xbf16, #tpu.memory_space<vmem>>, vector<16x128xbf16>,
    %c0_23 = arith.constant 0 : index
    %c3 = arith.constant 3 : index
    %c0_24 = arith.constant 0 : index
    %c0_25 = arith.constant 0 : index
    %15 = vector.load %arg1[%c0_23, %c3, %c0_24, %c0_25] : memref<1x8x16x256xbf16, #tpu.memory_space<vmem>>, vector<1x1x16x128xbf16>
    %16 = vector.shape_cast %15 : vector<1x1x16x128xbf16> to vector<16x128xbf16>
    %c80 = arith.constant 80 : index
    %c0_26 = arith.constant 0 : index
    %17 = vector.load %arg4[%c80, %c0_26] : memref<1032x128xbf16, #tpu.memory_space<vmem>>, vector<16x128xbf16>
    tpu.vector_store %arg4[%c80, %c0_26], %16 {strides = array<i32>} : memref<1032x128xbf16, #tpu.memory_space<vmem>>, vector<16x128xbf16>,
    %c0_27 = arith.constant 0 : index
    %c2_28 = arith.constant 2 : index
    %c0_29 = arith.constant 0 : index
    %c1_30 = arith.constant 1 : index
    %18 = vector.load %arg1[%c0_27, %c2_28, %c0_29, %c1_30] : memref<1x8x16x256xbf16, #tpu.memory_space<vmem>>, vector<1x1x16x128xbf16>
    %19 = vector.shape_cast %18 : vector<1x1x16x128xbf16> to vector<16x128xbf16>
    %c96 = arith.constant 96 : index
    %c0_31 = arith.constant 0 : index
    %20 = vector.load %arg4[%c96, %c0_31] : memref<1032x128xbf16, #tpu.memory_space<vmem>>, vector<16x128xbf16>
    tpu.vector_store %arg4[%c96, %c0_31], %19 {strides = array<i32>} : memref<1032x128xbf16, #tpu.memory_space<vmem>>, vector<16x128xbf16>,
    %c0_32 = arith.constant 0 : index
    %c3_33 = arith.constant 3 : index
    %c0_34 = arith.constant 0 : index
    %c1_35 = arith.constant 1 : index
    %21 = vector.load %arg1[%c0_32, %c3_33, %c0_34, %c1_35] : memref<1x8x16x256xbf16, #tpu.memory_space<vmem>>, vector<1x1x16x128xbf16>
    %22 = vector.shape_cast %21 : vector<1x1x16x128xbf16> to vector<16x128xbf16>
    %c112 = arith.constant 112 : index
    %c0_36 = arith.constant 0 : index
    %23 = vector.load %arg4[%c112, %c0_36] : memref<1032x128xbf16, #tpu.memory_space<vmem>>, vector<16x128xbf16>
    tpu.vector_store %arg4[%c112, %c0_36], %22 {strides = array<i32>} : memref<1032x128xbf16, #tpu.memory_space<vmem>>, vector<16x128xbf16>,
    %c0_37 = arith.constant 0 : index
    %c0_38 = arith.constant 0 : index
    %c0_39 = arith.constant 0 : index
    %c5 = arith.constant 5 : index
    %24 = vector.load %arg1[%c0_37, %c0_38, %c0_39, %c5] : memref<1x8x16x256xbf16, #tpu.memory_space<vmem>>, vector<1x1x16x128xbf16>
    %25 = vector.shape_cast %24 : vector<1x1x16x128xbf16> to vector<16x128xbf16>
    %c128 = arith.constant 128 : index
    %c0_40 = arith.constant 0 : index
    %26 = vector.load %arg4[%c128, %c0_40] : memref<1032x128xbf16, #tpu.memory_space<vmem>>, vector<16x128xbf16>
    tpu.vector_store %arg4[%c128, %c0_40], %25 {strides = array<i32>} : memref<1032x128xbf16, #tpu.memory_space<vmem>>, vector<16x128xbf16>,
    %c0_41 = arith.constant 0 : index
    %c1_42 = arith.constant 1 : index
    %c0_43 = arith.constant 0 : index
    %c5_44 = arith.constant 5 : index
    %27 = vector.load %arg1[%c0_41, %c1_42, %c0_43, %c5_44] : memref<1x8x16x256xbf16, #tpu.memory_space<vmem>>, vector<1x1x16x128xbf16>
    %28 = vector.shape_cast %27 : vector<1x1x16x128xbf16> to vector<16x128xbf16>
    %c144 = arith.constant 144 : index
    %c0_45 = arith.constant 0 : index
    %29 = vector.load %arg4[%c144, %c0_45] : memref<1032x128xbf16, #tpu.memory_space<vmem>>, vector<16x128xbf16>
    tpu.vector_store %arg4[%c144, %c0_45], %28 {strides = array<i32>} : memref<1032x128xbf16, #tpu.memory_space<vmem>>, vector<16x128xbf16>,
    %c0_46 = arith.constant 0 : index
    %c0_47 = arith.constant 0 : index
    %c0_48 = arith.constant 0 : index
    %c6 = arith.constant 6 : index
    %30 = vector.load %arg1[%c0_46, %c0_47, %c0_48, %c6] : memref<1x8x16x256xbf16, #tpu.memory_space<vmem>>, vector<1x1x16x128xbf16>
    %31 = vector.shape_cast %30 : vector<1x1x16x128xbf16> to vector<16x128xbf16>
    %c160 = arith.constant 160 : index
    %c0_49 = arith.constant 0 : index
    %32 = vector.load %arg4[%c160, %c0_49] : memref<1032x128xbf16, #tpu.memory_space<vmem>>, vector<16x128xbf16>
    tpu.vector_store %arg4[%c160, %c0_49], %31 {strides = array<i32>} : memref<1032x128xbf16, #tpu.memory_space<vmem>>, vector<16x128xbf16>,
    %c0_50 = arith.constant 0 : index
    %c1_51 = arith.constant 1 : index
    %c0_52 = arith.constant 0 : index
    %c6_53 = arith.constant 6 : index
    %33 = vector.load %arg1[%c0_50, %c1_51, %c0_52, %c6_53] : memref<1x8x16x256xbf16, #tpu.memory_space<vmem>>, vector<1x1x16x128xbf16>
    %34 = vector.shape_cast %33 : vector<1x1x16x128xbf16> to vector<16x128xbf16>
    %c176 = arith.constant 176 : index
    %c0_54 = arith.constant 0 : index
    %35 = vector.load %arg4[%c176, %c0_54] : memref<1032x128xbf16, #tpu.memory_space<vmem>>, vector<16x128xbf16>
    tpu.vector_store %arg4[%c176, %c0_54], %34 {strides = array<i32>} : memref<1032x128xbf16, #tpu.memory_space<vmem>>, vector<16x128xbf16>,
    %c0_55 = arith.constant 0 : index
    %c2_56 = arith.constant 2 : index
    %c0_57 = arith.constant 0 : index
    %c5_58 = arith.constant 5 : index
    %36 = vector.load %arg1[%c0_55, %c2_56, %c0_57, %c5_58] : memref<1x8x16x256xbf16, #tpu.memory_space<vmem>>, vector<1x1x16x128xbf16>
    %37 = vector.shape_cast %36 : vector<1x1x16x128xbf16> to vector<16x128xbf16>
    %c192 = arith.constant 192 : index
    %c0_59 = arith.constant 0 : index
    %38 = vector.load %arg4[%c192, %c0_59] : memref<1032x128xbf16, #tpu.memory_space<vmem>>, vector<16x128xbf16>
    tpu.vector_store %arg4[%c192, %c0_59], %37 {strides = array<i32>} : memref<1032x128xbf16, #tpu.memory_space<vmem>>, vector<16x128xbf16>,
    %c0_60 = arith.constant 0 : index
    %c3_61 = arith.constant 3 : index
    %c0_62 = arith.constant 0 : index
    %c5_63 = arith.constant 5 : index
    %39 = vector.load %arg1[%c0_60, %c3_61, %c0_62, %c5_63] : memref<1x8x16x256xbf16, #tpu.memory_space<vmem>>, vector<1x1x16x128xbf16>
    %40 = vector.shape_cast %39 : vector<1x1x16x128xbf16> to vector<16x128xbf16>
    %c208 = arith.constant 208 : index
    %c0_64 = arith.constant 0 : index
    %41 = vector.load %arg4[%c208, %c0_64] : memref<1032x128xbf16, #tpu.memory_space<vmem>>, vector<16x128xbf16>
    tpu.vector_store %arg4[%c208, %c0_64], %40 {strides = array<i32>} : memref<1032x128xbf16, #tpu.memory_space<vmem>>, vector<16x128xbf16>,
    %c0_65 = arith.constant 0 : index
    %c2_66 = arith.constant 2 : index
    %c0_67 = arith.constant 0 : index
    %c6_68 = arith.constant 6 : index
    %42 = vector.load %arg1[%c0_65, %c2_66, %c0_67, %c6_68] : memref<1x8x16x256xbf16, #tpu.memory_space<vmem>>, vector<1x1x16x128xbf16>
    %43 = vector.shape_cast %42 : vector<1x1x16x128xbf16> to vector<16x128xbf16>
    %c224 = arith.constant 224 : index
    %c0_69 = arith.constant 0 : index
    %44 = vector.load %arg4[%c224, %c0_69] : memref<1032x128xbf16, #tpu.memory_space<vmem>>, vector<16x128xbf16>
    tpu.vector_store %arg4[%c224, %c0_69], %43 {strides = array<i32>} : memref<1032x128xbf16, #tpu.memory_space<vmem>>, vector<16x128xbf16>,
    %c0_70 = arith.constant 0 : index
    %c3_71 = arith.constant 3 : index
    %c0_72 = arith.constant 0 : index
    %c6_73 = arith.constant 6 : index
    %45 = vector.load %arg1[%c0_70, %c3_71, %c0_72, %c6_73] : memref<1x8x16x256xbf16, #tpu.memory_space<vmem>>, vector<1x1x16x128xbf16>
    %46 = vector.shape_cast %45 : vector<1x1x16x128xbf16> to vector<16x128xbf16>
    %c240 = arith.constant 240 : index
    %c0_74 = arith.constant 0 : index
    %47 = vector.load %arg4[%c240, %c0_74] : memref<1032x128xbf16, #tpu.memory_space<vmem>>, vector<16x128xbf16>
    tpu.vector_store %arg4[%c240, %c0_74], %46 {strides = array<i32>} : memref<1032x128xbf16, #tpu.memory_space<vmem>>, vector<16x128xbf16>,
    %c0_75 = arith.constant 0 : index
    %c4 = arith.constant 4 : index
    %c0_76 = arith.constant 0 : index
    %c0_77 = arith.constant 0 : index
    %48 = vector.load %arg1[%c0_75, %c4, %c0_76, %c0_77] : memref<1x8x16x256xbf16, #tpu.memory_space<vmem>>, vector<1x1x16x128xbf16>
    %49 = vector.shape_cast %48 : vector<1x1x16x128xbf16> to vector<16x128xbf16>
    %c256 = arith.constant 256 : index
    %c0_78 = arith.constant 0 : index
    %50 = vector.load %arg4[%c256, %c0_78] : memref<1032x128xbf16, #tpu.memory_space<vmem>>, vector<16x128xbf16>
    tpu.vector_store %arg4[%c256, %c0_78], %49 {strides = array<i32>} : memref<1032x128xbf16, #tpu.memory_space<vmem>>, vector<16x128xbf16>,
    %c0_79 = arith.constant 0 : index
    %c5_80 = arith.constant 5 : index
    %c0_81 = arith.constant 0 : index
    %c0_82 = arith.constant 0 : index
    %51 = vector.load %arg1[%c0_79, %c5_80, %c0_81, %c0_82] : memref<1x8x16x256xbf16, #tpu.memory_space<vmem>>, vector<1x1x16x128xbf16>
    %52 = vector.shape_cast %51 : vector<1x1x16x128xbf16> to vector<16x128xbf16>
    %c272 = arith.constant 272 : index
    %c0_83 = arith.constant 0 : index
    %53 = vector.load %arg4[%c272, %c0_83] : memref<1032x128xbf16, #tpu.memory_space<vmem>>, vector<16x128xbf16>
    tpu.vector_store %arg4[%c272, %c0_83], %52 {strides = array<i32>} : memref<1032x128xbf16, #tpu.memory_space<vmem>>, vector<16x128xbf16>,
    %c0_84 = arith.constant 0 : index
    %c4_85 = arith.constant 4 : index
    %c0_86 = arith.constant 0 : index
    %c1_87 = arith.constant 1 : index
    %54 = vector.load %arg1[%c0_84, %c4_85, %c0_86, %c1_87] : memref<1x8x16x256xbf16, #tpu.memory_space<vmem>>, vector<1x1x16x128xbf16>
    %55 = vector.shape_cast %54 : vector<1x1x16x128xbf16> to vector<16x128xbf16>
    %c288 = arith.constant 288 : index
    %c0_88 = arith.constant 0 : index
    %56 = vector.load %arg4[%c288, %c0_88] : memref<1032x128xbf16, #tpu.memory_space<vmem>>, vector<16x128xbf16>
    tpu.vector_store %arg4[%c288, %c0_88], %55 {strides = array<i32>} : memref<1032x128xbf16, #tpu.memory_space<vmem>>, vector<16x128xbf16>,
    %c0_89 = arith.constant 0 : index
    %c5_90 = arith.constant 5 : index
    %c0_91 = arith.constant 0 : index
    %c1_92 = arith.constant 1 : index
    %57 = vector.load %arg1[%c0_89, %c5_90, %c0_91, %c1_92] : memref<1x8x16x256xbf16, #tpu.memory_space<vmem>>, vector<1x1x16x128xbf16>
    %58 = vector.shape_cast %57 : vector<1x1x16x128xbf16> to vector<16x128xbf16>
    %c304 = arith.constant 304 : index
    %c0_93 = arith.constant 0 : index
    %59 = vector.load %arg4[%c304, %c0_93] : memref<1032x128xbf16, #tpu.memory_space<vmem>>, vector<16x128xbf16>
    tpu.vector_store %arg4[%c304, %c0_93], %58 {strides = array<i32>} : memref<1032x128xbf16, #tpu.memory_space<vmem>>, vector<16x128xbf16>,
    %c0_94 = arith.constant 0 : index
    %c6_95 = arith.constant 6 : index
    %c0_96 = arith.constant 0 : index
    %c0_97 = arith.constant 0 : index
    %60 = vector.load %arg1[%c0_94, %c6_95, %c0_96, %c0_97] : memref<1x8x16x256xbf16, #tpu.memory_space<vmem>>, vector<1x1x16x128xbf16>
    %61 = vector.shape_cast %60 : vector<1x1x16x128xbf16> to vector<16x128xbf16>
    %c320 = arith.constant 320 : index
    %c0_98 = arith.constant 0 : index
    %62 = vector.load %arg4[%c320, %c0_98] : memref<1032x128xbf16, #tpu.memory_space<vmem>>, vector<16x128xbf16>
    tpu.vector_store %arg4[%c320, %c0_98], %61 {strides = array<i32>} : memref<1032x128xbf16, #tpu.memory_space<vmem>>, vector<16x128xbf16>,
    %c0_99 = arith.constant 0 : index
    %c7 = arith.constant 7 : index
    %c0_100 = arith.constant 0 : index
    %c0_101 = arith.constant 0 : index
    %63 = vector.load %arg1[%c0_99, %c7, %c0_100, %c0_101] : memref<1x8x16x256xbf16, #tpu.memory_space<vmem>>, vector<1x1x16x128xbf16>
    %64 = vector.shape_cast %63 : vector<1x1x16x128xbf16> to vector<16x128xbf16>
    %c336 = arith.constant 336 : index
    %c0_102 = arith.constant 0 : index
    %65 = vector.load %arg4[%c336, %c0_102] : memref<1032x128xbf16, #tpu.memory_space<vmem>>, vector<16x128xbf16>
    tpu.vector_store %arg4[%c336, %c0_102], %64 {strides = array<i32>} : memref<1032x128xbf16, #tpu.memory_space<vmem>>, vector<16x128xbf16>,
    %c0_103 = arith.constant 0 : index
    %c6_104 = arith.constant 6 : index
    %c0_105 = arith.constant 0 : index
    %c1_106 = arith.constant 1 : index
    %66 = vector.load %arg1[%c0_103, %c6_104, %c0_105, %c1_106] : memref<1x8x16x256xbf16, #tpu.memory_space<vmem>>, vector<1x1x16x128xbf16>
    %67 = vector.shape_cast %66 : vector<1x1x16x128xbf16> to vector<16x128xbf16>
    %c352 = arith.constant 352 : index
    %c0_107 = arith.constant 0 : index
    %68 = vector.load %arg4[%c352, %c0_107] : memref<1032x128xbf16, #tpu.memory_space<vmem>>, vector<16x128xbf16>
    tpu.vector_store %arg4[%c352, %c0_107], %67 {strides = array<i32>} : memref<1032x128xbf16, #tpu.memory_space<vmem>>, vector<16x128xbf16>,
    %c0_108 = arith.constant 0 : index
    %c7_109 = arith.constant 7 : index
    %c0_110 = arith.constant 0 : index
    %c1_111 = arith.constant 1 : index
    %69 = vector.load %arg1[%c0_108, %c7_109, %c0_110, %c1_111] : memref<1x8x16x256xbf16, #tpu.memory_space<vmem>>, vector<1x1x16x128xbf16>
    %70 = vector.shape_cast %69 : vector<1x1x16x128xbf16> to vector<16x128xbf16>
    %c368 = arith.constant 368 : index
    %c0_112 = arith.constant 0 : index
    %71 = vector.load %arg4[%c368, %c0_112] : memref<1032x128xbf16, #tpu.memory_space<vmem>>, vector<16x128xbf16>
    tpu.vector_store %arg4[%c368, %c0_112], %70 {strides = array<i32>} : memref<1032x128xbf16, #tpu.memory_space<vmem>>, vector<16x128xbf16>,
    %c0_113 = arith.constant 0 : index
    %c4_114 = arith.constant 4 : index
    %c0_115 = arith.constant 0 : index
    %c5_116 = arith.constant 5 : index
    %72 = vector.load %arg1[%c0_113, %c4_114, %c0_115, %c5_116] : memref<1x8x16x256xbf16, #tpu.memory_space<vmem>>, vector<1x1x16x128xbf16>
    %73 = vector.shape_cast %72 : vector<1x1x16x128xbf16> to vector<16x128xbf16>
    %c384 = arith.constant 384 : index
    %c0_117 = arith.constant 0 : index
    %74 = vector.load %arg4[%c384, %c0_117] : memref<1032x128xbf16, #tpu.memory_space<vmem>>, vector<16x128xbf16>
    tpu.vector_store %arg4[%c384, %c0_117], %73 {strides = array<i32>} : memref<1032x128xbf16, #tpu.memory_space<vmem>>, vector<16x128xbf16>,
    %c0_118 = arith.constant 0 : index
    %c5_119 = arith.constant 5 : index
    %c0_120 = arith.constant 0 : index
    %c5_121 = arith.constant 5 : index
    %75 = vector.load %arg1[%c0_118, %c5_119, %c0_120, %c5_121] : memref<1x8x16x256xbf16, #tpu.memory_space<vmem>>, vector<1x1x16x128xbf16>
    %76 = vector.shape_cast %75 : vector<1x1x16x128xbf16> to vector<16x128xbf16>
    %c400 = arith.constant 400 : index
    %c0_122 = arith.constant 0 : index
    %77 = vector.load %arg4[%c400, %c0_122] : memref<1032x128xbf16, #tpu.memory_space<vmem>>, vector<16x128xbf16>
    tpu.vector_store %arg4[%c400, %c0_122], %76 {strides = array<i32>} : memref<1032x128xbf16, #tpu.memory_space<vmem>>, vector<16x128xbf16>,
    %c0_123 = arith.constant 0 : index
    %c4_124 = arith.constant 4 : index
    %c0_125 = arith.constant 0 : index
    %c6_126 = arith.constant 6 : index
    %78 = vector.load %arg1[%c0_123, %c4_124, %c0_125, %c6_126] : memref<1x8x16x256xbf16, #tpu.memory_space<vmem>>, vector<1x1x16x128xbf16>
    %79 = vector.shape_cast %78 : vector<1x1x16x128xbf16> to vector<16x128xbf16>
    %c416 = arith.constant 416 : index
    %c0_127 = arith.constant 0 : index
    %80 = vector.load %arg4[%c416, %c0_127] : memref<1032x128xbf16, #tpu.memory_space<vmem>>, vector<16x128xbf16>
    tpu.vector_store %arg4[%c416, %c0_127], %79 {strides = array<i32>} : memref<1032x128xbf16, #tpu.memory_space<vmem>>, vector<16x128xbf16>,
    %c0_128 = arith.constant 0 : index
    %c5_129 = arith.constant 5 : index
    %c0_130 = arith.constant 0 : index
    %c6_131 = arith.constant 6 : index
    %81 = vector.load %arg1[%c0_128, %c5_129, %c0_130, %c6_131] : memref<1x8x16x256xbf16, #tpu.memory_space<vmem>>, vector<1x1x16x128xbf16>
    %82 = vector.shape_cast %81 : vector<1x1x16x128xbf16> to vector<16x128xbf16>
    %c432 = arith.constant 432 : index
    %c0_132 = arith.constant 0 : index
    %83 = vector.load %arg4[%c432, %c0_132] : memref<1032x128xbf16, #tpu.memory_space<vmem>>, vector<16x128xbf16>
    tpu.vector_store %arg4[%c432, %c0_132], %82 {strides = array<i32>} : memref<1032x128xbf16, #tpu.memory_space<vmem>>, vector<16x128xbf16>,
    %c0_133 = arith.constant 0 : index
    %c6_134 = arith.constant 6 : index
    %c0_135 = arith.constant 0 : index
    %c5_136 = arith.constant 5 : index
    %84 = vector.load %arg1[%c0_133, %c6_134, %c0_135, %c5_136] : memref<1x8x16x256xbf16, #tpu.memory_space<vmem>>, vector<1x1x16x128xbf16>
    %85 = vector.shape_cast %84 : vector<1x1x16x128xbf16> to vector<16x128xbf16>
    %c448 = arith.constant 448 : index
    %c0_137 = arith.constant 0 : index
    %86 = vector.load %arg4[%c448, %c0_137] : memref<1032x128xbf16, #tpu.memory_space<vmem>>, vector<16x128xbf16>
    tpu.vector_store %arg4[%c448, %c0_137], %85 {strides = array<i32>} : memref<1032x128xbf16, #tpu.memory_space<vmem>>, vector<16x128xbf16>,
    %c0_138 = arith.constant 0 : index
    %c7_139 = arith.constant 7 : index
    %c0_140 = arith.constant 0 : index
    %c5_141 = arith.constant 5 : index
    %87 = vector.load %arg1[%c0_138, %c7_139, %c0_140, %c5_141] : memref<1x8x16x256xbf16, #tpu.memory_space<vmem>>, vector<1x1x16x128xbf16>
    %88 = vector.shape_cast %87 : vector<1x1x16x128xbf16> to vector<16x128xbf16>
    %c464 = arith.constant 464 : index
    %c0_142 = arith.constant 0 : index
    %89 = vector.load %arg4[%c464, %c0_142] : memref<1032x128xbf16, #tpu.memory_space<vmem>>, vector<16x128xbf16>
    tpu.vector_store %arg4[%c464, %c0_142], %88 {strides = array<i32>} : memref<1032x128xbf16, #tpu.memory_space<vmem>>, vector<16x128xbf16>,
    %c0_143 = arith.constant 0 : index
    %c6_144 = arith.constant 6 : index
    %c0_145 = arith.constant 0 : index
    %c6_146 = arith.constant 6 : index
    %90 = vector.load %arg1[%c0_143, %c6_144, %c0_145, %c6_146] : memref<1x8x16x256xbf16, #tpu.memory_space<vmem>>, vector<1x1x16x128xbf16>
    %91 = vector.shape_cast %90 : vector<1x1x16x128xbf16> to vector<16x128xbf16>
    %c480 = arith.constant 480 : index
    %c0_147 = arith.constant 0 : index
    %92 = vector.load %arg4[%c480, %c0_147] : memref<1032x128xbf16, #tpu.memory_space<vmem>>, vector<16x128xbf16>
    tpu.vector_store %arg4[%c480, %c0_147], %91 {strides = array<i32>} : memref<1032x128xbf16, #tpu.memory_space<vmem>>, vector<16x128xbf16>,
    %c0_148 = arith.constant 0 : index
    %c7_149 = arith.constant 7 : index
    %c0_150 = arith.constant 0 : index
    %c6_151 = arith.constant 6 : index
    %93 = vector.load %arg1[%c0_148, %c7_149, %c0_150, %c6_151] : memref<1x8x16x256xbf16, #tpu.memory_space<vmem>>, vector<1x1x16x128xbf16>
    %94 = vector.shape_cast %93 : vector<1x1x16x128xbf16> to vector<16x128xbf16>
    %c496 = arith.constant 496 : index
    %c0_152 = arith.constant 0 : index
    %95 = vector.load %arg4[%c496, %c0_152] : memref<1032x128xbf16, #tpu.memory_space<vmem>>, vector<16x128xbf16>
    tpu.vector_store %arg4[%c496, %c0_152], %94 {strides = array<i32>} : memref<1032x128xbf16, #tpu.memory_space<vmem>>, vector<16x128xbf16>,
    %c0_153 = arith.constant 0 : index
    %c0_154 = arith.constant 0 : index
    %c0_155 = arith.constant 0 : index
    %c10 = arith.constant 10 : index
    %96 = vector.load %arg1[%c0_153, %c0_154, %c0_155, %c10] : memref<1x8x16x256xbf16, #tpu.memory_space<vmem>>, vector<1x1x16x128xbf16>
    %97 = vector.shape_cast %96 : vector<1x1x16x128xbf16> to vector<16x128xbf16>
    %c512 = arith.constant 512 : index
    %c0_156 = arith.constant 0 : index
    %98 = vector.load %arg4[%c512, %c0_156] : memref<1032x128xbf16, #tpu.memory_space<vmem>>, vector<16x128xbf16>
    tpu.vector_store %arg4[%c512, %c0_156], %97 {strides = array<i32>} : memref<1032x128xbf16, #tpu.memory_space<vmem>>, vector<16x128xbf16>,
    %c0_157 = arith.constant 0 : index
    %c1_158 = arith.constant 1 : index
    %c0_159 = arith.constant 0 : index
    %c10_160 = arith.constant 10 : index
    %99 = vector.load %arg1[%c0_157, %c1_158, %c0_159, %c10_160] : memref<1x8x16x256xbf16, #tpu.memory_space<vmem>>, vector<1x1x16x128xbf16>
    %100 = vector.shape_cast %99 : vector<1x1x16x128xbf16> to vector<16x128xbf16>
    %c528 = arith.constant 528 : index
    %c0_161 = arith.constant 0 : index
    %101 = vector.load %arg4[%c528, %c0_161] : memref<1032x128xbf16, #tpu.memory_space<vmem>>, vector<16x128xbf16>
    tpu.vector_store %arg4[%c528, %c0_161], %100 {strides = array<i32>} : memref<1032x128xbf16, #tpu.memory_space<vmem>>, vector<16x128xbf16>,
    %c0_162 = arith.constant 0 : index
    %c0_163 = arith.constant 0 : index
    %c0_164 = arith.constant 0 : index
    %c11 = arith.constant 11 : index
    %102 = vector.load %arg1[%c0_162, %c0_163, %c0_164, %c11] : memref<1x8x16x256xbf16, #tpu.memory_space<vmem>>, vector<1x1x16x128xbf16>
    %103 = vector.shape_cast %102 : vector<1x1x16x128xbf16> to vector<16x128xbf16>
    %c544 = arith.constant 544 : index
    %c0_165 = arith.constant 0 : index
    %104 = vector.load %arg4[%c544, %c0_165] : memref<1032x128xbf16, #tpu.memory_space<vmem>>, vector<16x128xbf16>
    tpu.vector_store %arg4[%c544, %c0_165], %103 {strides = array<i32>} : memref<1032x128xbf16, #tpu.memory_space<vmem>>, vector<16x128xbf16>,
    %c0_166 = arith.constant 0 : index
    %c1_167 = arith.constant 1 : index
    %c0_168 = arith.constant 0 : index
    %c11_169 = arith.constant 11 : index
    %105 = vector.load %arg1[%c0_166, %c1_167, %c0_168, %c11_169] : memref<1x8x16x256xbf16, #tpu.memory_space<vmem>>, vector<1x1x16x128xbf16>
    %106 = vector.shape_cast %105 : vector<1x1x16x128xbf16> to vector<16x128xbf16>
    %c560 = arith.constant 560 : index
    %c0_170 = arith.constant 0 : index
    %107 = vector.load %arg4[%c560, %c0_170] : memref<1032x128xbf16, #tpu.memory_space<vmem>>, vector<16x128xbf16>
    tpu.vector_store %arg4[%c560, %c0_170], %106 {strides = array<i32>} : memref<1032x128xbf16, #tpu.memory_space<vmem>>, vector<16x128xbf16>,
    %c0_171 = arith.constant 0 : index
    %c2_172 = arith.constant 2 : index
    %c0_173 = arith.constant 0 : index
    %c10_174 = arith.constant 10 : index
    %108 = vector.load %arg1[%c0_171, %c2_172, %c0_173, %c10_174] : memref<1x8x16x256xbf16, #tpu.memory_space<vmem>>, vector<1x1x16x128xbf16>
    %109 = vector.shape_cast %108 : vector<1x1x16x128xbf16> to vector<16x128xbf16>
    %c576 = arith.constant 576 : index
    %c0_175 = arith.constant 0 : index
    %110 = vector.load %arg4[%c576, %c0_175] : memref<1032x128xbf16, #tpu.memory_space<vmem>>, vector<16x128xbf16>
    tpu.vector_store %arg4[%c576, %c0_175], %109 {strides = array<i32>} : memref<1032x128xbf16, #tpu.memory_space<vmem>>, vector<16x128xbf16>,
    %c0_176 = arith.constant 0 : index
    %c3_177 = arith.constant 3 : index
    %c0_178 = arith.constant 0 : index
    %c10_179 = arith.constant 10 : index
    %111 = vector.load %arg1[%c0_176, %c3_177, %c0_178, %c10_179] : memref<1x8x16x256xbf16, #tpu.memory_space<vmem>>, vector<1x1x16x128xbf16>
    %112 = vector.shape_cast %111 : vector<1x1x16x128xbf16> to vector<16x128xbf16>
    %c592 = arith.constant 592 : index
    %c0_180 = arith.constant 0 : index
    %113 = vector.load %arg4[%c592, %c0_180] : memref<1032x128xbf16, #tpu.memory_space<vmem>>, vector<16x128xbf16>
    tpu.vector_store %arg4[%c592, %c0_180], %112 {strides = array<i32>} : memref<1032x128xbf16, #tpu.memory_space<vmem>>, vector<16x128xbf16>,
    %c0_181 = arith.constant 0 : index
    %c2_182 = arith.constant 2 : index
    %c0_183 = arith.constant 0 : index
    %c11_184 = arith.constant 11 : index
    %114 = vector.load %arg1[%c0_181, %c2_182, %c0_183, %c11_184] : memref<1x8x16x256xbf16, #tpu.memory_space<vmem>>, vector<1x1x16x128xbf16>
    %115 = vector.shape_cast %114 : vector<1x1x16x128xbf16> to vector<16x128xbf16>
    %c608 = arith.constant 608 : index
    %c0_185 = arith.constant 0 : index
    %116 = vector.load %arg4[%c608, %c0_185] : memref<1032x128xbf16, #tpu.memory_space<vmem>>, vector<16x128xbf16>
    tpu.vector_store %arg4[%c608, %c0_185], %115 {strides = array<i32>} : memref<1032x128xbf16, #tpu.memory_space<vmem>>, vector<16x128xbf16>,
    %c0_186 = arith.constant 0 : index
    %c3_187 = arith.constant 3 : index
    %c0_188 = arith.constant 0 : index
    %c11_189 = arith.constant 11 : index
    %117 = vector.load %arg1[%c0_186, %c3_187, %c0_188, %c11_189] : memref<1x8x16x256xbf16, #tpu.memory_space<vmem>>, vector<1x1x16x128xbf16>
    %118 = vector.shape_cast %117 : vector<1x1x16x128xbf16> to vector<16x128xbf16>
    %c624 = arith.constant 624 : index
    %c0_190 = arith.constant 0 : index
    %119 = vector.load %arg4[%c624, %c0_190] : memref<1032x128xbf16, #tpu.memory_space<vmem>>, vector<16x128xbf16>
    tpu.vector_store %arg4[%c624, %c0_190], %118 {strides = array<i32>} : memref<1032x128xbf16, #tpu.memory_space<vmem>>, vector<16x128xbf16>,
    %c0_191 = arith.constant 0 : index
    %c0_192 = arith.constant 0 : index
    %c0_193 = arith.constant 0 : index
    %c15 = arith.constant 15 : index
    %120 = vector.load %arg1[%c0_191, %c0_192, %c0_193, %c15] : memref<1x8x16x256xbf16, #tpu.memory_space<vmem>>, vector<1x1x16x128xbf16>
    %121 = vector.shape_cast %120 : vector<1x1x16x128xbf16> to vector<16x128xbf16>
    %c640 = arith.constant 640 : index
    %c0_194 = arith.constant 0 : index
    %122 = vector.load %arg4[%c640, %c0_194] : memref<1032x128xbf16, #tpu.memory_space<vmem>>, vector<16x128xbf16>
    tpu.vector_store %arg4[%c640, %c0_194], %121 {strides = array<i32>} : memref<1032x128xbf16, #tpu.memory_space<vmem>>, vector<16x128xbf16>,
    %c0_195 = arith.constant 0 : index
    %c1_196 = arith.constant 1 : index
    %c0_197 = arith.constant 0 : index
    %c15_198 = arith.constant 15 : index
    %123 = vector.load %arg1[%c0_195, %c1_196, %c0_197, %c15_198] : memref<1x8x16x256xbf16, #tpu.memory_space<vmem>>, vector<1x1x16x128xbf16>
    %124 = vector.shape_cast %123 : vector<1x1x16x128xbf16> to vector<16x128xbf16>
    %c656 = arith.constant 656 : index
    %c0_199 = arith.constant 0 : index
    %125 = vector.load %arg4[%c656, %c0_199] : memref<1032x128xbf16, #tpu.memory_space<vmem>>, vector<16x128xbf16>
    tpu.vector_store %arg4[%c656, %c0_199], %124 {strides = array<i32>} : memref<1032x128xbf16, #tpu.memory_space<vmem>>, vector<16x128xbf16>,
    %c0_200 = arith.constant 0 : index
    %c0_201 = arith.constant 0 : index
    %c0_202 = arith.constant 0 : index
    %c16_203 = arith.constant 16 : index
    %126 = vector.load %arg1[%c0_200, %c0_201, %c0_202, %c16_203] : memref<1x8x16x256xbf16, #tpu.memory_space<vmem>>, vector<1x1x16x128xbf16>
    %127 = vector.shape_cast %126 : vector<1x1x16x128xbf16> to vector<16x128xbf16>
    %c672 = arith.constant 672 : index
    %c0_204 = arith.constant 0 : index
    %128 = vector.load %arg4[%c672, %c0_204] : memref<1032x128xbf16, #tpu.memory_space<vmem>>, vector<16x128xbf16>
    tpu.vector_store %arg4[%c672, %c0_204], %127 {strides = array<i32>} : memref<1032x128xbf16, #tpu.memory_space<vmem>>, vector<16x128xbf16>,
    %c0_205 = arith.constant 0 : index
    %c1_206 = arith.constant 1 : index
    %c0_207 = arith.constant 0 : index
    %c16_208 = arith.constant 16 : index
    %129 = vector.load %arg1[%c0_205, %c1_206, %c0_207, %c16_208] : memref<1x8x16x256xbf16, #tpu.memory_space<vmem>>, vector<1x1x16x128xbf16>
    %130 = vector.shape_cast %129 : vector<1x1x16x128xbf16> to vector<16x128xbf16>
    %c688 = arith.constant 688 : index
    %c0_209 = arith.constant 0 : index
    %131 = vector.load %arg4[%c688, %c0_209] : memref<1032x128xbf16, #tpu.memory_space<vmem>>, vector<16x128xbf16>
    tpu.vector_store %arg4[%c688, %c0_209], %130 {strides = array<i32>} : memref<1032x128xbf16, #tpu.memory_space<vmem>>, vector<16x128xbf16>,
    %c0_210 = arith.constant 0 : index
    %c2_211 = arith.constant 2 : index
    %c0_212 = arith.constant 0 : index
    %c15_213 = arith.constant 15 : index
    %132 = vector.load %arg1[%c0_210, %c2_211, %c0_212, %c15_213] : memref<1x8x16x256xbf16, #tpu.memory_space<vmem>>, vector<1x1x16x128xbf16>
    %133 = vector.shape_cast %132 : vector<1x1x16x128xbf16> to vector<16x128xbf16>
    %c704 = arith.constant 704 : index
    %c0_214 = arith.constant 0 : index
    %134 = vector.load %arg4[%c704, %c0_214] : memref<1032x128xbf16, #tpu.memory_space<vmem>>, vector<16x128xbf16>
    tpu.vector_store %arg4[%c704, %c0_214], %133 {strides = array<i32>} : memref<1032x128xbf16, #tpu.memory_space<vmem>>, vector<16x128xbf16>,
    %c0_215 = arith.constant 0 : index
    %c3_216 = arith.constant 3 : index
    %c0_217 = arith.constant 0 : index
    %c15_218 = arith.constant 15 : index
    %135 = vector.load %arg1[%c0_215, %c3_216, %c0_217, %c15_218] : memref<1x8x16x256xbf16, #tpu.memory_space<vmem>>, vector<1x1x16x128xbf16>
    %136 = vector.shape_cast %135 : vector<1x1x16x128xbf16> to vector<16x128xbf16>
    %c720 = arith.constant 720 : index
    %c0_219 = arith.constant 0 : index
    %137 = vector.load %arg4[%c720, %c0_219] : memref<1032x128xbf16, #tpu.memory_space<vmem>>, vector<16x128xbf16>
    tpu.vector_store %arg4[%c720, %c0_219], %136 {strides = array<i32>} : memref<1032x128xbf16, #tpu.memory_space<vmem>>, vector<16x128xbf16>,
    %c0_220 = arith.constant 0 : index
    %c2_221 = arith.constant 2 : index
    %c0_222 = arith.constant 0 : index
    %c16_223 = arith.constant 16 : index
    %138 = vector.load %arg1[%c0_220, %c2_221, %c0_222, %c16_223] : memref<1x8x16x256xbf16, #tpu.memory_space<vmem>>, vector<1x1x16x128xbf16>
    %139 = vector.shape_cast %138 : vector<1x1x16x128xbf16> to vector<16x128xbf16>
    %c736 = arith.constant 736 : index
    %c0_224 = arith.constant 0 : index
    %140 = vector.load %arg4[%c736, %c0_224] : memref<1032x128xbf16, #tpu.memory_space<vmem>>, vector<16x128xbf16>
    tpu.vector_store %arg4[%c736, %c0_224], %139 {strides = array<i32>} : memref<1032x128xbf16, #tpu.memory_space<vmem>>, vector<16x128xbf16>,
    %c0_225 = arith.constant 0 : index
    %c3_226 = arith.constant 3 : index
    %c0_227 = arith.constant 0 : index
    %c16_228 = arith.constant 16 : index
    %141 = vector.load %arg1[%c0_225, %c3_226, %c0_227, %c16_228] : memref<1x8x16x256xbf16, #tpu.memory_space<vmem>>, vector<1x1x16x128xbf16>
    %142 = vector.shape_cast %141 : vector<1x1x16x128xbf16> to vector<16x128xbf16>
    %c752 = arith.constant 752 : index
    %c0_229 = arith.constant 0 : index
    %143 = vector.load %arg4[%c752, %c0_229] : memref<1032x128xbf16, #tpu.memory_space<vmem>>, vector<16x128xbf16>
    tpu.vector_store %arg4[%c752, %c0_229], %142 {strides = array<i32>} : memref<1032x128xbf16, #tpu.memory_space<vmem>>, vector<16x128xbf16>,
    %c0_230 = arith.constant 0 : index
    %c4_231 = arith.constant 4 : index
    %c0_232 = arith.constant 0 : index
    %c10_233 = arith.constant 10 : index
    %144 = vector.load %arg1[%c0_230, %c4_231, %c0_232, %c10_233] : memref<1x8x16x256xbf16, #tpu.memory_space<vmem>>, vector<1x1x16x128xbf16>
    %145 = vector.shape_cast %144 : vector<1x1x16x128xbf16> to vector<16x128xbf16>
    %c768 = arith.constant 768 : index
    %c0_234 = arith.constant 0 : index
    %146 = vector.load %arg4[%c768, %c0_234] : memref<1032x128xbf16, #tpu.memory_space<vmem>>, vector<16x128xbf16>
    tpu.vector_store %arg4[%c768, %c0_234], %145 {strides = array<i32>} : memref<1032x128xbf16, #tpu.memory_space<vmem>>, vector<16x128xbf16>,
    %c0_235 = arith.constant 0 : index
    %c5_236 = arith.constant 5 : index
    %c0_237 = arith.constant 0 : index
    %c10_238 = arith.constant 10 : index
    %147 = vector.load %arg1[%c0_235, %c5_236, %c0_237, %c10_238] : memref<1x8x16x256xbf16, #tpu.memory_space<vmem>>, vector<1x1x16x128xbf16>
    %148 = vector.shape_cast %147 : vector<1x1x16x128xbf16> to vector<16x128xbf16>
    %c784 = arith.constant 784 : index
    %c0_239 = arith.constant 0 : index
    %149 = vector.load %arg4[%c784, %c0_239] : memref<1032x128xbf16, #tpu.memory_space<vmem>>, vector<16x128xbf16>
    tpu.vector_store %arg4[%c784, %c0_239], %148 {strides = array<i32>} : memref<1032x128xbf16, #tpu.memory_space<vmem>>, vector<16x128xbf16>,
    %c0_240 = arith.constant 0 : index
    %c4_241 = arith.constant 4 : index
    %c0_242 = arith.constant 0 : index
    %c11_243 = arith.constant 11 : index
    %150 = vector.load %arg1[%c0_240, %c4_241, %c0_242, %c11_243] : memref<1x8x16x256xbf16, #tpu.memory_space<vmem>>, vector<1x1x16x128xbf16>
    %151 = vector.shape_cast %150 : vector<1x1x16x128xbf16> to vector<16x128xbf16>
    %c800 = arith.constant 800 : index
    %c0_244 = arith.constant 0 : index
    %152 = vector.load %arg4[%c800, %c0_244] : memref<1032x128xbf16, #tpu.memory_space<vmem>>, vector<16x128xbf16>
    tpu.vector_store %arg4[%c800, %c0_244], %151 {strides = array<i32>} : memref<1032x128xbf16, #tpu.memory_space<vmem>>, vector<16x128xbf16>,
    %c0_245 = arith.constant 0 : index
    %c5_246 = arith.constant 5 : index
    %c0_247 = arith.constant 0 : index
    %c11_248 = arith.constant 11 : index
    %153 = vector.load %arg1[%c0_245, %c5_246, %c0_247, %c11_248] : memref<1x8x16x256xbf16, #tpu.memory_space<vmem>>, vector<1x1x16x128xbf16>
    %154 = vector.shape_cast %153 : vector<1x1x16x128xbf16> to vector<16x128xbf16>
    %c816 = arith.constant 816 : index
    %c0_249 = arith.constant 0 : index
    %155 = vector.load %arg4[%c816, %c0_249] : memref<1032x128xbf16, #tpu.memory_space<vmem>>, vector<16x128xbf16>
    tpu.vector_store %arg4[%c816, %c0_249], %154 {strides = array<i32>} : memref<1032x128xbf16, #tpu.memory_space<vmem>>, vector<16x128xbf16>,
    %c0_250 = arith.constant 0 : index
    %c6_251 = arith.constant 6 : index
    %c0_252 = arith.constant 0 : index
    %c10_253 = arith.constant 10 : index
    %156 = vector.load %arg1[%c0_250, %c6_251, %c0_252, %c10_253] : memref<1x8x16x256xbf16, #tpu.memory_space<vmem>>, vector<1x1x16x128xbf16>
    %157 = vector.shape_cast %156 : vector<1x1x16x128xbf16> to vector<16x128xbf16>
    %c832 = arith.constant 832 : index
    %c0_254 = arith.constant 0 : index
    %158 = vector.load %arg4[%c832, %c0_254] : memref<1032x128xbf16, #tpu.memory_space<vmem>>, vector<16x128xbf16>
    tpu.vector_store %arg4[%c832, %c0_254], %157 {strides = array<i32>} : memref<1032x128xbf16, #tpu.memory_space<vmem>>, vector<16x128xbf16>,
    %c0_255 = arith.constant 0 : index
    %c7_256 = arith.constant 7 : index
    %c0_257 = arith.constant 0 : index
    %c10_258 = arith.constant 10 : index
    %159 = vector.load %arg1[%c0_255, %c7_256, %c0_257, %c10_258] : memref<1x8x16x256xbf16, #tpu.memory_space<vmem>>, vector<1x1x16x128xbf16>
    %160 = vector.shape_cast %159 : vector<1x1x16x128xbf16> to vector<16x128xbf16>
    %c848 = arith.constant 848 : index
    %c0_259 = arith.constant 0 : index
    %161 = vector.load %arg4[%c848, %c0_259] : memref<1032x128xbf16, #tpu.memory_space<vmem>>, vector<16x128xbf16>
    tpu.vector_store %arg4[%c848, %c0_259], %160 {strides = array<i32>} : memref<1032x128xbf16, #tpu.memory_space<vmem>>, vector<16x128xbf16>,
    %c0_260 = arith.constant 0 : index
    %c6_261 = arith.constant 6 : index
    %c0_262 = arith.constant 0 : index
    %c11_263 = arith.constant 11 : index
    %162 = vector.load %arg1[%c0_260, %c6_261, %c0_262, %c11_263] : memref<1x8x16x256xbf16, #tpu.memory_space<vmem>>, vector<1x1x16x128xbf16>
    %163 = vector.shape_cast %162 : vector<1x1x16x128xbf16> to vector<16x128xbf16>
    %c864 = arith.constant 864 : index
    %c0_264 = arith.constant 0 : index
    %164 = vector.load %arg4[%c864, %c0_264] : memref<1032x128xbf16, #tpu.memory_space<vmem>>, vector<16x128xbf16>
    tpu.vector_store %arg4[%c864, %c0_264], %163 {strides = array<i32>} : memref<1032x128xbf16, #tpu.memory_space<vmem>>, vector<16x128xbf16>,
    %c0_265 = arith.constant 0 : index
    %c7_266 = arith.constant 7 : index
    %c0_267 = arith.constant 0 : index
    %c11_268 = arith.constant 11 : index
    %165 = vector.load %arg1[%c0_265, %c7_266, %c0_267, %c11_268] : memref<1x8x16x256xbf16, #tpu.memory_space<vmem>>, vector<1x1x16x128xbf16>
    %166 = vector.shape_cast %165 : vector<1x1x16x128xbf16> to vector<16x128xbf16>
    %c880 = arith.constant 880 : index
    %c0_269 = arith.constant 0 : index
    %167 = vector.load %arg4[%c880, %c0_269] : memref<1032x128xbf16, #tpu.memory_space<vmem>>, vector<16x128xbf16>
    tpu.vector_store %arg4[%c880, %c0_269], %166 {strides = array<i32>} : memref<1032x128xbf16, #tpu.memory_space<vmem>>, vector<16x128xbf16>,
    %c0_270 = arith.constant 0 : index
    %c4_271 = arith.constant 4 : index
    %c0_272 = arith.constant 0 : index
    %c15_273 = arith.constant 15 : index
    %168 = vector.load %arg1[%c0_270, %c4_271, %c0_272, %c15_273] : memref<1x8x16x256xbf16, #tpu.memory_space<vmem>>, vector<1x1x16x128xbf16>
    %169 = vector.shape_cast %168 : vector<1x1x16x128xbf16> to vector<16x128xbf16>
    %c896 = arith.constant 896 : index
    %c0_274 = arith.constant 0 : index
    %170 = vector.load %arg4[%c896, %c0_274] : memref<1032x128xbf16, #tpu.memory_space<vmem>>, vector<16x128xbf16>
    tpu.vector_store %arg4[%c896, %c0_274], %169 {strides = array<i32>} : memref<1032x128xbf16, #tpu.memory_space<vmem>>, vector<16x128xbf16>,
    %c0_275 = arith.constant 0 : index
    %c5_276 = arith.constant 5 : index
    %c0_277 = arith.constant 0 : index
    %c15_278 = arith.constant 15 : index
    %171 = vector.load %arg1[%c0_275, %c5_276, %c0_277, %c15_278] : memref<1x8x16x256xbf16, #tpu.memory_space<vmem>>, vector<1x1x16x128xbf16>
    %172 = vector.shape_cast %171 : vector<1x1x16x128xbf16> to vector<16x128xbf16>
    %c912 = arith.constant 912 : index
    %c0_279 = arith.constant 0 : index
    %173 = vector.load %arg4[%c912, %c0_279] : memref<1032x128xbf16, #tpu.memory_space<vmem>>, vector<16x128xbf16>
    tpu.vector_store %arg4[%c912, %c0_279], %172 {strides = array<i32>} : memref<1032x128xbf16, #tpu.memory_space<vmem>>, vector<16x128xbf16>,
    %c0_280 = arith.constant 0 : index
    %c4_281 = arith.constant 4 : index
    %c0_282 = arith.constant 0 : index
    %c16_283 = arith.constant 16 : index
    %174 = vector.load %arg1[%c0_280, %c4_281, %c0_282, %c16_283] : memref<1x8x16x256xbf16, #tpu.memory_space<vmem>>, vector<1x1x16x128xbf16>
    %175 = vector.shape_cast %174 : vector<1x1x16x128xbf16> to vector<16x128xbf16>
    %c928 = arith.constant 928 : index
    %c0_284 = arith.constant 0 : index
    %176 = vector.load %arg4[%c928, %c0_284] : memref<1032x128xbf16, #tpu.memory_space<vmem>>, vector<16x128xbf16>
    tpu.vector_store %arg4[%c928, %c0_284], %175 {strides = array<i32>} : memref<1032x128xbf16, #tpu.memory_space<vmem>>, vector<16x128xbf16>,
    %c0_285 = arith.constant 0 : index
    %c5_286 = arith.constant 5 : index
    %c0_287 = arith.constant 0 : index
    %c16_288 = arith.constant 16 : index
    %177 = vector.load %arg1[%c0_285, %c5_286, %c0_287, %c16_288] : memref<1x8x16x256xbf16, #tpu.memory_space<vmem>>, vector<1x1x16x128xbf16>
    %178 = vector.shape_cast %177 : vector<1x1x16x128xbf16> to vector<16x128xbf16>
    %c944 = arith.constant 944 : index
    %c0_289 = arith.constant 0 : index
    %179 = vector.load %arg4[%c944, %c0_289] : memref<1032x128xbf16, #tpu.memory_space<vmem>>, vector<16x128xbf16>
    tpu.vector_store %arg4[%c944, %c0_289], %178 {strides = array<i32>} : memref<1032x128xbf16, #tpu.memory_space<vmem>>, vector<16x128xbf16>,
    %c0_290 = arith.constant 0 : index
    %c6_291 = arith.constant 6 : index
    %c0_292 = arith.constant 0 : index
    %c15_293 = arith.constant 15 : index
    %180 = vector.load %arg1[%c0_290, %c6_291, %c0_292, %c15_293] : memref<1x8x16x256xbf16, #tpu.memory_space<vmem>>, vector<1x1x16x128xbf16>
    %181 = vector.shape_cast %180 : vector<1x1x16x128xbf16> to vector<16x128xbf16>
    %c960 = arith.constant 960 : index
    %c0_294 = arith.constant 0 : index
    %182 = vector.load %arg4[%c960, %c0_294] : memref<1032x128xbf16, #tpu.memory_space<vmem>>, vector<16x128xbf16>
    tpu.vector_store %arg4[%c960, %c0_294], %181 {strides = array<i32>} : memref<1032x128xbf16, #tpu.memory_space<vmem>>, vector<16x128xbf16>,
    %c0_295 = arith.constant 0 : index
    %c7_296 = arith.constant 7 : index
    %c0_297 = arith.constant 0 : index
    %c15_298 = arith.constant 15 : index
    %183 = vector.load %arg1[%c0_295, %c7_296, %c0_297, %c15_298] : memref<1x8x16x256xbf16, #tpu.memory_space<vmem>>, vector<1x1x16x128xbf16>
    %184 = vector.shape_cast %183 : vector<1x1x16x128xbf16> to vector<16x128xbf16>
    %c976 = arith.constant 976 : index
    %c0_299 = arith.constant 0 : index
    %185 = vector.load %arg4[%c976, %c0_299] : memref<1032x128xbf16, #tpu.memory_space<vmem>>, vector<16x128xbf16>
    tpu.vector_store %arg4[%c976, %c0_299], %184 {strides = array<i32>} : memref<1032x128xbf16, #tpu.memory_space<vmem>>, vector<16x128xbf16>,
    %c0_300 = arith.constant 0 : index
    %c6_301 = arith.constant 6 : index
    %c0_302 = arith.constant 0 : index
    %c16_303 = arith.constant 16 : index
    %186 = vector.load %arg1[%c0_300, %c6_301, %c0_302, %c16_303] : memref<1x8x16x256xbf16, #tpu.memory_space<vmem>>, vector<1x1x16x128xbf16>
    %187 = vector.shape_cast %186 : vector<1x1x16x128xbf16> to vector<16x128xbf16>
    %c992 = arith.constant 992 : index
    %c0_304 = arith.constant 0 : index
    %188 = vector.load %arg4[%c992, %c0_304] : memref<1032x128xbf16, #tpu.memory_space<vmem>>, vector<16x128xbf16>
    tpu.vector_store %arg4[%c992, %c0_304], %187 {strides = array<i32>} : memref<1032x128xbf16, #tpu.memory_space<vmem>>, vector<16x128xbf16>,
    %c0_305 = arith.constant 0 : index
    %c7_306 = arith.constant 7 : index
    %c0_307 = arith.constant 0 : index
    %c16_308 = arith.constant 16 : index
    %189 = vector.load %arg1[%c0_305, %c7_306, %c0_307, %c16_308] : memref<1x8x16x256xbf16, #tpu.memory_space<vmem>>, vector<1x1x16x128xbf16>
    %190 = vector.shape_cast %189 : vector<1x1x16x128xbf16> to vector<16x128xbf16>
    %c1008 = arith.constant 1008 : index
    %c0_309 = arith.constant 0 : index
    %191 = vector.load %arg4[%c1008, %c0_309] : memref<1032x128xbf16, #tpu.memory_space<vmem>>, vector<16x128xbf16>
    tpu.vector_store %arg4[%c1008, %c0_309], %190 {strides = array<i32>} : memref<1032x128xbf16, #tpu.memory_space<vmem>>, vector<16x128xbf16>,
    %cst = arith.constant 1.000000e+00 : bf16
    %192 = vector.broadcast %cst : bf16 to vector<8x128xbf16>
    %c1024 = arith.constant 1024 : index
    %c0_310 = arith.constant 0 : index
    %193 = vector.load %arg4[%c1024, %c0_310] : memref<1032x128xbf16, #tpu.memory_space<vmem>>, vector<8x128xbf16>
    tpu.vector_store %arg4[%c1024, %c0_310], %192 {strides = array<i32>} : memref<1032x128xbf16, #tpu.memory_space<vmem>>, vector<8x128xbf16>,
    %c0_311 = arith.constant 0 : index
    %c0_312 = arith.constant 0 : index
    %194 = vector.load %arg4[%c0_311, %c0_312] : memref<1032x128xbf16, #tpu.memory_space<vmem>>, vector<1032x128xbf16>
    %c0_313 = arith.constant 0 : index
    %c0_314 = arith.constant 0 : index
    %c0_315 = arith.constant 0 : index
    %195 = vector.load %arg2[%c0_313, %c0_314, %c0_315] : memref<8x32x1032xbf16, #tpu.memory_space<vmem>>, vector<1x32x1032xbf16>
    %196 = vector.shape_cast %195 : vector<1x32x1032xbf16> to vector<32x1032xbf16>
    %cst_316 = arith.constant dense<0.000000e+00> : vector<32x128xf32>
    %197 = tpu.matmul %196, %194, %cst_316 {dimension_numbers = #tpu.dot_dimension_numbers<[1], [0], [0], [1], [0, 0, 1, 1], [], []>} : vector<32x1032xbf16>, vector<1032x128xbf16>, vector<32x128xf32> -> vector<32x128xf32>
    %c1_317 = arith.constant 1 : index
    %c0_318 = arith.constant 0 : index
    %c0_319 = arith.constant 0 : index
    %198 = vector.load %arg2[%c1_317, %c0_318, %c0_319] : memref<8x32x1032xbf16, #tpu.memory_space<vmem>>, vector<1x32x1032xbf16>
    %199 = vector.shape_cast %198 : vector<1x32x1032xbf16> to vector<32x1032xbf16>
    %cst_320 = arith.constant dense<0.000000e+00> : vector<32x128xf32>
    %200 = tpu.matmul %199, %194, %cst_320 {dimension_numbers = #tpu.dot_dimension_numbers<[1], [0], [0], [1], [0, 0, 1, 1], [], []>} : vector<32x1032xbf16>, vector<1032x128xbf16>, vector<32x128xf32> -> vector<32x128xf32>
    %201 = arith.maximumf %197, %200 : vector<32x128xf32>
    %c2_321 = arith.constant 2 : index
    %c0_322 = arith.constant 0 : index
    %c0_323 = arith.constant 0 : index
    %202 = vector.load %arg2[%c2_321, %c0_322, %c0_323] : memref<8x32x1032xbf16, #tpu.memory_space<vmem>>, vector<1x32x1032xbf16>
    %203 = vector.shape_cast %202 : vector<1x32x1032xbf16> to vector<32x1032xbf16>
    %cst_324 = arith.constant dense<0.000000e+00> : vector<32x128xf32>
    %204 = tpu.matmul %203, %194, %cst_324 {dimension_numbers = #tpu.dot_dimension_numbers<[1], [0], [0], [1], [0, 0, 1, 1], [], []>} : vector<32x1032xbf16>, vector<1032x128xbf16>, vector<32x128xf32> -> vector<32x128xf32>
    %205 = arith.maximumf %201, %204 : vector<32x128xf32>
    %c3_325 = arith.constant 3 : index
    %c0_326 = arith.constant 0 : index
    %c0_327 = arith.constant 0 : index
    %206 = vector.load %arg2[%c3_325, %c0_326, %c0_327] : memref<8x32x1032xbf16, #tpu.memory_space<vmem>>, vector<1x32x1032xbf16>
    %207 = vector.shape_cast %206 : vector<1x32x1032xbf16> to vector<32x1032xbf16>
    %cst_328 = arith.constant dense<0.000000e+00> : vector<32x128xf32>
    %208 = tpu.matmul %207, %194, %cst_328 {dimension_numbers = #tpu.dot_dimension_numbers<[1], [0], [0], [1], [0, 0, 1, 1], [], []>} : vector<32x1032xbf16>, vector<1032x128xbf16>, vector<32x128xf32> -> vector<32x128xf32>
    %209 = arith.maximumf %205, %208 : vector<32x128xf32>
    %c4_329 = arith.constant 4 : index
    %c0_330 = arith.constant 0 : index
    %c0_331 = arith.constant 0 : index
    %210 = vector.load %arg2[%c4_329, %c0_330, %c0_331] : memref<8x32x1032xbf16, #tpu.memory_space<vmem>>, vector<1x32x1032xbf16>
    %211 = vector.shape_cast %210 : vector<1x32x1032xbf16> to vector<32x1032xbf16>
    %cst_332 = arith.constant dense<0.000000e+00> : vector<32x128xf32>
    %212 = tpu.matmul %211, %194, %cst_332 {dimension_numbers = #tpu.dot_dimension_numbers<[1], [0], [0], [1], [0, 0, 1, 1], [], []>} : vector<32x1032xbf16>, vector<1032x128xbf16>, vector<32x128xf32> -> vector<32x128xf32>
    %213 = arith.maximumf %209, %212 : vector<32x128xf32>
    %c5_333 = arith.constant 5 : index
    %c0_334 = arith.constant 0 : index
    %c0_335 = arith.constant 0 : index
    %214 = vector.load %arg2[%c5_333, %c0_334, %c0_335] : memref<8x32x1032xbf16, #tpu.memory_space<vmem>>, vector<1x32x1032xbf16>
    %215 = vector.shape_cast %214 : vector<1x32x1032xbf16> to vector<32x1032xbf16>
    %cst_336 = arith.constant dense<0.000000e+00> : vector<32x128xf32>
    %216 = tpu.matmul %215, %194, %cst_336 {dimension_numbers = #tpu.dot_dimension_numbers<[1], [0], [0], [1], [0, 0, 1, 1], [], []>} : vector<32x1032xbf16>, vector<1032x128xbf16>, vector<32x128xf32> -> vector<32x128xf32>
    %217 = arith.maximumf %213, %216 : vector<32x128xf32>
    %c6_337 = arith.constant 6 : index
    %c0_338 = arith.constant 0 : index
    %c0_339 = arith.constant 0 : index
    %218 = vector.load %arg2[%c6_337, %c0_338, %c0_339] : memref<8x32x1032xbf16, #tpu.memory_space<vmem>>, vector<1x32x1032xbf16>
    %219 = vector.shape_cast %218 : vector<1x32x1032xbf16> to vector<32x1032xbf16>
    %cst_340 = arith.constant dense<0.000000e+00> : vector<32x128xf32>
    %220 = tpu.matmul %219, %194, %cst_340 {dimension_numbers = #tpu.dot_dimension_numbers<[1], [0], [0], [1], [0, 0, 1, 1], [], []>} : vector<32x1032xbf16>, vector<1032x128xbf16>, vector<32x128xf32> -> vector<32x128xf32>
    %221 = arith.maximumf %217, %220 : vector<32x128xf32>
    %c7_341 = arith.constant 7 : index
    %c0_342 = arith.constant 0 : index
    %c0_343 = arith.constant 0 : index
    %222 = vector.load %arg2[%c7_341, %c0_342, %c0_343] : memref<8x32x1032xbf16, #tpu.memory_space<vmem>>, vector<1x32x1032xbf16>
    %223 = vector.shape_cast %222 : vector<1x32x1032xbf16> to vector<32x1032xbf16>
    %cst_344 = arith.constant dense<0.000000e+00> : vector<32x128xf32>
    %224 = tpu.matmul %223, %194, %cst_344 {dimension_numbers = #tpu.dot_dimension_numbers<[1], [0], [0], [1], [0, 0, 1, 1], [], []>} : vector<32x1032xbf16>, vector<1032x128xbf16>, vector<32x128xf32> -> vector<32x128xf32>
    %225 = arith.maximumf %221, %224 : vector<32x128xf32>
    %cst_345 = arith.constant 0.000000e+00 : f32
    %226 = vector.broadcast %cst_345 : f32 to vector<32x128xf32>
    %227 = arith.maximumf %225, %226 : vector<32x128xf32>
    %c0_346 = arith.constant 0 : index
    %c0_347 = arith.constant 0 : index
    %c0_348 = arith.constant 0 : index
    %228 = vector.load %arg3[%c0_346, %c0_347, %c0_348] : memref<1x32x128xf32, #tpu.memory_space<vmem>>, vector<1x32x128xf32>
    %229 = vector.shape_cast %228 : vector<1x32x128xf32> to vector<32x128xf32>
    %230 = vector.shape_cast %227 : vector<32x128xf32> to vector<1x32x128xf32>
    tpu.vector_store %arg3[%c0_346, %c0_347, %c0_348], %230 {strides = array<i32>} : memref<1x32x128xf32, #tpu.memory_space<vmem>>, vector<1x32x128xf32>,
    return
  }
  func.func @transform_0(%arg0: i32) -> (i32, i32, i32, i32) {
    %c0_i32 = arith.constant 0 : i32
    %c0_i32_0 = arith.constant 0 : i32
    %c0_i32_1 = arith.constant 0 : i32
    %c0_i32_2 = arith.constant 0 : i32
    return %arg0, %c0_i32, %c0_i32_0, %c0_i32_1 : i32, i32, i32, i32
  }
  func.func @transform_1(%arg0: i32) -> (i32, i32, i32) {
    %c0_i32 = arith.constant 0 : i32
    %c0_i32_0 = arith.constant 0 : i32
    %c0_i32_1 = arith.constant 0 : i32
    %c0_i32_2 = arith.constant 0 : i32
    return %c0_i32, %c0_i32_0, %c0_i32_1 : i32, i32, i32
  }
  func.func @transform_2(%arg0: i32) -> (i32, i32, i32) {
    %c0_i32 = arith.constant 0 : i32
    %c0_i32_0 = arith.constant 0 : i32
    %c0_i32_1 = arith.constant 0 : i32
    return %arg0, %c0_i32, %c0_i32_0 : i32, i32, i32
  }
}

</mosaic_0001>

<bundles_post_ra>
// kernel: cnn3d_forward.3
= control target key start
LH: loop header
LB: loop body
LE: loop exit
PB: predicated region body
PF: predicated region fallthrough
CT: control target
= control target key end

     0   :  { %7 = vsyncpa [#allocation4], 0  ;;  %s3090_s0 = inlined_call_operand.hbm [shape: bf16[2,8,1,384], index: 0, kind: input, shape index: {}]   ;;  %s3091_s1 = inlined_call_operand.hbm [shape: bf16[8,16,72], index: 1, kind: input, shape index: {}]   ;;  %s3092_s2 = inlined_call_operand.hbm [shape: f32[2,16,256], index: 2, kind: output, shape index: {}]  }
   0x1   :  { %9 = vsyncpa [#allocation4 + $0x1], 0 }
   0x2   :  { %10 = vsyncpa [#allocation7], 0 }
   0x3   :  { %11 = vsyncpa [#allocation5], 0 }
   0x4   :  { %13 = vsyncpa [#allocation5 + $0x1], 0  ;;  %s2399_s9 = smov 0   ;;  %s2401_s10 = smov 0  }
   0x5   :  { %s2403_s11 = smov 0   ;;  %s2405_s12 = smov 0  }
   0x6 LB: > { %s2420_s13 = sadd.s32 4294967295, %s2363_s12   ;;  %s1917_s14 = sadd.s32 4294967294, %s2363_s12   ;;  %s2363_s12 = sphi %s2405_s12, %s3114_s12   ;;  %s2359_s11 = sphi %s2403_s11, %s3113_s11   ;;  %s2355_s10 = sphi %s2401_s10, %s3112_s10   ;;  %s2351_s9 = sphi %s2399_s9, %s3111_s9  }
   0x7   : > { %p39_p0 = scmp.ne.s32.totalorder %s2355_s10, %s2351_s9  ;;  %p3093_p1 = scmp.eq.s32.totalorder %s2420_s13, 0 }
   0x8   : > { %p90_p3 = scmp.eq.s32.totalorder %s1917_s14, 1  ;;  %p1918_p5 = scmp.ge.s32.totalorder %s2363_s12, 1 }
   0x9   : > { %p2429_p4 = por %p3093_p1, %p39_p0  ;;  %p97_p7 = scmp.lt.s32.totalorder %s2363_s12, 3 }
   0xa   : > { %p2434_p6 = por %p90_p3, %p39_p0  ;;  %s2365_s18 = smov [#allocation6]  }
   0xb   : > { %s3096_s15 = scalar_select %p2429_p4, 1, 0 }
   0xc   : > { %s3097_s16 = scalar_select %p2434_p6, 1, 0 }
   0xd   : > { %p2439_p8 = pnand %p1918_p5, %p97_p7  ;;  %s109_s19 = sshll.u32 %s2365_s18, 4  ;;  %s2443_s19 = int_to_ptr.vmem [resolvable:$true] %s109_s19 }
   0xe   : > { %s2455_s21 = sadd.s32 1, %s2363_s12   ;;  %s26_s22 = sadd.s32 1, %s2359_s11 }
   0xf   : > { %s3098_s17 = scalar_select %p2439_p8, 1, 0 }
  0x10   : > { %p2022_p9 = pneg %p2439_p8  ;;  %s23_s23 = ssub.s32 %s2363_s12, %s2455_s21 }
  0x11   : > { %s2235_s26 = scalar_lea.hbm %s3091_s1, 1024 }
  0x12   : > { %p2450_p11 = pnand %p2022_p9, %p3093_p1  ;;  %p2236_p12 = scmp.ne.s32.totalorder %s3091_s1, %s2235_s26 }
  0x13   : > { %p2242_p5 = scmp.lt.u32.totalorder %s2235_s26, %s3091_s1 }
  0x14   : > { %p2237_p13 = pneg %p2450_p11 }
  0x16   : > { %p2238_p0 = pnand %p2237_p13, %p2236_p12 }
  0x18   : > { %p2239_p3 = pneg %p2238_p0 }
  0x1a   : > { %p2244_p7 = pnand %p2242_p5, %p2239_p3 }
  0x1c   : > { %2247 = shalt.err (!%p2244_p7)
}
  0x1d   : > { %s2248_s3 = scalar_lea.vmem %s2443_s19, 1024  ;;  %p2256_p2 = scmp.lt.s32.totalorder %s2443_s19, %s2443_s19 }
  0x1e   : > { %p2249_p9 = scmp.ne.s32.totalorder %s2443_s19, %s2248_s3  ;;  %p2257_p6 = scmp.lt.s32.totalorder %s2248_s3, %s2248_s3 }
  0x20   : > { %p2251_p10 = pnand %p2249_p9, %p2237_p13  ;;  %p2258_p4 = por %p2257_p6, %p2256_p2 }
  0x22   : > { %p2252_p1 = pneg %p2251_p10 }
  0x24   : > { %p2259_p8 = pnand %p2258_p4, %p2252_p1 }
  0x26   : > { %2262 = shalt.err (!%p2259_p8)
}
  0x27   : > { %s2366_s4 = smov 64   ;;  %s2367_s5 = smov 4  }
  0x28   : > { %2025 = dma.hbm_to_vmem [thread:$0]  (!%p2450_p11), %s3091_s1, 1024, %s2443_s19, [#allocation7], %s2366_s4, %s2366_s4, %s2367_s5  }
  0x29   : > { %p24_p2 = scmp.eq.s32.totalorder %s23_s23, 0  ;;  %p33_p1 = scmp.ne.s32.totalorder %s2359_s11, %s2355_s10 }
  0x2a   : > { %p34_p4 = scmp.eq.s32.totalorder %s2363_s12, 0  ;;  %p2035_p6 = scmp.lt.s32.totalorder %s2363_s12, 2 }
  0x2b   : > { %s2486_s8 = scalar_select %p24_p2, %s2359_s11, %s26_s22  }
  0x2c   : > { %p35_p8 = por %p34_p4, %p33_p1  ;;  %p3100_p10 = scmp.eq.s32.totalorder %s2420_s13, 1 }
  0x2d   : > { %s123_s18 = sand.u32 1, %s2359_s11   ;;  %s2012_s24 = smul.u32 384, %s2363_s12 }
  0x2e   : > { %p2490_p12 = por %p3100_p10, %p33_p1  ;;  %s2011_s25 = smul.u32 24, %s123_s18 }
  0x2f   : > { %s2499_s27 = scalar_lea.hbm %s3090_s0, %s2012_s24  ;;  %p2501_p11 = pnand %p2035_p6, %p35_p8 }
  0x30   : > { %s127_s22 = scalar_lea.vmem [#allocation3], %s2011_s25  ;;  %s2507_s28 = scalar_lea.sflag [#allocation4], %s123_s18 }
  0x31   : > { %s134_s23 = sshll.u32 %s127_s22, 4  ;;  %s2263_s29 = scalar_lea.hbm %s2499_s27, 384  ;;  %s2505_s23 = int_to_ptr.vmem [resolvable:$true] %s134_s23 }
  0x32   : > { %p2264_p13 = scmp.ne.s32.totalorder %s2499_s27, %s2263_s29  ;;  %p2265_p0 = pneg %p2501_p11 }
  0x33   : > { %s2268_s4 = scalar_lea.hbm %s3090_s0, 768  ;;  %p2269_p7 = scmp.lt.u32.totalorder %s2499_s27, %s3090_s0 }
  0x34   : > { %p2266_p3 = pnand %p2265_p0, %p2264_p13  ;;  %p2270_p9 = scmp.lt.u32.totalorder %s2268_s4, %s2263_s29 }
  0x35   : > { %p2272_p1 = scmp.lt.u32.totalorder %s2263_s29, %s2499_s27 }
  0x36   : > { %p2267_p5 = pneg %p2266_p3  ;;  %p2271_p2 = por %p2270_p9, %p2269_p7 }
  0x38   : > { %p2273_p4 = por %p2272_p1, %p2271_p2 }
  0x3a   : > { %p2274_p6 = pnand %p2273_p4, %p2267_p5 }
  0x3c   : > { %2277 = shalt.err (!%p2274_p6)
}
  0x3d   : > { %s2278_s7 = scalar_lea.vmem %s2505_s23, 384  ;;  %s2368_s18 = smov [#allocation3]  }
  0x3e   : > { %p2279_p8 = scmp.ne.s32.totalorder %s2505_s23, %s2278_s7  ;;  %s2283_s24 = sshll.u32 %s2368_s18, 4  ;;  %s2284_s24 = int_to_ptr.vmem [resolvable:$false] %s2283_s24 }
  0x3f   : > { %s2285_s25 = scalar_lea.vmem %s2284_s24, 768  ;;  %p2286_p3 = scmp.lt.s32.totalorder %s2505_s23, %s2284_s24 }
  0x40   : > { %p2281_p10 = pnand %p2279_p8, %p2265_p0  ;;  %p2287_p7 = scmp.lt.s32.totalorder %s2285_s25, %s2278_s7 }
  0x42   : > { %p2282_p13 = pneg %p2281_p10  ;;  %p2288_p9 = por %p2287_p7, %p2286_p3 }
  0x44   : > { %p2289_p2 = pnand %p2288_p9, %p2282_p13 }
  0x46   : > { %2292 = shalt.err (!%p2289_p2)
}
  0x47   : > { %s2369_s20 = smov 48   ;;  %s2370_s26 = smov 3  }
  0x48   : > { %2029 = dma.hbm_to_vmem [thread:$0]  (!%p2501_p11), %s2499_s27, 384, %s2505_s23, %s2507_s28, %s2369_s20, %s2369_s20, %s2370_s26  }
  0x49   : > { %p3103_p0 = scmp.ne.s32.totalorder %s3098_s17, 0 }
  0x4a   : > { %s2538_s22 = sand.u32 (!%p3103_p0), 1, %s2355_s10   ;;  %p3104_p5 = scmp.ne.s32.totalorder (!%p3103_p0), %s3096_s15, 0 }
  0x4b   : > { %146 = sbr.rel (%p3103_p0) target bundleno = 586 (0x24a), region = 28  ;;  %s149_s30 = scalar_lea.sflag (!%p3103_p0), [#allocation4], %s2538_s22 }
  0x4c   : > { %s2013_s29 = smul.u32 (!%p3103_p0), 24, %s2538_s22 }
  0x4e   : > { %s2542_s3 = scalar_lea.vmem (!%p3103_p0), [#allocation3], %s2013_s29 }
  0x52   : > { %2338 = dma.done.wait (%p3104_p5), %s149_s30, 384  }
  0x53   : > { %2340 = vsyncadd (%p3104_p5), %s149_s30, 4294966912  ;;  %p3105_p11 = scmp.eq.s32.totalorder %s2420_s13, 0 }
  0x55   : > { %2342 = dma.done.wait (%p3105_p11), [#allocation7], 1024   ;;  %p3106_p1 = pmov %p3105_p11 }
  0x56   : > { %v184_v0 = vlaneseq  ;;  %v2371_v1 = vmov 1966171168   ;;  %v313_v6 = vld [vmem:[%s2542_s3] sm:$0x7]  ;;  %v1931_v7 = vld [vmem:[%s2542_s3 + $0x3] sm:$0x7] }
  0x57   : > { %2344 = vsyncadd (%p3106_p1), [#allocation7], 4294966272  ;;  %v182_v2 = vunpack.c.l.s4 %v2371_v1  ;;  %v210_v8 = vld [vmem:[%s2542_s3] sm:$0x7]  ;;  %v314_v9 = vunpack.c.l.bf16 %v313_v6  ;;  %v333_v10 = vunpack.c.l.bf16 %v1931_v7  ;;  %v1926_v12 = vld [vmem:[%s2542_s3 + $0x3] sm:$0x7] }
  0x58   : > { %v185_v3 = vshrl.u32 %v184_v0, 7  ;;  %v211_v11 = vunpack.c.l.bf16 %v210_v8  ;;  %v350_v13 = vld [vmem:[%s2542_s3] sm:$0x7]  ;;  %v1932_v14 = vld [vmem:[%s2542_s3 + $0x3] sm:$0x7]  ;;  %v230_v15 = vunpack.c.l.bf16 %v1926_v12  ;;  %s2372_s15 = smov 119  }
  0x59   : > { %v183_v4 = vunpack.c.0.s8 %v182_v2  ;;  %v351_v16 = vunpack.c.l.bf16 %v350_v13  ;;  %v370_v17 = vunpack.c.l.bf16 %v1932_v14  ;;  %v1929_v18 = vld [vmem:[%s2542_s3 + $0x6] sm:$0x7]  ;;  %v1930_v19 = vld [vmem:[%s2542_s3 + $0x9] sm:$0x7]  ;;  %v1943_v32 = vld [vmem:[%s2542_s3 + $0x12] sm:$0x7] }
  0x5a   : > { %v1935_v20 = vld [vmem:[%s2542_s3 + $0x6] sm:$0x7]  ;;  %v278_v24 = vunpack.c.l.bf16 %v1929_v18  ;;  %v1936_v25 = vld [vmem:[%s2542_s3 + $0x9] sm:$0x7]  ;;  %v296_v30 = vunpack.c.l.bf16 %v1930_v19  ;;  %v1944_v37 = vld [vmem:[%s2542_s3 + $0x15] sm:$0x7]  ;;  %v556_v47 = vunpack.c.l.bf16 %v1943_v32 }
  0x5b   : > { %v2553_v5 = vsub.s32 %v183_v4, %v185_v3  ;;  %v1933_v26 = vld [vmem:[%s2542_s3 + $0x6] sm:$0x7]  ;;  %v1934_v31 = vld [vmem:[%s2542_s3 + $0x9] sm:$0x7]  ;;  %v424_v35 = vunpack.c.l.bf16 %v1935_v20  ;;  %v442_v36 = vunpack.c.l.bf16 %v1936_v25  ;;  %v1939_v38 = vld [vmem:[%s2542_s3 + $0xc] sm:$0x7]  ;;  %v574_v52 = vunpack.c.l.bf16 %v1944_v37 }
  0x5c   : > { %v388_v42 = vunpack.c.l.bf16 %v1933_v26  ;;  %v1940_v43 = vld [vmem:[%s2542_s3 + $0xf] sm:$0x7]  ;;  %v406_v46 = vunpack.c.l.bf16 %v1934_v31  ;;  %v1947_v48 = vld [vmem:[%s2542_s3 + $0xc] sm:$0x7]  ;;  %s2373_s17 = smov 127   ;;  %v490_v53 = vunpack.c.l.bf16 %v1939_v38  ;;  %s2374_s27 = smov 118  }
  0x5d   : > { %v322_v21 = vrot.slane %v314_v9, %v2553_v5  ;;  %v341_v22 = vrot.slane %v333_v10, %v2553_v5  ;;  %v219_v23 = vrot.slane %v211_v11, %v2553_v5  ;;  %v238_v27 = vrot.slane %v230_v15, %v2553_v5  ;;  %v1948_v49 = vld [vmem:[%s2542_s3 + $0xf] sm:$0x7]  ;;  %v1945_v56 = vld [vmem:[%s2542_s3 + $0xc] sm:$0x7]  ;;  %v1951_v6 = vld [vmem:[%s2542_s3 + $0x12] sm:$0x7] }
  0x5e   : > { %v359_v28 = vrot.slane %v351_v16, %v2553_v5  ;;  %v378_v29 = vrot.slane %v370_v17, %v2553_v5  ;;  %v286_v34 = vrot.slane %v278_v24, %v2553_v5  ;;  %v304_v41 = vrot.slane %v296_v30, %v2553_v5  ;;  %v1946_v57 = vld [vmem:[%s2542_s3 + $0xf] sm:$0x7]  ;;  %v1952_v7 = vld [vmem:[%s2542_s3 + $0x15] sm:$0x7]  ;;  %v1949_v8 = vld [vmem:[%s2542_s3 + $0x12] sm:$0x7] }
  0x5f   : > { %v2097_v33 = vpack.i.bf16 %v341_v22, %v322_v21  ;;  %v2087_v39 = vpack.i.bf16 %v238_v27, %v219_v23  ;;  %v432_v44 = vrot.slane %v424_v35, %v2553_v5  ;;  %v450_v45 = vrot.slane %v442_v36, %v2553_v5  ;;  %v1950_v9 = vld [vmem:[%s2542_s3 + $0x15] sm:$0x7]  ;;  %v772_v12 = vld [vmem:[%s2542_s3] sm:$0x7]  ;;  %v1954_v13 = vld [vmem:[%s2542_s3 + $0x3] sm:$0x7] }
  0x60   : > { %v2102_v40 = vpack.i.bf16 %v378_v29, %v359_v28  ;;  %v2092_v50 = vpack.i.bf16 %v304_v41, %v286_v34  ;;  %v396_v51 = vrot.slane %v388_v42, %v2553_v5  ;;  %v414_v54 = vrot.slane %v406_v46, %v2553_v5  ;;  %v735_v22 = vld [vmem:[%s2542_s3] sm:$0x7]  ;;  %v1953_v23 = vld [vmem:[%s2542_s3 + $0x3] sm:$0x7]  ;;  %v1957_v27 = vld [vmem:[%s2542_s3 + $0x6] sm:$0x7] }
  0x61   : > { %2098 = vrot.lane.b32.xlu1 %v2097_v33, %s2372_s15  ;;  %2088 = vrot.lane.b32.xlu0 %v2087_v39, %s2373_s17  ;;  %v508_v55 = vunpack.c.l.bf16 %v1940_v43  ;;  %v2112_v58 = vpack.i.bf16 %v450_v45, %v432_v44  ;;  %v628_v59 = vunpack.c.l.bf16 %v1947_v48  ;;  %v646_v60 = vunpack.c.l.bf16 %v1948_v49  ;;  %v1958_v32 = vld [vmem:[%s2542_s3 + $0x9] sm:$0x7]  ;;  %v1955_v36 = vld [vmem:[%s2542_s3 + $0x6] sm:$0x7]  ;;  %s2375_s19 = smov 100   ;;  %s2376_s23 = smov 101  }
  0x62   : > { %v564_v61 = vrot.slane %v556_v47, %v2553_v5  ;;  %v582_v62 = vrot.slane %v574_v52, %v2553_v5  ;;  %v498_v63 = vrot.slane %v490_v53, %v2553_v5  ;;  %v2107_v2 = vpack.i.bf16 %v414_v54, %v396_v51  ;;  %v1956_v37 = vld [vmem:[%s2542_s3 + $0x9] sm:$0x7]  ;;  %v918_v41 = vld [vmem:[%s2542_s3] sm:$0x7]  ;;  %v1960_v42 = vld [vmem:[%s2542_s3 + $0x3] sm:$0x7] }
  0x63   : > { %v516_v1 = vrot.slane %v508_v55, %v2553_v5  ;;  %v592_v3 = vunpack.c.l.bf16 %v1945_v56  ;;  %v610_v4 = vunpack.c.l.bf16 %v1946_v57  ;;  %v636_v10 = vrot.slane %v628_v59, %v2553_v5  ;;  %v881_v43 = vld [vmem:[%s2542_s3] sm:$0x7]  ;;  %v1959_v45 = vld [vmem:[%s2542_s3 + $0x3] sm:$0x7]  ;;  %v1963_v46 = vld [vmem:[%s2542_s3 + $0x6] sm:$0x7] }
  0x64   : > { %v654_v11 = vrot.slane %v646_v60, %v2553_v5  ;;  %v2122_v14 = vpack.i.bf16 %v582_v62, %v564_v61  ;;  %v700_v16 = vunpack.c.l.bf16 %v1951_v6  ;;  %v718_v17 = vunpack.c.l.bf16 %v1952_v7  ;;  %v1964_v47 = vld [vmem:[%s2542_s3 + $0x9] sm:$0x7]  ;;  %v1961_v51 = vld [vmem:[%s2542_s3 + $0x6] sm:$0x7]  ;;  %s2377_s28 = smov 91   ;;  %s2378_s4 = smov 92  }
  0x65   : > { %2103 = vrot.lane.b32.xlu1 %v2102_v40, %s2374_s27  ;;  %2093 = vrot.lane.b32.xlu0 %v2092_v50, %s2373_s17  ;;  %v2117_v15 = vpack.i.bf16 %v516_v1, %v498_v63  ;;  %v600_v18 = vrot.slane %v592_v3, %v2553_v5  ;;  %v618_v19 = vrot.slane %v610_v4, %v2553_v5  ;;  %v664_v20 = vunpack.c.l.bf16 %v1949_v8  ;;  %v1962_v52 = vld [vmem:[%s2542_s3 + $0x9] sm:$0x7]  ;;  %v1967_v8 = vld [vmem:[%s2542_s3 + $0xc] sm:$0x7]  ;;  %s1924_s5 = sshll.u32 %s2538_s22, 5  ;;  %s2010_s18 = sshll.u32 %s2420_s13, 9 }
  0x66   : > { %v682_v21 = vunpack.c.l.bf16 %v1950_v9  ;;  %v773_v24 = vunpack.c.l.bf16 %v772_v12  ;;  %v792_v25 = vunpack.c.l.bf16 %v1954_v13  ;;  %v2132_v26 = vpack.i.bf16 %v654_v11, %v636_v10  ;;  %v1968_v9 = vld [vmem:[%s2542_s3 + $0xf] sm:$0x7]  ;;  %s176_s6 = scalar_lea.vmem [#allocation8], %s1924_s5  ;;  %s3046_s20 = scalar_lea.hbm %s3092_s2, %s2010_s18 }
  0x67   : > { %v708_v28 = vrot.slane %v700_v16, %v2553_v5  ;;  %v726_v29 = vrot.slane %v718_v17, %v2553_v5  ;;  %v736_v30 = vunpack.c.l.bf16 %v735_v22  ;;  %v755_v31 = vunpack.c.l.bf16 %v1953_v23  ;;  %s1834_s7 = sshll.u32 %s176_s6, 4  ;;  %s1821_s13 = scalar_lea.sflag [#allocation5], %s2538_s22  ;;  %s3041_s7 = int_to_ptr.vmem [resolvable:$true] %s1834_s7 }
  0x68   : > { %v2127_v33 = vpack.i.bf16 %v618_v19, %v600_v18  ;;  %v672_v34 = vrot.slane %v664_v20, %v2553_v5  ;;  %v690_v35 = vrot.slane %v682_v21, %v2553_v5  ;;  %v781_v38 = vrot.slane %v773_v24, %v2553_v5  ;;  %v1965_v18 = vld [vmem:[%s2542_s3 + $0xc] sm:$0x7]  ;;  %v1966_v24 = vld [vmem:[%s2542_s3 + $0xf] sm:$0x7]  ;;  %s2293_s26 = scalar_lea.vmem %s3041_s7, 512  ;;  %s2381_s29 = smov [#allocation8]  }
  0x69   : > { %2113 = vrot.lane.b32.xlu1 %v2112_v58, %s2374_s27  ;;  %2108 = vrot.lane.b32.xlu0 %v2107_v2, %s2372_s15  ;;  %v800_v39 = vrot.slane %v792_v25, %v2553_v5  ;;  %v846_v40 = vunpack.c.l.bf16 %v1957_v27  ;;  %v864_v44 = vunpack.c.l.bf16 %v1958_v32  ;;  %v2142_v48 = vpack.i.bf16 %v726_v29, %v708_v28  ;;  %v1971_v25 = vld [vmem:[%s2542_s3 + $0x12] sm:$0x7]  ;;  %v1925_v29 = vld [vmem:[%s2542_s3 + $0x3] sm:$0x3]  ;;  %p2294_p4 = scmp.ne.s32.totalorder %s3041_s7, %s2293_s26  ;;  %s2297_s30 = sshll.u32 %s2381_s29, 4  ;;  %s2298_s30 = int_to_ptr.vmem [resolvable:$false] %s2297_s30 }
  0x6a   : > { %v744_v49 = vrot.slane %v736_v30, %v2553_v5  ;;  %v763_v50 = vrot.slane %v755_v31, %v2553_v5  ;;  %v2137_v53 = vpack.i.bf16 %v690_v35, %v672_v34  ;;  %v810_v54 = vunpack.c.l.bf16 %v1955_v36  ;;  %v1927_v30 = vld [vmem:[%s2542_s3 + $0x6] sm:$0x3]  ;;  %v1928_v31 = vld [vmem:[%s2542_s3 + $0x9] sm:$0x3]  ;;  %v1969_v36 = vld [vmem:[%s2542_s3 + $0x12] sm:$0x7]  ;;  %p2300_p10 = scmp.lt.s32.totalorder %s3041_s7, %s2298_s30 }
  0x6b   : > { %v828_v55 = vunpack.c.l.bf16 %v1956_v37  ;;  %v2152_v56 = vpack.i.bf16 %v800_v39, %v781_v38  ;;  %v854_v57 = vrot.slane %v846_v40, %v2553_v5  ;;  %v872_v58 = vrot.slane %v864_v44, %v2553_v5  ;;  %v1970_v37 = vld [vmem:[%s2542_s3 + $0x15] sm:$0x7]  ;;  %p2295_p6 = pnand %p2294_p4, %p2490_p12 }
  0x6c   : > { %v919_v59 = vunpack.c.l.bf16 %v918_v41  ;;  %v938_v60 = vunpack.c.l.bf16 %v1960_v42  ;;  %v882_v61 = vunpack.c.l.bf16 %v881_v43  ;;  %v2147_v62 = vpack.i.bf16 %v763_v50, %v744_v49  ;;  %v1937_v42 = vld [vmem:[%s2542_s3 + $0xc] sm:$0x3]  ;;  %v1942_v49 = vld [vmem:[%s2542_s3 + $0x15] sm:$0x3] }
  0x6d   : > { %2123 = vrot.lane.b32.xlu1 %v2122_v14, %s2373_s17  ;;  %2118 = vrot.lane.b32.xlu0 %v2117_v15, %s2373_s17  ;;  %v901_v63 = vunpack.c.l.bf16 %v1959_v45  ;;  %v992_v1 = vunpack.c.l.bf16 %v1963_v46  ;;  %v1010_v2 = vunpack.c.l.bf16 %v1964_v47  ;;  %v818_v3 = vrot.slane %v810_v54, %v2553_v5  ;;  %v1938_v47 = vld [vmem:[%s2542_s3 + $0xf] sm:$0x3]  ;;  %v1975_v54 = vld [vmem:[%s2542_s3 + $0xc] sm:$0x7]  ;;  %p2296_p8 = pneg %p2295_p6 }
  0x6e   : > { %v836_v4 = vrot.slane %v828_v55, %v2553_v5  ;;  %v956_v6 = vunpack.c.l.bf16 %v1961_v51  ;;  %v974_v7 = vunpack.c.l.bf16 %v1962_v52  ;;  %v2162_v10 = vpack.i.bf16 %v872_v58, %v854_v57 }
  0x6f   : > { %v927_v11 = vrot.slane %v919_v59, %v2553_v5  ;;  %v946_v12 = vrot.slane %v938_v60, %v2553_v5  ;;  %v890_v13 = vrot.slane %v882_v61, %v2553_v5  ;;  %v909_v14 = vrot.slane %v901_v63, %v2553_v5  ;;  %v1976_v60 = vld [vmem:[%s2542_s3 + $0xf] sm:$0x7] }
  0x70   : > { %v2647_v15 = vrot.slane %v992_v1, %v2553_v5  ;;  %v2650_v16 = vrot.slane %v1010_v2, %v2553_v5  ;;  %v1064_v17 = vunpack.c.l.bf16 %v1967_v8  ;;  %vm2654_vm0 = vcmp.lt.s32.totalorder %v184_v0, 256  ;;  %v178_v0 = vld [vmem:[%s2542_s3] sm:$0x3] }
  0x71   : > { %2133 = vrot.lane.b32.xlu1 %v2132_v26, %s2374_s27  ;;  %2128 = vrot.lane.b32.xlu0 %v2127_v33, %s2372_s15  ;;  %v2157_v20 = vpack.i.bf16 %v836_v4, %v818_v3  ;;  %v2660_v21 = vrot.slane %v956_v6, %v2553_v5  ;;  %v2663_v22 = vrot.slane %v974_v7, %v2553_v5  ;;  %v1082_v23 = vunpack.c.l.bf16 %v1968_v9  ;;  %v1972_v26 = vld [vmem:[%s2542_s3 + $0x15] sm:$0x7]  ;;  %v1973_v3 = vld [vmem:[%s2542_s3 + $0xc] sm:$0x7] }
  0x72   : > { %v2172_v27 = vpack.i.bf16 %v946_v12, %v927_v11  ;;  %v1028_v28 = vunpack.c.l.bf16 %v1965_v18  ;;  %v2167_v32 = vpack.i.bf16 %v909_v14, %v890_v13  ;;  %v2182_v33 = vpack.i.bf16 %v2650_v16, %v2647_v15  ;;  %v1974_v4 = vld [vmem:[%s2542_s3 + $0xf] sm:$0x7]  ;;  %v1979_v18 = vld [vmem:[%s2542_s3 + $0x12] sm:$0x7] }
  0x73   : > { %v2676_v34 = vrot.slane %v1064_v17, %v2553_v5  ;;  %v1046_v35 = vunpack.c.l.bf16 %v1966_v24  ;;  %v2177_v38 = vpack.i.bf16 %v2663_v22, %v2660_v21  ;;  %v1090_v39 = vrot.slane %v1082_v23, %v2553_v5  ;;  %v1977_v21 = vld [vmem:[%s2542_s3 + $0x12] sm:$0x7]  ;;  %v1978_v22 = vld [vmem:[%s2542_s3 + $0x15] sm:$0x7] }
  0x74   : > { %v1136_v40 = vunpack.c.l.bf16 %v1971_v25  ;;  %v179_v41 = vunpack.c.l.bf16 %v178_v0  ;;  %v1154_v43 = vunpack.c.l.bf16 %v1972_v26  ;;  %v197_v44 = vunpack.c.l.bf16 %v1925_v29 }
  0x75   : > { %2143 = vrot.lane.b32.xlu1 %v2142_v48, %s2374_s27  ;;  %2138 = vrot.lane.b32.xlu0 %v2137_v53, %s2372_s15  ;;  %v249_v45 = vunpack.c.l.bf16 %v1927_v30  ;;  %v264_v46 = vunpack.c.l.bf16 %v1928_v31  ;;  %v1941_v48 = vld [vmem:[%s2542_s3 + $0x12] sm:$0x3]  ;;  %v1036_v50 = vrot.slane %v1028_v28, %v2553_v5  ;;  %v1100_v51 = vunpack.c.l.bf16 %v1969_v36 }
  0x76   : > { %v1118_v52 = vunpack.c.l.bf16 %v1970_v37  ;;  %v187_v53 = vrot.slane %v179_v41, %v2553_v5  ;;  %v205_v55 = vrot.slane %v197_v44, %v2553_v5  ;;  %v461_v58 = vunpack.c.l.bf16 %v1937_v42 }
  0x77   : > { %v272_v57 = vrot.slane %v264_v46, %v2553_v5  ;;  %v1054_v59 = vrot.slane %v1046_v35, %v2553_v5  ;;  %v476_v61 = vunpack.c.l.bf16 %v1938_v47  ;;  %v542_v63 = vunpack.c.l.bf16 %v1942_v49 }
  0x78   : > { %193 = vst.msk [vmem:[#allocation2] ss:$8 sm:$0x3] %vm2654_vm0, %v187_v53  ;;  %v1144_v1 = vrot.slane %v1136_v40, %v2553_v5  ;;  %v1162_v2 = vrot.slane %v1154_v43, %v2553_v5  ;;  %208 = vst.msk [vmem:[#allocation2 + $0x1] ss:$8 sm:$0x3] %vm2654_vm0, %v205_v55  ;;  %v469_v6 = vrot.slane %v461_v58, %v2553_v5  ;;  %v1208_v7 = vunpack.c.l.bf16 %v1975_v54 }
  0x79   : > { %2153 = vrot.lane.b32.xlu1 %v2152_v56, %s2375_s19  ;;  %2148 = vrot.lane.b32.xlu0 %v2147_v62, %s2376_s23  ;;  %v257_v56 = vrot.slane %v249_v45, %v2553_v5  ;;  %v527_v62 = vunpack.c.l.bf16 %v1941_v48  ;;  %275 = vst.msk [vmem:[#allocation2 + $0x5] ss:$8 sm:$0x3] %vm2654_vm0, %v272_v57  ;;  %v484_v8 = vrot.slane %v476_v61, %v2553_v5  ;;  %v1226_v14 = vunpack.c.l.bf16 %v1976_v60 }
  0x7a   : > { %v2192_v11 = vpack.i.bf16 %v1090_v39, %v2676_v34  ;;  %v1108_v12 = vrot.slane %v1100_v51, %v2553_v5  ;;  %v1126_v13 = vrot.slane %v1118_v52, %v2553_v5  ;;  %472 = vst.msk [vmem:[#allocation2 + $0x20] ss:$8 sm:$0x3] %vm2654_vm0, %v469_v6  ;;  %v2187_v15 = vpack.i.bf16 %v1054_v59, %v1036_v50 }
  0x7b   : > { %260 = vst.msk [vmem:[#allocation2 + $0x4] ss:$8 sm:$0x3] %vm2654_vm0, %v257_v56  ;;  %v535_v9 = vrot.slane %v527_v62, %v2553_v5  ;;  %v1172_v16 = vunpack.c.l.bf16 %v1973_v3  ;;  %v1190_v17 = vunpack.c.l.bf16 %v1974_v4  ;;  %487 = vst.msk [vmem:[#allocation2 + $0x21] ss:$8 sm:$0x3] %vm2654_vm0, %v484_v8  ;;  %v2202_v23 = vpack.i.bf16 %v1162_v2, %v1144_v1 }
  0x7c   : > { %v1216_v24 = vrot.slane %v1208_v7, %v2553_v5  ;;  %v2197_v25 = vpack.i.bf16 %v1126_v13, %v1108_v12  ;;  %v1234_v26 = vrot.slane %v1226_v14, %v2553_v5  ;;  %v1280_v0 = vunpack.c.l.bf16 %v1979_v18 }
  0x7d   : > { %2163 = vrot.lane.b32.xlu1 %v2162_v10, %s2375_s19  ;;  %2158 = vrot.lane.b32.xlu0 %v2157_v20, %s2376_s23  ;;  %v550_v10 = vrot.slane %v542_v63, %v2553_v5  ;;  %v1980_v20 = vld [vmem:[%s2542_s3 + $0x15] sm:$0x7]  ;;  %538 = vst.msk [vmem:[#allocation2 + $0x24] ss:$8 sm:$0x3] %vm2654_vm0, %v535_v9  ;;  %v1180_v28 = vrot.slane %v1172_v16, %v2553_v5  ;;  %v1244_v30 = vunpack.c.l.bf16 %v1977_v21  ;;  %v1262_v31 = vunpack.c.l.bf16 %v1978_v22  ;;  %s2299_s3 = scalar_lea.vmem %s2298_s30, 1024 }
  0x7e   : > { %v1198_v29 = vrot.slane %v1190_v17, %v2553_v5  ;;  %v2379_v40 = vmov 0   ;;  %vm326_vm1 = vcmask 973824   ;;  %vm223_vm2 = vcmask 1039360   ;;  %p2301_p13 = scmp.lt.s32.totalorder %s2299_s3, %s2293_s26 }
  0x7f   : > { %553 = vst.msk [vmem:[#allocation2 + $0x25] ss:$8 sm:$0x3] %vm2654_vm0, %v550_v10  ;;  %v1252_v36 = vrot.slane %v1244_v30, %v2553_v5  ;;  %v1270_v37 = vrot.slane %v1262_v31, %v2553_v5  ;;  %1395 = vmatprep.mubr.bf16.mxu0 %v2379_v40  ;;  %1449 = vmatprep.mubr.bf16.mxu1 %v2379_v40  ;;  %vm363_vm3 = vcmask 965632   ;;  %vm785_vm4 = vcmask 818176  }
  0x80   : > { %v2207_v35 = vpack.i.bf16 %v1198_v29, %v1180_v28  ;;  %vm748_vm5 = vcmask 826368   ;;  %vm931_vm6 = vcmask 744448   ;;  %vm894_vm7 = vcmask 752640   ;;  %p2302_p3 = por %p2301_p13, %p2300_p10 }
  0x81   : > { %2173 = vrot.lane.b32.xlu1 %v2172_v27, %s2377_s28  ;;  %2168 = vrot.lane.b32.xlu0 %v2167_v32, %s2378_s4  ;;  %v1298_v27 = vunpack.c.l.bf16 %v1980_v20  ;;  %v2212_v32 = vpack.i.bf16 %v1234_v26, %v1216_v24  ;;  %v2217_v39 = vpack.i.bf16 %v1270_v37, %v1252_v36  ;;  %vm1356_vm8 = vcmask 1043456  }
  0x82   : > { %v2955_v19 = vsel %vm1356_vm8, 1.0|1.0, %v2379_v40  ;;  %vm1352_vm9 = vcmask 588800   ;;  %p2303_p7 = pnand %p2302_p3, %p2296_p8 }
  0x83   : > { %v1306_v34 = vrot.slane %v1298_v27, %v2553_v5 }
  0x85   : > { %2183 = vrot.lane.b32.xlu1 %v2182_v33, %s2377_s28  ;;  %2178 = vrot.lane.b32.xlu0 %v2177_v38, %s2378_s4  ;;  %v1288_v33 = vrot.slane %v1280_v0, %v2553_v5 }
  0x87   : > { %v2222_v38 = vpack.i.bf16 %v1306_v34, %v1288_v33 }
  0x89   : > { %2193 = vrot.lane.b32.xlu1 %v2192_v11, %s2375_s19  ;;  %2188 = vrot.lane.b32.xlu0 %v2187_v15, %s2376_s23 }
  0x8d   : > { %2203 = vrot.lane.b32.xlu1 %v2202_v23, %s2375_s19  ;;  %2198 = vrot.lane.b32.xlu0 %v2197_v25, %s2376_s23 }
  0x91   : > { %2213 = vrot.lane.b32.xlu1 %v2212_v32, %s2377_s28  ;;  %2208 = vrot.lane.b32.xlu0 %v2207_v35, %s2378_s4 }
  0x95   : > { %2223 = vrot.lane.b32.xlu1 %v2222_v38, %s2377_s28  ;;  %2218 = vrot.lane.b32.xlu0 %v2217_v39, %s2378_s4 }
  0xd3   : > { %v2099_v41 = vpop.permute.xlu1 %2098  ;;  %v2089_v44 = vpop.permute.xlu0 %2088 }
  0xd4   : > { %v2101_v42 = vunpack.i.h.bf16 %v2099_v41  ;;  %v2100_v43 = vunpack.i.l.bf16 %v2099_v41  ;;  %v2091_v5 = vunpack.i.h.bf16 %v2089_v44  ;;  %v2090_v45 = vunpack.i.l.bf16 %v2089_v44 }
  0xd6   : > { %v344_v46 = vrot.slane %v2101_v42, 1  ;;  %v325_v47 = vrot.slane %v2100_v43, 1  ;;  %v241_v48 = vrot.slane %v2091_v5, 1  ;;  %v222_v49 = vrot.slane %v2090_v45, 1 }
  0xd7   : > { %v2104_v50 = vpop.permute.xlu1 %2103  ;;  %v2094_v55 = vpop.permute.xlu0 %2093 }
  0xd8   : > { %v345_v51 = vsel %vm326_vm1, %v2101_v42, %v344_v46  ;;  %v327_v52 = vsel %vm326_vm1, %v2100_v43, %v325_v47  ;;  %v2106_v53 = vunpack.i.h.bf16 %v2104_v50  ;;  %v2105_v54 = vunpack.i.l.bf16 %v2104_v50 }
  0xd9   : > { %348 = vst.msk [vmem:[#allocation2 + $0x11] ss:$8 sm:$0x3] %vm2654_vm0, %v345_v51  ;;  %330 = vst.msk [vmem:[#allocation2 + $0x10] ss:$8 sm:$0x3] %vm2654_vm0, %v327_v52  ;;  %v242_v56 = vsel %vm223_vm2, %v2091_v5, %v241_v48  ;;  %v224_v57 = vsel %vm223_vm2, %v2090_v45, %v222_v49  ;;  %v2096_v58 = vunpack.i.h.bf16 %v2094_v55  ;;  %v2095_v59 = vunpack.i.l.bf16 %v2094_v55 }
  0xda   : > { %245 = vst.msk [vmem:[#allocation2 + $0x3] ss:$8 sm:$0x3] %vm2654_vm0, %v242_v56  ;;  %227 = vst.msk [vmem:[#allocation2 + $0x2] ss:$8 sm:$0x3] %vm2654_vm0, %v224_v57 }
  0xdb   : > { %v381_v60 = vrot.slane %v2106_v53, 1  ;;  %v362_v61 = vrot.slane %v2105_v54, 1  ;;  %v307_v62 = vrot.slane %v2096_v58, 1  ;;  %v289_v63 = vrot.slane %v2095_v59, 1  ;;  %v2114_v1 = vpop.permute.xlu1 %2113  ;;  %v2109_v7 = vpop.permute.xlu0 %2108 }
  0xdc   : > { %v2116_v4 = vunpack.i.h.bf16 %v2114_v1  ;;  %v2115_v6 = vunpack.i.l.bf16 %v2114_v1  ;;  %v2111_v10 = vunpack.i.h.bf16 %v2109_v7  ;;  %v2110_v11 = vunpack.i.l.bf16 %v2109_v7 }
  0xdd   : > { %v382_v2 = vsel %vm363_vm3, %v2106_v53, %v381_v60  ;;  %v364_v3 = vsel %vm363_vm3, %v2105_v54, %v362_v61  ;;  %v308_v8 = vsel %vm223_vm2, %v2096_v58, %v307_v62  ;;  %v290_v9 = vsel %vm223_vm2, %v2095_v59, %v289_v63 }
  0xde   : > { %385 = vst.msk [vmem:[#allocation2 + $0x13] ss:$8 sm:$0x3] %vm2654_vm0, %v382_v2  ;;  %367 = vst.msk [vmem:[#allocation2 + $0x12] ss:$8 sm:$0x3] %vm2654_vm0, %v364_v3 }
  0xdf   : > { %311 = vst.msk [vmem:[#allocation2 + $0x7] ss:$8 sm:$0x3] %vm2654_vm0, %v308_v8  ;;  %293 = vst.msk [vmem:[#allocation2 + $0x6] ss:$8 sm:$0x3] %vm2654_vm0, %v290_v9  ;;  %v2124_v16 = vpop.permute.xlu1 %2123  ;;  %v2119_v22 = vpop.permute.xlu0 %2118 }
  0xe0   : > { %v453_v12 = vrot.slane %v2116_v4, 1  ;;  %v435_v13 = vrot.slane %v2115_v6, 1  ;;  %v417_v14 = vrot.slane %v2111_v10, 1  ;;  %v399_v15 = vrot.slane %v2110_v11, 1 }
  0xe1   : > { %v2126_v20 = vunpack.i.h.bf16 %v2124_v16  ;;  %v2125_v21 = vunpack.i.l.bf16 %v2124_v16  ;;  %v2121_v25 = vunpack.i.h.bf16 %v2119_v22  ;;  %v2120_v26 = vunpack.i.l.bf16 %v2119_v22 }
  0xe2   : > { %v454_v17 = vsel %vm363_vm3, %v2116_v4, %v453_v12  ;;  %v436_v18 = vsel %vm363_vm3, %v2115_v6, %v435_v13  ;;  %v418_v23 = vsel %vm326_vm1, %v2111_v10, %v417_v14  ;;  %v400_v24 = vsel %vm326_vm1, %v2110_v11, %v399_v15 }
  0xe3   : > { %457 = vst.msk [vmem:[#allocation2 + $0x17] ss:$8 sm:$0x3] %vm2654_vm0, %v454_v17  ;;  %439 = vst.msk [vmem:[#allocation2 + $0x16] ss:$8 sm:$0x3] %vm2654_vm0, %v436_v18  ;;  %v2134_v30 = vpop.permute.xlu1 %2133  ;;  %v2129_v35 = vpop.permute.xlu0 %2128 }
  0xe4   : > { %421 = vst.msk [vmem:[#allocation2 + $0x15] ss:$8 sm:$0x3] %vm2654_vm0, %v418_v23  ;;  %403 = vst.msk [vmem:[#allocation2 + $0x14] ss:$8 sm:$0x3] %vm2654_vm0, %v400_v24  ;;  %v2136_v33 = vunpack.i.h.bf16 %v2134_v30  ;;  %v2135_v34 = vunpack.i.l.bf16 %v2134_v30  ;;  %v2131_v38 = vunpack.i.h.bf16 %v2129_v35  ;;  %v2130_v39 = vunpack.i.l.bf16 %v2129_v35 }
  0xe5   : > { %v585_v0 = vrot.slane %v2126_v20, 1  ;;  %v567_v27 = vrot.slane %v2125_v21, 1  ;;  %v519_v28 = vrot.slane %v2121_v25, 1  ;;  %v501_v29 = vrot.slane %v2120_v26, 1 }
  0xe6   : > { %v657_v41 = vrot.slane %v2136_v33, 1  ;;  %v639_v42 = vrot.slane %v2135_v34, 1  ;;  %v621_v43 = vrot.slane %v2131_v38, 1  ;;  %v603_v44 = vrot.slane %v2130_v39, 1  ;;  %v1318_v50 = vld [vmem:[#allocation2 + $0x8] sm:$0xff]  ;;  %v1317_v56 = vld [vmem:[#allocation2] sm:$0xff] }
  0xe7   : > { %v586_v31 = vsel %vm223_vm2, %v2126_v20, %v585_v0  ;;  %v568_v32 = vsel %vm223_vm2, %v2125_v21, %v567_v27  ;;  %v520_v36 = vsel %vm223_vm2, %v2121_v25, %v519_v28  ;;  %v502_v37 = vsel %vm223_vm2, %v2120_v26, %v501_v29  ;;  %v2144_v5 = vpop.permute.xlu1 %2143  ;;  %v2139_v49 = vpop.permute.xlu0 %2138 }
  0xe8   : > { %589 = vst.msk [vmem:[#allocation2 + $0x27] ss:$8 sm:$0x3] %vm2654_vm0, %v586_v31  ;;  %571 = vst.msk [vmem:[#allocation2 + $0x26] ss:$8 sm:$0x3] %vm2654_vm0, %v568_v32  ;;  %v658_v45 = vsel %vm363_vm3, %v2136_v33, %v657_v41  ;;  %v640_v46 = vsel %vm363_vm3, %v2135_v34, %v639_v42  ;;  %v2146_v47 = vunpack.i.h.bf16 %v2144_v5  ;;  %v2145_v48 = vunpack.i.l.bf16 %v2144_v5 }
  0xe9   : > { %523 = vst.msk [vmem:[#allocation2 + $0x23] ss:$8 sm:$0x3] %vm2654_vm0, %v520_v36  ;;  %505 = vst.msk [vmem:[#allocation2 + $0x22] ss:$8 sm:$0x3] %vm2654_vm0, %v502_v37  ;;  %v622_v51 = vsel %vm326_vm1, %v2131_v38, %v621_v43  ;;  %v604_v52 = vsel %vm326_vm1, %v2130_v39, %v603_v44  ;;  %v2141_v53 = vunpack.i.h.bf16 %v2139_v49  ;;  %v2140_v54 = vunpack.i.l.bf16 %v2139_v49 }
  0xea   : > { %661 = vst.msk [vmem:[#allocation2 + $0x33] ss:$8 sm:$0x3] %vm2654_vm0, %v658_v45  ;;  %643 = vst.msk [vmem:[#allocation2 + $0x32] ss:$8 sm:$0x3] %vm2654_vm0, %v640_v46 }
  0xeb   : > { %v1320_v55 = vld [vmem:[#allocation2 + $0x18] sm:$0xff]  ;;  %v1319_v57 = vld [vmem:[#allocation2 + $0x10] sm:$0xff]  ;;  %625 = vst.msk [vmem:[#allocation2 + $0x31] ss:$8 sm:$0x3] %vm2654_vm0, %v622_v51  ;;  %v729_v58 = vrot.slane %v2146_v47, 1  ;;  %v2154_v1 = vpop.permute.xlu1 %2153  ;;  %v2149_v7 = vpop.permute.xlu0 %2148 }
  0xec   : > { %607 = vst.msk [vmem:[#allocation2 + $0x30] ss:$8 sm:$0x3] %vm2654_vm0, %v604_v52  ;;  %v711_v59 = vrot.slane %v2145_v48, 1  ;;  %v2809_v60 = vpack.c.bf16 %v1320_v55, %v1318_v50  ;;  %v2811_v61 = vpack.c.bf16 %v1319_v57, %v1317_v56  ;;  %v693_v62 = vrot.slane %v2141_v53, 1 }
  0xed   : > { %v675_v63 = vrot.slane %v2140_v54, 1  ;;  %v730_v2 = vsel %vm363_vm3, %v2146_v47, %v729_v58  ;;  %v2156_v4 = vunpack.i.h.bf16 %v2154_v1  ;;  %v2155_v6 = vunpack.i.l.bf16 %v2154_v1 }
  0xee   : > { %v712_v3 = vsel %vm363_vm3, %v2145_v48, %v711_v59  ;;  %1363 = vmatprep.subr.bf16.mxu0 %v2809_v60  ;;  %1417 = vmatprep.subr.bf16.mxu1 %v2809_v60  ;;  %733 = vst.msk [vmem:[#allocation2 + $0x37] ss:$8 sm:$0x3] %vm2654_vm0, %v730_v2  ;;  %v694_v8 = vsel %vm326_vm1, %v2141_v53, %v693_v62  ;;  %v2151_v10 = vunpack.i.h.bf16 %v2149_v7  ;;  %v2150_v11 = vunpack.i.l.bf16 %v2149_v7 }
  0xef   : > { %715 = vst.msk [vmem:[#allocation2 + $0x36] ss:$8 sm:$0x3] %vm2654_vm0, %v712_v3  ;;  %v676_v9 = vsel %vm326_vm1, %v2140_v54, %v675_v63  ;;  %1364 = vmatpush1.bf16.msra.mxu0 %v2811_v61  ;;  %1418 = vmatpush1.bf16.msra.mxu1 %v2811_v61  ;;  %697 = vst.msk [vmem:[#allocation2 + $0x35] ss:$8 sm:$0x3] %vm2654_vm0, %v694_v8  ;;  %v2164_v16 = vpop.permute.xlu1 %2163  ;;  %v2159_v22 = vpop.permute.xlu0 %2158 }
  0xf0   : > { %679 = vst.msk [vmem:[#allocation2 + $0x34] ss:$8 sm:$0x3] %vm2654_vm0, %v676_v9  ;;  %v803_v12 = vrot.slane %v2156_v4, 1  ;;  %v784_v13 = vrot.slane %v2155_v6, 1  ;;  %v766_v14 = vrot.slane %v2151_v10, 1  ;;  %v2166_v20 = vunpack.i.h.bf16 %v2164_v16 }
  0xf1   : > { %v747_v15 = vrot.slane %v2150_v11, 1  ;;  %v2165_v21 = vunpack.i.l.bf16 %v2164_v16  ;;  %v2161_v25 = vunpack.i.h.bf16 %v2159_v22  ;;  %v2160_v26 = vunpack.i.l.bf16 %v2159_v22  ;;  %v1322_v36 = vld [vmem:[#allocation2 + $0x28] sm:$0xff]  ;;  %v1321_v43 = vld [vmem:[#allocation2 + $0x20] sm:$0xff] }
  0xf2   : > { %v804_v17 = vsel %vm785_vm4, %v2156_v4, %v803_v12  ;;  %v786_v18 = vsel %vm785_vm4, %v2155_v6, %v784_v13  ;;  %v767_v23 = vsel %vm748_vm5, %v2151_v10, %v766_v14  ;;  %v875_v0 = vrot.slane %v2166_v20, 1 }
  0xf3   : > { %807 = vst.msk [vmem:[#allocation2 + $0x43] ss:$8 sm:$0x3] %vm2654_vm0, %v804_v17  ;;  %789 = vst.msk [vmem:[#allocation2 + $0x42] ss:$8 sm:$0x3] %vm2654_vm0, %v786_v18  ;;  %v749_v24 = vsel %vm748_vm5, %v2150_v11, %v747_v15  ;;  %v2174_v30 = vpop.permute.xlu1 %2173  ;;  %v2169_v35 = vpop.permute.xlu0 %2168 }
  0xf4   : > { %770 = vst.msk [vmem:[#allocation2 + $0x41] ss:$8 sm:$0x3] %vm2654_vm0, %v767_v23  ;;  %752 = vst.msk [vmem:[#allocation2 + $0x40] ss:$8 sm:$0x3] %vm2654_vm0, %v749_v24  ;;  %v876_v31 = vsel %vm785_vm4, %v2166_v20, %v875_v0  ;;  %v2176_v33 = vunpack.i.h.bf16 %v2174_v30  ;;  %v2175_v34 = vunpack.i.l.bf16 %v2174_v30  ;;  %v2171_v39 = vunpack.i.h.bf16 %v2169_v35 }
  0xf5   : > { %v857_v27 = vrot.slane %v2165_v21, 1  ;;  %v839_v28 = vrot.slane %v2161_v25, 1  ;;  %v821_v29 = vrot.slane %v2160_v26, 1  ;;  %879 = vst.msk [vmem:[#allocation2 + $0x47] ss:$8 sm:$0x3] %vm2654_vm0, %v876_v31  ;;  %v2170_v41 = vunpack.i.l.bf16 %v2169_v35 }
  0xf6   : > { %v949_v5 = vrot.slane %v2176_v33, 1  ;;  %v930_v45 = vrot.slane %v2175_v34, 1  ;;  %v912_v48 = vrot.slane %v2171_v39, 1 }
  0xf7   : > { %v858_v32 = vsel %vm785_vm4, %v2165_v21, %v857_v27  ;;  %v840_v37 = vsel %vm748_vm5, %v2161_v25, %v839_v28  ;;  %v822_v38 = vsel %vm748_vm5, %v2160_v26, %v821_v29  ;;  %v1324_v42 = vld [vmem:[#allocation2 + $0x38] sm:$0xff]  ;;  %v1323_v44 = vld [vmem:[#allocation2 + $0x30] sm:$0xff]  ;;  %v893_v49 = vrot.slane %v2170_v41, 1  ;;  %v2184_v50 = vpop.permute.xlu1 %2183  ;;  %v2179_v55 = vpop.permute.xlu0 %2178 }
  0xf8   : > { %861 = vst.msk [vmem:[#allocation2 + $0x46] ss:$8 sm:$0x3] %vm2654_vm0, %v858_v32  ;;  %843 = vst.msk [vmem:[#allocation2 + $0x45] ss:$8 sm:$0x3] %vm2654_vm0, %v840_v37  ;;  %v2853_v46 = vpack.c.bf16 %v1324_v42, %v1322_v36  ;;  %v2855_v47 = vpack.c.bf16 %v1323_v44, %v1321_v43  ;;  %v950_v51 = vsel %vm931_vm6, %v2176_v33, %v949_v5  ;;  %v2186_v53 = vunpack.i.h.bf16 %v2184_v50 }
  0xf9   : > { %825 = vst.msk [vmem:[#allocation2 + $0x44] ss:$8 sm:$0x3] %vm2654_vm0, %v822_v38  ;;  %v932_v52 = vsel %vm931_vm6, %v2175_v34, %v930_v45  ;;  %v2185_v54 = vunpack.i.l.bf16 %v2184_v50  ;;  %953 = vst.msk [vmem:[#allocation2 + $0x53] ss:$8 sm:$0x3] %vm2654_vm0, %v950_v51  ;;  %v913_v56 = vsel %vm894_vm7, %v2171_v39, %v912_v48  ;;  %v895_v57 = vsel %vm894_vm7, %v2170_v41, %v893_v49 }
  0xfa   : > { %1365 = vmatprep.subr.bf16.mxu0 %v2853_v46  ;;  %1419 = vmatprep.subr.bf16.mxu1 %v2853_v46  ;;  %935 = vst.msk [vmem:[#allocation2 + $0x52] ss:$8 sm:$0x3] %vm2654_vm0, %v932_v52  ;;  %v2181_v58 = vunpack.i.h.bf16 %v2179_v55  ;;  %v2180_v59 = vunpack.i.l.bf16 %v2179_v55  ;;  %916 = vst.msk [vmem:[#allocation2 + $0x51] ss:$8 sm:$0x3] %vm2654_vm0, %v913_v56 }
  0xfb   : > { %1366 = vmatpush1.bf16.msra.mxu0 %v2855_v47  ;;  %1420 = vmatpush1.bf16.msra.mxu1 %v2855_v47  ;;  %898 = vst.msk [vmem:[#allocation2 + $0x50] ss:$8 sm:$0x3] %vm2654_vm0, %v895_v57  ;;  %v1021_v62 = vrot.slane %v2186_v53, 1  ;;  %v1003_v63 = vrot.slane %v2185_v54, 1  ;;  %v2194_v3 = vpop.permute.xlu1 %2193  ;;  %v2189_v9 = vpop.permute.xlu0 %2188 }
  0xfc   : > { %v985_v1 = vrot.slane %v2181_v58, 1  ;;  %v967_v2 = vrot.slane %v2180_v59, 1  ;;  %v2196_v7 = vunpack.i.h.bf16 %v2194_v3  ;;  %v2195_v8 = vunpack.i.l.bf16 %v2194_v3 }
  0xfd   : > { %v1022_v4 = vsel %vm931_vm6, %v2186_v53, %v1021_v62  ;;  %v1004_v6 = vsel %vm931_vm6, %v2185_v54, %v1003_v63  ;;  %v2191_v12 = vunpack.i.h.bf16 %v2189_v9  ;;  %v2190_v13 = vunpack.i.l.bf16 %v2189_v9 }
  0xfe   : > { %1025 = vst.msk [vmem:[#allocation2 + $0x57] ss:$8 sm:$0x3] %vm2654_vm0, %v1022_v4  ;;  %1007 = vst.msk [vmem:[#allocation2 + $0x56] ss:$8 sm:$0x3] %vm2654_vm0, %v1004_v6  ;;  %v986_v10 = vsel %vm894_vm7, %v2181_v58, %v985_v1  ;;  %v968_v11 = vsel %vm894_vm7, %v2180_v59, %v967_v2 }
  0xff   : > { %989 = vst.msk [vmem:[#allocation2 + $0x55] ss:$8 sm:$0x3] %vm2654_vm0, %v986_v10  ;;  %971 = vst.msk [vmem:[#allocation2 + $0x54] ss:$8 sm:$0x3] %vm2654_vm0, %v968_v11  ;;  %v2204_v18 = vpop.permute.xlu1 %2203  ;;  %v2199_v24 = vpop.permute.xlu0 %2198 }
 0x100   : > { %v1093_v14 = vrot.slane %v2196_v7, 1  ;;  %v1075_v15 = vrot.slane %v2195_v8, 1  ;;  %v1057_v16 = vrot.slane %v2191_v12, 1  ;;  %v1039_v17 = vrot.slane %v2190_v13, 1  ;;  %v1326_v38 = vld [vmem:[#allocation2 + $0x48] sm:$0xff]  ;;  %v1325_v5 = vld [vmem:[#allocation2 + $0x40] sm:$0xff] }
 0x101   : > { %v2206_v22 = vunpack.i.h.bf16 %v2204_v18  ;;  %v2205_v23 = vunpack.i.l.bf16 %v2204_v18  ;;  %v2201_v0 = vunpack.i.h.bf16 %v2199_v24  ;;  %v2200_v27 = vunpack.i.l.bf16 %v2199_v24  ;;  %v2231_v24 = vld [vmem:[#allocation6 + $0x20] sm:$0xff]  }
 0x102   : > { %v1094_v20 = vsel %vm785_vm4, %v2196_v7, %v1093_v14  ;;  %v1076_v21 = vsel %vm785_vm4, %v2195_v8, %v1075_v15  ;;  %v1058_v25 = vsel %vm748_vm5, %v2191_v12, %v1057_v16  ;;  %v1040_v26 = vsel %vm748_vm5, %v2190_v13, %v1039_v17 }
 0x103   : > { %1097 = vst.msk [vmem:[#allocation2 + $0x63] ss:$8 sm:$0x3] %vm2654_vm0, %v1094_v20  ;;  %1079 = vst.msk [vmem:[#allocation2 + $0x62] ss:$8 sm:$0x3] %vm2654_vm0, %v1076_v21  ;;  %v2214_v32 = vpop.permute.xlu1 %2213  ;;  %v2209_v37 = vpop.permute.xlu0 %2208 }
 0x104   : > { %1061 = vst.msk [vmem:[#allocation2 + $0x61] ss:$8 sm:$0x3] %vm2654_vm0, %v1058_v25  ;;  %1043 = vst.msk [vmem:[#allocation2 + $0x60] ss:$8 sm:$0x3] %vm2654_vm0, %v1040_v26  ;;  %v2216_v35 = vunpack.i.h.bf16 %v2214_v32  ;;  %v2215_v36 = vunpack.i.l.bf16 %v2214_v32  ;;  %v2211_v42 = vunpack.i.h.bf16 %v2209_v37  ;;  %v2210_v43 = vunpack.i.l.bf16 %v2209_v37 }
 0x105   : > { %v1165_v28 = vrot.slane %v2206_v22, 1  ;;  %v1147_v29 = vrot.slane %v2205_v23, 1  ;;  %v1129_v30 = vrot.slane %v2201_v0, 1  ;;  %v1111_v31 = vrot.slane %v2200_v27, 1  ;;  %v2227_v20 = vld [vmem:[#allocation6] sm:$0xff]   ;;  %v2228_v21 = vld [vmem:[#allocation6 + $0x8] sm:$0xff]  }
 0x106   : > { %v1328_v44 = vld [vmem:[#allocation2 + $0x58] sm:$0xff]  ;;  %v1327_v45 = vld [vmem:[#allocation2 + $0x50] sm:$0xff]  ;;  %v1237_v48 = vrot.slane %v2216_v35, 1  ;;  %v1219_v49 = vrot.slane %v2215_v36, 1  ;;  %v1201_v52 = vrot.slane %v2211_v42, 1  ;;  %v1183_v53 = vrot.slane %v2210_v43, 1 }
 0x107   : > { %v1166_v33 = vsel %vm785_vm4, %v2206_v22, %v1165_v28  ;;  %v1148_v34 = vsel %vm785_vm4, %v2205_v23, %v1147_v29  ;;  %v1130_v39 = vsel %vm748_vm5, %v2201_v0, %v1129_v30  ;;  %v1112_v41 = vsel %vm748_vm5, %v2200_v27, %v1111_v31  ;;  %v2224_v54 = vpop.permute.xlu1 %2223  ;;  %v2219_v59 = vpop.permute.xlu0 %2218  ;;  %v2229_v22 = vld [vmem:[#allocation6 + $0x10] sm:$0xff]   ;;  %v2230_v23 = vld [vmem:[#allocation6 + $0x18] sm:$0xff]   ;;  %v2232_v25 = vld [vmem:[#allocation6 + $0x28] sm:$0xff]  }
 0x108   : > { %1169 = vst.msk [vmem:[#allocation2 + $0x67] ss:$8 sm:$0x3] %vm2654_vm0, %v1166_v33  ;;  %1151 = vst.msk [vmem:[#allocation2 + $0x66] ss:$8 sm:$0x3] %vm2654_vm0, %v1148_v34  ;;  %v2909_v50 = vpack.c.bf16 %v1328_v44, %v1326_v38  ;;  %v2911_v51 = vpack.c.bf16 %v1327_v45, %v1325_v5  ;;  %v1238_v55 = vsel %vm931_vm6, %v2216_v35, %v1237_v48  ;;  %v2226_v57 = vunpack.i.h.bf16 %v2224_v54 }
 0x109   : > { %1133 = vst.msk [vmem:[#allocation2 + $0x65] ss:$8 sm:$0x3] %vm2654_vm0, %v1130_v39  ;;  %1115 = vst.msk [vmem:[#allocation2 + $0x64] ss:$8 sm:$0x3] %vm2654_vm0, %v1112_v41  ;;  %v1220_v56 = vsel %vm931_vm6, %v2215_v36, %v1219_v49  ;;  %v2225_v58 = vunpack.i.l.bf16 %v2224_v54  ;;  %v1202_v62 = vsel %vm894_vm7, %v2211_v42, %v1201_v52  ;;  %v1184_v63 = vsel %vm894_vm7, %v2210_v43, %v1183_v53 }
 0x10a   : > { %1367 = vmatprep.subr.bf16.mxu0 %v2909_v50  ;;  %1421 = vmatprep.subr.bf16.mxu1 %v2909_v50  ;;  %1241 = vst.msk [vmem:[#allocation2 + $0x73] ss:$8 sm:$0x3] %vm2654_vm0, %v1238_v55  ;;  %1223 = vst.msk [vmem:[#allocation2 + $0x72] ss:$8 sm:$0x3] %vm2654_vm0, %v1220_v56  ;;  %v2221_v1 = vunpack.i.h.bf16 %v2219_v59  ;;  %v2220_v2 = vunpack.i.l.bf16 %v2219_v59 }
 0x10b   : > { %1368 = vmatpush1.bf16.msra.mxu0 %v2911_v51  ;;  %1422 = vmatpush1.bf16.msra.mxu1 %v2911_v51  ;;  %1205 = vst.msk [vmem:[#allocation2 + $0x71] ss:$8 sm:$0x3] %vm2654_vm0, %v1202_v62  ;;  %1187 = vst.msk [vmem:[#allocation2 + $0x70] ss:$8 sm:$0x3] %vm2654_vm0, %v1184_v63 }
 0x10c   : > { %v1309_v3 = vrot.slane %v2226_v57, 1  ;;  %v1291_v4 = vrot.slane %v2225_v58, 1  ;;  %v1273_v6 = vrot.slane %v2221_v1, 1  ;;  %v1255_v7 = vrot.slane %v2220_v2, 1 }
 0x10d   : > { %v2380_v18 = vmov 1.0|1.0  }
 0x10e   : > { %v1310_v8 = vsel %vm931_vm6, %v2226_v57, %v1309_v3  ;;  %v1292_v9 = vsel %vm931_vm6, %v2225_v58, %v1291_v4  ;;  %v1274_v10 = vsel %vm894_vm7, %v2221_v1, %v1273_v6  ;;  %v1256_v11 = vsel %vm894_vm7, %v2220_v2, %v1255_v7 }
 0x10f   : > { %1313 = vst.msk [vmem:[#allocation2 + $0x77] ss:$8 sm:$0x3] %vm2654_vm0, %v1310_v8  ;;  %1295 = vst.msk [vmem:[#allocation2 + $0x76] ss:$8 sm:$0x3] %vm2654_vm0, %v1292_v9 }
 0x110   : > { %1277 = vst.msk [vmem:[#allocation2 + $0x75] ss:$8 sm:$0x3] %vm2654_vm0, %v1274_v10  ;;  %1259 = vst.msk [vmem:[#allocation2 + $0x74] ss:$8 sm:$0x3] %vm2654_vm0, %v1256_v11 }
 0x111   : > { %v1330_v12 = vld [vmem:[#allocation2 + $0x68] sm:$0xff]  ;;  %v1329_v14 = vld [vmem:[#allocation2 + $0x60] sm:$0xff] }
 0x117   : > { %v1332_v13 = vld [vmem:[#allocation2 + $0x78] sm:$0xff]  ;;  %v1331_v15 = vld [vmem:[#allocation2 + $0x70] sm:$0xff] }
 0x118   : > { %v2941_v16 = vpack.c.bf16 %v1332_v13, %v1330_v12  ;;  %v2943_v17 = vpack.c.bf16 %v1331_v15, %v1329_v14 }
 0x11a   : > { %1369 = vmatprep.subr.bf16.mxu0 %v2941_v16  ;;  %1423 = vmatprep.subr.bf16.mxu1 %v2941_v16 }
 0x11b   : > { %1370 = vmatpush1.bf16.msra.mxu0 %v2943_v17  ;;  %1424 = vmatpush1.bf16.msra.mxu1 %v2943_v17 }
 0x11c   : > { %1982 = vmatprep.subr.msk.bf16.mxu0 %vm1356_vm8, %v2380_v18  ;;  %1985 = vmatprep.subr.msk.bf16.mxu1 %vm1356_vm8, %v2380_v18 }
 0x11f   : > { %1372 = vmatpush1.bf16.msra.mxu0 %v2955_v19  ;;  %1426 = vmatpush1.bf16.msra.mxu1 %v2955_v19 }
 0x120   : > { %1475 = vmatprep.subr.bf16.mxu0 %v2809_v60  ;;  %1533 = vmatprep.subr.bf16.mxu1 %v2809_v60 }
 0x122   : > { %1983 = vmatmul.mubr.msk.bf16.vlgmr.msra.gmra.mrb[0].mxu0 %vm1352_vm9, %v2227_v20  ;;  %1986 = vmatmul.mubr.msk.bf16.vlgmr.msra.gmra.mrb[0].mxu1 %vm1352_vm9, %v2228_v21 }
 0x123   : > { %1476 = vmatpush1.bf16.msra.mxu0 %v2811_v61  ;;  %1534 = vmatpush1.bf16.msra.mxu1 %v2811_v61 }
 0x124   : > { %1477 = vmatprep.subr.bf16.mxu0 %v2853_v46  ;;  %1535 = vmatprep.subr.bf16.mxu1 %v2853_v46 }
 0x125   : > { %1507 = vmatprep.mubr.bf16.mxu0 %v2379_v40  ;;  %1565 = vmatprep.mubr.bf16.mxu1 %v2379_v40 }
 0x127   : > { %1478 = vmatpush1.bf16.msra.mxu0 %v2855_v47  ;;  %1536 = vmatpush1.bf16.msra.mxu1 %v2855_v47 }
 0x128   : > { %1479 = vmatprep.subr.bf16.mxu0 %v2909_v50  ;;  %1537 = vmatprep.subr.bf16.mxu1 %v2909_v50 }
 0x12b   : > { %1480 = vmatpush1.bf16.msra.mxu0 %v2911_v51  ;;  %1538 = vmatpush1.bf16.msra.mxu1 %v2911_v51 }
 0x12c   : > { %1481 = vmatprep.subr.bf16.mxu0 %v2941_v16  ;;  %1539 = vmatprep.subr.bf16.mxu1 %v2941_v16 }
 0x12f   : > { %1482 = vmatpush1.bf16.msra.mxu0 %v2943_v17  ;;  %1540 = vmatpush1.bf16.msra.mxu1 %v2943_v17 }
 0x130   : > { %1988 = vmatprep.subr.msk.bf16.mxu0 %vm1356_vm8, %v2380_v18  ;;  %1991 = vmatprep.subr.msk.bf16.mxu1 %vm1356_vm8, %v2380_v18 }
 0x133   : > { %1484 = vmatpush1.bf16.msra.mxu0 %v2955_v19  ;;  %1542 = vmatpush1.bf16.msra.mxu1 %v2955_v19 }
 0x134   : > { %1591 = vmatprep.subr.bf16.mxu0 %v2809_v60  ;;  %1649 = vmatprep.subr.bf16.mxu1 %v2809_v60 }
 0x136   : > { %1989 = vmatmul.mubr.msk.bf16.vlgmr.msra.gmra.mrb[4].mxu0 %vm1352_vm9, %v2229_v22  ;;  %1992 = vmatmul.mubr.msk.bf16.vlgmr.msra.gmra.mrb[4].mxu1 %vm1352_vm9, %v2230_v23 }
 0x137   : > { %1592 = vmatpush1.bf16.msra.mxu0 %v2811_v61  ;;  %1650 = vmatpush1.bf16.msra.mxu1 %v2811_v61 }
 0x138   : > { %1593 = vmatprep.subr.bf16.mxu0 %v2853_v46  ;;  %1651 = vmatprep.subr.bf16.mxu1 %v2853_v46 }
 0x139   : > { %1623 = vmatprep.mubr.bf16.mxu0 %v2379_v40  ;;  %1681 = vmatprep.mubr.bf16.mxu1 %v2379_v40 }
 0x13b   : > { %1594 = vmatpush1.bf16.msra.mxu0 %v2855_v47  ;;  %1652 = vmatpush1.bf16.msra.mxu1 %v2855_v47 }
 0x13c   : > { %1595 = vmatprep.subr.bf16.mxu0 %v2909_v50  ;;  %1653 = vmatprep.subr.bf16.mxu1 %v2909_v50 }
 0x13f   : > { %1596 = vmatpush1.bf16.msra.mxu0 %v2911_v51  ;;  %1654 = vmatpush1.bf16.msra.mxu1 %v2911_v51 }
 0x140   : > { %1597 = vmatprep.subr.bf16.mxu0 %v2941_v16  ;;  %1655 = vmatprep.subr.bf16.mxu1 %v2941_v16 }
 0x143   : > { %1598 = vmatpush1.bf16.msra.mxu0 %v2943_v17  ;;  %1656 = vmatpush1.bf16.msra.mxu1 %v2943_v17 }
 0x144   : > { %1994 = vmatprep.subr.msk.bf16.mxu0 %vm1356_vm8, %v2380_v18  ;;  %1997 = vmatprep.subr.msk.bf16.mxu1 %vm1356_vm8, %v2380_v18 }
 0x147   : > { %1600 = vmatpush1.bf16.msra.mxu0 %v2955_v19  ;;  %1658 = vmatpush1.bf16.msra.mxu1 %v2955_v19 }
 0x148   : > { %1707 = vmatprep.subr.bf16.mxu0 %v2809_v60  ;;  %1765 = vmatprep.subr.bf16.mxu1 %v2809_v60  ;;  %v2234_v60 = vld [vmem:[#allocation6 + $0x38] sm:$0xff]  }
 0x14a   : > { %1995 = vmatmul.mubr.msk.bf16.vlgmr.msra.gmra.mrb[8].mxu0 %vm1352_vm9, %v2231_v24  ;;  %1998 = vmatmul.mubr.msk.bf16.vlgmr.msra.gmra.mrb[8].mxu1 %vm1352_vm9, %v2232_v25 }
 0x14b   : > { %1708 = vmatpush1.bf16.msra.mxu0 %v2811_v61  ;;  %1766 = vmatpush1.bf16.msra.mxu1 %v2811_v61 }
 0x14c   : > { %1709 = vmatprep.subr.bf16.mxu0 %v2853_v46  ;;  %1767 = vmatprep.subr.bf16.mxu1 %v2853_v46 }
 0x14d   : > { %1739 = vmatprep.mubr.bf16.mxu0 %v2379_v40  ;;  %1797 = vmatprep.mubr.bf16.mxu1 %v2379_v40  ;;  %v2233_v40 = vld [vmem:[#allocation6 + $0x30] sm:$0xff]  }
 0x14f   : > { %1710 = vmatpush1.bf16.msra.mxu0 %v2855_v47  ;;  %1768 = vmatpush1.bf16.msra.mxu1 %v2855_v47 }
 0x150   : > { %1711 = vmatprep.subr.bf16.mxu0 %v2909_v50  ;;  %1769 = vmatprep.subr.bf16.mxu1 %v2909_v50 }
 0x153   : > { %1712 = vmatpush1.bf16.msra.mxu0 %v2911_v51  ;;  %1770 = vmatpush1.bf16.msra.mxu1 %v2911_v51 }
 0x154   : > { %1713 = vmatprep.subr.bf16.mxu0 %v2941_v16  ;;  %1771 = vmatprep.subr.bf16.mxu1 %v2941_v16 }
 0x157   : > { %1714 = vmatpush1.bf16.msra.mxu0 %v2943_v17  ;;  %1772 = vmatpush1.bf16.msra.mxu1 %v2943_v17 }
 0x158   : > { %2000 = vmatprep.subr.msk.bf16.mxu0 %vm1356_vm8, %v2380_v18  ;;  %2003 = vmatprep.subr.msk.bf16.mxu1 %vm1356_vm8, %v2380_v18 }
 0x15b   : > { %1716 = vmatpush1.bf16.msra.mxu0 %v2955_v19  ;;  %1774 = vmatpush1.bf16.msra.mxu1 %v2955_v19 }
 0x15e   : > { %2001 = vmatmul.mubr.msk.bf16.vlgmr.msra.gmra.mrb[12].mxu0 %vm1352_vm9, %v2233_v40  ;;  %2004 = vmatmul.mubr.msk.bf16.vlgmr.msra.gmra.mrb[12].mxu1 %vm1352_vm9, %v2234_v60 }
 0x1f5   : > { %v1397_v61 = vpop.f32.mrb[0].mxu0  ;;  %v1451_v46 = vpop.f32.mrb[0].mxu1 }
 0x1f6   : > { %v1460_v47 = vmax.f32 %v1397_v61, %v1451_v46  ;;  %v1399_v26 = vpop.f32.mrb[1].mxu0  ;;  %v1453_v0 = vpop.f32.mrb[1].mxu1 }
 0x1f7   : > { %v1461_v27 = vmax.f32 %v1399_v26, %v1453_v0  ;;  %v1401_v28 = vpop.f32.mrb[2].mxu0  ;;  %v1455_v29 = vpop.f32.mrb[2].mxu1 }
 0x1f8   : > { %v1462_v30 = vmax.f32 %v1401_v28, %v1455_v29  ;;  %v1403_v31 = vpop.f32.mrb[3].mxu0  ;;  %v1457_v32 = vpop.f32.mrb[3].mxu1 }
 0x1f9   : > { %v1463_v33 = vmax.f32 %v1403_v31, %v1457_v32 }
 0x209   : > { %v1509_v34 = vpop.f32.mrb[4].mxu0  ;;  %v1567_v35 = vpop.f32.mrb[4].mxu1 }
 0x20a   : > { %v1518_v36 = vmax.f32 %v1460_v47, %v1509_v34  ;;  %v1511_v37 = vpop.f32.mrb[5].mxu0  ;;  %v1569_v38 = vpop.f32.mrb[5].mxu1 }
 0x20b   : > { %v1519_v39 = vmax.f32 %v1461_v27, %v1511_v37  ;;  %v1513_v41 = vpop.f32.mrb[6].mxu0  ;;  %v1571_v42 = vpop.f32.mrb[6].mxu1 }
 0x20c   : > { %v1576_v43 = vmax.f32 %v1518_v36, %v1567_v35  ;;  %v1520_v44 = vmax.f32 %v1462_v30, %v1513_v41  ;;  %v1515_v5 = vpop.f32.mrb[7].mxu0  ;;  %v1573_v45 = vpop.f32.mrb[7].mxu1 }
 0x20d   : > { %v1577_v48 = vmax.f32 %v1519_v39, %v1569_v38  ;;  %v1521_v49 = vmax.f32 %v1463_v33, %v1515_v5 }
 0x20e   : > { %v1578_v50 = vmax.f32 %v1520_v44, %v1571_v42 }
 0x20f   : > { %v1579_v51 = vmax.f32 %v1521_v49, %v1573_v45 }
 0x21d   : > { %v1625_v52 = vpop.f32.mrb[8].mxu0  ;;  %v1683_v53 = vpop.f32.mrb[8].mxu1 }
 0x21e   : > { %v1634_v54 = vmax.f32 %v1576_v43, %v1625_v52  ;;  %v1627_v55 = vpop.f32.mrb[9].mxu0  ;;  %v1685_v56 = vpop.f32.mrb[9].mxu1 }
 0x21f   : > { %v1635_v57 = vmax.f32 %v1577_v48, %v1627_v55  ;;  %v1629_v58 = vpop.f32.mrb[10].mxu0  ;;  %v1687_v59 = vpop.f32.mrb[10].mxu1 }
 0x220   : > { %v1692_v62 = vmax.f32 %v1634_v54, %v1683_v53  ;;  %v1636_v63 = vmax.f32 %v1578_v50, %v1629_v58  ;;  %v1631_v1 = vpop.f32.mrb[11].mxu0  ;;  %v1689_v2 = vpop.f32.mrb[11].mxu1 }
 0x221   : > { %v1693_v3 = vmax.f32 %v1635_v57, %v1685_v56  ;;  %v1637_v4 = vmax.f32 %v1579_v51, %v1631_v1 }
 0x222   : > { %v1694_v6 = vmax.f32 %v1636_v63, %v1687_v59 }
 0x223   : > { %v1695_v7 = vmax.f32 %v1637_v4, %v1689_v2 }
 0x231   : > { %v1741_v8 = vpop.f32.mrb[12].mxu0  ;;  %v1799_v9 = vpop.f32.mrb[12].mxu1 }
 0x232   : > { %v1750_v10 = vmax.f32 %v1692_v62, %v1741_v8  ;;  %v1743_v11 = vpop.f32.mrb[13].mxu0  ;;  %v1801_v12 = vpop.f32.mrb[13].mxu1 }
 0x233   : > { %v1751_v13 = vmax.f32 %v1693_v3, %v1743_v11  ;;  %v1745_v14 = vpop.f32.mrb[14].mxu0  ;;  %v1803_v15 = vpop.f32.mrb[14].mxu1 }
 0x234   : > { %v1808_v16 = vmax.f32 %v1750_v10, %v1799_v9  ;;  %v1752_v17 = vmax.f32 %v1694_v6, %v1745_v14  ;;  %v1747_v18 = vpop.f32.mrb[15].mxu0  ;;  %v1805_v19 = vpop.f32.mrb[15].mxu1 }
 0x235   : > { %v1809_v20 = vmax.f32 %v1751_v13, %v1801_v12  ;;  %v1753_v21 = vmax.f32 %v1695_v7, %v1747_v18 }
 0x236   : > { %v1812_v22 = vmax.f32 %v1808_v16, 0.0  ;;  %v1810_v23 = vmax.f32 %v1752_v17, %v1803_v15 }
 0x237   : > { %v1813_v24 = vmax.f32 %v1809_v20, 0.0  ;;  %v1811_v25 = vmax.f32 %v1753_v21, %v1805_v19 }
 0x238   : > { %1816 = vst [vmem:[%s176_s6] sm:$0xff] %v1812_v22  ;;  %v1814_v40 = vmax.f32 %v1810_v23, 0.0 }
 0x239   : > { %1817 = vst [vmem:[%s176_s6 + $0x8] sm:$0xff] %v1813_v24  ;;  %v1815_v60 = vmax.f32 %v1811_v25, 0.0 }
 0x23a   : > { %1818 = vst [vmem:[%s176_s6 + $0x10] sm:$0xff] %v1814_v40 }
 0x23b   : > { %1819 = vst [vmem:[%s176_s6 + $0x18] sm:$0xff] %v1815_v60 }
 0x23c   : > { %2306 = shalt.err (!%p2303_p7)
}
 0x23d   : > { %s2307_s15 = scalar_lea.hbm %s3046_s20, 512  ;;  %s2311_s19 = scalar_lea.hbm %s3092_s2, 1024 }
 0x23e   : > { %p2308_p9 = scmp.ne.s32.totalorder %s3046_s20, %s2307_s15  ;;  %p2312_p5 = scmp.lt.u32.totalorder %s3046_s20, %s3092_s2 }
 0x23f   : > { %p2313_p11 = scmp.lt.u32.totalorder %s2311_s19, %s2307_s15  ;;  %p2315_p4 = scmp.lt.u32.totalorder %s2307_s15, %s3046_s20 }
 0x240   : > { %p2309_p2 = pnand %p2308_p9, %p2490_p12 }
 0x241   : > { %p2314_p1 = por %p2313_p11, %p2312_p5 }
 0x242   : > { %p2310_p0 = pneg %p2309_p2 }
 0x243   : > { %p2316_p6 = por %p2315_p4, %p2314_p1 }
 0x245   : > { %p2317_p8 = pnand %p2316_p6, %p2310_p0 }
 0x247   : > { %2320 = shalt.err (!%p2317_p8)
}
 0x248   : > { %s2382_s4 = smov 256   ;;  %s2383_s5 = smov 16  }
 0x249   : > { %2020 = dma.vmem_to_hbm [thread:$0]  (%p2490_p12), %s3041_s7, 512, %s3046_s20, %s1821_s13, %s2382_s4, %s2382_s4, %s2383_s5  }
 0x24a PF: > { %s1849_s6 = sand.u32 1, %s2351_s9   ;;  %p3109_p10 = scmp.ne.s32.totalorder %s3097_s16, 0 }
 0x24b   : > { %p3110_p13 = scmp.ge.s32.totalorder %s2363_s12, 2  ;;  %s1850_s18 = scalar_lea.sflag [#allocation5], %s1849_s6 }
 0x24d   : > { %p2031_p3 = pnand %p3110_p13, %p3109_p10 }
 0x24f   : > { %2346 = dma.done.wait (!%p2031_p3), %s1850_s18, 512  }
 0x250   : > { %2348 = vsyncadd (!%p2031_p3), %s1850_s18, 4294966784  ;;  %p16_p7 = scmp.ge.s32.totalorder %s2455_s21, 4   ;;  %s3111_s9 = smov %s2355_s10 }
 0x251   : > { %s3112_s10 = smov %s2359_s11  ;;  %s3113_s11 = smov %s2486_s8 }
 0x252   : > { %s3114_s12 = smov %s2455_s21  ;;  %18 = sbr.rel (!%p16_p7) target bundleno = 6 (0x6), region = 154 }
 0x259   :  { %1855 = vsyncpa [#allocation4], 1 }
 0x25a   :  { %1857 = vsyncpa [#allocation4 + $0x1], 1 }
 0x25b   :  { %1858 = vsyncpa [#allocation7], 1 }
 0x25c   :  { %1859 = vsyncpa [#allocation5], 1 }
 0x25d   :  { %1861 = vsyncpa [#allocation5 + $0x1], 1 }

// kernel: cnn3d_forward.5
= control target key start
LH: loop header
LB: loop body
LE: loop exit
PB: predicated region body
PF: predicated region fallthrough
CT: control target
= control target key end

     0   :  { %v36_v3 = vlaneseq  ;;  %v247_v8 = vmov 1983009808   ;;  %s311_s0 = inlined_call_operand.vmem [shape: f32[2,512], index: 0, kind: input, shape index: {}]   ;;  %s312_s1 = inlined_call_operand.vmem [shape: f32[10,512], index: 1, kind: input, shape index: {}]   ;;  %s313_s2 = inlined_call_operand.vmem [shape: f32[1,10], index: 2, kind: input, shape index: {}]   ;;  %s314_s3 = inlined_call_operand.hbm [shape: f32[2,10], index: 3, kind: output, shape index: {}]  }
   0x1   :  { %v17_v0 = vld [vmem:[%s312_s1 + $0x8] sm:$0xff]  ;;  %v16_v2 = vld [vmem:[%s312_s1] sm:$0xff]  ;;  %v19_v6 = vld [vmem:[%s312_s1 + $0x18] sm:$0xff]  ;;  %v34_v9 = vunpack.c.l.s4 %v247_v8 }
   0x2   :  { %v21_v1 = vld [vmem:[%s312_s1 + $0x28] sm:$0x3]  ;;  %v20_v5 = vld [vmem:[%s312_s1 + $0x20] sm:$0x3]  ;;  %v23_v7 = vld [vmem:[%s312_s1 + $0x38] sm:$0x3] }
   0x3   :  { %v210_v4 = vpack.c.bf16 %v21_v1, %v17_v0  ;;  %v212_v10 = vpack.c.bf16 %v20_v5, %v16_v2  ;;  %v214_v11 = vpack.c.bf16 %v23_v7, %v19_v6  ;;  %v18_v12 = vld [vmem:[%s312_s1 + $0x10] sm:$0xff]  ;;  %v15_v14 = vld [vmem:[%s311_s0] sm:$0xff]  ;;  %v37_v15 = vshrl.u32 %v36_v3, 7 }
   0x4   :  { %v22_v13 = vld [vmem:[%s312_s1 + $0x30] sm:$0x3]  ;;  %v35_v17 = vunpack.c.0.s8 %v34_v9  ;;  %v32_v18 = vcombine.high %v15_v14, %v15_v14 }
   0x5   :  { %211 = vmatprep.subr.bf16.mxu1 %v210_v4  ;;  %v216_v16 = vpack.c.bf16 %v22_v13, %v18_v12 }
   0x6   :  { %8 = vsyncpa [#allocation3], 0  ;;  %213 = vmatpush1.bf16.xpose.msra.mxu1 %v212_v10  ;;  %215 = vmatprep.subr.bf16.mxu0 %v214_v11  ;;  %v38_v19 = vsub.s32 %v35_v17, %v37_v15  ;;  %v209_v24 = vld [vmem:[%s313_s2] ss:$0 sm:$0xff]  ;;  %s248_s30 = smov [#allocation2]   ;;  %vm193_vm0 = vcmask 74752  }
   0x7   :  { %217 = vmatpush1.bf16.xpose.msra.mxu0 %v216_v16  ;;  %s201_s4 = sshll.u32 %s248_s30, 4  ;;  %s202_s4 = int_to_ptr.vmem [resolvable:$true] %s201_s4 }
   0x8   :  { %v39_v20 = vrot.slane %v15_v14, %v38_v19  ;;  %v46_v21 = vrot.slane %v32_v18, %v38_v19  ;;  %s223_s5 = scalar_lea.vmem %s202_s4, 32  ;;  %p228_p1 = scmp.lt.s32.totalorder %s202_s4, %s202_s4 }
   0x9   :  { %p224_p0 = scmp.ne.s32.totalorder %s202_s4, %s223_s5  ;;  %p229_p2 = scmp.lt.s32.totalorder %s223_s5, %s223_s5 }
   0xa   :  { %v47_v22 = vcombine.high %v39_v20, %v39_v20  ;;  %v48_v23 = vcombine.high %v46_v21, %v46_v21 }
   0xb   :  { %p230_p3 = por %p229_p2, %p228_p1 }
   0xc   :  { %117 = vmatprep.mubr.f32.mxu1 %v47_v22  ;;  %187 = vmatprep.mubr.f32.mxu0 %v48_v23 }
   0xd   :  { %118 = vmatmul.mubr.f32.vlgmr.msra.gmra.mrb[0].mxu1 %v39_v20  ;;  %p231_p4 = pnand %p230_p3, %p224_p0 }
   0xe   :  { %188 = vmatmul.mubr.f32.vlgmr.msra.gmra.mrb[0].mxu0 %v46_v21 }
  0xe0   :  { %v119_v25 = vpop.f32.mrb[0].mxu1 }
  0xe1   :  { %v189_v26 = vpop.f32.mrb[0].mxu0  ;;  %v120_v27 = vadd.f32 %v209_v24, %v119_v25  ;;  %v121_v28 = vpop.f32.mrb[1].mxu1 }
  0xe2   :  { %v191_v29 = vpop.f32.mrb[1].mxu0 }
  0xe3   :  { %v190_v30 = vadd.f32 %v189_v26, %v120_v27 }
  0xe5   :  { %194 = vst.msk [vmem:[#allocation2] sm:$0x3] %vm193_vm0, %v190_v30 }
  0xe6   :  { %234 = shalt.err (!%p231_p4)
}
  0xe7   :  { %s235_s7 = scalar_lea.hbm %s314_s3, 32 }
  0xe8   :  { %p236_p5 = scmp.ne.s32.totalorder %s314_s3, %s235_s7  ;;  %p239_p6 = scmp.lt.u32.totalorder %s235_s7, %s314_s3 }
  0xea   :  { %p241_p7 = pnand %p239_p6, %p236_p5 }
  0xec   :  { %244 = shalt.err (!%p241_p7)
}
  0xed   :  { %204 = dma.vmem_to_hbm [thread:$0]  %s202_s4, 32, %s314_s3, [#allocation3]  }
  0xee   :  { %245 = dma.done.wait [#allocation3], 32  }
  0xef   :  { %246 = vsyncadd [#allocation3], 4294967264 }
  0xf0   :  { %208 = vsyncpa [#allocation3], 1 }

// kernel: cnn3d_forward.4
= control target key start
LH: loop header
LB: loop body
LE: loop exit
PB: predicated region body
PF: predicated region fallthrough
CT: control target
= control target key end

     0   :  { %7 = vsyncpa [#allocation4], 0  ;;  %s8207_s0 = inlined_call_operand.hbm [shape: bf16[2,8,16,256], index: 0, kind: input, shape index: {}]   ;;  %s8208_s1 = inlined_call_operand.hbm [shape: bf16[8,32,1032], index: 1, kind: input, shape index: {}]   ;;  %s8209_s2 = inlined_call_operand.hbm [shape: f32[2,32,128], index: 2, kind: output, shape index: {}]  }
   0x1   :  { %9 = vsyncpa [#allocation4 + $0x1], 0 }
   0x2   :  { %10 = vsyncpa [#allocation7], 0 }
   0x3   :  { %11 = vsyncpa [#allocation5], 0 }
   0x4   :  { %13 = vsyncpa [#allocation5 + $0x1], 0  ;;  %s6626_s9 = smov 0   ;;  %s6628_s10 = smov 0  }
   0x5   :  { %s6630_s11 = smov 0   ;;  %s6632_s12 = smov 0  }
   0x6 LB: > { %s6647_s13 = sadd.s32 4294967295, %s6592_s12   ;;  %s4671_s14 = sadd.s32 4294967294, %s6592_s12   ;;  %s6592_s12 = sphi %s6632_s12, %s8388_s12   ;;  %s6588_s11 = sphi %s6630_s11, %s8387_s11   ;;  %s6584_s10 = sphi %s6628_s10, %s8386_s10   ;;  %s6580_s9 = sphi %s6626_s9, %s8385_s9  }
   0x7   : > { %p39_p0 = scmp.ne.s32.totalorder %s6584_s10, %s6580_s9  ;;  %p8210_p1 = scmp.eq.s32.totalorder %s6647_s13, 0 }
   0x8   : > { %p90_p3 = scmp.eq.s32.totalorder %s4671_s14, 1  ;;  %p4672_p5 = scmp.ge.s32.totalorder %s6592_s12, 1 }
   0x9   : > { %p6656_p4 = por %p8210_p1, %p39_p0  ;;  %p97_p7 = scmp.lt.s32.totalorder %s6592_s12, 3 }
   0xa   : > { %p6661_p6 = por %p90_p3, %p39_p0  ;;  %s6594_s18 = smov [#allocation6]  }
   0xb   : > { %s8280_s15 = scalar_select %p6656_p4, 1, 0 }
   0xc   : > { %s8281_s16 = scalar_select %p6661_p6, 1, 0 }
   0xd   : > { %p6666_p8 = pnand %p4672_p5, %p97_p7  ;;  %s109_s19 = sshll.u32 %s6594_s18, 4  ;;  %s6670_s19 = int_to_ptr.vmem [resolvable:$true] %s109_s19 }
   0xe   : > { %s6682_s21 = sadd.s32 1, %s6592_s12   ;;  %s26_s22 = sadd.s32 1, %s6588_s11 }
   0xf   : > { %s8282_s17 = scalar_select %p6666_p8, 1, 0 }
  0x10   : > { %p6010_p9 = pneg %p6666_p8  ;;  %s23_s23 = ssub.s32 %s6592_s12, %s6682_s21 }
  0x11   : > { %s6464_s26 = scalar_lea.hbm %s8208_s1, 18432 }
  0x12   : > { %p6677_p11 = pnand %p6010_p9, %p8210_p1  ;;  %p6465_p12 = scmp.ne.s32.totalorder %s8208_s1, %s6464_s26 }
  0x13   : > { %p6471_p5 = scmp.lt.u32.totalorder %s6464_s26, %s8208_s1 }
  0x14   : > { %p6466_p13 = pneg %p6677_p11 }
  0x16   : > { %p6467_p0 = pnand %p6466_p13, %p6465_p12 }
  0x18   : > { %p6468_p3 = pneg %p6467_p0 }
  0x1a   : > { %p6473_p7 = pnand %p6471_p5, %p6468_p3 }
  0x1c   : > { %6476 = shalt.err (!%p6473_p7)
}
  0x1d   : > { %s6477_s3 = scalar_lea.vmem %s6670_s19, 18432  ;;  %p6485_p2 = scmp.lt.s32.totalorder %s6670_s19, %s6670_s19 }
  0x1e   : > { %p6478_p9 = scmp.ne.s32.totalorder %s6670_s19, %s6477_s3  ;;  %p6486_p6 = scmp.lt.s32.totalorder %s6477_s3, %s6477_s3 }
  0x20   : > { %p6480_p10 = pnand %p6478_p9, %p6466_p13  ;;  %p6487_p4 = por %p6486_p6, %p6485_p2 }
  0x22   : > { %p6481_p1 = pneg %p6480_p10 }
  0x24   : > { %p6488_p8 = pnand %p6487_p4, %p6481_p1 }
  0x26   : > { %6491 = shalt.err (!%p6488_p8)
}
  0x27   : > { %s6595_s4 = smov 576   ;;  %s6596_s5 = smov 36  }
  0x28   : > { %6013 = dma.hbm_to_vmem [thread:$0]  (!%p6677_p11), %s8208_s1, 18432, %s6670_s19, [#allocation7], %s6595_s4, %s6595_s4, %s6596_s5  }
  0x29   : > { %p24_p2 = scmp.eq.s32.totalorder %s23_s23, 0  ;;  %p33_p1 = scmp.ne.s32.totalorder %s6588_s11, %s6584_s10 }
  0x2a   : > { %p34_p4 = scmp.eq.s32.totalorder %s6592_s12, 0  ;;  %p6023_p6 = scmp.lt.s32.totalorder %s6592_s12, 2 }
  0x2b   : > { %s6713_s8 = scalar_select %p24_p2, %s6588_s11, %s26_s22  }
  0x2c   : > { %p35_p8 = por %p34_p4, %p33_p1  ;;  %p8284_p10 = scmp.eq.s32.totalorder %s6647_s13, 1 }
  0x2d   : > { %s123_s18 = sand.u32 1, %s6588_s11   ;;  %s5024_s24 = sshll.u32 %s6592_s12, 11 }
  0x2e   : > { %p6717_p12 = por %p8284_p10, %p33_p1  ;;  %s4675_s25 = sshll.u32 %s123_s18, 7 }
  0x2f   : > { %s6726_s27 = scalar_lea.hbm %s8207_s0, %s5024_s24  ;;  %s127_s19 = scalar_lea.vmem [#allocation3], %s4675_s25 }
  0x30   : > { %s134_s22 = sshll.u32 %s127_s19, 4  ;;  %p6728_p11 = pnand %p6023_p6, %p35_p8  ;;  %s6732_s22 = int_to_ptr.vmem [resolvable:$true] %s134_s22 }
  0x31   : > { %s6734_s28 = scalar_lea.sflag [#allocation4], %s123_s18  ;;  %s6492_s29 = scalar_lea.hbm %s6726_s27, 2048 }
  0x32   : > { %p6493_p13 = scmp.ne.s32.totalorder %s6726_s27, %s6492_s29  ;;  %p6494_p0 = pneg %p6728_p11 }
  0x33   : > { %s6497_s4 = scalar_lea.hbm %s8207_s0, 4096  ;;  %p6498_p7 = scmp.lt.u32.totalorder %s6726_s27, %s8207_s0 }
  0x34   : > { %p6495_p3 = pnand %p6494_p0, %p6493_p13  ;;  %p6499_p9 = scmp.lt.u32.totalorder %s6497_s4, %s6492_s29 }
  0x35   : > { %p6501_p1 = scmp.lt.u32.totalorder %s6492_s29, %s6726_s27 }
  0x36   : > { %p6496_p5 = pneg %p6495_p3  ;;  %p6500_p2 = por %p6499_p9, %p6498_p7 }
  0x38   : > { %p6502_p4 = por %p6501_p1, %p6500_p2 }
  0x3a   : > { %p6503_p6 = pnand %p6502_p4, %p6496_p5 }
  0x3c   : > { %6506 = shalt.err (!%p6503_p6)
}
  0x3d   : > { %s6507_s7 = scalar_lea.vmem %s6732_s22, 2048  ;;  %s6597_s18 = smov [#allocation3]  }
  0x3e   : > { %p6508_p8 = scmp.ne.s32.totalorder %s6732_s22, %s6507_s7  ;;  %s6512_s24 = sshll.u32 %s6597_s18, 4  ;;  %s6513_s24 = int_to_ptr.vmem [resolvable:$false] %s6512_s24 }
  0x3f   : > { %s6514_s25 = scalar_lea.vmem %s6513_s24, 4096  ;;  %p6515_p3 = scmp.lt.s32.totalorder %s6732_s22, %s6513_s24 }
  0x40   : > { %p6510_p10 = pnand %p6508_p8, %p6494_p0  ;;  %p6516_p7 = scmp.lt.s32.totalorder %s6514_s25, %s6507_s7 }
  0x42   : > { %p6511_p13 = pneg %p6510_p10  ;;  %p6517_p9 = por %p6516_p7, %p6515_p3 }
  0x44   : > { %p6518_p2 = pnand %p6517_p9, %p6511_p13 }
  0x46   : > { %6521 = shalt.err (!%p6518_p2)
}
  0x47   : > { %s6598_s20 = smov 128   ;;  %s6599_s26 = smov 8  }
  0x48   : > { %6017 = dma.hbm_to_vmem [thread:$0]  (!%p6728_p11), %s6726_s27, 2048, %s6732_s22, %s6734_s28, %s6598_s20, %s6598_s20, %s6599_s26  }
  0x49   : > { %p8287_p0 = scmp.ne.s32.totalorder %s8282_s17, 0 }
  0x4b   : > { %146 = sbr.rel (%p8287_p0) target bundleno = 1187 (0x4a3), region = 28 }
  0x52   : > { %s6765_s19 = sand.u32 1, %s6584_s10   ;;  %p8288_p5 = scmp.ne.s32.totalorder %s8280_s15, 0 }
  0x53   : > { %s4679_s29 = sshll.u32 %s6765_s19, 7  ;;  %s149_s30 = scalar_lea.sflag [#allocation4], %s6765_s19 }
  0x54   : > { %s6769_s3 = scalar_lea.vmem [#allocation3], %s4679_s29 }
  0x55   : > { %6567 = dma.done.wait (%p8288_p5), %s149_s30, 2048  }
  0x56   : > { %6569 = vsyncadd (%p8288_p5), %s149_s30, 4294965248  ;;  %p8289_p11 = scmp.eq.s32.totalorder %s6647_s13, 0 }
  0x58   : > { %6571 = dma.done.wait (%p8289_p11), [#allocation7], 18432   ;;  %p8290_p1 = pmov %p8289_p11 }
  0x59   : > { %v6780_v0 = vld [vmem:[%s6769_s3 + $0x10] sm:$0xff]  ;;  %v6783_v1 = vld [vmem:[%s6769_s3] sm:$0xff]  ;;  %s6600_s15 = smov 123   ;;  %v6790_v2 = vld [vmem:[%s6769_s3 + $0x18] sm:$0xff]  ;;  %s6601_s17 = smov 122   ;;  %vm273_vm0 = vcmask 1006592  }
  0x5a   : > { %6573 = vsyncadd (%p8290_p1), [#allocation7], 4294948864  ;;  %284 = vrot.lane.b32.xlu1 %v6780_v0, %s6600_s15  ;;  %267 = vrot.lane.b32.xlu0 %v6783_v1, %s6600_s15  ;;  %v6793_v3 = vld [vmem:[%s6769_s3 + $0x8] sm:$0xff]  ;;  %v179_v4 = vld [vmem:[%s6769_s3] sm:$0xf]  ;;  %s6602_s27 = smov 127  }
  0x5b   : > { %v180_v5 = vld [vmem:[%s6769_s3 + $0x8] sm:$0xf]  ;;  %v4682_v6 = vld [vmem:[%s6769_s3 + $0x10] sm:$0xf]  ;;  %181 = vst [vmem:[#allocation2] sm:$0xf] %v179_v4 }
  0x5c   : > { %182 = vst [vmem:[#allocation2 + $0x4] sm:$0xf] %v180_v5  ;;  %v4683_v7 = vld [vmem:[%s6769_s3 + $0x18] sm:$0xf]  ;;  %186 = vst [vmem:[#allocation2 + $0x8] sm:$0xf] %v4682_v6 }
  0x5d   : > { %187 = vst [vmem:[#allocation2 + $0xc] sm:$0xf] %v4683_v7  ;;  %v6808_v8 = vld [vmem:[%s6769_s3 + $0x48] sm:$0xff]  ;;  %v6815_v9 = vld [vmem:[%s6769_s3 + $0x40] sm:$0xff]  ;;  %v6828_v12 = vld [vmem:[%s6769_s3 + $0x58] sm:$0xff]  ;;  %s6603_s22 = smov 113  }
  0x5e   : > { %286 = vrot.lane.b32.xlu1 %v6790_v2, %s6600_s15  ;;  %269 = vrot.lane.b32.xlu0 %v6793_v3, %s6600_s15  ;;  %v4706_v10 = vld [vmem:[%s6769_s3 + $0x40] sm:$0xf]  ;;  %v4707_v11 = vld [vmem:[%s6769_s3 + $0x48] sm:$0xf]  ;;  %s6604_s23 = smov 118   ;;  %s6605_s28 = smov 112  }
  0x5f   : > { %396 = vst [vmem:[#allocation2 + $0x80] sm:$0xf] %v4706_v10  ;;  %397 = vst [vmem:[#allocation2 + $0x84] sm:$0xf] %v4707_v11  ;;  %v6835_v13 = vld [vmem:[%s6769_s3 + $0x50] sm:$0xff]  ;;  %v6840_v16 = vld [vmem:[%s6769_s3 + $0x28] sm:$0xff] }
  0x60   : > { %v4708_v14 = vld [vmem:[%s6769_s3 + $0x50] sm:$0xf]  ;;  %v4709_v15 = vld [vmem:[%s6769_s3 + $0x58] sm:$0xf]  ;;  %v6843_v17 = vld [vmem:[%s6769_s3 + $0x20] sm:$0xff]  ;;  %s6606_s4 = smov 117  }
  0x61   : > { %401 = vst [vmem:[#allocation2 + $0x88] sm:$0xf] %v4708_v14  ;;  %402 = vst [vmem:[#allocation2 + $0x8c] sm:$0xf] %v4709_v15  ;;  %v4686_v18 = vld [vmem:[%s6769_s3 + $0x20] sm:$0xf] }
  0x62   : > { %302 = vrot.lane.b32.xlu1 %v6793_v3, %s6601_s17  ;;  %300 = vrot.lane.b32.xlu0 %v6783_v1, %s6601_s17  ;;  %v4687_v19 = vld [vmem:[%s6769_s3 + $0x28] sm:$0xf]  ;;  %224 = vst [vmem:[#allocation2 + $0x20] sm:$0xf] %v4686_v18  ;;  %v6856_v20 = vld [vmem:[%s6769_s3 + $0x38] sm:$0xff]  ;;  %vm306_vm1 = vcmask 998400  }
  0x63   : > { %225 = vst [vmem:[#allocation2 + $0x24] sm:$0xf] %v4687_v19  ;;  %v6863_v21 = vld [vmem:[%s6769_s3 + $0x30] sm:$0xff]  ;;  %v4689_v23 = vld [vmem:[%s6769_s3 + $0x38] sm:$0xf]  ;;  %v6888_v24 = vld [vmem:[%s6769_s3 + $0x68] sm:$0xff] }
  0x64   : > { %v4688_v22 = vld [vmem:[%s6769_s3 + $0x30] sm:$0xf]  ;;  %230 = vst [vmem:[#allocation2 + $0x2c] sm:$0xf] %v4689_v23  ;;  %v6891_v25 = vld [vmem:[%s6769_s3 + $0x60] sm:$0xff]  ;;  %v6912_v28 = vld [vmem:[%s6769_s3 + $0x78] sm:$0xff] }
  0x65   : > { %229 = vst [vmem:[#allocation2 + $0x28] sm:$0xf] %v4688_v22  ;;  %v4714_v26 = vld [vmem:[%s6769_s3 + $0x60] sm:$0xf]  ;;  %v4715_v27 = vld [vmem:[%s6769_s3 + $0x68] sm:$0xf] }
  0x66   : > { %194 = vrot.lane.b32.xlu1 %v6793_v3, %s6602_s27  ;;  %192 = vrot.lane.b32.xlu0 %v6783_v1, %s6602_s27  ;;  %438 = vst [vmem:[#allocation2 + $0xa0] sm:$0xf] %v4714_v26  ;;  %439 = vst [vmem:[#allocation2 + $0xa4] sm:$0xf] %v4715_v27  ;;  %v6915_v29 = vld [vmem:[%s6769_s3 + $0x70] sm:$0xff]  ;;  %vm198_vm2 = vcmask 1039360  }
  0x67   : > { %v4716_v30 = vld [vmem:[%s6769_s3 + $0x70] sm:$0xf]  ;;  %v4717_v31 = vld [vmem:[%s6769_s3 + $0x78] sm:$0xf]  ;;  %v6103_v32 = vld [vmem:[#allocation6 + $0x4] ss:$36 sps:$4 sm:$0xff]  }
  0x68   : > { %443 = vst [vmem:[#allocation2 + $0xa8] sm:$0xf] %v4716_v30  ;;  %444 = vst [vmem:[#allocation2 + $0xac] sm:$0xf] %v4717_v31  ;;  %1791 = vmatprep.mubr.bf16.mxu0 %v6103_v32  ;;  %v6118_v51 = vld [vmem:[#allocation6 + $0xc] ss:$36 sps:$4 sm:$0xff]  }
  0x69   : > { %1840 = vmatprep.mubr.bf16.mxu1 %v6118_v51  ;;  %v6074_v56 = vld [vmem:[#allocation2] sm:$0xff]   ;;  %v6076_v5 = vld [vmem:[#allocation2 + $0x8] sm:$0xff]   ;;  %vm745_vm3 = vcmask 924672   ;;  %vm615_vm4 = vcmask 965632   ;;  %vm778_vm5 = vcmask 916480   ;;  %vm648_vm6 = vcmask 957440  }
  0x6a   : > { %483 = vrot.lane.b32.xlu1 %v6808_v8, %s6600_s15  ;;  %481 = vrot.lane.b32.xlu0 %v6815_v9, %s6600_s15  ;;  %v6082_v26 = vld [vmem:[#allocation2 + $0x80] sm:$0xff]   ;;  %vm1755_vm7 = vcmask 1043456   ;;  %vm1748_vm8 = vcmask 64512   ;;  %s4681_s5 = sshll.u32 %s6765_s19, 5  ;;  %s5025_s18 = sshll.u32 %s6647_s13, 9 }
  0x6b   : > { %s176_s6 = scalar_lea.vmem [#allocation8], %s4681_s5  ;;  %s8163_s20 = scalar_lea.hbm %s8209_s2, %s5025_s18 }
  0x6c   : > { %s4588_s7 = sshll.u32 %s176_s6, 4  ;;  %s4575_s13 = scalar_lea.sflag [#allocation5], %s6765_s19  ;;  %s8157_s7 = int_to_ptr.vmem [resolvable:$true] %s4588_s7 }
  0x6d   : > { %s6522_s26 = scalar_lea.vmem %s8157_s7, 512  ;;  %s6608_s29 = smov [#allocation8]  }
  0x6e   : > { %319 = vrot.lane.b32.xlu1 %v6790_v2, %s6601_s17  ;;  %317 = vrot.lane.b32.xlu0 %v6780_v0, %s6601_s17  ;;  %p6523_p4 = scmp.ne.s32.totalorder %s8157_s7, %s6522_s26  ;;  %s6526_s30 = sshll.u32 %s6608_s29, 4  ;;  %s6527_s30 = int_to_ptr.vmem [resolvable:$false] %s6526_s30 }
  0x6f   : > { %p6529_p10 = scmp.lt.s32.totalorder %s8157_s7, %s6527_s30 }
  0x70   : > { %p6524_p6 = pnand %p6523_p4, %p6717_p12 }
  0x72   : > { %211 = vrot.lane.b32.xlu1 %v6790_v2, %s6602_s27  ;;  %209 = vrot.lane.b32.xlu0 %v6780_v0, %s6602_s27  ;;  %p6525_p8 = pneg %p6524_p6 }
  0x76   : > { %499 = vrot.lane.b32.xlu1 %v6828_v12, %s6600_s15  ;;  %497 = vrot.lane.b32.xlu0 %v6835_v13, %s6600_s15 }
  0x7a   : > { %335 = vrot.lane.b32.xlu1 %v6840_v16, %s6600_s15  ;;  %333 = vrot.lane.b32.xlu0 %v6843_v17, %s6600_s15 }
  0x7e   : > { %515 = vrot.lane.b32.xlu1 %v6808_v8, %s6601_s17  ;;  %513 = vrot.lane.b32.xlu0 %v6815_v9, %s6601_s17 }
  0x82   : > { %351 = vrot.lane.b32.xlu1 %v6856_v20, %s6600_s15  ;;  %349 = vrot.lane.b32.xlu0 %v6863_v21, %s6600_s15 }
  0x86   : > { %409 = vrot.lane.b32.xlu1 %v6808_v8, %s6602_s27  ;;  %407 = vrot.lane.b32.xlu0 %v6815_v9, %s6602_s27 }
  0x8a   : > { %531 = vrot.lane.b32.xlu1 %v6828_v12, %s6601_s17  ;;  %529 = vrot.lane.b32.xlu0 %v6835_v13, %s6601_s17 }
  0x8e   : > { %367 = vrot.lane.b32.xlu1 %v6840_v16, %s6601_s17  ;;  %365 = vrot.lane.b32.xlu0 %v6843_v17, %s6601_s17 }
  0x92   : > { %425 = vrot.lane.b32.xlu1 %v6828_v12, %s6602_s27  ;;  %423 = vrot.lane.b32.xlu0 %v6835_v13, %s6602_s27 }
  0x96   : > { %237 = vrot.lane.b32.xlu1 %v6840_v16, %s6602_s27  ;;  %235 = vrot.lane.b32.xlu0 %v6843_v17, %s6602_s27 }
  0x9a   : > { %547 = vrot.lane.b32.xlu1 %v6888_v24, %s6600_s15  ;;  %545 = vrot.lane.b32.xlu0 %v6891_v25, %s6600_s15 }
  0x9e   : > { %383 = vrot.lane.b32.xlu1 %v6856_v20, %s6601_s17  ;;  %381 = vrot.lane.b32.xlu0 %v6863_v21, %s6601_s17 }
  0xa2   : > { %253 = vrot.lane.b32.xlu1 %v6856_v20, %s6602_s27  ;;  %251 = vrot.lane.b32.xlu0 %v6863_v21, %s6602_s27 }
  0xa6   : > { %563 = vrot.lane.b32.xlu1 %v6912_v28, %s6600_s15  ;;  %561 = vrot.lane.b32.xlu0 %v6915_v29, %s6600_s15 }
  0xaa   : > { %741 = vrot.lane.b32.xlu1 %v6793_v3, %s6603_s22  ;;  %739 = vrot.lane.b32.xlu0 %v6783_v1, %s6603_s22 }
  0xae   : > { %611 = vrot.lane.b32.xlu1 %v6793_v3, %s6604_s23  ;;  %609 = vrot.lane.b32.xlu0 %v6783_v1, %s6604_s23 }
  0xb2   : > { %579 = vrot.lane.b32.xlu1 %v6888_v24, %s6601_s17  ;;  %577 = vrot.lane.b32.xlu0 %v6891_v25, %s6601_s17 }
  0xb6   : > { %451 = vrot.lane.b32.xlu1 %v6888_v24, %s6602_s27  ;;  %449 = vrot.lane.b32.xlu0 %v6891_v25, %s6602_s27 }
  0xba   : > { %758 = vrot.lane.b32.xlu1 %v6790_v2, %s6603_s22  ;;  %756 = vrot.lane.b32.xlu0 %v6780_v0, %s6603_s22 }
  0xbe   : > { %628 = vrot.lane.b32.xlu1 %v6790_v2, %s6604_s23  ;;  %626 = vrot.lane.b32.xlu0 %v6780_v0, %s6604_s23 }
  0xc2   : > { %595 = vrot.lane.b32.xlu1 %v6912_v28, %s6601_s17  ;;  %593 = vrot.lane.b32.xlu0 %v6915_v29, %s6601_s17 }
  0xc6   : > { %467 = vrot.lane.b32.xlu1 %v6912_v28, %s6602_s27  ;;  %465 = vrot.lane.b32.xlu0 %v6915_v29, %s6602_s27 }
  0xca   : > { %774 = vrot.lane.b32.xlu1 %v6793_v3, %s6605_s28  ;;  %772 = vrot.lane.b32.xlu0 %v6783_v1, %s6605_s28 }
  0xcc   : > { %v285_v33 = vpop.permute.xlu1 %284  ;;  %v268_v34 = vpop.permute.xlu0 %267 }
  0xcd   : > { %v288_v35 = vrot.slane %v285_v33, 4  ;;  %v271_v36 = vrot.slane %v268_v34, 4 }
  0xce   : > { %644 = vrot.lane.b32.xlu1 %v6793_v3, %s6606_s4  ;;  %642 = vrot.lane.b32.xlu0 %v6783_v1, %s6606_s4 }
  0xcf   : > { %v290_v37 = vsel %vm273_vm0, %v285_v33, %v288_v35  ;;  %v274_v38 = vsel %vm273_vm0, %v268_v34, %v271_v36 }
  0xd0   : > { %294 = vst [vmem:[#allocation2 + $0x48] sm:$0xf] %v290_v37  ;;  %278 = vst [vmem:[#allocation2 + $0x40] sm:$0xf] %v274_v38  ;;  %v287_v39 = vpop.permute.xlu1 %286  ;;  %v270_v40 = vpop.permute.xlu0 %269 }
  0xd1   : > { %v289_v41 = vrot.slane %v287_v39, 4  ;;  %v272_v42 = vrot.slane %v270_v40, 4 }
  0xd2   : > { %999 = vrot.lane.b32.xlu1 %v6808_v8, %s6603_s22  ;;  %997 = vrot.lane.b32.xlu0 %v6815_v9, %s6603_s22 }
  0xd3   : > { %v291_v43 = vsel %vm273_vm0, %v287_v39, %v289_v41  ;;  %v275_v44 = vsel %vm273_vm0, %v270_v40, %v272_v42 }
  0xd4   : > { %295 = vst [vmem:[#allocation2 + $0x4c] sm:$0xf] %v291_v43  ;;  %279 = vst [vmem:[#allocation2 + $0x44] sm:$0xf] %v275_v44  ;;  %v303_v45 = vpop.permute.xlu1 %302  ;;  %v301_v46 = vpop.permute.xlu0 %300 }
  0xd5   : > { %v305_v47 = vrot.slane %v303_v45, 4  ;;  %v304_v48 = vrot.slane %v301_v46, 4 }
  0xd6   : > { %791 = vrot.lane.b32.xlu1 %v6790_v2, %s6605_s28  ;;  %789 = vrot.lane.b32.xlu0 %v6780_v0, %s6605_s28 }
  0xd7   : > { %v308_v49 = vsel %vm306_vm1, %v303_v45, %v305_v47  ;;  %v307_v50 = vsel %vm306_vm1, %v301_v46, %v304_v48 }
  0xd8   : > { %312 = vst [vmem:[#allocation2 + $0x54] sm:$0xf] %v308_v49  ;;  %311 = vst [vmem:[#allocation2 + $0x50] sm:$0xf] %v307_v50  ;;  %v195_v52 = vpop.permute.xlu1 %194  ;;  %v193_v53 = vpop.permute.xlu0 %192  ;;  %v6085_v50 = vld [vmem:[#allocation2 + $0x88] sm:$0xff]  }
  0xd9   : > { %v197_v54 = vrot.slane %v195_v52, 4  ;;  %v196_v55 = vrot.slane %v193_v53, 4 }
  0xda   : > { %871 = vrot.lane.b32.xlu1 %v6808_v8, %s6604_s23  ;;  %869 = vrot.lane.b32.xlu0 %v6815_v9, %s6604_s23 }
  0xdb   : > { %v200_v57 = vsel %vm198_vm2, %v195_v52, %v197_v54  ;;  %v199_v58 = vsel %vm198_vm2, %v193_v53, %v196_v55  ;;  %v6073_v59 = vld [vmem:[#allocation2 + $0x40] sm:$0xff]   ;;  %v6075_v1 = vld [vmem:[#allocation2 + $0x48] sm:$0xff]  }
  0xdc   : > { %204 = vst [vmem:[#allocation2 + $0x14] sm:$0xf] %v200_v57  ;;  %203 = vst [vmem:[#allocation2 + $0x10] sm:$0xf] %v199_v58  ;;  %v484_v60 = vpop.permute.xlu1 %483  ;;  %v482_v61 = vpop.permute.xlu0 %481  ;;  %5026 = vmatprep.subr.bf16.mxu0 %v6073_v59  ;;  %v6087_v58 = vld [vmem:[#allocation2 + $0x20] sm:$0xff]  }
  0xdd   : > { %v486_v62 = vrot.slane %v484_v60, 4  ;;  %v485_v63 = vrot.slane %v482_v61, 4  ;;  %5027 = vmatpush3.bf16.msra.mxu0 %v6074_v56 }
  0xde   : > { %661 = vrot.lane.b32.xlu1 %v6790_v2, %s6606_s4  ;;  %659 = vrot.lane.b32.xlu0 %v6780_v0, %s6606_s4 }
  0xdf   : > { %v488_v3 = vsel %vm273_vm0, %v484_v60, %v486_v62  ;;  %v487_v4 = vsel %vm273_vm0, %v482_v61, %v485_v63  ;;  %5028 = vmatprep.subr.bf16.mxu0 %v6075_v1  ;;  %v6077_v0 = vld [vmem:[#allocation2 + $0x50] sm:$0xff]  }
  0xe0   : > { %492 = vst [vmem:[#allocation2 + $0xc4] sm:$0xf] %v488_v3  ;;  %491 = vst [vmem:[#allocation2 + $0xc0] sm:$0xf] %v487_v4  ;;  %v320_v6 = vpop.permute.xlu1 %319  ;;  %v318_v7 = vpop.permute.xlu0 %317 }
  0xe1   : > { %v322_v10 = vrot.slane %v320_v6, 4  ;;  %v321_v11 = vrot.slane %v318_v7, 4  ;;  %5029 = vmatpush3.bf16.msra.mxu0 %v6076_v5 }
  0xe2   : > { %1015 = vrot.lane.b32.xlu1 %v6828_v12, %s6603_s22  ;;  %1013 = vrot.lane.b32.xlu0 %v6835_v13, %s6603_s22 }
  0xe3   : > { %v324_v2 = vsel %vm306_vm1, %v320_v6, %v322_v10  ;;  %v323_v14 = vsel %vm306_vm1, %v318_v7, %v321_v11  ;;  %v6078_v15 = vld [vmem:[#allocation2 + $0x10] sm:$0xff]   ;;  %5030 = vmatprep.subr.bf16.mxu0 %v6077_v0 }
  0xe4   : > { %328 = vst [vmem:[#allocation2 + $0x5c] sm:$0xf] %v324_v2  ;;  %327 = vst [vmem:[#allocation2 + $0x58] sm:$0xf] %v323_v14  ;;  %v212_v18 = vpop.permute.xlu1 %211  ;;  %v210_v19 = vpop.permute.xlu0 %209 }
  0xe5   : > { %v214_v22 = vrot.slane %v212_v18, 4  ;;  %v213_v23 = vrot.slane %v210_v19, 4  ;;  %5031 = vmatpush3.bf16.msra.mxu0 %v6078_v15 }
  0xe6   : > { %807 = vrot.lane.b32.xlu1 %v6840_v16, %s6603_s22  ;;  %805 = vrot.lane.b32.xlu0 %v6843_v17, %s6603_s22 }
  0xe7   : > { %v216_v27 = vsel %vm198_vm2, %v212_v18, %v214_v22  ;;  %v215_v30 = vsel %vm198_vm2, %v210_v19, %v213_v23  ;;  %v6079_v31 = vld [vmem:[#allocation2 + $0xc0] sm:$0xff]  }
  0xe8   : > { %220 = vst [vmem:[#allocation2 + $0x1c] sm:$0xf] %v216_v27  ;;  %219 = vst [vmem:[#allocation2 + $0x18] sm:$0xf] %v215_v30  ;;  %v500_v32 = vpop.permute.xlu1 %499  ;;  %v498_v33 = vpop.permute.xlu0 %497  ;;  %5054 = vmatprep.subr.bf16.mxu1 %v6079_v31 }
  0xe9   : > { %v502_v34 = vrot.slane %v500_v32, 4  ;;  %v501_v35 = vrot.slane %v498_v33, 4  ;;  %5055 = vmatpush3.bf16.msra.mxu1 %v6082_v26 }
  0xea   : > { %887 = vrot.lane.b32.xlu1 %v6828_v12, %s6604_s23  ;;  %885 = vrot.lane.b32.xlu0 %v6835_v13, %s6604_s23 }
  0xeb   : > { %v504_v36 = vsel %vm273_vm0, %v500_v32, %v502_v34  ;;  %v503_v37 = vsel %vm273_vm0, %v498_v33, %v501_v35  ;;  %v6080_v38 = vld [vmem:[#allocation2 + $0x58] sm:$0xff]  }
  0xec   : > { %508 = vst [vmem:[#allocation2 + $0xcc] sm:$0xf] %v504_v36  ;;  %507 = vst [vmem:[#allocation2 + $0xc8] sm:$0xf] %v503_v37  ;;  %v336_v39 = vpop.permute.xlu1 %335  ;;  %v334_v40 = vpop.permute.xlu0 %333  ;;  %5032 = vmatprep.subr.bf16.mxu0 %v6080_v38 }
  0xed   : > { %v338_v41 = vrot.slane %v336_v39, 4  ;;  %v337_v42 = vrot.slane %v334_v40, 4 }
  0xee   : > { %677 = vrot.lane.b32.xlu1 %v6840_v16, %s6604_s23  ;;  %675 = vrot.lane.b32.xlu0 %v6843_v17, %s6604_s23 }
  0xef   : > { %v340_v43 = vsel %vm273_vm0, %v336_v39, %v338_v41  ;;  %v339_v44 = vsel %vm273_vm0, %v334_v40, %v337_v42  ;;  %v6081_v45 = vld [vmem:[#allocation2 + $0x18] sm:$0xff]  }
  0xf0   : > { %344 = vst [vmem:[#allocation2 + $0x64] sm:$0xf] %v340_v43  ;;  %343 = vst [vmem:[#allocation2 + $0x60] sm:$0xf] %v339_v44  ;;  %v516_v46 = vpop.permute.xlu1 %515  ;;  %v514_v47 = vpop.permute.xlu0 %513  ;;  %5033 = vmatpush3.bf16.msra.mxu0 %v6081_v45 }
  0xf1   : > { %v518_v48 = vrot.slane %v516_v46, 4  ;;  %v517_v49 = vrot.slane %v514_v47, 4 }
  0xf2   : > { %1031 = vrot.lane.b32.xlu1 %v6808_v8, %s6605_s28  ;;  %1029 = vrot.lane.b32.xlu0 %v6815_v9, %s6605_s28 }
  0xf3   : > { %v520_v51 = vsel %vm306_vm1, %v516_v46, %v518_v48  ;;  %v519_v52 = vsel %vm306_vm1, %v514_v47, %v517_v49  ;;  %v6083_v53 = vld [vmem:[#allocation2 + $0xc8] sm:$0xff]  }
  0xf4   : > { %524 = vst [vmem:[#allocation2 + $0xd4] sm:$0xf] %v520_v51  ;;  %523 = vst [vmem:[#allocation2 + $0xd0] sm:$0xf] %v519_v52  ;;  %v352_v54 = vpop.permute.xlu1 %351  ;;  %v350_v55 = vpop.permute.xlu0 %349  ;;  %5056 = vmatprep.subr.bf16.mxu1 %v6083_v53 }
  0xf5   : > { %v354_v56 = vrot.slane %v352_v54, 4  ;;  %v353_v57 = vrot.slane %v350_v55, 4  ;;  %5057 = vmatpush3.bf16.msra.mxu1 %v6085_v50 }
  0xf6   : > { %823 = vrot.lane.b32.xlu1 %v6856_v20, %s6603_s22  ;;  %821 = vrot.lane.b32.xlu0 %v6863_v21, %s6603_s22 }
  0xf7   : > { %v356_v59 = vsel %vm273_vm0, %v352_v54, %v354_v56  ;;  %v355_v60 = vsel %vm273_vm0, %v350_v55, %v353_v57  ;;  %v6084_v61 = vld [vmem:[#allocation2 + $0x60] sm:$0xff]  }
  0xf8   : > { %360 = vst [vmem:[#allocation2 + $0x6c] sm:$0xf] %v356_v59  ;;  %359 = vst [vmem:[#allocation2 + $0x68] sm:$0xf] %v355_v60  ;;  %v410_v62 = vpop.permute.xlu1 %409  ;;  %v408_v63 = vpop.permute.xlu0 %407  ;;  %5034 = vmatprep.subr.bf16.mxu0 %v6084_v61 }
  0xf9   : > { %v412_v1 = vrot.slane %v410_v62, 4  ;;  %v411_v3 = vrot.slane %v408_v63, 4  ;;  %5035 = vmatpush3.bf16.msra.mxu0 %v6087_v58  ;;  %v6098_v58 = vld [vmem:[#allocation2 + $0xa0] sm:$0xff]  }
  0xfa   : > { %903 = vrot.lane.b32.xlu1 %v6808_v8, %s6606_s4  ;;  %901 = vrot.lane.b32.xlu0 %v6815_v9, %s6606_s4  ;;  %v6091_v8 = vld [vmem:[#allocation2 + $0x28] sm:$0xff]  }
  0xfb   : > { %v414_v4 = vsel %vm198_vm2, %v410_v62, %v412_v1  ;;  %v413_v5 = vsel %vm198_vm2, %v408_v63, %v411_v3  ;;  %v6086_v6 = vld [vmem:[#allocation2 + $0xd0] sm:$0xff]  }
  0xfc   : > { %418 = vst [vmem:[#allocation2 + $0x94] sm:$0xf] %v414_v4  ;;  %417 = vst [vmem:[#allocation2 + $0x90] sm:$0xf] %v413_v5  ;;  %v532_v7 = vpop.permute.xlu1 %531  ;;  %v530_v10 = vpop.permute.xlu0 %529  ;;  %5058 = vmatprep.subr.bf16.mxu1 %v6086_v6  ;;  %v6607_v4 = vmov 1065369472  }
  0xfd   : > { %v534_v11 = vrot.slane %v532_v7, 4  ;;  %v533_v0 = vrot.slane %v530_v10, 4  ;;  %1121 = vst [vmem:[#allocation2 + $0x200] sm:$0xf] %v6607_v4 }
  0xfe   : > { %693 = vrot.lane.b32.xlu1 %v6856_v20, %s6604_s23  ;;  %691 = vrot.lane.b32.xlu0 %v6863_v21, %s6604_s23 }
  0xff   : > { %v536_v9 = vsel %vm306_vm1, %v532_v7, %v534_v11  ;;  %v535_v2 = vsel %vm306_vm1, %v530_v10, %v533_v0  ;;  %v6088_v14 = vld [vmem:[#allocation2 + $0x68] sm:$0xff]  }
 0x100   : > { %540 = vst [vmem:[#allocation2 + $0xdc] sm:$0xf] %v536_v9  ;;  %539 = vst [vmem:[#allocation2 + $0xd8] sm:$0xf] %v535_v2  ;;  %v368_v15 = vpop.permute.xlu1 %367  ;;  %v366_v18 = vpop.permute.xlu0 %365  ;;  %5036 = vmatprep.subr.bf16.mxu0 %v6088_v14 }
 0x101   : > { %v370_v19 = vrot.slane %v368_v15, 4  ;;  %v369_v22 = vrot.slane %v366_v18, 4  ;;  %5037 = vmatpush3.bf16.msra.mxu0 %v6091_v8 }
 0x102   : > { %1047 = vrot.lane.b32.xlu1 %v6828_v12, %s6605_s28  ;;  %1045 = vrot.lane.b32.xlu0 %v6835_v13, %s6605_s28 }
 0x103   : > { %v372_v23 = vsel %vm306_vm1, %v368_v15, %v370_v19  ;;  %v371_v26 = vsel %vm306_vm1, %v366_v18, %v369_v22  ;;  %v6089_v27 = vld [vmem:[#allocation2 + $0x90] sm:$0xff]   ;;  %v6101_v19 = vld [vmem:[#allocation6] ss:$36 sps:$4 sm:$0xff]  }
 0x104   : > { %376 = vst [vmem:[#allocation2 + $0x74] sm:$0xf] %v372_v23  ;;  %375 = vst [vmem:[#allocation2 + $0x70] sm:$0xf] %v371_v26  ;;  %v426_v30 = vpop.permute.xlu1 %425  ;;  %v424_v31 = vpop.permute.xlu0 %423  ;;  %5059 = vmatpush3.bf16.msra.mxu1 %v6089_v27  ;;  %v6135_v26 = vld [vmem:[#allocation6 + $0x4c] ss:$36 sps:$4 sm:$0xff]  }
 0x105   : > { %v428_v32 = vrot.slane %v426_v30, 4  ;;  %v427_v33 = vrot.slane %v424_v31, 4 }
 0x106   : > { %839 = vrot.lane.b32.xlu1 %v6840_v16, %s6605_s28  ;;  %837 = vrot.lane.b32.xlu0 %v6843_v17, %s6605_s28 }
 0x107   : > { %v430_v34 = vsel %vm198_vm2, %v426_v30, %v428_v32  ;;  %v429_v35 = vsel %vm198_vm2, %v424_v31, %v427_v33  ;;  %v6090_v36 = vld [vmem:[#allocation2 + $0xd8] sm:$0xff]  }
 0x108   : > { %434 = vst [vmem:[#allocation2 + $0x9c] sm:$0xf] %v430_v34  ;;  %433 = vst [vmem:[#allocation2 + $0x98] sm:$0xf] %v429_v35  ;;  %v238_v37 = vpop.permute.xlu1 %237  ;;  %v236_v38 = vpop.permute.xlu0 %235  ;;  %5060 = vmatprep.subr.bf16.mxu1 %v6090_v36 }
 0x109   : > { %v240_v39 = vrot.slane %v238_v37, 4  ;;  %v239_v40 = vrot.slane %v236_v38, 4 }
 0x10a   : > { %919 = vrot.lane.b32.xlu1 %v6828_v12, %s6606_s4  ;;  %917 = vrot.lane.b32.xlu0 %v6835_v13, %s6606_s4 }
 0x10b   : > { %v242_v41 = vsel %vm198_vm2, %v238_v37, %v240_v39  ;;  %v241_v42 = vsel %vm198_vm2, %v236_v38, %v239_v40  ;;  %v6092_v43 = vld [vmem:[#allocation2 + $0x70] sm:$0xff]  }
 0x10c   : > { %246 = vst [vmem:[#allocation2 + $0x34] sm:$0xf] %v242_v41  ;;  %245 = vst [vmem:[#allocation2 + $0x30] sm:$0xf] %v241_v42  ;;  %v548_v44 = vpop.permute.xlu1 %547  ;;  %v546_v45 = vpop.permute.xlu0 %545  ;;  %5038 = vmatprep.subr.bf16.mxu0 %v6092_v43  ;;  %v6137_v40 = vld [vmem:[#allocation6 + $0x48] ss:$36 sps:$4 sm:$0xff]  }
 0x10d   : > { %v550_v46 = vrot.slane %v548_v44, 4  ;;  %v549_v47 = vrot.slane %v546_v45, 4 }
 0x10e   : > { %709 = vrot.lane.b32.xlu1 %v6840_v16, %s6606_s4  ;;  %707 = vrot.lane.b32.xlu0 %v6843_v17, %s6606_s4 }
 0x10f   : > { %v552_v12 = vsel %vm273_vm0, %v548_v44, %v550_v46  ;;  %v551_v13 = vsel %vm273_vm0, %v546_v45, %v549_v47  ;;  %v6093_v48 = vld [vmem:[#allocation2 + $0x98] sm:$0xff]  }
 0x110   : > { %556 = vst [vmem:[#allocation2 + $0xe4] sm:$0xf] %v552_v12  ;;  %555 = vst [vmem:[#allocation2 + $0xe0] sm:$0xf] %v551_v13  ;;  %v384_v49 = vpop.permute.xlu1 %383  ;;  %v382_v50 = vpop.permute.xlu0 %381  ;;  %5061 = vmatpush3.bf16.msra.mxu1 %v6093_v48  ;;  %v4793_v13 = vld [vmem:[%s6769_s3 + $0x78] sm:$0xff]  ;;  %v4792_v48 = vld [vmem:[%s6769_s3 + $0x70] sm:$0xff] }
 0x111   : > { %v386_v51 = vrot.slane %v384_v49, 4  ;;  %v385_v52 = vrot.slane %v382_v50, 4  ;;  %s6528_s3 = scalar_lea.vmem %s6527_s30, 1024 }
 0x112   : > { %1063 = vrot.lane.b32.xlu1 %v6888_v24, %s6603_s22  ;;  %1061 = vrot.lane.b32.xlu0 %v6891_v25, %s6603_s22  ;;  %p6530_p13 = scmp.lt.s32.totalorder %s6528_s3, %s6522_s26 }
 0x113   : > { %v388_v16 = vsel %vm306_vm1, %v384_v49, %v386_v51  ;;  %v387_v17 = vsel %vm306_vm1, %v382_v50, %v385_v52  ;;  %v6094_v53 = vld [vmem:[#allocation2 + $0x30] sm:$0xff]  }
 0x114   : > { %392 = vst [vmem:[#allocation2 + $0x7c] sm:$0xf] %v388_v16  ;;  %391 = vst [vmem:[#allocation2 + $0x78] sm:$0xf] %v387_v17  ;;  %v254_v54 = vpop.permute.xlu1 %253  ;;  %v252_v55 = vpop.permute.xlu0 %251  ;;  %5039 = vmatpush3.bf16.msra.mxu0 %v6094_v53  ;;  %p6531_p3 = por %p6530_p13, %p6529_p10 }
 0x115   : > { %v256_v56 = vrot.slane %v254_v54, 4  ;;  %v255_v57 = vrot.slane %v252_v55, 4 }
 0x116   : > { %855 = vrot.lane.b32.xlu1 %v6856_v20, %s6605_s28  ;;  %853 = vrot.lane.b32.xlu0 %v6863_v21, %s6605_s28  ;;  %p6532_p7 = pnand %p6531_p3, %p6525_p8 }
 0x117   : > { %v258_v59 = vsel %vm198_vm2, %v254_v54, %v256_v56  ;;  %v257_v60 = vsel %vm198_vm2, %v252_v55, %v255_v57  ;;  %v6095_v61 = vld [vmem:[#allocation2 + $0xe0] sm:$0xff]  }
 0x118   : > { %262 = vst [vmem:[#allocation2 + $0x3c] sm:$0xf] %v258_v59  ;;  %261 = vst [vmem:[#allocation2 + $0x38] sm:$0xf] %v257_v60  ;;  %v564_v62 = vpop.permute.xlu1 %563  ;;  %v562_v63 = vpop.permute.xlu0 %561  ;;  %5062 = vmatprep.subr.bf16.mxu1 %v6095_v61 }
 0x119   : > { %v566_v1 = vrot.slane %v564_v62, 4  ;;  %v565_v3 = vrot.slane %v562_v63, 4  ;;  %5063 = vmatpush3.bf16.msra.mxu1 %v6098_v58 }
 0x11a   : > { %935 = vrot.lane.b32.xlu1 %v6888_v24, %s6604_s23  ;;  %933 = vrot.lane.b32.xlu0 %v6891_v25, %s6604_s23 }
 0x11b   : > { %v568_v5 = vsel %vm273_vm0, %v564_v62, %v566_v1  ;;  %v567_v6 = vsel %vm273_vm0, %v562_v63, %v565_v3  ;;  %v6096_v7 = vld [vmem:[#allocation2 + $0x78] sm:$0xff]  }
 0x11c   : > { %572 = vst [vmem:[#allocation2 + $0xec] sm:$0xf] %v568_v5  ;;  %571 = vst [vmem:[#allocation2 + $0xe8] sm:$0xf] %v567_v6  ;;  %v742_v10 = vpop.permute.xlu1 %741  ;;  %v740_v11 = vpop.permute.xlu0 %739  ;;  %5040 = vmatprep.subr.bf16.mxu0 %v6096_v7 }
 0x11d   : > { %v744_v0 = vrot.slane %v742_v10, 4  ;;  %v743_v8 = vrot.slane %v740_v11, 4 }
 0x11e   : > { %725 = vrot.lane.b32.xlu1 %v6856_v20, %s6606_s4  ;;  %723 = vrot.lane.b32.xlu0 %v6863_v21, %s6606_s4  ;;  %v7089_v20 = vld [vmem:[#allocation2 + $0xa8] sm:$0xff]  }
 0x11f   : > { %v747_v9 = vsel %vm745_vm3, %v742_v10, %v744_v0  ;;  %v746_v2 = vsel %vm745_vm3, %v740_v11, %v743_v8  ;;  %v6097_v14 = vld [vmem:[#allocation2 + $0x38] sm:$0xff]  }
 0x120   : > { %751 = vst [vmem:[#allocation2 + $0x144] sm:$0xf] %v747_v9  ;;  %750 = vst [vmem:[#allocation2 + $0x140] sm:$0xf] %v746_v2  ;;  %v612_v15 = vpop.permute.xlu1 %611  ;;  %v610_v18 = vpop.permute.xlu0 %609  ;;  %5041 = vmatpush3.bf16.msra.mxu0 %v6097_v14 }
 0x121   : > { %v614_v22 = vrot.slane %v612_v15, 4  ;;  %v613_v23 = vrot.slane %v610_v18, 4 }
 0x122   : > { %1079 = vrot.lane.b32.xlu1 %v6912_v28, %s6603_s22  ;;  %1077 = vrot.lane.b32.xlu0 %v6915_v29, %s6603_s22 }
 0x123   : > { %v617_v21 = vsel %vm615_vm4, %v612_v15, %v614_v22  ;;  %v616_v27 = vsel %vm615_vm4, %v610_v18, %v613_v23  ;;  %v7093_v30 = vld [vmem:[#allocation2 + $0xe8] sm:$0xff]   ;;  %1792 = vmatmul.mubr.bf16.vlgmr.msra.gmra.mrb[0].mxu0 %v6101_v19 }
 0x124   : > { %621 = vst [vmem:[#allocation2 + $0x104] sm:$0xf] %v617_v21  ;;  %620 = vst [vmem:[#allocation2 + $0x100] sm:$0xf] %v616_v27  ;;  %v580_v31 = vpop.permute.xlu1 %579  ;;  %v578_v32 = vpop.permute.xlu0 %577  ;;  %5064 = vmatprep.subr.bf16.mxu1 %v7093_v30  ;;  %1799 = vmatprep.mubr.bf16.mxu0 %v6135_v26 }
 0x125   : > { %v582_v33 = vrot.slane %v580_v31, 4  ;;  %v581_v34 = vrot.slane %v578_v32, 4  ;;  %5065 = vmatpush3.bf16.msra.mxu1 %v7089_v20 }
 0x126   : > { %951 = vrot.lane.b32.xlu1 %v6912_v28, %s6604_s23  ;;  %949 = vrot.lane.b32.xlu0 %v6915_v29, %s6604_s23  ;;  %v6142_v28 = vld [vmem:[#allocation6 + $0x14] ss:$36 sps:$4 sm:$0xff]  }
 0x127   : > { %v584_v35 = vsel %vm306_vm1, %v580_v31, %v582_v33  ;;  %v583_v36 = vsel %vm306_vm1, %v578_v32, %v581_v34  ;;  %v7102_v37 = vld [vmem:[#allocation2 + $0x140] sm:$0xff]   ;;  %v6116_v31 = vld [vmem:[#allocation6 + $0x8] ss:$36 sps:$4 sm:$0xff]   ;;  %v6144_v34 = vld [vmem:[#allocation6 + $0x54] ss:$36 sps:$4 sm:$0xff]  }
 0x128   : > { %588 = vst [vmem:[#allocation2 + $0xf4] sm:$0xf] %v584_v35  ;;  %587 = vst [vmem:[#allocation2 + $0xf0] sm:$0xf] %v583_v36  ;;  %v452_v38 = vpop.permute.xlu1 %451  ;;  %v450_v39 = vpop.permute.xlu0 %449  ;;  %5082 = vmatprep.subr.bf16.mxu0 %v7102_v37 }
 0x129   : > { %v454_v41 = vrot.slane %v452_v38, 4  ;;  %v453_v42 = vrot.slane %v450_v39, 4 }
 0x12a   : > { %1095 = vrot.lane.b32.xlu1 %v6888_v24, %s6605_s28  ;;  %1093 = vrot.lane.b32.xlu0 %v6891_v25, %s6605_s28 }
 0x12b   : > { %v456_v29 = vsel %vm198_vm2, %v452_v38, %v454_v41  ;;  %v455_v43 = vsel %vm198_vm2, %v450_v39, %v453_v42  ;;  %v7112_v44 = vld [vmem:[#allocation2 + $0x100] sm:$0xff]   ;;  %1800 = vmatmul.mubr.bf16.gmra.mrb[4].mxu0 %v6137_v40 }
 0x12c   : > { %460 = vst [vmem:[#allocation2 + $0xb4] sm:$0xf] %v456_v29  ;;  %459 = vst [vmem:[#allocation2 + $0xb0] sm:$0xf] %v455_v43  ;;  %v759_v45 = vpop.permute.xlu1 %758  ;;  %v757_v46 = vpop.permute.xlu0 %756  ;;  %5083 = vmatpush3.bf16.msra.mxu0 %v7112_v44  ;;  %1889 = vmatprep.mubr.bf16.mxu0 %v6142_v28 }
 0x12d   : > { %v761_v47 = vrot.slane %v759_v45, 4  ;;  %v760_v12 = vrot.slane %v757_v46, 4 }
 0x12e   : > { %967 = vrot.lane.b32.xlu1 %v6888_v24, %s6606_s4  ;;  %965 = vrot.lane.b32.xlu0 %v6891_v25, %s6606_s4 }
 0x12f   : > { %v763_v49 = vsel %vm745_vm3, %v759_v45, %v761_v47  ;;  %v762_v50 = vsel %vm745_vm3, %v757_v46, %v760_v12  ;;  %v7123_v51 = vld [vmem:[#allocation2 + $0xf0] sm:$0xff]  }
 0x130   : > { %767 = vst [vmem:[#allocation2 + $0x14c] sm:$0xf] %v763_v49  ;;  %766 = vst [vmem:[#allocation2 + $0x148] sm:$0xf] %v762_v50  ;;  %v629_v52 = vpop.permute.xlu1 %628  ;;  %v627_v16 = vpop.permute.xlu0 %626  ;;  %5066 = vmatprep.subr.bf16.mxu1 %v7123_v51  ;;  %v6147_v47 = vld [vmem:[#allocation6 + $0x50] ss:$36 sps:$4 sm:$0xff]  }
 0x131   : > { %v631_v17 = vrot.slane %v629_v52, 4  ;;  %v630_v53 = vrot.slane %v627_v16, 4 }
 0x132   : > { %1111 = vrot.lane.b32.xlu1 %v4793_v13, %s6605_s28  ;;  %1109 = vrot.lane.b32.xlu0 %v4792_v48, %s6605_s28 }
 0x133   : > { %v633_v24 = vsel %vm615_vm4, %v629_v52, %v631_v17  ;;  %v632_v25 = vsel %vm615_vm4, %v627_v16, %v630_v53  ;;  %v7130_v54 = vld [vmem:[#allocation2 + $0xb0] sm:$0xff]  }
 0x134   : > { %637 = vst [vmem:[#allocation2 + $0x10c] sm:$0xf] %v633_v24  ;;  %636 = vst [vmem:[#allocation2 + $0x108] sm:$0xf] %v632_v25  ;;  %v596_v55 = vpop.permute.xlu1 %595  ;;  %v594_v56 = vpop.permute.xlu0 %593  ;;  %5067 = vmatpush3.bf16.msra.mxu1 %v7130_v54 }
 0x135   : > { %v598_v57 = vrot.slane %v596_v55, 4  ;;  %v597_v58 = vrot.slane %v594_v56, 4 }
 0x136   : > { %983 = vrot.lane.b32.xlu1 %v4793_v13, %s6606_s4  ;;  %981 = vrot.lane.b32.xlu0 %v4792_v48, %s6606_s4  ;;  %v6160_v48 = vld [vmem:[#allocation6 + $0x1c] ss:$36 sps:$4 sm:$0xff]  }
 0x137   : > { %v600_v59 = vsel %vm306_vm1, %v596_v55, %v598_v57  ;;  %v599_v60 = vsel %vm306_vm1, %v594_v56, %v597_v58  ;;  %v7137_v61 = vld [vmem:[#allocation2 + $0x148] sm:$0xff]  }
 0x138   : > { %604 = vst [vmem:[#allocation2 + $0xfc] sm:$0xf] %v600_v59  ;;  %603 = vst [vmem:[#allocation2 + $0xf8] sm:$0xf] %v599_v60  ;;  %v468_v62 = vpop.permute.xlu1 %467  ;;  %v466_v63 = vpop.permute.xlu0 %465  ;;  %5084 = vmatprep.subr.bf16.mxu0 %v7137_v61 }
 0x139   : > { %v470_v1 = vrot.slane %v468_v62, 4  ;;  %v469_v3 = vrot.slane %v466_v63, 4 }
 0x13b   : > { %v472_v4 = vsel %vm198_vm2, %v468_v62, %v470_v1  ;;  %v471_v5 = vsel %vm198_vm2, %v466_v63, %v469_v3  ;;  %v7142_v6 = vld [vmem:[#allocation2 + $0x108] sm:$0xff]  }
 0x13c   : > { %476 = vst [vmem:[#allocation2 + $0xbc] sm:$0xf] %v472_v4  ;;  %475 = vst [vmem:[#allocation2 + $0xb8] sm:$0xf] %v471_v5  ;;  %v775_v7 = vpop.permute.xlu1 %774  ;;  %v773_v10 = vpop.permute.xlu0 %772  ;;  %5085 = vmatpush3.bf16.msra.mxu0 %v7142_v6 }
 0x13d   : > { %v777_v11 = vrot.slane %v775_v7, 4  ;;  %v776_v0 = vrot.slane %v773_v10, 4 }
 0x13f   : > { %v780_v8 = vsel %vm778_vm5, %v775_v7, %v777_v11  ;;  %v779_v9 = vsel %vm778_vm5, %v773_v10, %v776_v0  ;;  %v7147_v2 = vld [vmem:[#allocation2 + $0xf8] sm:$0xff]  }
 0x140   : > { %784 = vst [vmem:[#allocation2 + $0x154] sm:$0xf] %v780_v8  ;;  %783 = vst [vmem:[#allocation2 + $0x150] sm:$0xf] %v779_v9  ;;  %v645_v14 = vpop.permute.xlu1 %644  ;;  %v643_v15 = vpop.permute.xlu0 %642  ;;  %5068 = vmatprep.subr.bf16.mxu1 %v7147_v2 }
 0x141   : > { %v647_v18 = vrot.slane %v645_v14, 4  ;;  %v646_v19 = vrot.slane %v643_v15, 4 }
 0x143   : > { %v650_v22 = vsel %vm648_vm6, %v645_v14, %v647_v18  ;;  %v649_v23 = vsel %vm648_vm6, %v643_v15, %v646_v19  ;;  %v7152_v26 = vld [vmem:[#allocation2 + $0xb8] sm:$0xff]  }
 0x144   : > { %654 = vst [vmem:[#allocation2 + $0x114] sm:$0xf] %v650_v22  ;;  %653 = vst [vmem:[#allocation2 + $0x110] sm:$0xf] %v649_v23  ;;  %v1000_v21 = vpop.permute.xlu1 %999  ;;  %v998_v27 = vpop.permute.xlu0 %997  ;;  %5069 = vmatpush3.bf16.msra.mxu1 %v7152_v26 }
 0x145   : > { %v1002_v32 = vrot.slane %v1000_v21, 4  ;;  %v1001_v33 = vrot.slane %v998_v27, 4 }
 0x147   : > { %v1004_v35 = vsel %vm745_vm3, %v1000_v21, %v1002_v32  ;;  %v1003_v36 = vsel %vm745_vm3, %v998_v27, %v1001_v33  ;;  %v7157_v38 = vld [vmem:[#allocation2 + $0x150] sm:$0xff]   ;;  %1841 = vmatmul.mubr.bf16.vlgmr.msra.gmra.mrb[0].mxu1 %v6116_v31 }
 0x148   : > { %1008 = vst [vmem:[#allocation2 + $0x1c4] sm:$0xf] %v1004_v35  ;;  %1007 = vst [vmem:[#allocation2 + $0x1c0] sm:$0xf] %v1003_v36  ;;  %v792_v39 = vpop.permute.xlu1 %791  ;;  %v790_v40 = vpop.permute.xlu0 %789  ;;  %5086 = vmatprep.subr.bf16.mxu0 %v7157_v38  ;;  %1848 = vmatprep.mubr.bf16.mxu1 %v6144_v34 }
 0x149   : > { %v794_v41 = vrot.slane %v792_v39, 4  ;;  %v793_v42 = vrot.slane %v790_v40, 4 }
 0x14b   : > { %v796_v28 = vsel %vm778_vm5, %v792_v39, %v794_v41  ;;  %v795_v29 = vsel %vm778_vm5, %v790_v40, %v793_v42  ;;  %v7162_v43 = vld [vmem:[#allocation2 + $0x110] sm:$0xff]  }
 0x14c   : > { %800 = vst [vmem:[#allocation2 + $0x15c] sm:$0xf] %v796_v28  ;;  %799 = vst [vmem:[#allocation2 + $0x158] sm:$0xf] %v795_v29  ;;  %v872_v45 = vpop.permute.xlu1 %871  ;;  %v870_v46 = vpop.permute.xlu0 %869  ;;  %5087 = vmatpush3.bf16.msra.mxu0 %v7162_v43 }
 0x14d   : > { %v874_v12 = vrot.slane %v872_v45, 4  ;;  %v873_v13 = vrot.slane %v870_v46, 4 }
 0x14f   : > { %v876_v49 = vsel %vm615_vm4, %v872_v45, %v874_v12  ;;  %v875_v50 = vsel %vm615_vm4, %v870_v46, %v873_v13  ;;  %v7167_v52 = vld [vmem:[#allocation2 + $0x1c0] sm:$0xff]   ;;  %1849 = vmatmul.mubr.bf16.gmra.mrb[4].mxu1 %v6147_v47 }
 0x150   : > { %880 = vst [vmem:[#allocation2 + $0x184] sm:$0xf] %v876_v49  ;;  %879 = vst [vmem:[#allocation2 + $0x180] sm:$0xf] %v875_v50  ;;  %v662_v16 = vpop.permute.xlu1 %661  ;;  %v660_v17 = vpop.permute.xlu0 %659  ;;  %5110 = vmatprep.subr.bf16.mxu1 %v7167_v52  ;;  %1938 = vmatprep.mubr.bf16.mxu1 %v6160_v48 }
 0x151   : > { %v664_v53 = vrot.slane %v662_v16, 4  ;;  %v663_v24 = vrot.slane %v660_v17, 4 }
 0x153   : > { %v666_v25 = vsel %vm648_vm6, %v662_v16, %v664_v53  ;;  %v665_v55 = vsel %vm648_vm6, %v660_v17, %v663_v24  ;;  %v7172_v56 = vld [vmem:[#allocation2 + $0x158] sm:$0xff]  }
 0x154   : > { %670 = vst [vmem:[#allocation2 + $0x11c] sm:$0xf] %v666_v25  ;;  %669 = vst [vmem:[#allocation2 + $0x118] sm:$0xf] %v665_v55  ;;  %v1016_v57 = vpop.permute.xlu1 %1015  ;;  %v1014_v58 = vpop.permute.xlu0 %1013  ;;  %5088 = vmatprep.subr.bf16.mxu0 %v7172_v56 }
 0x155   : > { %v1018_v59 = vrot.slane %v1016_v57, 4  ;;  %v1017_v60 = vrot.slane %v1014_v58, 4 }
 0x157   : > { %v1020_v62 = vsel %vm745_vm3, %v1016_v57, %v1018_v59  ;;  %v1019_v63 = vsel %vm745_vm3, %v1014_v58, %v1017_v60  ;;  %v7177_v1 = vld [vmem:[#allocation2 + $0x180] sm:$0xff]  }
 0x158   : > { %8291 = vst [vmem:[#allocation12_spill] sm:$0xff] %v7177_v1  ;;  %1024 = vst [vmem:[#allocation2 + $0x1cc] sm:$0xf] %v1020_v62  ;;  %v808_v3 = vpop.permute.xlu1 %807  ;;  %v806_v4 = vpop.permute.xlu0 %805  ;;  %5111 = vmatpush3.bf16.msra.mxu1 %v7177_v1 }
 0x159   : > { %1023 = vst [vmem:[#allocation2 + $0x1c8] sm:$0xf] %v1019_v63  ;;  %v810_v5 = vrot.slane %v808_v3, 4  ;;  %v809_v7 = vrot.slane %v806_v4, 4 }
 0x15b   : > { %v812_v10 = vsel %vm745_vm3, %v808_v3, %v810_v5  ;;  %v811_v11 = vsel %vm745_vm3, %v806_v4, %v809_v7  ;;  %v7182_v0 = vld [vmem:[#allocation2 + $0x118] sm:$0xff]  }
 0x15c   : > { %816 = vst [vmem:[#allocation2 + $0x164] sm:$0xf] %v812_v10  ;;  %815 = vst [vmem:[#allocation2 + $0x160] sm:$0xf] %v811_v11  ;;  %v888_v8 = vpop.permute.xlu1 %887  ;;  %v886_v9 = vpop.permute.xlu0 %885  ;;  %5089 = vmatpush3.bf16.msra.mxu0 %v7182_v0 }
 0x15d   : > { %v890_v14 = vrot.slane %v888_v8, 4  ;;  %v889_v15 = vrot.slane %v886_v9, 4 }
 0x15f   : > { %v892_v18 = vsel %vm615_vm4, %v888_v8, %v890_v14  ;;  %v891_v19 = vsel %vm615_vm4, %v886_v9, %v889_v15 }
 0x160   : > { %v7187_v22 = vld [vmem:[#allocation2 + $0x1c8] sm:$0xff]   ;;  %896 = vst [vmem:[#allocation2 + $0x18c] sm:$0xf] %v892_v18  ;;  %895 = vst [vmem:[#allocation2 + $0x188] sm:$0xf] %v891_v19  ;;  %v678_v23 = vpop.permute.xlu1 %677  ;;  %v676_v21 = vpop.permute.xlu0 %675 }
 0x161   : > { %v680_v27 = vrot.slane %v678_v23, 4  ;;  %v679_v31 = vrot.slane %v676_v21, 4  ;;  %5112 = vmatprep.subr.bf16.mxu1 %v7187_v22 }
 0x163   : > { %v682_v32 = vsel %vm615_vm4, %v678_v23, %v680_v27  ;;  %v681_v33 = vsel %vm615_vm4, %v676_v21, %v679_v31  ;;  %v7192_v34 = vld [vmem:[#allocation2 + $0x160] sm:$0xff]  }
 0x164   : > { %686 = vst [vmem:[#allocation2 + $0x124] sm:$0xf] %v682_v32  ;;  %685 = vst [vmem:[#allocation2 + $0x120] sm:$0xf] %v681_v33  ;;  %v1032_v35 = vpop.permute.xlu1 %1031  ;;  %v1030_v36 = vpop.permute.xlu0 %1029  ;;  %5090 = vmatprep.subr.bf16.mxu0 %v7192_v34 }
 0x165   : > { %v1034_v39 = vrot.slane %v1032_v35, 4  ;;  %v1033_v40 = vrot.slane %v1030_v36, 4 }
 0x167   : > { %v1036_v41 = vsel %vm778_vm5, %v1032_v35, %v1034_v39  ;;  %v1035_v42 = vsel %vm778_vm5, %v1030_v36, %v1033_v40  ;;  %v7197_v28 = vld [vmem:[#allocation2 + $0x188] sm:$0xff]  }
 0x168   : > { %1040 = vst [vmem:[#allocation2 + $0x1d4] sm:$0xf] %v1036_v41  ;;  %1039 = vst [vmem:[#allocation2 + $0x1d0] sm:$0xf] %v1035_v42  ;;  %v824_v29 = vpop.permute.xlu1 %823  ;;  %v822_v45 = vpop.permute.xlu0 %821  ;;  %5113 = vmatpush3.bf16.msra.mxu1 %v7197_v28 }
 0x169   : > { %v826_v46 = vrot.slane %v824_v29, 4  ;;  %v825_v47 = vrot.slane %v822_v45, 4 }
 0x16b   : > { %v828_v12 = vsel %vm745_vm3, %v824_v29, %v826_v46  ;;  %v827_v13 = vsel %vm745_vm3, %v822_v45, %v825_v47  ;;  %v7202_v48 = vld [vmem:[#allocation2 + $0x120] sm:$0xff]  }
 0x16c   : > { %832 = vst [vmem:[#allocation2 + $0x16c] sm:$0xf] %v828_v12  ;;  %831 = vst [vmem:[#allocation2 + $0x168] sm:$0xf] %v827_v13  ;;  %v904_v49 = vpop.permute.xlu1 %903  ;;  %v902_v50 = vpop.permute.xlu0 %901  ;;  %5091 = vmatpush3.bf16.msra.mxu0 %v7202_v48 }
 0x16d   : > { %v906_v16 = vrot.slane %v904_v49, 4  ;;  %v905_v17 = vrot.slane %v902_v50, 4 }
 0x16f   : > { %v908_v53 = vsel %vm648_vm6, %v904_v49, %v906_v16  ;;  %v907_v24 = vsel %vm648_vm6, %v902_v50, %v905_v17  ;;  %v7207_v25 = vld [vmem:[#allocation2 + $0x1d0] sm:$0xff]  }
 0x170   : > { %912 = vst [vmem:[#allocation2 + $0x194] sm:$0xf] %v908_v53  ;;  %911 = vst [vmem:[#allocation2 + $0x190] sm:$0xf] %v907_v24  ;;  %v694_v55 = vpop.permute.xlu1 %693  ;;  %v692_v57 = vpop.permute.xlu0 %691  ;;  %5114 = vmatprep.subr.bf16.mxu1 %v7207_v25 }
 0x171   : > { %v696_v58 = vrot.slane %v694_v55, 4  ;;  %v695_v59 = vrot.slane %v692_v57, 4 }
 0x173   : > { %v698_v60 = vsel %vm615_vm4, %v694_v55, %v696_v58  ;;  %v697_v62 = vsel %vm615_vm4, %v692_v57, %v695_v59  ;;  %v7212_v63 = vld [vmem:[#allocation2 + $0x168] sm:$0xff]  }
 0x174   : > { %702 = vst [vmem:[#allocation2 + $0x12c] sm:$0xf] %v698_v60  ;;  %701 = vst [vmem:[#allocation2 + $0x128] sm:$0xf] %v697_v62  ;;  %v1048_v3 = vpop.permute.xlu1 %1047  ;;  %v1046_v4 = vpop.permute.xlu0 %1045  ;;  %5092 = vmatprep.subr.bf16.mxu0 %v7212_v63 }
 0x175   : > { %v1050_v5 = vrot.slane %v1048_v3, 4  ;;  %v1049_v7 = vrot.slane %v1046_v4, 4 }
 0x177   : > { %v1052_v10 = vsel %vm778_vm5, %v1048_v3, %v1050_v5  ;;  %v1051_v11 = vsel %vm778_vm5, %v1046_v4, %v1049_v7  ;;  %v7217_v8 = vld [vmem:[#allocation2 + $0x190] sm:$0xff]  }
 0x178   : > { %1056 = vst [vmem:[#allocation2 + $0x1dc] sm:$0xf] %v1052_v10  ;;  %1055 = vst [vmem:[#allocation2 + $0x1d8] sm:$0xf] %v1051_v11  ;;  %v840_v9 = vpop.permute.xlu1 %839  ;;  %v838_v14 = vpop.permute.xlu0 %837  ;;  %5115 = vmatpush3.bf16.msra.mxu1 %v7217_v8 }
 0x179   : > { %v842_v15 = vrot.slane %v840_v9, 4  ;;  %v841_v18 = vrot.slane %v838_v14, 4 }
 0x17b   : > { %v844_v19 = vsel %vm778_vm5, %v840_v9, %v842_v15  ;;  %v843_v23 = vsel %vm778_vm5, %v838_v14, %v841_v18  ;;  %v7222_v21 = vld [vmem:[#allocation2 + $0x128] sm:$0xff]  }
 0x17c   : > { %848 = vst [vmem:[#allocation2 + $0x174] sm:$0xf] %v844_v19  ;;  %847 = vst [vmem:[#allocation2 + $0x170] sm:$0xf] %v843_v23  ;;  %v920_v27 = vpop.permute.xlu1 %919  ;;  %v918_v31 = vpop.permute.xlu0 %917  ;;  %5093 = vmatpush3.bf16.msra.mxu0 %v7222_v21 }
 0x17d   : > { %v922_v32 = vrot.slane %v920_v27, 4  ;;  %v921_v33 = vrot.slane %v918_v31, 4 }
 0x17f   : > { %v924_v35 = vsel %vm648_vm6, %v920_v27, %v922_v32  ;;  %v923_v36 = vsel %vm648_vm6, %v918_v31, %v921_v33  ;;  %v7227_v39 = vld [vmem:[#allocation2 + $0x1d8] sm:$0xff]  }
 0x180   : > { %928 = vst [vmem:[#allocation2 + $0x19c] sm:$0xf] %v924_v35  ;;  %927 = vst [vmem:[#allocation2 + $0x198] sm:$0xf] %v923_v36  ;;  %v710_v40 = vpop.permute.xlu1 %709  ;;  %v708_v41 = vpop.permute.xlu0 %707  ;;  %5116 = vmatprep.subr.bf16.mxu1 %v7227_v39 }
 0x181   : > { %v712_v42 = vrot.slane %v710_v40, 4  ;;  %v711_v29 = vrot.slane %v708_v41, 4 }
 0x183   : > { %v714_v45 = vsel %vm648_vm6, %v710_v40, %v712_v42  ;;  %v713_v46 = vsel %vm648_vm6, %v708_v41, %v711_v29  ;;  %v7232_v47 = vld [vmem:[#allocation2 + $0x170] sm:$0xff]  }
 0x184   : > { %718 = vst [vmem:[#allocation2 + $0x134] sm:$0xf] %v714_v45  ;;  %717 = vst [vmem:[#allocation2 + $0x130] sm:$0xf] %v713_v46  ;;  %v1064_v12 = vpop.permute.xlu1 %1063  ;;  %v1062_v13 = vpop.permute.xlu0 %1061  ;;  %5094 = vmatprep.subr.bf16.mxu0 %v7232_v47 }
 0x185   : > { %v1066_v49 = vrot.slane %v1064_v12, 4  ;;  %v1065_v50 = vrot.slane %v1062_v13, 4 }
 0x187   : > { %v1068_v16 = vsel %vm745_vm3, %v1064_v12, %v1066_v49  ;;  %v1067_v17 = vsel %vm745_vm3, %v1062_v13, %v1065_v50  ;;  %v7237_v53 = vld [vmem:[#allocation2 + $0x198] sm:$0xff]   ;;  %v7260_v13 = vld [vmem:[#allocation2 + $0x200] ss:$0 sps:$4 sm:$0xff]  }
 0x188   : > { %1072 = vst [vmem:[#allocation2 + $0x1e4] sm:$0xf] %v1068_v16  ;;  %1071 = vst [vmem:[#allocation2 + $0x1e0] sm:$0xf] %v1067_v17  ;;  %v856_v24 = vpop.permute.xlu1 %855  ;;  %v854_v55 = vpop.permute.xlu0 %853  ;;  %5117 = vmatpush3.bf16.msra.mxu1 %v7237_v53 }
 0x189   : > { %v858_v57 = vrot.slane %v856_v24, 4  ;;  %v857_v58 = vrot.slane %v854_v55, 4 }
 0x18b   : > { %v860_v59 = vsel %vm778_vm5, %v856_v24, %v858_v57  ;;  %v859_v60 = vsel %vm778_vm5, %v854_v55, %v857_v58  ;;  %v7242_v62 = vld [vmem:[#allocation2 + $0x130] sm:$0xff]  }
 0x18c   : > { %864 = vst [vmem:[#allocation2 + $0x17c] sm:$0xf] %v860_v59  ;;  %863 = vst [vmem:[#allocation2 + $0x178] sm:$0xf] %v859_v60  ;;  %v936_v3 = vpop.permute.xlu1 %935  ;;  %v934_v4 = vpop.permute.xlu0 %933  ;;  %5095 = vmatpush3.bf16.msra.mxu0 %v7242_v62  ;;  %v6140_v55 = vld [vmem:[#allocation6 + $0x10] ss:$36 sps:$4 sm:$0xff]  }
 0x18d   : > { %v938_v5 = vrot.slane %v936_v3, 4  ;;  %v937_v7 = vrot.slane %v934_v4, 4  ;;  %v7271_v59 = vsel %vm1755_vm7, %v7260_v13, 0  ;;  %v6149_v60 = vld [vmem:[#allocation6 + $0x5c] ss:$36 sps:$4 sm:$0xff]  }
 0x18e   : > { %8292 = vst [vmem:[#allocation13_spill] sm:$0xff] %v7271_v59 }
 0x18f   : > { %v940_v10 = vsel %vm615_vm4, %v936_v3, %v938_v5  ;;  %v939_v11 = vsel %vm615_vm4, %v934_v4, %v937_v7  ;;  %v7247_v9 = vld [vmem:[#allocation2 + $0x1e0] sm:$0xff]  }
 0x190   : > { %944 = vst [vmem:[#allocation2 + $0x1a4] sm:$0xf] %v940_v10  ;;  %943 = vst [vmem:[#allocation2 + $0x1a0] sm:$0xf] %v939_v11  ;;  %v726_v14 = vpop.permute.xlu1 %725  ;;  %v724_v15 = vpop.permute.xlu0 %723  ;;  %5118 = vmatprep.subr.bf16.mxu1 %v7247_v9 }
 0x191   : > { %v728_v18 = vrot.slane %v726_v14, 4  ;;  %v727_v19 = vrot.slane %v724_v15, 4 }
 0x193   : > { %v730_v23 = vsel %vm648_vm6, %v726_v14, %v728_v18  ;;  %v729_v27 = vsel %vm648_vm6, %v724_v15, %v727_v19  ;;  %v7252_v31 = vld [vmem:[#allocation2 + $0x178] sm:$0xff]   ;;  %v7279_v15 = vld [vmem:[#allocation2 + $0xc0] sm:$0xff]  }
 0x194   : > { %734 = vst [vmem:[#allocation2 + $0x13c] sm:$0xf] %v730_v23  ;;  %733 = vst [vmem:[#allocation2 + $0x138] sm:$0xf] %v729_v27  ;;  %v1080_v32 = vpop.permute.xlu1 %1079  ;;  %v1078_v33 = vpop.permute.xlu0 %1077  ;;  %5096 = vmatprep.subr.bf16.mxu0 %v7252_v31 }
 0x195   : > { %v1082_v35 = vrot.slane %v1080_v32, 4  ;;  %v1081_v36 = vrot.slane %v1078_v33, 4 }
 0x197   : > { %v1084_v40 = vsel %vm745_vm3, %v1080_v32, %v1082_v35  ;;  %v1083_v41 = vsel %vm745_vm3, %v1078_v33, %v1081_v36  ;;  %v7257_v42 = vld [vmem:[#allocation2 + $0x1a0] sm:$0xff]  }
 0x198   : > { %1088 = vst [vmem:[#allocation2 + $0x1ec] sm:$0xf] %v1084_v40  ;;  %1087 = vst [vmem:[#allocation2 + $0x1e8] sm:$0xf] %v1083_v41  ;;  %v952_v29 = vpop.permute.xlu1 %951  ;;  %v950_v45 = vpop.permute.xlu0 %949  ;;  %5119 = vmatpush3.bf16.msra.mxu1 %v7257_v42  ;;  %v6151_v33 = vld [vmem:[#allocation6 + $0x58] ss:$36 sps:$4 sm:$0xff]  }
 0x199   : > { %v954_v46 = vrot.slane %v952_v29, 4  ;;  %v953_v12 = vrot.slane %v950_v45, 4  ;;  %v6154_v40 = vld [vmem:[#allocation6 + $0x20] ss:$36 sps:$4 sm:$0xff]  }
 0x19b   : > { %v956_v49 = vsel %vm615_vm4, %v952_v29, %v954_v46  ;;  %v955_v50 = vsel %vm615_vm4, %v950_v45, %v953_v12  ;;  %v7264_v16 = vld [vmem:[#allocation2 + $0x138] sm:$0xff]  }
 0x19c   : > { %960 = vst [vmem:[#allocation2 + $0x1ac] sm:$0xf] %v956_v49  ;;  %959 = vst [vmem:[#allocation2 + $0x1a8] sm:$0xf] %v955_v50  ;;  %v1096_v17 = vpop.permute.xlu1 %1095  ;;  %v1094_v24 = vpop.permute.xlu0 %1093  ;;  %5097 = vmatpush3.bf16.msra.mxu0 %v7264_v16 }
 0x19d   : > { %v1098_v57 = vrot.slane %v1096_v17, 4  ;;  %v1097_v58 = vrot.slane %v1094_v24, 4  ;;  %5994 = vmatprep.subr.msk.bf16.mxu0 %vm1755_vm7, %v7260_v13 }
 0x19f   : > { %v1100_v3 = vsel %vm778_vm5, %v1096_v17, %v1098_v57  ;;  %v1099_v4 = vsel %vm778_vm5, %v1094_v24, %v1097_v58  ;;  %v7275_v5 = vld [vmem:[#allocation2 + $0x1e8] sm:$0xff]   ;;  %1890 = vmatmul.mubr.bf16.vlgmr.msra.gmra.mrb[8].mxu0 %v6140_v55  ;;  %v6166_v58 = vld [vmem:[#allocation6 + $0x9c] ss:$36 sps:$4 sm:$0xff]  }
 0x1a0   : > { %1104 = vst [vmem:[#allocation2 + $0x1f4] sm:$0xf] %v1100_v3  ;;  %1103 = vst [vmem:[#allocation2 + $0x1f0] sm:$0xf] %v1099_v4  ;;  %v968_v7 = vpop.permute.xlu1 %967  ;;  %v966_v10 = vpop.permute.xlu0 %965  ;;  %5120 = vmatprep.subr.bf16.mxu1 %v7275_v5  ;;  %5947 = vmatpush3.bf16.msra.mxu0 %v7271_v59  ;;  %v6155_v57 = vld [vmem:[#allocation6 + $0x68] ss:$36 sps:$4 sm:$0xff]  }
 0x1a1   : > { %v970_v11 = vrot.slane %v968_v7, 4  ;;  %v969_v14 = vrot.slane %v966_v10, 4  ;;  %5169 = vmatprep.subr.bf16.mxu0 %v7279_v15  ;;  %1897 = vmatprep.mubr.bf16.mxu0 %v6149_v60  ;;  %v7301_v3 = vld [vmem:[#allocation2 + $0x80] sm:$0xff]   ;;  %v7305_v4 = vld [vmem:[#allocation2 + $0xc8] sm:$0xff]  }
 0x1a3   : > { %v972_v18 = vsel %vm648_vm6, %v968_v7, %v970_v11  ;;  %v971_v19 = vsel %vm648_vm6, %v966_v10, %v969_v14  ;;  %v7284_v23 = vld [vmem:[#allocation2 + $0x1a8] sm:$0xff]   ;;  %v6158_v10 = vld [vmem:[#allocation6 + $0x18] ss:$36 sps:$4 sm:$0xff]   ;;  %v7314_v14 = vld [vmem:[#allocation2 + $0xd0] sm:$0xff]  }
 0x1a4   : > { %976 = vst [vmem:[#allocation2 + $0x1b4] sm:$0xf] %v972_v18  ;;  %975 = vst [vmem:[#allocation2 + $0x1b0] sm:$0xf] %v971_v19  ;;  %v1112_v27 = vpop.permute.xlu1 %1111  ;;  %v1110_v32 = vpop.permute.xlu0 %1109  ;;  %5121 = vmatpush3.bf16.msra.mxu1 %v7284_v23  ;;  %v7310_v11 = vld [vmem:[#allocation2 + $0x88] sm:$0xff]   ;;  %v7317_v18 = vld [vmem:[#allocation2 + $0x40] sm:$0xff]  }
 0x1a5   : > { %v1114_v35 = vrot.slane %v1112_v27, 4  ;;  %v1113_v36 = vrot.slane %v1110_v32, 4  ;;  %v6161_v19 = vld [vmem:[#allocation6 + $0x64] ss:$36 sps:$4 sm:$0xff]  }
 0x1a7   : > { %v1116_v41 = vsel %vm778_vm5, %v1112_v27, %v1114_v35  ;;  %v1115_v29 = vsel %vm778_vm5, %v1110_v32, %v1113_v36  ;;  %v7289_v45 = vld [vmem:[#allocation2 + $0x1f0] sm:$0xff]   ;;  %1898 = vmatmul.mubr.bf16.gmra.mrb[12].mxu0 %v6151_v33  ;;  %v7323_v32 = vld [vmem:[#allocation2] sm:$0xff]   ;;  %v7326_v33 = vld [vmem:[#allocation2 + $0xd8] sm:$0xff]  }
 0x1a8   : > { %1120 = vst [vmem:[#allocation2 + $0x1fc] sm:$0xf] %v1116_v41  ;;  %1119 = vst [vmem:[#allocation2 + $0x1f8] sm:$0xf] %v1115_v29  ;;  %v984_v46 = vpop.permute.xlu1 %983  ;;  %v982_v12 = vpop.permute.xlu0 %981  ;;  %5122 = vmatprep.subr.bf16.mxu1 %v7289_v45  ;;  %5948 = vmatprep.mubr.msk.bf16.mxu0 %vm1748_vm8, %v6154_v40  ;;  %v7320_v27 = vld [vmem:[#allocation2 + $0x90] sm:$0xff]   ;;  %v7329_v35 = vld [vmem:[#allocation2 + $0x48] sm:$0xff]  }
 0x1a9   : > { %v986_v49 = vrot.slane %v984_v46, 4  ;;  %v985_v50 = vrot.slane %v982_v12, 4  ;;  %v6163_v36 = vld [vmem:[#allocation6 + $0x60] ss:$36 sps:$4 sm:$0xff]   ;;  %v7332_v40 = vld [vmem:[#allocation2 + $0x98] sm:$0xff]  }
 0x1aa   : > { %v7335_v41 = vld [vmem:[#allocation2 + $0x8] sm:$0xff]   ;;  %v7338_v29 = vld [vmem:[#allocation2 + $0xe0] sm:$0xff]  }
 0x1ab   : > { %v988_v17 = vsel %vm648_vm6, %v984_v46, %v986_v49  ;;  %v987_v24 = vsel %vm648_vm6, %v982_v12, %v985_v50  ;;  %v7295_v55 = vld [vmem:[#allocation2 + $0x1b0] sm:$0xff]   ;;  %8293 = vst [vmem:[#allocation14_spill] sm:$0xff] %v7335_v41  ;;  %v6169_v12 = vld [vmem:[#allocation6 + $0x94] ss:$36 sps:$4 sm:$0xff]   ;;  %v7344_v49 = vld [vmem:[#allocation2 + $0xa0] sm:$0xff]  }
 0x1ac   : > { %992 = vst [vmem:[#allocation2 + $0x1bc] sm:$0xf] %v988_v17  ;;  %991 = vst [vmem:[#allocation2 + $0x1b8] sm:$0xf] %v987_v24  ;;  %5123 = vmatpush3.bf16.msra.mxu1 %v7295_v55  ;;  %v7341_v46 = vld [vmem:[#allocation2 + $0x50] sm:$0xff]   ;;  %v7351_v17 = vld [vmem:[#allocation2 + $0x58] sm:$0xff]  }
 0x1ad   : > { %8294 = vst [vmem:[#allocation15_spill] sm:$0xff] %v7341_v46  ;;  %v7347_v50 = vld [vmem:[#allocation2 + $0x10] sm:$0xff]   ;;  %8295 = vst [vmem:[#allocation16_spill] sm:$0xff] %v7351_v17  ;;  %v7355_v24 = vld [vmem:[#allocation2 + $0x18] sm:$0xff]  }
 0x1af   : > { %v7298_v60 = vld [vmem:[#allocation2 + $0x1f8] sm:$0xff]   ;;  %5949 = vmatmul.mubr.msk.bf16.vlgmr.msra.gmra.mrb[16].mxu0 %vm1748_vm8, %v6155_v57  ;;  %v7359_v57 = vld [vmem:[#allocation2 + $0x60] sm:$0xff]  }
 0x1b0   : > { %5170 = vmatpush3.bf16.msra.mxu0 %v7301_v3  ;;  %5124 = vmatprep.subr.bf16.mxu1 %v7298_v60 }
 0x1b1   : > { %5171 = vmatprep.subr.bf16.mxu0 %v7305_v4  ;;  %2202 = vmatprep.mubr.bf16.mxu0 %v6166_v58  ;;  %v7367_v58 = vld [vmem:[#allocation2 + $0x68] sm:$0xff]  }
 0x1b3   : > { %v7308_v7 = vld [vmem:[#allocation2 + $0x1b8] sm:$0xff]  }
 0x1b4   : > { %5172 = vmatpush3.bf16.msra.mxu0 %v7310_v11  ;;  %5125 = vmatpush3.bf16.msra.mxu1 %v7308_v7 }
 0x1b5   : > { %5173 = vmatprep.subr.bf16.mxu0 %v7314_v14  ;;  %5141 = vmatprep.subr.bf16.mxu1 %v7317_v18 }
 0x1b7   : > { %1939 = vmatmul.mubr.bf16.vlgmr.msra.gmra.mrb[8].mxu1 %v6158_v10  ;;  %v6170_v10 = vld [vmem:[#allocation6 + $0xe4] ss:$36 sps:$4 sm:$0xff]  }
 0x1b8   : > { %5174 = vmatpush3.bf16.msra.mxu0 %v7320_v27  ;;  %5142 = vmatpush3.bf16.msra.mxu1 %v7323_v32 }
 0x1b9   : > { %5175 = vmatprep.subr.bf16.mxu0 %v7326_v33  ;;  %5143 = vmatprep.subr.bf16.mxu1 %v7329_v35 }
 0x1ba   : > { %1946 = vmatprep.mubr.bf16.mxu1 %v6161_v19  ;;  %v6167_v19 = vld [vmem:[#allocation6 + $0x90] ss:$36 sps:$4 sm:$0xff]  }
 0x1bc   : > { %5176 = vmatpush3.bf16.msra.mxu0 %v7332_v40  ;;  %5144 = vmatpush3.bf16.msra.mxu1 %v7335_v41 }
 0x1bd   : > { %5177 = vmatprep.subr.bf16.mxu0 %v7338_v29  ;;  %5145 = vmatprep.subr.bf16.mxu1 %v7341_v46 }
 0x1bf   : > { %1947 = vmatmul.mubr.bf16.gmra.mrb[12].mxu1 %v6163_v36  ;;  %v6172_v36 = vld [vmem:[#allocation6 + $0xe0] ss:$36 sps:$4 sm:$0xff]  }
 0x1c0   : > { %5178 = vmatpush3.bf16.msra.mxu0 %v7344_v49  ;;  %5146 = vmatpush3.bf16.msra.mxu1 %v7347_v50 }
 0x1c1   : > { %5179 = vmatprep.subr.bf16.mxu0 %v7093_v30  ;;  %5147 = vmatprep.subr.bf16.mxu1 %v7351_v17  ;;  %v7363_v30 = vld [vmem:[#allocation2 + $0x20] sm:$0xff]  }
 0x1c2   : > { %2153 = vmatprep.mubr.bf16.mxu1 %v6169_v12  ;;  %v7387_v12 = vld [vmem:[#allocation2 + $0x38] sm:$0xff]  }
 0x1c4   : > { %5180 = vmatpush3.bf16.msra.mxu0 %v7089_v20  ;;  %5148 = vmatpush3.bf16.msra.mxu1 %v7355_v24  ;;  %v6164_v20 = vld [vmem:[#allocation6 + $0x98] ss:$36 sps:$4 sm:$0xff]  }
 0x1c5   : > { %5181 = vmatprep.subr.bf16.mxu0 %v7123_v51  ;;  %5149 = vmatprep.subr.bf16.mxu1 %v7359_v57  ;;  %v7371_v51 = vld [vmem:[#allocation2 + $0x28] sm:$0xff]  }
 0x1c8   : > { %5182 = vmatpush3.bf16.msra.mxu0 %v7130_v54  ;;  %5150 = vmatpush3.bf16.msra.mxu1 %v7363_v30  ;;  %v7375_v54 = vld [vmem:[#allocation2 + $0x70] sm:$0xff]  }
 0x1c9   : > { %5183 = vmatprep.subr.bf16.mxu0 %v7147_v2  ;;  %5151 = vmatprep.subr.bf16.mxu1 %v7367_v58  ;;  %v7379_v2 = vld [vmem:[#allocation2 + $0x30] sm:$0xff]  }
 0x1cc   : > { %5184 = vmatpush3.bf16.msra.mxu0 %v7152_v26  ;;  %5152 = vmatpush3.bf16.msra.mxu1 %v7371_v51  ;;  %v7383_v26 = vld [vmem:[#allocation2 + $0x78] sm:$0xff]  }
 0x1cd   : > { %5225 = vmatprep.subr.bf16.mxu0 %v7167_v52  ;;  %5153 = vmatprep.subr.bf16.mxu1 %v7375_v54 }
 0x1cf   : > { %2203 = vmatmul.mubr.bf16.vlgmr.msra.gmra.mrb[20].mxu0 %v6164_v20  ;;  %v6173_v20 = vld [vmem:[#allocation6 + $0xdc] ss:$36 sps:$4 sm:$0xff]  }
 0x1d0   : > { %5226 = vmatpush3.bf16.msra.mxu0 %v7177_v1  ;;  %5154 = vmatpush3.bf16.msra.mxu1 %v7379_v2  ;;  %v6178_v1 = vld [vmem:[#allocation6 + $0xac] ss:$36 sps:$4 sm:$0xff]  }
 0x1d1   : > { %5227 = vmatprep.subr.bf16.mxu0 %v7187_v22  ;;  %5155 = vmatprep.subr.bf16.mxu1 %v7383_v26 }
 0x1d2   : > { %2210 = vmatprep.mubr.bf16.mxu0 %v6170_v10  ;;  %v6175_v10 = vld [vmem:[#allocation6 + $0xd8] ss:$36 sps:$4 sm:$0xff]  }
 0x1d4   : > { %5228 = vmatpush3.bf16.msra.mxu0 %v7197_v28  ;;  %5156 = vmatpush3.bf16.msra.mxu1 %v7387_v12 }
 0x1d5   : > { %5229 = vmatprep.subr.bf16.mxu0 %v7207_v25  ;;  %5197 = vmatprep.subr.bf16.mxu1 %v7102_v37  ;;  %v6181_v37 = vld [vmem:[#allocation6 + $0xa4] ss:$36 sps:$4 sm:$0xff]  }
 0x1d7   : > { %2154 = vmatmul.mubr.bf16.vlgmr.msra.gmra.mrb[16].mxu1 %v6167_v19  ;;  %2211 = vmatmul.mubr.bf16.gmra.mrb[24].mxu0 %v6172_v36  ;;  %v6182_v19 = vld [vmem:[#allocation6 + $0xec] ss:$36 sps:$4 sm:$0xff]   ;;  %v6192_v36 = vld [vmem:[#allocation6 + $0x124] ss:$36 sps:$4 sm:$0xff]  }
 0x1d8   : > { %5230 = vmatpush3.bf16.msra.mxu0 %v7217_v8  ;;  %5198 = vmatpush3.bf16.msra.mxu1 %v7112_v44  ;;  %v6176_v44 = vld [vmem:[#allocation6 + $0xa8] ss:$36 sps:$4 sm:$0xff]  }
 0x1d9   : > { %5231 = vmatprep.subr.bf16.mxu0 %v7227_v39  ;;  %5199 = vmatprep.subr.bf16.mxu1 %v7137_v61  ;;  %v6185_v61 = vld [vmem:[#allocation6 + $0xf4] ss:$36 sps:$4 sm:$0xff]  }
 0x1da   : > { %2161 = vmatprep.mubr.bf16.mxu1 %v6173_v20  ;;  %2300 = vmatprep.mubr.bf16.mxu0 %v6178_v1  ;;  %v6187_v1 = vld [vmem:[#allocation6 + $0xf0] ss:$36 sps:$4 sm:$0xff]  }
 0x1dc   : > { %5232 = vmatpush3.bf16.msra.mxu0 %v7237_v53  ;;  %5200 = vmatpush3.bf16.msra.mxu1 %v7142_v6  ;;  %v6179_v6 = vld [vmem:[#allocation6 + $0xa0] ss:$36 sps:$4 sm:$0xff]  }
 0x1dd   : > { %5233 = vmatprep.subr.bf16.mxu0 %v7247_v9  ;;  %5201 = vmatprep.subr.bf16.mxu1 %v7157_v38 }
 0x1df   : > { %2162 = vmatmul.mubr.bf16.gmra.mrb[20].mxu1 %v6175_v10 }
 0x1e0   : > { %5234 = vmatpush3.bf16.msra.mxu0 %v7257_v42  ;;  %5202 = vmatpush3.bf16.msra.mxu1 %v7162_v43 }
 0x1e1   : > { %5235 = vmatprep.subr.bf16.mxu0 %v7275_v5  ;;  %5203 = vmatprep.subr.bf16.mxu1 %v7172_v56 }
 0x1e2   : > { %2251 = vmatprep.mubr.bf16.mxu1 %v6181_v37 }
 0x1e4   : > { %5236 = vmatpush3.bf16.msra.mxu0 %v7284_v23  ;;  %5204 = vmatpush3.bf16.msra.mxu1 %v7182_v0 }
 0x1e5   : > { %5237 = vmatprep.subr.bf16.mxu0 %v7289_v45  ;;  %5205 = vmatprep.subr.bf16.mxu1 %v7192_v34 }
 0x1e8   : > { %5238 = vmatpush3.bf16.msra.mxu0 %v7295_v55  ;;  %5206 = vmatpush3.bf16.msra.mxu1 %v7202_v48 }
 0x1e9   : > { %5239 = vmatprep.subr.bf16.mxu0 %v7298_v60  ;;  %5207 = vmatprep.subr.bf16.mxu1 %v7212_v63 }
 0x1ec   : > { %5240 = vmatpush3.bf16.msra.mxu0 %v7308_v7  ;;  %5208 = vmatpush3.bf16.msra.mxu1 %v7222_v21 }
 0x1ed   : > { %5256 = vmatprep.subr.bf16.mxu0 %v7317_v18  ;;  %5209 = vmatprep.subr.bf16.mxu1 %v7232_v47 }
 0x1ef   : > { %2301 = vmatmul.mubr.bf16.vlgmr.msra.gmra.mrb[28].mxu0 %v6176_v44 }
 0x1f0   : > { %5257 = vmatpush3.bf16.msra.mxu0 %v7323_v32  ;;  %5210 = vmatpush3.bf16.msra.mxu1 %v7242_v62 }
 0x1f1   : > { %5258 = vmatprep.subr.bf16.mxu0 %v7329_v35  ;;  %5211 = vmatprep.subr.bf16.mxu1 %v7252_v31 }
 0x1f2   : > { %2308 = vmatprep.mubr.bf16.mxu0 %v6185_v61 }
 0x1f4   : > { %5259 = vmatpush3.bf16.msra.mxu0 %v7335_v41  ;;  %5212 = vmatpush3.bf16.msra.mxu1 %v7264_v16  ;;  %v6184_v41 = vld [vmem:[#allocation6 + $0xe8] ss:$36 sps:$4 sm:$0xff]  }
 0x1f5   : > { %5260 = vmatprep.subr.bf16.mxu0 %v7341_v46  ;;  %5995 = vmatprep.subr.msk.bf16.mxu1 %vm1755_vm7, %v7260_v13 }
 0x1f6   : > { %v5042_v20 = vpop.f32.mrb[0].mxu0 }
 0x1f7   : > { %2252 = vmatmul.mubr.bf16.vlgmr.msra.gmra.mrb[24].mxu1 %v6179_v6  ;;  %2309 = vmatmul.mubr.bf16.gmra.mrb[32].mxu0 %v6187_v1  ;;  %v5043_v10 = vpop.f32.mrb[1].mxu0  ;;  %v6188_v6 = vld [vmem:[#allocation6 + $0xb0] ss:$36 sps:$4 sm:$0xff]  }
 0x1f8   : > { %5261 = vmatpush3.bf16.msra.mxu0 %v7347_v50  ;;  %5953 = vmatpush3.bf16.msra.mxu1 %v7271_v59  ;;  %v7427_v37 = vadd.f32 %v5043_v10, %v5042_v20  ;;  %v5045_v44 = vpop.f32.mrb[2].mxu0 }
 0x1f9   : > { %5262 = vmatprep.subr.bf16.mxu0 %v7351_v17  ;;  %5284 = vmatprep.subr.bf16.mxu1 %v7279_v15  ;;  %v5046_v61 = vpop.f32.mrb[3].mxu0 }
 0x1fa   : > { %2259 = vmatprep.mubr.bf16.mxu1 %v6182_v19  ;;  %2519 = vmatprep.mubr.bf16.mxu0 %v6192_v36  ;;  %v7431_v46 = vadd.f32 %v5046_v61, %v5045_v44  ;;  %v6189_v44 = vld [vmem:[#allocation6 + $0xf8] ss:$36 sps:$4 sm:$0xff]   ;;  %v6197_v61 = vld [vmem:[#allocation6 + $0x12c] ss:$36 sps:$4 sm:$0xff]  }
 0x1fc   : > { %5263 = vmatpush3.bf16.msra.mxu0 %v7355_v24 }
 0x1fd   : > { %5264 = vmatprep.subr.bf16.mxu0 %v7359_v57 }
 0x1fe   : > { %v5048_v1 = vpop.f32.mrb[4].mxu0 }
 0x1ff   : > { %2260 = vmatmul.mubr.bf16.gmra.mrb[28].mxu1 %v6184_v41  ;;  %v5049_v20 = vpop.f32.mrb[5].mxu0  ;;  %v6190_v41 = vld [vmem:[#allocation6 + $0x120] ss:$36 sps:$4 sm:$0xff]  }
 0x200   : > { %5265 = vmatpush3.bf16.msra.mxu0 %v7363_v30  ;;  %5954 = vmatprep.mubr.msk.bf16.mxu1 %vm1748_vm8, %v6188_v6  ;;  %v7437_v10 = vadd.f32 %v5049_v20, %v5048_v1  ;;  %v5051_v17 = vpop.f32.mrb[6].mxu0  ;;  %v6193_v6 = vld [vmem:[#allocation6 + $0x16c] ss:$36 sps:$4 sm:$0xff]   ;;  %v7456_v1 = vld [vmem:[#allocation2 + $0x100] sm:$0xff]   ;;  %v7460_v20 = vld [vmem:[#allocation2 + $0x148] sm:$0xff]  }
 0x201   : > { %5266 = vmatprep.subr.bf16.mxu0 %v7367_v58  ;;  %v5052_v19 = vpop.f32.mrb[7].mxu0  ;;  %8297 = vst [vmem:[#allocation18_spill] sm:$0xff] %v7456_v1  ;;  %8298 = vst [vmem:[#allocation19_spill] sm:$0xff] %v7460_v20 }
 0x202   : > { %v7440_v36 = vadd.f32 %v5052_v19, %v5051_v17  ;;  %v7452_v17 = vld [vmem:[#allocation2 + $0x140] sm:$0xff]   ;;  %v6198_v19 = vld [vmem:[#allocation6 + $0x168] ss:$36 sps:$4 sm:$0xff]  }
 0x203   : > { %8296 = vst [vmem:[#allocation17_spill] sm:$0xff] %v7452_v17 }
 0x204   : > { %5267 = vmatpush3.bf16.msra.mxu0 %v7371_v51 }
 0x205   : > { %5268 = vmatprep.subr.bf16.mxu0 %v7375_v54 }
 0x207   : > { %5955 = vmatmul.mubr.msk.bf16.vlgmr.msra.gmra.mrb[32].mxu1 %vm1748_vm8, %v6189_v44  ;;  %v7464_v44 = vld [vmem:[#allocation2 + $0x108] sm:$0xff]  }
 0x208   : > { %5269 = vmatpush3.bf16.msra.mxu0 %v7379_v2  ;;  %5285 = vmatpush3.bf16.msra.mxu1 %v7301_v3  ;;  %8299 = vst [vmem:[#allocation20_spill] sm:$0xff] %v7464_v44 }
 0x209   : > { %5270 = vmatprep.subr.bf16.mxu0 %v7383_v26  ;;  %5286 = vmatprep.subr.bf16.mxu1 %v7305_v4 }
 0x20a   : > { %2568 = vmatprep.mubr.bf16.mxu1 %v6197_v61  ;;  %v6201_v61 = vld [vmem:[#allocation6 + $0x134] ss:$36 sps:$4 sm:$0xff]  }
 0x20c   : > { %5271 = vmatpush3.bf16.msra.mxu0 %v7387_v12  ;;  %5287 = vmatpush3.bf16.msra.mxu1 %v7310_v11 }
 0x20d   : > { %5288 = vmatprep.subr.bf16.mxu1 %v7314_v14  ;;  %5312 = vmatprep.subr.bf16.mxu0 %v7452_v17  ;;  %v7486_v17 = vld [vmem:[#allocation2 + $0xb0] sm:$0xff]  }
 0x20f   : > { %2520 = vmatmul.mubr.bf16.vlgmr.msra.gmra.mrb[36].mxu0 %v6190_v41  ;;  %v7471_v41 = vld [vmem:[#allocation2 + $0xe8] sm:$0xff]  }
 0x210   : > { %5289 = vmatpush3.bf16.msra.mxu1 %v7320_v27  ;;  %5313 = vmatpush3.bf16.msra.mxu0 %v7456_v1  ;;  %v7479_v1 = vld [vmem:[#allocation2 + $0xf0] sm:$0xff]  }
 0x211   : > { %5290 = vmatprep.subr.bf16.mxu1 %v7326_v33  ;;  %5314 = vmatprep.subr.bf16.mxu0 %v7460_v20 }
 0x212   : > { %2527 = vmatprep.mubr.bf16.mxu0 %v6193_v6 }
 0x214   : > { %5291 = vmatpush3.bf16.msra.mxu1 %v7332_v40  ;;  %5315 = vmatpush3.bf16.msra.mxu0 %v7464_v44  ;;  %v7475_v44 = vld [vmem:[#allocation2 + $0xa8] sm:$0xff]  }
 0x215   : > { %5292 = vmatprep.subr.bf16.mxu1 %v7338_v29  ;;  %5316 = vmatprep.subr.bf16.mxu0 %v7157_v38 }
 0x217   : > { %2528 = vmatmul.mubr.bf16.gmra.mrb[40].mxu0 %v6198_v19 }
 0x218   : > { %5293 = vmatpush3.bf16.msra.mxu1 %v7344_v49  ;;  %5317 = vmatpush3.bf16.msra.mxu0 %v7162_v43 }
 0x219   : > { %5294 = vmatprep.subr.bf16.mxu1 %v7471_v41  ;;  %5318 = vmatprep.subr.bf16.mxu0 %v7172_v56 }
 0x21a   : > { %2617 = vmatprep.mubr.bf16.mxu0 %v6201_v61  ;;  %v5070_v6 = vpop.f32.mrb[0].mxu1 }
 0x21b   : > { %v5071_v20 = vpop.f32.mrb[1].mxu1 }
 0x21c   : > { %5295 = vmatpush3.bf16.msra.mxu1 %v7475_v44  ;;  %5319 = vmatpush3.bf16.msra.mxu0 %v7182_v0  ;;  %v5072_v38 = vadd.f32 %v5071_v20, %v5070_v6  ;;  %v5073_v19 = vpop.f32.mrb[2].mxu1  ;;  %v7493_v20 = vld [vmem:[#allocation2 + $0xf8] sm:$0xff]   ;;  %v6195_v6 = vld [vmem:[#allocation6 + $0x128] ss:$36 sps:$4 sm:$0xff]  }
 0x21d   : > { %5296 = vmatprep.subr.bf16.mxu1 %v7479_v1  ;;  %5320 = vmatprep.subr.bf16.mxu0 %v7192_v34  ;;  %v5074_v43 = vpop.f32.mrb[3].mxu1  ;;  %8302 = vst [vmem:[#allocation23_spill] sm:$0xff] %v7493_v20 }
 0x21e   : > { %v7484_v56 = vadd.f32 %v5072_v38, %v7427_v37  ;;  %v5075_v61 = vadd.f32 %v5074_v43, %v5073_v19  ;;  %v7497_v38 = vld [vmem:[#allocation2 + $0xb8] sm:$0xff]  }
 0x21f   : > { %8303 = vst [vmem:[#allocation24_spill] sm:$0xff] %v7497_v38  ;;  %v6202_v43 = vld [vmem:[#allocation6 + $0x174] ss:$36 sps:$4 sm:$0xff]  }
 0x220   : > { %8300 = vst [vmem:[#allocation21_spill] sm:$0xff] %v7484_v56  ;;  %5297 = vmatpush3.bf16.msra.mxu1 %v7486_v17  ;;  %5321 = vmatpush3.bf16.msra.mxu0 %v7202_v48  ;;  %v7491_v0 = vadd.f32 %v5075_v61, %v7431_v46 }
 0x221   : > { %5298 = vmatprep.subr.bf16.mxu1 %v7493_v20  ;;  %5322 = vmatprep.subr.bf16.mxu0 %v7212_v63 }
 0x222   : > { %8301 = vst [vmem:[#allocation22_spill] sm:$0xff] %v7491_v0  ;;  %v5076_v34 = vpop.f32.mrb[4].mxu1  ;;  %v8304_v0 = vld [vmem:[#allocation12_spill] sm:$0xff] }
 0x223   : > { %v5077_v37 = vpop.f32.mrb[5].mxu1 }
 0x224   : > { %5299 = vmatpush3.bf16.msra.mxu1 %v7497_v38  ;;  %5323 = vmatpush3.bf16.msra.mxu0 %v7222_v21  ;;  %v5078_v19 = vadd.f32 %v5077_v37, %v5076_v34  ;;  %v5079_v48 = vpop.f32.mrb[6].mxu1  ;;  %v6204_v34 = vld [vmem:[#allocation6 + $0x170] ss:$36 sps:$4 sm:$0xff]   ;;  %v6210_v37 = vld [vmem:[#allocation6 + $0x138] ss:$36 sps:$4 sm:$0xff]  }
 0x225   : > { %5324 = vmatprep.subr.bf16.mxu0 %v7232_v47  ;;  %5340 = vmatprep.subr.bf16.mxu1 %v7167_v52  ;;  %v5080_v46 = vpop.f32.mrb[7].mxu1  ;;  %v6199_v52 = vld [vmem:[#allocation6 + $0x130] ss:$36 sps:$4 sm:$0xff]  }
 0x226   : > { %v7504_v61 = vadd.f32 %v5078_v19, %v7437_v10  ;;  %v5081_v63 = vadd.f32 %v5080_v46, %v5079_v48  ;;  %v6205_v10 = vld [vmem:[#allocation6 + $0x17c] ss:$36 sps:$4 sm:$0xff]   ;;  %v6213_v19 = vld [vmem:[#allocation6 + $0x184] ss:$36 sps:$4 sm:$0xff]   ;;  %v8305_v46 = vld [vmem:[#allocation14_spill] sm:$0xff] }
 0x227   : > { %2569 = vmatmul.mubr.bf16.vlgmr.msra.gmra.mrb[36].mxu1 %v6195_v6  ;;  %v6218_v6 = vld [vmem:[#allocation6 + $0x1bc] ss:$36 sps:$4 sm:$0xff]  }
 0x228   : > { %5325 = vmatpush3.bf16.msra.mxu0 %v7242_v62  ;;  %5341 = vmatpush3.bf16.msra.mxu1 %v8304_v0  ;;  %v7509_v56 = vadd.f32 %v5081_v63, %v7440_v36  ;;  %v6212_v0 = vld [vmem:[#allocation6 + $0x13c] ss:$36 sps:$4 sm:$0xff]   ;;  %v6209_v36 = vld [vmem:[#allocation6 + $0x188] ss:$36 sps:$4 sm:$0xff]   ;;  %v6221_v63 = vld [vmem:[#allocation6 + $0x1b4] ss:$36 sps:$4 sm:$0xff]  }
 0x229   : > { %5326 = vmatprep.subr.bf16.mxu0 %v7252_v31  ;;  %5342 = vmatprep.subr.bf16.mxu1 %v7187_v22  ;;  %v6207_v22 = vld [vmem:[#allocation6 + $0x178] ss:$36 sps:$4 sm:$0xff]   ;;  %v6215_v48 = vld [vmem:[#allocation6 + $0x180] ss:$36 sps:$4 sm:$0xff]  }
 0x22a   : > { %2576 = vmatprep.mubr.bf16.mxu1 %v6202_v43  ;;  %v8306_v43 = vld [vmem:[#allocation15_spill] sm:$0xff] }
 0x22c   : > { %5327 = vmatpush3.bf16.msra.mxu0 %v7264_v16  ;;  %5343 = vmatpush3.bf16.msra.mxu1 %v7197_v28  ;;  %v6208_v28 = vld [vmem:[#allocation6 + $0x140] ss:$36 sps:$4 sm:$0xff]  }
 0x22d   : > { %5344 = vmatprep.subr.bf16.mxu1 %v7207_v25  ;;  %5996 = vmatprep.subr.msk.bf16.mxu0 %vm1755_vm7, %v7260_v13 }
 0x22f   : > { %2618 = vmatmul.mubr.bf16.vlgmr.msra.gmra.mrb[44].mxu0 %v6199_v52  ;;  %2577 = vmatmul.mubr.bf16.gmra.mrb[40].mxu1 %v6204_v34  ;;  %v8307_v52 = vld [vmem:[#allocation16_spill] sm:$0xff]  ;;  %v6216_v34 = vld [vmem:[#allocation6 + $0x1b8] ss:$36 sps:$4 sm:$0xff]  }
 0x230   : > { %5345 = vmatpush3.bf16.msra.mxu1 %v7217_v8  ;;  %5959 = vmatpush3.bf16.msra.mxu0 %v7271_v59 }
 0x231   : > { %5346 = vmatprep.subr.bf16.mxu1 %v7227_v39  ;;  %5399 = vmatprep.subr.bf16.mxu0 %v7279_v15 }
 0x232   : > { %2625 = vmatprep.mubr.bf16.mxu0 %v6205_v10  ;;  %2666 = vmatprep.mubr.bf16.mxu1 %v6212_v0  ;;  %v7560_v10 = vld [vmem:[#allocation2 + $0x1c0] sm:$0xff]   ;;  %v6222_v0 = vld [vmem:[#allocation6 + $0x204] ss:$36 sps:$4 sm:$0xff]  }
 0x233   : > { %8308 = vst [vmem:[#allocation12_spill] sm:$0xff] %v7560_v10 }
 0x234   : > { %5347 = vmatpush3.bf16.msra.mxu1 %v7237_v53 }
 0x235   : > { %5348 = vmatprep.subr.bf16.mxu1 %v7247_v9 }
 0x237   : > { %2626 = vmatmul.mubr.bf16.gmra.mrb[48].mxu0 %v6207_v22  ;;  %v7564_v22 = vld [vmem:[#allocation2 + $0x180] sm:$0xff]  }
 0x238   : > { %5349 = vmatpush3.bf16.msra.mxu1 %v7257_v42  ;;  %5960 = vmatprep.mubr.msk.bf16.mxu0 %vm1748_vm8, %v6208_v28  ;;  %8309 = vst [vmem:[#allocation14_spill] sm:$0xff] %v7564_v22  ;;  %v7568_v28 = vld [vmem:[#allocation2 + $0x1c8] sm:$0xff]  }
 0x239   : > { %5350 = vmatprep.subr.bf16.mxu1 %v7275_v5  ;;  %8310 = vst [vmem:[#allocation15_spill] sm:$0xff] %v7568_v28 }
 0x23c   : > { %5351 = vmatpush3.bf16.msra.mxu1 %v7284_v23 }
 0x23d   : > { %5352 = vmatprep.subr.bf16.mxu1 %v7289_v45 }
 0x23f   : > { %5961 = vmatmul.mubr.msk.bf16.vlgmr.msra.gmra.mrb[52].mxu0 %vm1748_vm8, %v6209_v36  ;;  %v6219_v36 = vld [vmem:[#allocation6 + $0x1b0] ss:$36 sps:$4 sm:$0xff]  }
 0x240   : > { %5400 = vmatpush3.bf16.msra.mxu0 %v7301_v3  ;;  %5353 = vmatpush3.bf16.msra.mxu1 %v7295_v55 }
 0x241   : > { %5401 = vmatprep.subr.bf16.mxu0 %v7305_v4  ;;  %5354 = vmatprep.subr.bf16.mxu1 %v7298_v60 }
 0x242   : > { %2934 = vmatprep.mubr.bf16.mxu0 %v6218_v6  ;;  %v6224_v6 = vld [vmem:[#allocation6 + $0x200] ss:$36 sps:$4 sm:$0xff]  }
 0x244   : > { %5402 = vmatpush3.bf16.msra.mxu0 %v7310_v11  ;;  %5355 = vmatpush3.bf16.msra.mxu1 %v7308_v7 }
 0x245   : > { %5403 = vmatprep.subr.bf16.mxu0 %v7314_v14  ;;  %5371 = vmatprep.subr.bf16.mxu1 %v7317_v18 }
 0x247   : > { %2667 = vmatmul.mubr.bf16.vlgmr.msra.gmra.mrb[44].mxu1 %v6210_v37  ;;  %v7572_v37 = vld [vmem:[#allocation2 + $0x188] sm:$0xff]  }
 0x248   : > { %5404 = vmatpush3.bf16.msra.mxu0 %v7320_v27  ;;  %5372 = vmatpush3.bf16.msra.mxu1 %v7323_v32  ;;  %8311 = vst [vmem:[#allocation16_spill] sm:$0xff] %v7572_v37 }
 0x249   : > { %5405 = vmatprep.subr.bf16.mxu0 %v7326_v33  ;;  %5373 = vmatprep.subr.bf16.mxu1 %v7329_v35 }
 0x24a   : > { %2674 = vmatprep.mubr.bf16.mxu1 %v6213_v19  ;;  %v8312_v19 = vld [vmem:[#allocation17_spill] sm:$0xff] }
 0x24c   : > { %5406 = vmatpush3.bf16.msra.mxu0 %v7332_v40  ;;  %5374 = vmatpush3.bf16.msra.mxu1 %v8305_v46 }
 0x24d   : > { %5407 = vmatprep.subr.bf16.mxu0 %v7338_v29  ;;  %5375 = vmatprep.subr.bf16.mxu1 %v8306_v43 }
 0x24f   : > { %2675 = vmatmul.mubr.bf16.gmra.mrb[48].mxu1 %v6215_v48  ;;  %v6225_v48 = vld [vmem:[#allocation6 + $0x1fc] ss:$36 sps:$4 sm:$0xff]  }
 0x250   : > { %5408 = vmatpush3.bf16.msra.mxu0 %v7344_v49  ;;  %5376 = vmatpush3.bf16.msra.mxu1 %v7347_v50 }
 0x251   : > { %5409 = vmatprep.subr.bf16.mxu0 %v7471_v41  ;;  %5377 = vmatprep.subr.bf16.mxu1 %v8307_v52 }
 0x252   : > { %2885 = vmatprep.mubr.bf16.mxu1 %v6221_v63  ;;  %v6230_v63 = vld [vmem:[#allocation6 + $0x1cc] ss:$36 sps:$4 sm:$0xff]  }
 0x254   : > { %5410 = vmatpush3.bf16.msra.mxu0 %v7475_v44  ;;  %5378 = vmatpush3.bf16.msra.mxu1 %v7355_v24 }
 0x255   : > { %5411 = vmatprep.subr.bf16.mxu0 %v7479_v1  ;;  %5379 = vmatprep.subr.bf16.mxu1 %v7359_v57 }
 0x258   : > { %5412 = vmatpush3.bf16.msra.mxu0 %v7486_v17  ;;  %5380 = vmatpush3.bf16.msra.mxu1 %v7363_v30 }
 0x259   : > { %5413 = vmatprep.subr.bf16.mxu0 %v7493_v20  ;;  %5381 = vmatprep.subr.bf16.mxu1 %v7367_v58  ;;  %v6228_v20 = vld [vmem:[#allocation6 + $0x1c8] ss:$36 sps:$4 sm:$0xff]  }
 0x25c   : > { %5414 = vmatpush3.bf16.msra.mxu0 %v7497_v38  ;;  %5382 = vmatpush3.bf16.msra.mxu1 %v7371_v51 }
 0x25d   : > { %5455 = vmatprep.subr.bf16.mxu0 %v7560_v10  ;;  %5383 = vmatprep.subr.bf16.mxu1 %v7375_v54 }
 0x25f   : > { %2935 = vmatmul.mubr.bf16.vlgmr.msra.gmra.mrb[56].mxu0 %v6216_v34  ;;  %v8313_v34 = vld [vmem:[#allocation18_spill] sm:$0xff] }
 0x260   : > { %5456 = vmatpush3.bf16.msra.mxu0 %v7564_v22  ;;  %5384 = vmatpush3.bf16.msra.mxu1 %v7379_v2 }
 0x261   : > { %5457 = vmatprep.subr.bf16.mxu0 %v7568_v28  ;;  %5385 = vmatprep.subr.bf16.mxu1 %v7383_v26  ;;  %v7585_v28 = vld [vmem:[#allocation2 + $0x150] sm:$0xff]  }
 0x262   : > { %2942 = vmatprep.mubr.bf16.mxu0 %v6222_v0  ;;  %v8314_v0 = vld [vmem:[#allocation19_spill] sm:$0xff] }
 0x264   : > { %5458 = vmatpush3.bf16.msra.mxu0 %v7572_v37  ;;  %5386 = vmatpush3.bf16.msra.mxu1 %v7387_v12  ;;  %v6227_v37 = vld [vmem:[#allocation6 + $0x1f8] ss:$36 sps:$4 sm:$0xff]  }
 0x265   : > { %5459 = vmatprep.subr.bf16.mxu0 %v7207_v25  ;;  %5427 = vmatprep.subr.bf16.mxu1 %v8312_v19  ;;  %v8315_v25 = vld [vmem:[#allocation20_spill] sm:$0xff] }
 0x267   : > { %2886 = vmatmul.mubr.bf16.vlgmr.msra.gmra.mrb[52].mxu1 %v6219_v36  ;;  %2943 = vmatmul.mubr.bf16.gmra.mrb[60].mxu0 %v6224_v6  ;;  %v7593_v36 = vld [vmem:[#allocation2 + $0x158] sm:$0xff]  }
 0x268   : > { %5460 = vmatpush3.bf16.msra.mxu0 %v7217_v8  ;;  %5428 = vmatpush3.bf16.msra.mxu1 %v8313_v34  ;;  %v6233_v8 = vld [vmem:[#allocation6 + $0x1c4] ss:$36 sps:$4 sm:$0xff]  }
 0x269   : > { %5461 = vmatprep.subr.bf16.mxu0 %v7227_v39  ;;  %5429 = vmatprep.subr.bf16.mxu1 %v8314_v0  ;;  %v7589_v39 = vld [vmem:[#allocation2 + $0x110] sm:$0xff]  }
 0x26a   : > { %2893 = vmatprep.mubr.bf16.mxu1 %v6225_v48  ;;  %3032 = vmatprep.mubr.bf16.mxu0 %v6230_v63  ;;  %v7597_v48 = vld [vmem:[#allocation2 + $0x118] sm:$0xff]   ;;  %v8316_v63 = vld [vmem:[#allocation21_spill] sm:$0xff] }
 0x26c   : > { %5462 = vmatpush3.bf16.msra.mxu0 %v7237_v53  ;;  %5430 = vmatpush3.bf16.msra.mxu1 %v8315_v25 }
 0x26d   : > { %5463 = vmatprep.subr.bf16.mxu0 %v7247_v9  ;;  %5431 = vmatprep.subr.bf16.mxu1 %v7585_v28 }
 0x26f   : > { %2894 = vmatmul.mubr.bf16.gmra.mrb[56].mxu1 %v6227_v37  ;;  %v7601_v37 = vld [vmem:[#allocation2 + $0x160] sm:$0xff]  }
 0x270   : > { %5464 = vmatpush3.bf16.msra.mxu0 %v7257_v42  ;;  %5432 = vmatpush3.bf16.msra.mxu1 %v7589_v39 }
 0x271   : > { %5465 = vmatprep.subr.bf16.mxu0 %v7275_v5  ;;  %5433 = vmatprep.subr.bf16.mxu1 %v7593_v36 }
 0x272   : > { %v5098_v53 = vpop.f32.mrb[8].mxu0  ;;  %2983 = vmatprep.mubr.bf16.mxu1 %v6233_v8  ;;  %v8317_v8 = vld [vmem:[#allocation22_spill] sm:$0xff] }
 0x273   : > { %v5099_v9 = vpop.f32.mrb[9].mxu0 }
 0x274   : > { %5466 = vmatpush3.bf16.msra.mxu0 %v7284_v23  ;;  %v5100_v6 = vadd.f32 %v5099_v9, %v5098_v53  ;;  %5434 = vmatpush3.bf16.msra.mxu1 %v7597_v48  ;;  %v5101_v42 = vpop.f32.mrb[10].mxu0  ;;  %v7607_v23 = vld [vmem:[#allocation2 + $0x120] sm:$0xff]   ;;  %v7611_v53 = vld [vmem:[#allocation2 + $0x168] sm:$0xff]  }
 0x275   : > { %5467 = vmatprep.subr.bf16.mxu0 %v7289_v45  ;;  %5435 = vmatprep.subr.bf16.mxu1 %v7601_v37  ;;  %v5102_v5 = vpop.f32.mrb[11].mxu0 }
 0x276   : > { %v1892_v22 = vadd.f32 %v5100_v6, %v8316_v63  ;;  %v5103_v10 = vadd.f32 %v5102_v5, %v5101_v42  ;;  %v6237_v5 = vld [vmem:[#allocation6 + $0x214] ss:$36 sps:$4 sm:$0xff]  }
 0x278   : > { %v1895_v38 = vadd.f32 %v5103_v10, %v8317_v8  ;;  %5468 = vmatpush3.bf16.msra.mxu0 %v7295_v55  ;;  %5436 = vmatpush3.bf16.msra.mxu1 %v7607_v23 }
 0x279   : > { %5469 = vmatprep.subr.bf16.mxu0 %v7298_v60  ;;  %5437 = vmatprep.subr.bf16.mxu1 %v7611_v53 }
 0x27a   : > { %v5104_v45 = vpop.f32.mrb[12].mxu0 }
 0x27b   : > { %v5105_v9 = vpop.f32.mrb[13].mxu0 }
 0x27c   : > { %5470 = vmatpush3.bf16.msra.mxu0 %v7308_v7  ;;  %v5106_v6 = vadd.f32 %v5105_v9, %v5104_v45  ;;  %5438 = vmatpush3.bf16.msra.mxu1 %v7222_v21  ;;  %v5107_v10 = vpop.f32.mrb[14].mxu0  ;;  %v6231_v7 = vld [vmem:[#allocation6 + $0x1c0] ss:$36 sps:$4 sm:$0xff]  }
 0x27d   : > { %5486 = vmatprep.subr.bf16.mxu0 %v7317_v18  ;;  %5439 = vmatprep.subr.bf16.mxu1 %v7232_v47  ;;  %v5108_v55 = vpop.f32.mrb[15].mxu0  ;;  %v6239_v18 = vld [vmem:[#allocation6 + $0x210] ss:$36 sps:$4 sm:$0xff]  }
 0x27e   : > { %v1900_v60 = vadd.f32 %v5106_v6, %v7504_v61  ;;  %v5109_v42 = vadd.f32 %v5108_v55, %v5107_v10  ;;  %v6241_v6 = vld [vmem:[#allocation6 + $0x218] ss:$36 sps:$4 sm:$0xff]  }
 0x27f   : > { %3033 = vmatmul.mubr.bf16.vlgmr.msra.gmra.mrb[64].mxu0 %v6228_v20 }
 0x280   : > { %v1903_v63 = vadd.f32 %v5109_v42, %v7509_v56  ;;  %5487 = vmatpush3.bf16.msra.mxu0 %v7323_v32  ;;  %5440 = vmatpush3.bf16.msra.mxu1 %v7242_v62  ;;  %v6234_v32 = vld [vmem:[#allocation6 + $0x20c] ss:$36 sps:$4 sm:$0xff]  }
 0x281   : > { %5488 = vmatprep.subr.bf16.mxu0 %v7329_v35  ;;  %5441 = vmatprep.subr.bf16.mxu1 %v7252_v31  ;;  %v6244_v35 = vld [vmem:[#allocation6 + $0x244] ss:$36 sps:$4 sm:$0xff]  }
 0x282   : > { %v5950_v21 = vpop.f32.mrb[16].mxu0  ;;  %3040 = vmatprep.mubr.bf16.mxu0 %v6237_v5  ;;  %v6236_v56 = vld [vmem:[#allocation6 + $0x208] ss:$36 sps:$4 sm:$0xff]  }
 0x283   : > { %v1989_v47 = vpop.f32.mrb[17].mxu0 }
 0x284   : > { %5489 = vmatpush3.bf16.msra.mxu0 %v8305_v46  ;;  %5442 = vmatpush3.bf16.msra.mxu1 %v7264_v16  ;;  %v5951_v20 = vpop.f32.mrb[18].mxu0  ;;  %v6240_v46 = vld [vmem:[#allocation6 + $0x1d0] ss:$36 sps:$4 sm:$0xff]  }
 0x285   : > { %5490 = vmatprep.subr.bf16.mxu0 %v8306_v43  ;;  %5997 = vmatprep.subr.msk.bf16.mxu1 %vm1755_vm7, %v7260_v13  ;;  %v1992_v62 = vpop.f32.mrb[19].mxu0 }
 0x287   : > { %2984 = vmatmul.mubr.bf16.vlgmr.msra.gmra.mrb[60].mxu1 %v6231_v7  ;;  %3041 = vmatmul.mubr.bf16.gmra.mrb[68].mxu0 %v6239_v18 }
 0x288   : > { %5491 = vmatpush3.bf16.msra.mxu0 %v7347_v50  ;;  %5965 = vmatpush3.bf16.msra.mxu1 %v7271_v59 }
 0x289   : > { %5492 = vmatprep.subr.bf16.mxu0 %v8307_v52  ;;  %5514 = vmatprep.subr.bf16.mxu1 %v7279_v15 }
 0x28a   : > { %v5126_v31 = vpop.f32.mrb[8].mxu1  ;;  %2991 = vmatprep.mubr.bf16.mxu1 %v6234_v32  ;;  %3251 = vmatprep.mubr.bf16.mxu0 %v6244_v35 }
 0x28b   : > { %v5127_v16 = vpop.f32.mrb[9].mxu1 }
 0x28c   : > { %5493 = vmatpush3.bf16.msra.mxu0 %v7355_v24  ;;  %v5128_v13 = vadd.f32 %v5127_v16, %v5126_v31  ;;  %v5129_v61 = vpop.f32.mrb[10].mxu1  ;;  %v8319_v31 = vld [vmem:[#allocation23_spill] sm:$0xff] }
 0x28d   : > { %5494 = vmatprep.subr.bf16.mxu0 %v7359_v57  ;;  %v5130_v43 = vpop.f32.mrb[11].mxu1 }
 0x28e   : > { %v5131_v50 = vadd.f32 %v5130_v43, %v5129_v61  ;;  %v1941_v8 = vadd.f32 %v5128_v13, %v1892_v22  ;;  %v8320_v61 = vld [vmem:[#allocation24_spill] sm:$0xff] }
 0x28f   : > { %2992 = vmatmul.mubr.bf16.gmra.mrb[64].mxu1 %v6236_v56  ;;  %v6247_v56 = vld [vmem:[#allocation6 + $0x248] ss:$36 sps:$4 sm:$0xff]  }
 0x290   : > { %v7635_v45 = vadd.f32 %v1989_v47, %v1941_v8  ;;  %5495 = vmatpush3.bf16.msra.mxu0 %v7363_v30  ;;  %v1944_v15 = vadd.f32 %v5131_v50, %v1895_v38  ;;  %5966 = vmatprep.mubr.msk.bf16.mxu1 %vm1748_vm8, %v6240_v46  ;;  %v6249_v30 = vld [vmem:[#allocation6 + $0x24c] ss:$36 sps:$4 sm:$0xff]   ;;  %v7682_v46 = vld [vmem:[#allocation2 + $0x128] sm:$0xff]  }
 0x291   : > { %5496 = vmatprep.subr.bf16.mxu0 %v7367_v58  ;;  %v7685_v8 = vld [vmem:[#allocation2 + $0x170] sm:$0xff]  }
 0x292   : > { %v7640_v52 = vadd.f32 %v1992_v62, %v1944_v15  ;;  %v5132_v24 = vpop.f32.mrb[12].mxu1  ;;  %v8321_v15 = vld [vmem:[#allocation12_spill] sm:$0xff] }
 0x293   : > { %v5133_v9 = vpop.f32.mrb[13].mxu1 }
 0x294   : > { %5497 = vmatpush3.bf16.msra.mxu0 %v7371_v51  ;;  %v5134_v57 = vadd.f32 %v5133_v9, %v5132_v24  ;;  %v5135_v10 = vpop.f32.mrb[14].mxu1  ;;  %v6254_v9 = vld [vmem:[#allocation6 + $0x294] ss:$36 sps:$4 sm:$0xff]  }
 0x295   : > { %5498 = vmatprep.subr.bf16.mxu0 %v7375_v54  ;;  %v5136_v22 = vpop.f32.mrb[15].mxu1  ;;  %v6242_v54 = vld [vmem:[#allocation6 + $0x240] ss:$36 sps:$4 sm:$0xff]  }
 0x296   : > { %v1949_v55 = vadd.f32 %v5134_v57, %v1900_v60  ;;  %v5137_v42 = vadd.f32 %v5136_v22, %v5135_v10  ;;  %v6253_v60 = vld [vmem:[#allocation6 + $0x254] ss:$36 sps:$4 sm:$0xff]   ;;  %v7691_v10 = vld [vmem:[#allocation2 + $0x130] sm:$0xff]  }
 0x297   : > { %5967 = vmatmul.mubr.msk.bf16.vlgmr.msra.gmra.mrb[68].mxu1 %vm1748_vm8, %v6241_v6  ;;  %v8322_v22 = vld [vmem:[#allocation14_spill] sm:$0xff] }
 0x298   : > { %v1952_v38 = vadd.f32 %v5137_v42, %v1903_v63  ;;  %5499 = vmatpush3.bf16.msra.mxu0 %v7379_v2  ;;  %5515 = vmatpush3.bf16.msra.mxu1 %v7301_v3  ;;  %v7647_v58 = vadd.f32 %v5950_v21, %v1949_v55  ;;  %v6245_v2 = vld [vmem:[#allocation6 + $0x28c] ss:$36 sps:$4 sm:$0xff]   ;;  %v7697_v42 = vld [vmem:[#allocation2 + $0x178] sm:$0xff]  }
 0x299   : > { %5500 = vmatprep.subr.bf16.mxu0 %v7383_v26  ;;  %5516 = vmatprep.subr.bf16.mxu1 %v7305_v4  ;;  %v6250_v26 = vld [vmem:[#allocation6 + $0x288] ss:$36 sps:$4 sm:$0xff]  }
 0x29a   : > { %3300 = vmatprep.mubr.bf16.mxu1 %v6249_v30  ;;  %v7651_v51 = vadd.f32 %v5951_v20, %v1952_v38  ;;  %v8323_v30 = vld [vmem:[#allocation15_spill] sm:$0xff]  ;;  %v6251_v38 = vld [vmem:[#allocation6 + $0x250] ss:$36 sps:$4 sm:$0xff]  }
 0x29c   : > { %8318 = vst [vmem:[#allocation17_spill] sm:$0xff] %v7651_v51  ;;  %5501 = vmatpush3.bf16.msra.mxu0 %v7387_v12  ;;  %5517 = vmatpush3.bf16.msra.mxu1 %v7310_v11  ;;  %v6274_v51 = vld [vmem:[#allocation6 + $0x324] ss:$36 sps:$4 sm:$0xff]  }
 0x29d   : > { %5518 = vmatprep.subr.bf16.mxu1 %v7314_v14  ;;  %5542 = vmatprep.subr.bf16.mxu0 %v8312_v19 }
 0x29f   : > { %3252 = vmatmul.mubr.bf16.vlgmr.msra.gmra.mrb[72].mxu0 %v6242_v54  ;;  %v6256_v54 = vld [vmem:[#allocation6 + $0x290] ss:$36 sps:$4 sm:$0xff]  }
 0x2a0   : > { %5519 = vmatpush3.bf16.msra.mxu1 %v7320_v27  ;;  %5543 = vmatpush3.bf16.msra.mxu0 %v8313_v34 }
 0x2a1   : > { %5520 = vmatprep.subr.bf16.mxu1 %v7326_v33  ;;  %5544 = vmatprep.subr.bf16.mxu0 %v8314_v0 }
 0x2a2   : > { %v5185_v3 = vpop.f32.mrb[20].mxu0  ;;  %3259 = vmatprep.mubr.bf16.mxu0 %v6245_v2  ;;  %v7701_v2 = vld [vmem:[#allocation2 + $0x138] sm:$0xff]  }
 0x2a3   : > { %v5186_v4 = vpop.f32.mrb[21].mxu0 }
 0x2a4   : > { %5521 = vmatpush3.bf16.msra.mxu1 %v7332_v40  ;;  %5545 = vmatpush3.bf16.msra.mxu0 %v8315_v25  ;;  %v5187_v11 = vadd.f32 %v5186_v4, %v5185_v3  ;;  %v5188_v14 = vpop.f32.mrb[22].mxu0  ;;  %v8324_v3 = vld [vmem:[#allocation16_spill] sm:$0xff]  ;;  %v7705_v4 = vld [vmem:[#allocation2 + $0x1d0] sm:$0xff]  }
 0x2a5   : > { %5522 = vmatprep.subr.bf16.mxu1 %v7338_v29  ;;  %5546 = vmatprep.subr.bf16.mxu0 %v7585_v28  ;;  %v5189_v27 = vpop.f32.mrb[23].mxu0 }
 0x2a6   : > { %v5190_v12 = vadd.f32 %v5189_v27, %v5188_v14  ;;  %v6264_v14 = vld [vmem:[#allocation6 + $0x25c] ss:$36 sps:$4 sm:$0xff]   ;;  %v7712_v27 = vld [vmem:[#allocation2 + $0x190] sm:$0xff]  }
 0x2a7   : > { %3260 = vmatmul.mubr.bf16.gmra.mrb[76].mxu0 %v6250_v26  ;;  %v7708_v26 = vld [vmem:[#allocation2 + $0x200] ss:$0 sps:$4 sm:$0xff]  }
 0x2a8   : > { %5523 = vmatpush3.bf16.msra.mxu1 %v7344_v49  ;;  %5547 = vmatpush3.bf16.msra.mxu0 %v7589_v39 }
 0x2a9   : > { %5524 = vmatprep.subr.bf16.mxu1 %v7471_v41  ;;  %5548 = vmatprep.subr.bf16.mxu0 %v7593_v36 }
 0x2aa   : > { %v5157_v33 = vpop.f32.mrb[16].mxu1  ;;  %3349 = vmatprep.mubr.bf16.mxu0 %v6253_v60  ;;  %v5191_v40 = vpop.f32.mrb[24].mxu0  ;;  %v7719_v60 = vld [vmem:[#allocation2 + $0xc0] sm:$0xff]  }
 0x2ab   : > { %v5158_v5 = vpop.f32.mrb[17].mxu1  ;;  %v5192_v63 = vpop.f32.mrb[25].mxu0  ;;  %8326 = vst [vmem:[#allocation19_spill] sm:$0xff] %v7719_v60 }
 0x2ac   : > { %5525 = vmatpush3.bf16.msra.mxu1 %v7475_v44  ;;  %5549 = vmatpush3.bf16.msra.mxu0 %v7597_v48  ;;  %v5159_v29 = vadd.f32 %v5158_v5, %v5157_v33  ;;  %v5160_v21 = vpop.f32.mrb[18].mxu1  ;;  %v5193_v7 = vadd.f32 %v5192_v63, %v5191_v40  ;;  %v5194_v47 = vpop.f32.mrb[26].mxu0  ;;  %v6259_v40 = vld [vmem:[#allocation6 + $0x298] ss:$36 sps:$4 sm:$0xff]  }
 0x2ad   : > { %5526 = vmatprep.subr.bf16.mxu1 %v7479_v1  ;;  %5550 = vmatprep.subr.bf16.mxu0 %v7601_v37  ;;  %v5161_v49 = vpop.f32.mrb[19].mxu1  ;;  %v5195_v18 = vpop.f32.mrb[27].mxu0  ;;  %v7722_v63 = vld [vmem:[#allocation2 + $0x198] sm:$0xff]  }
 0x2ae   : > { %v7673_v20 = vadd.f32 %v5187_v11, %v5159_v29  ;;  %v5162_v62 = vadd.f32 %v5161_v49, %v5160_v21  ;;  %v5196_v32 = vadd.f32 %v5195_v18, %v5194_v47  ;;  %v6257_v11 = vld [vmem:[#allocation6 + $0x29c] ss:$36 sps:$4 sm:$0xff]  }
 0x2af   : > { %v6260_v29 = vld [vmem:[#allocation6 + $0x260] ss:$36 sps:$4 sm:$0xff]  }
 0x2b0   : > { %v7675_v35 = vadd.f32 %v5190_v12, %v5162_v62  ;;  %5527 = vmatpush3.bf16.msra.mxu1 %v7486_v17  ;;  %5551 = vmatpush3.bf16.msra.mxu0 %v7607_v23  ;;  %v7716_v12 = vld [vmem:[#allocation2 + $0x1d8] sm:$0xff]   ;;  %v7725_v47 = vld [vmem:[#allocation2 + $0x1e0] sm:$0xff]  }
 0x2b1   : > { %5528 = vmatprep.subr.bf16.mxu1 %v8319_v31  ;;  %5552 = vmatprep.subr.bf16.mxu0 %v7611_v53  ;;  %8325 = vst [vmem:[#allocation18_spill] sm:$0xff] %v7716_v12  ;;  %8327 = vst [vmem:[#allocation20_spill] sm:$0xff] %v7725_v47  ;;  %v7728_v62 = vld [vmem:[#allocation2 + $0x1a0] sm:$0xff]  }
 0x2b2   : > { %v5163_v16 = vpop.f32.mrb[20].mxu1  ;;  %8328 = vst [vmem:[#allocation21_spill] sm:$0xff] %v7728_v62 }
 0x2b3   : > { %v5164_v13 = vpop.f32.mrb[21].mxu1 }
 0x2b4   : > { %5529 = vmatpush3.bf16.msra.mxu1 %v8320_v61  ;;  %5553 = vmatpush3.bf16.msra.mxu0 %v7682_v46  ;;  %v5165_v43 = vadd.f32 %v5164_v13, %v5163_v16  ;;  %v5166_v50 = vpop.f32.mrb[22].mxu1 }
 0x2b5   : > { %5554 = vmatprep.subr.bf16.mxu0 %v7685_v8  ;;  %5570 = vmatprep.subr.bf16.mxu1 %v8321_v15  ;;  %v5167_v24 = vpop.f32.mrb[23].mxu1 }
 0x2b6   : > { %v7689_v6 = vadd.f32 %v5193_v7, %v5165_v43  ;;  %v5168_v57 = vadd.f32 %v5167_v24, %v5166_v50  ;;  %v6261_v43 = vld [vmem:[#allocation6 + $0x2a8] ss:$36 sps:$4 sm:$0xff]  }
 0x2b7   : > { %3301 = vmatmul.mubr.bf16.vlgmr.msra.gmra.mrb[72].mxu1 %v6247_v56  ;;  %v7735_v24 = vld [vmem:[#allocation2 + $0x1a8] sm:$0xff]  }
 0x2b8   : > { %5555 = vmatpush3.bf16.msra.mxu0 %v7691_v10  ;;  %5571 = vmatpush3.bf16.msra.mxu1 %v8322_v22  ;;  %v7695_v55 = vadd.f32 %v5196_v32, %v5168_v57  ;;  %v7732_v32 = vld [vmem:[#allocation2 + $0x1e8] sm:$0xff]  }
 0x2b9   : > { %5556 = vmatprep.subr.bf16.mxu0 %v7697_v42  ;;  %5572 = vmatprep.subr.bf16.mxu1 %v8323_v30  ;;  %8329 = vst [vmem:[#allocation22_spill] sm:$0xff] %v7732_v32 }
 0x2ba   : > { %3308 = vmatprep.mubr.bf16.mxu1 %v6254_v9 }
 0x2bc   : > { %5557 = vmatpush3.bf16.msra.mxu0 %v7701_v2  ;;  %5573 = vmatpush3.bf16.msra.mxu1 %v8324_v3 }
 0x2bd   : > { %5574 = vmatprep.subr.bf16.mxu1 %v7705_v4  ;;  %5998 = vmatprep.subr.msk.bf16.mxu0 %vm1755_vm7, %v7708_v26 }
 0x2bf   : > { %3350 = vmatmul.mubr.bf16.vlgmr.msra.gmra.mrb[80].mxu0 %v6251_v38  ;;  %3309 = vmatmul.mubr.bf16.gmra.mrb[76].mxu1 %v6256_v54 }
 0x2c0   : > { %5575 = vmatpush3.bf16.msra.mxu1 %v7712_v27  ;;  %5971 = vmatpush3.bf16.msra.mxu0 %v7271_v59 }
 0x2c1   : > { %5576 = vmatprep.subr.bf16.mxu1 %v7716_v12  ;;  %5629 = vmatprep.subr.bf16.mxu0 %v7719_v60  ;;  %v7744_v60 = vld [vmem:[#allocation2 + $0x80] sm:$0xff]  }
 0x2c2   : > { %3357 = vmatprep.mubr.bf16.mxu0 %v6257_v11  ;;  %v5241_v33 = vpop.f32.mrb[28].mxu0  ;;  %3398 = vmatprep.mubr.bf16.mxu1 %v6264_v14  ;;  %v7738_v11 = vld [vmem:[#allocation2 + $0x1f0] sm:$0xff]   ;;  %8330 = vst [vmem:[#allocation23_spill] sm:$0xff] %v7744_v60 }
 0x2c3   : > { %v5242_v5 = vpop.f32.mrb[29].mxu0 }
 0x2c4   : > { %5577 = vmatpush3.bf16.msra.mxu1 %v7722_v63  ;;  %v5243_v21 = vadd.f32 %v5242_v5, %v5241_v33  ;;  %v5244_v7 = vpop.f32.mrb[30].mxu0 }
 0x2c5   : > { %5578 = vmatprep.subr.bf16.mxu1 %v7725_v47  ;;  %v5245_v49 = vpop.f32.mrb[31].mxu0 }
 0x2c6   : > { %v5246_v18 = vadd.f32 %v5245_v49, %v5244_v7  ;;  %v6270_v7 = vld [vmem:[#allocation6 + $0x2dc] ss:$36 sps:$4 sm:$0xff]  }
 0x2c7   : > { %3358 = vmatmul.mubr.bf16.gmra.mrb[84].mxu0 %v6259_v40 }
 0x2c8   : > { %5579 = vmatpush3.bf16.msra.mxu1 %v7728_v62  ;;  %5972 = vmatprep.mubr.msk.bf16.mxu0 %vm1748_vm8, %v6260_v29 }
 0x2c9   : > { %5580 = vmatprep.subr.bf16.mxu1 %v7732_v32 }
 0x2ca   : > { %v5213_v16 = vpop.f32.mrb[24].mxu1  ;;  %v5247_v56 = vpop.f32.mrb[32].mxu0 }
 0x2cb   : > { %v5214_v13 = vpop.f32.mrb[25].mxu1  ;;  %v5248_v50 = vpop.f32.mrb[33].mxu0 }
 0x2cc   : > { %5581 = vmatpush3.bf16.msra.mxu1 %v7735_v24  ;;  %v5215_v9 = vadd.f32 %v5214_v13, %v5213_v16  ;;  %v5216_v57 = vpop.f32.mrb[26].mxu1  ;;  %v5249_v38 = vadd.f32 %v5248_v50, %v5247_v56  ;;  %v5250_v54 = vpop.f32.mrb[34].mxu0  ;;  %v7747_v16 = vld [vmem:[#allocation2 + $0x1b0] sm:$0xff]   ;;  %v7750_v13 = vld [vmem:[#allocation2 + $0xc8] sm:$0xff]  }
 0x2cd   : > { %5582 = vmatprep.subr.bf16.mxu1 %v7738_v11  ;;  %v5217_v14 = vpop.f32.mrb[27].mxu1  ;;  %v5251_v33 = vpop.f32.mrb[35].mxu0  ;;  %8331 = vst [vmem:[#allocation24_spill] sm:$0xff] %v7750_v13 }
 0x2ce   : > { %v2254_v40 = vadd.f32 %v5215_v9, %v7673_v20  ;;  %v5218_v5 = vadd.f32 %v5217_v14, %v5216_v57  ;;  %v5252_v29 = vadd.f32 %v5251_v33, %v5250_v54  ;;  %v7753_v20 = vld [vmem:[#allocation2 + $0x1f8] sm:$0xff]   ;;  %v7756_v57 = vld [vmem:[#allocation2 + $0x88] sm:$0xff]   ;;  %v7762_v33 = vld [vmem:[#allocation2 + $0xd0] sm:$0xff]  }
 0x2cf   : > { %5973 = vmatmul.mubr.msk.bf16.vlgmr.msra.gmra.mrb[88].mxu0 %vm1748_vm8, %v6261_v43  ;;  %v6262_v9 = vld [vmem:[#allocation6 + $0x258] ss:$36 sps:$4 sm:$0xff]   ;;  %8332 = vst [vmem:[#allocation12_spill] sm:$0xff] %v7756_v57  ;;  %8333 = vst [vmem:[#allocation14_spill] sm:$0xff] %v7762_v33 }
 0x2d0   : > { %v2257_v49 = vadd.f32 %v5218_v5, %v7675_v35  ;;  %5630 = vmatpush3.bf16.msra.mxu0 %v7744_v60  ;;  %5583 = vmatpush3.bf16.msra.mxu1 %v7747_v16  ;;  %v2303_v56 = vadd.f32 %v5243_v21, %v2254_v40  ;;  %v7759_v54 = vld [vmem:[#allocation2 + $0x1b8] sm:$0xff]   ;;  %v7765_v40 = vld [vmem:[#allocation2 + $0x40] sm:$0xff]   ;;  %v7779_v60 = vld [vmem:[#allocation2 + $0x48] sm:$0xff]  }
 0x2d1   : > { %5631 = vmatprep.subr.bf16.mxu0 %v7750_v13  ;;  %5584 = vmatprep.subr.bf16.mxu1 %v7753_v20  ;;  %v7770_v13 = vld [vmem:[#allocation2 + $0x90] sm:$0xff]  }
 0x2d2   : > { %v5219_v43 = vpop.f32.mrb[28].mxu1  ;;  %v2306_v50 = vadd.f32 %v5246_v18, %v2257_v49  ;;  %3666 = vmatprep.mubr.bf16.mxu0 %v6270_v7  ;;  %v6265_v49 = vld [vmem:[#allocation6 + $0x2a4] ss:$36 sps:$4 sm:$0xff]   ;;  %8334 = vst [vmem:[#allocation15_spill] sm:$0xff] %v7770_v13 }
 0x2d3   : > { %v5220_v35 = vpop.f32.mrb[29].mxu1 }
 0x2d4   : > { %5632 = vmatpush3.bf16.msra.mxu0 %v7756_v57  ;;  %5585 = vmatpush3.bf16.msra.mxu1 %v7759_v54  ;;  %v5221_v21 = vadd.f32 %v5220_v35, %v5219_v43  ;;  %v5222_v14 = vpop.f32.mrb[30].mxu1  ;;  %v7773_v43 = vld [vmem:[#allocation2] sm:$0xff]  }
 0x2d5   : > { %5633 = vmatprep.subr.bf16.mxu0 %v7762_v33  ;;  %5601 = vmatprep.subr.bf16.mxu1 %v7765_v40  ;;  %v5223_v18 = vpop.f32.mrb[31].mxu1  ;;  %v7776_v33 = vld [vmem:[#allocation2 + $0xd8] sm:$0xff]  }
 0x2d6   : > { %v2262_v5 = vadd.f32 %v5221_v21, %v7689_v6  ;;  %v5224_v7 = vadd.f32 %v5223_v18, %v5222_v14  ;;  %8335 = vst [vmem:[#allocation16_spill] sm:$0xff] %v7776_v33  ;;  %v6267_v14 = vld [vmem:[#allocation6 + $0x2a0] ss:$36 sps:$4 sm:$0xff]   ;;  %v7784_v18 = vld [vmem:[#allocation2 + $0x98] sm:$0xff]  }
 0x2d7   : > { %3399 = vmatmul.mubr.bf16.vlgmr.msra.gmra.mrb[80].mxu1 %v6262_v9  ;;  %8336 = vst [vmem:[#allocation25_spill] sm:$0xff] %v7784_v18 }
 0x2d8   : > { %v2265_v57 = vadd.f32 %v5224_v7, %v7695_v55  ;;  %5634 = vmatpush3.bf16.msra.mxu0 %v7770_v13  ;;  %5602 = vmatpush3.bf16.msra.mxu1 %v7773_v43  ;;  %v2311_v35 = vadd.f32 %v5249_v38, %v2262_v5  ;;  %v7787_v38 = vld [vmem:[#allocation2 + $0x8] sm:$0xff]  }
 0x2d9   : > { %5635 = vmatprep.subr.bf16.mxu0 %v7776_v33  ;;  %5603 = vmatprep.subr.bf16.mxu1 %v7779_v60  ;;  %v7837_v13 = vld [vmem:[#allocation2 + $0x28] sm:$0xff]  }
 0x2da   : > { %v5956_v6 = vpop.f32.mrb[32].mxu1  ;;  %v2314_v9 = vadd.f32 %v5252_v29, %v2265_v57  ;;  %3406 = vmatprep.mubr.bf16.mxu1 %v6265_v49  ;;  %v7794_v29 = vld [vmem:[#allocation2 + $0xe0] sm:$0xff]   ;;  %v7797_v57 = vld [vmem:[#allocation2 + $0x50] sm:$0xff]  }
 0x2db   : > { %v7782_v55 = vadd.f32 %v5956_v6, %v2311_v35  ;;  %v2351_v21 = vpop.f32.mrb[33].mxu1  ;;  %8337 = vst [vmem:[#allocation26_spill] sm:$0xff] %v7794_v29  ;;  %8338 = vst [vmem:[#allocation27_spill] sm:$0xff] %v7797_v57  ;;  %v7825_v6 = vld [vmem:[#allocation2 + $0x60] sm:$0xff]  }
 0x2dc   : > { %5636 = vmatpush3.bf16.msra.mxu0 %v7784_v18  ;;  %5604 = vmatpush3.bf16.msra.mxu1 %v7787_v38  ;;  %v7790_v5 = vadd.f32 %v2351_v21, %v2303_v56  ;;  %v5957_v7 = vpop.f32.mrb[34].mxu1  ;;  %v6273_v21 = vld [vmem:[#allocation6 + $0x2d4] ss:$36 sps:$4 sm:$0xff]   ;;  %v7810_v18 = vld [vmem:[#allocation2 + $0xa0] sm:$0xff]   ;;  %8344 = vst [vmem:[#allocation33_spill] sm:$0xff] %v7825_v6 }
 0x2dd   : > { %5637 = vmatprep.subr.bf16.mxu0 %v7794_v29  ;;  %5605 = vmatprep.subr.bf16.mxu1 %v7797_v57  ;;  %v7800_v49 = vadd.f32 %v5957_v7, %v2314_v9  ;;  %v2354_v35 = vpop.f32.mrb[35].mxu1  ;;  %8340 = vst [vmem:[#allocation29_spill] sm:$0xff] %v7810_v18  ;;  %v7813_v9 = vld [vmem:[#allocation2 + $0x10] sm:$0xff]  }
 0x2de   : > { %v7804_v56 = vadd.f32 %v2354_v35, %v2306_v50  ;;  %8341 = vst [vmem:[#allocation30_spill] sm:$0xff] %v7813_v9  ;;  %v7817_v50 = vld [vmem:[#allocation2 + $0x58] sm:$0xff]  }
 0x2df   : > { %8339 = vst [vmem:[#allocation28_spill] sm:$0xff] %v7800_v49  ;;  %3407 = vmatmul.mubr.bf16.gmra.mrb[84].mxu1 %v6267_v14  ;;  %8342 = vst [vmem:[#allocation31_spill] sm:$0xff] %v7817_v50  ;;  %v7821_v35 = vld [vmem:[#allocation2 + $0x18] sm:$0xff]  }
 0x2e0   : > { %5638 = vmatpush3.bf16.msra.mxu0 %v7810_v18  ;;  %5606 = vmatpush3.bf16.msra.mxu1 %v7813_v9  ;;  %8343 = vst [vmem:[#allocation32_spill] sm:$0xff] %v7821_v35 }
 0x2e1   : > { %5639 = vmatprep.subr.bf16.mxu0 %v7471_v41  ;;  %5607 = vmatprep.subr.bf16.mxu1 %v7817_v50 }
 0x2e2   : > { %v5272_v7 = vpop.f32.mrb[36].mxu0  ;;  %3617 = vmatprep.mubr.bf16.mxu1 %v6273_v21  ;;  %v7829_v21 = vld [vmem:[#allocation2 + $0x20] sm:$0xff]  }
 0x2e3   : > { %v5273_v14 = vpop.f32.mrb[37].mxu0 }
 0x2e4   : > { %5640 = vmatpush3.bf16.msra.mxu0 %v7475_v44  ;;  %5608 = vmatpush3.bf16.msra.mxu1 %v7821_v35  ;;  %v5274_v33 = vadd.f32 %v5273_v14, %v5272_v7  ;;  %v5275_v29 = vpop.f32.mrb[38].mxu0  ;;  %v7833_v44 = vld [vmem:[#allocation2 + $0x68] sm:$0xff]  }
 0x2e5   : > { %5641 = vmatprep.subr.bf16.mxu0 %v7479_v1  ;;  %5609 = vmatprep.subr.bf16.mxu1 %v7825_v6  ;;  %v5276_v41 = vpop.f32.mrb[39].mxu0  ;;  %v6268_v1 = vld [vmem:[#allocation6 + $0x2d8] ss:$36 sps:$4 sm:$0xff]  }
 0x2e6   : > { %v5277_v18 = vadd.f32 %v5276_v41, %v5275_v29  ;;  %v7843_v41 = vld [vmem:[#allocation2 + $0x70] sm:$0xff]  }
 0x2e8   : > { %5642 = vmatpush3.bf16.msra.mxu0 %v7486_v17  ;;  %5610 = vmatpush3.bf16.msra.mxu1 %v7829_v21 }
 0x2e9   : > { %5643 = vmatprep.subr.bf16.mxu0 %v8319_v31  ;;  %5611 = vmatprep.subr.bf16.mxu1 %v7833_v44 }
 0x2ea   : > { %v5278_v7 = vpop.f32.mrb[40].mxu0 }
 0x2eb   : > { %v5279_v14 = vpop.f32.mrb[41].mxu0 }
 0x2ec   : > { %5644 = vmatpush3.bf16.msra.mxu0 %v8320_v61  ;;  %5612 = vmatpush3.bf16.msra.mxu1 %v7837_v13  ;;  %v7840_v17 = vadd.f32 %v5279_v14, %v5278_v7  ;;  %v5281_v29 = vpop.f32.mrb[42].mxu0  ;;  %v7849_v61 = vld [vmem:[#allocation2 + $0x30] sm:$0xff]   ;;  %v7853_v7 = vld [vmem:[#allocation2 + $0x78] sm:$0xff]   ;;  %v6276_v14 = vld [vmem:[#allocation6 + $0x320] ss:$36 sps:$4 sm:$0xff]  }
 0x2ed   : > { %5685 = vmatprep.subr.bf16.mxu0 %v8321_v15  ;;  %5613 = vmatprep.subr.bf16.mxu1 %v7843_v41  ;;  %v5282_v31 = vpop.f32.mrb[43].mxu0  ;;  %v6271_v15 = vld [vmem:[#allocation6 + $0x2d0] ss:$36 sps:$4 sm:$0xff]  }
 0x2ee   : > { %v7846_v49 = vadd.f32 %v5282_v31, %v5281_v29  ;;  %v7857_v29 = vld [vmem:[#allocation2 + $0x38] sm:$0xff]  }
 0x2ef   : > { %3667 = vmatmul.mubr.bf16.vlgmr.msra.gmra.mrb[92].mxu0 %v6268_v1  ;;  %8345 = vst [vmem:[#allocation34_spill] sm:$0xff] %v7857_v29  ;;  %v6282_v1 = vld [vmem:[#allocation6 + $0x2ec] ss:$36 sps:$4 sm:$0xff]  }
 0x2f0   : > { %5686 = vmatpush3.bf16.msra.mxu0 %v8322_v22  ;;  %5614 = vmatpush3.bf16.msra.mxu1 %v7849_v61  ;;  %v6277_v22 = vld [vmem:[#allocation6 + $0x31c] ss:$36 sps:$4 sm:$0xff]  }
 0x2f1   : > { %5687 = vmatprep.subr.bf16.mxu0 %v8323_v30  ;;  %5615 = vmatprep.subr.bf16.mxu1 %v7853_v7 }
 0x2f2   : > { %3674 = vmatprep.mubr.bf16.mxu0 %v6274_v51 }
 0x2f4   : > { %5688 = vmatpush3.bf16.msra.mxu0 %v8324_v3  ;;  %5616 = vmatpush3.bf16.msra.mxu1 %v7857_v29  ;;  %v6279_v3 = vld [vmem:[#allocation6 + $0x318] ss:$36 sps:$4 sm:$0xff]  }
 0x2f5   : > { %5689 = vmatprep.subr.bf16.mxu0 %v7705_v4  ;;  %5657 = vmatprep.subr.bf16.mxu1 %v8312_v19 }
 0x2f7   : > { %3618 = vmatmul.mubr.bf16.vlgmr.msra.gmra.mrb[88].mxu1 %v6271_v15  ;;  %3675 = vmatmul.mubr.bf16.gmra.mrb[96].mxu0 %v6276_v14 }
 0x2f8   : > { %5690 = vmatpush3.bf16.msra.mxu0 %v7712_v27  ;;  %5658 = vmatpush3.bf16.msra.mxu1 %v8313_v34 }
 0x2f9   : > { %5691 = vmatprep.subr.bf16.mxu0 %v7716_v12  ;;  %5659 = vmatprep.subr.bf16.mxu1 %v8314_v0  ;;  %v6285_v12 = vld [vmem:[#allocation6 + $0x2e4] ss:$36 sps:$4 sm:$0xff]  }
 0x2fa   : > { %v5300_v51 = vpop.f32.mrb[36].mxu1  ;;  %3625 = vmatprep.mubr.bf16.mxu1 %v6277_v22  ;;  %3764 = vmatprep.mubr.bf16.mxu0 %v6282_v1 }
 0x2fb   : > { %v5301_v30 = vpop.f32.mrb[37].mxu1 }
 0x2fc   : > { %5692 = vmatpush3.bf16.msra.mxu0 %v7722_v63  ;;  %v5302_v19 = vadd.f32 %v5301_v30, %v5300_v51  ;;  %5660 = vmatpush3.bf16.msra.mxu1 %v8315_v25  ;;  %v5303_v31 = vpop.f32.mrb[38].mxu1 }
 0x2fd   : > { %5693 = vmatprep.subr.bf16.mxu0 %v7725_v47  ;;  %5661 = vmatprep.subr.bf16.mxu1 %v7585_v28  ;;  %v5304_v34 = vpop.f32.mrb[39].mxu1 }
 0x2fe   : > { %v2571_v15 = vadd.f32 %v5302_v19, %v5274_v33  ;;  %v5305_v14 = vadd.f32 %v5304_v34, %v5303_v31 }
 0x2ff   : > { %3626 = vmatmul.mubr.bf16.gmra.mrb[92].mxu1 %v6279_v3 }
 0x300   : > { %v2574_v0 = vadd.f32 %v5305_v14, %v5277_v18  ;;  %5694 = vmatpush3.bf16.msra.mxu0 %v7728_v62  ;;  %5662 = vmatpush3.bf16.msra.mxu1 %v7589_v39 }
 0x301   : > { %5695 = vmatprep.subr.bf16.mxu0 %v7732_v32  ;;  %5663 = vmatprep.subr.bf16.mxu1 %v7593_v36 }
 0x302   : > { %v5328_v25 = vpop.f32.mrb[44].mxu0  ;;  %v5306_v22 = vpop.f32.mrb[40].mxu1  ;;  %3715 = vmatprep.mubr.bf16.mxu1 %v6285_v12 }
 0x303   : > { %v5329_v1 = vpop.f32.mrb[45].mxu0  ;;  %v5307_v51 = vpop.f32.mrb[41].mxu1 }
 0x304   : > { %5696 = vmatpush3.bf16.msra.mxu0 %v7735_v24  ;;  %v5330_v33 = vadd.f32 %v5329_v1, %v5328_v25  ;;  %5664 = vmatpush3.bf16.msra.mxu1 %v7597_v48  ;;  %v5331_v30 = vpop.f32.mrb[46].mxu0  ;;  %v5308_v18 = vadd.f32 %v5307_v51, %v5306_v22  ;;  %v5309_v3 = vpop.f32.mrb[42].mxu1  ;;  %v6280_v51 = vld [vmem:[#allocation6 + $0x2e8] ss:$36 sps:$4 sm:$0xff]  }
 0x305   : > { %5697 = vmatprep.subr.bf16.mxu0 %v7738_v11  ;;  %5665 = vmatprep.subr.bf16.mxu1 %v7601_v37  ;;  %v5332_v19 = vpop.f32.mrb[47].mxu0  ;;  %v5310_v31 = vpop.f32.mrb[43].mxu1 }
 0x306   : > { %v2620_v34 = vadd.f32 %v5330_v33, %v2571_v15  ;;  %v2579_v14 = vadd.f32 %v5308_v18, %v7840_v17  ;;  %v5333_v12 = vadd.f32 %v5332_v19, %v5331_v30  ;;  %v5311_v32 = vadd.f32 %v5310_v31, %v5309_v3  ;;  %v6289_v33 = vld [vmem:[#allocation6 + $0x334] ss:$36 sps:$4 sm:$0xff]   ;;  %v6283_v3 = vld [vmem:[#allocation6 + $0x2e0] ss:$36 sps:$4 sm:$0xff]  }
 0x307   : > { %v6291_v31 = vld [vmem:[#allocation6 + $0x330] ss:$36 sps:$4 sm:$0xff]  }
 0x308   : > { %v2623_v62 = vadd.f32 %v5333_v12, %v2574_v0  ;;  %5698 = vmatpush3.bf16.msra.mxu0 %v7747_v16  ;;  %v2582_v25 = vadd.f32 %v5311_v32, %v7846_v49  ;;  %5666 = vmatpush3.bf16.msra.mxu1 %v7607_v23 }
 0x309   : > { %5699 = vmatprep.subr.bf16.mxu0 %v7753_v20  ;;  %5667 = vmatprep.subr.bf16.mxu1 %v7611_v53 }
 0x30a   : > { %v5334_v22 = vpop.f32.mrb[48].mxu0 }
 0x30b   : > { %v5335_v1 = vpop.f32.mrb[49].mxu0 }
 0x30c   : > { %5700 = vmatpush3.bf16.msra.mxu0 %v7759_v54  ;;  %v5336_v15 = vadd.f32 %v5335_v1, %v5334_v22  ;;  %5668 = vmatpush3.bf16.msra.mxu1 %v7682_v46  ;;  %v5337_v17 = vpop.f32.mrb[50].mxu0  ;;  %v6296_v22 = vld [vmem:[#allocation6 + $0x364] ss:$36 sps:$4 sm:$0xff]   ;;  %v8346_v1 = vld [vmem:[#allocation19_spill] sm:$0xff] }
 0x30d   : > { %5716 = vmatprep.subr.bf16.mxu0 %v7765_v40  ;;  %5669 = vmatprep.subr.bf16.mxu1 %v7685_v8  ;;  %v5338_v32 = vpop.f32.mrb[51].mxu0 }
 0x30e   : > { %v2628_v49 = vadd.f32 %v5336_v15, %v2579_v14  ;;  %v5339_v0 = vadd.f32 %v5338_v32, %v5337_v17  ;;  %v6288_v17 = vld [vmem:[#allocation6 + $0x328] ss:$36 sps:$4 sm:$0xff]  }
 0x30f   : > { %3765 = vmatmul.mubr.bf16.vlgmr.msra.gmra.mrb[100].mxu0 %v6280_v51 }
 0x310   : > { %v2631_v30 = vadd.f32 %v5339_v0, %v2582_v25  ;;  %5717 = vmatpush3.bf16.msra.mxu0 %v7773_v43  ;;  %5670 = vmatpush3.bf16.msra.mxu1 %v7691_v10  ;;  %v6286_v25 = vld [vmem:[#allocation6 + $0x32c] ss:$36 sps:$4 sm:$0xff]  }
 0x311   : > { %5718 = vmatprep.subr.bf16.mxu0 %v7779_v60  ;;  %5671 = vmatprep.subr.bf16.mxu1 %v7697_v42 }
 0x312   : > { %v5962_v18 = vpop.f32.mrb[52].mxu0  ;;  %3772 = vmatprep.mubr.bf16.mxu0 %v6289_v33  ;;  %v6292_v33 = vld [vmem:[#allocation6 + $0x2f0] ss:$36 sps:$4 sm:$0xff]  }
 0x313   : > { %v2717_v19 = vpop.f32.mrb[53].mxu0 }
 0x314   : > { %5719 = vmatpush3.bf16.msra.mxu0 %v7787_v38  ;;  %5672 = vmatpush3.bf16.msra.mxu1 %v7701_v2  ;;  %v5963_v14 = vpop.f32.mrb[54].mxu0 }
 0x315   : > { %5720 = vmatprep.subr.bf16.mxu0 %v7797_v57  ;;  %5999 = vmatprep.subr.msk.bf16.mxu1 %vm1755_vm7, %v7708_v26  ;;  %v2720_v12 = vpop.f32.mrb[55].mxu0 }
 0x317   : > { %3716 = vmatmul.mubr.bf16.vlgmr.msra.gmra.mrb[96].mxu1 %v6283_v3  ;;  %3773 = vmatmul.mubr.bf16.gmra.mrb[104].mxu0 %v6291_v31 }
 0x318   : > { %5721 = vmatpush3.bf16.msra.mxu0 %v7813_v9  ;;  %5977 = vmatpush3.bf16.msra.mxu1 %v7271_v59 }
 0x319   : > { %5722 = vmatprep.subr.bf16.mxu0 %v7817_v50  ;;  %5744 = vmatprep.subr.bf16.mxu1 %v8346_v1 }
 0x31a   : > { %v5356_v51 = vpop.f32.mrb[44].mxu1  ;;  %3723 = vmatprep.mubr.bf16.mxu1 %v6286_v25  ;;  %3983 = vmatprep.mubr.bf16.mxu0 %v6296_v22  ;;  %v8347_v25 = vmax.f32 %v7635_v45, %v7790_v5  ;;  %v6301_v5 = vld [vmem:[#allocation6 + $0x36c] ss:$36 sps:$4 sm:$0xff]  }
 0x31b   : > { %v5357_v15 = vpop.f32.mrb[45].mxu1 }
 0x31c   : > { %5723 = vmatpush3.bf16.msra.mxu0 %v7821_v35  ;;  %v5358_v32 = vadd.f32 %v5357_v15, %v5356_v51  ;;  %v5359_v0 = vpop.f32.mrb[46].mxu1  ;;  %v6293_v35 = vld [vmem:[#allocation6 + $0x338] ss:$36 sps:$4 sm:$0xff]  }
 0x31d   : > { %5724 = vmatprep.subr.bf16.mxu0 %v7825_v6  ;;  %v5360_v3 = vpop.f32.mrb[47].mxu1 }
 0x31e   : > { %v5361_v31 = vadd.f32 %v5360_v3, %v5359_v0  ;;  %v2669_v9 = vadd.f32 %v5358_v32, %v2620_v34  ;;  %v8348_v34 = vmax.f32 %v7640_v52, %v7804_v56  ;;  %v8350_v52 = vld [vmem:[#allocation24_spill] sm:$0xff]  ;;  %v8351_v56 = vmax.f32 %v7647_v58, %v7782_v55  ;;  %v8358_v58 = vld [vmem:[#allocation15_spill] sm:$0xff] }
 0x31f   : > { %3724 = vmatmul.mubr.bf16.gmra.mrb[100].mxu1 %v6288_v17  ;;  %v6294_v0 = vld [vmem:[#allocation6 + $0x360] ss:$36 sps:$4 sm:$0xff]  }
 0x320   : > { %v2718_v57 = vadd.f32 %v2717_v19, %v2669_v9  ;;  %5725 = vmatpush3.bf16.msra.mxu0 %v7829_v21  ;;  %v2672_v50 = vadd.f32 %v5361_v31, %v2623_v62  ;;  %5978 = vmatprep.mubr.msk.bf16.mxu1 %vm1748_vm8, %v6292_v33  ;;  %v8356_v31 = vld [vmem:[#allocation14_spill] sm:$0xff]  ;;  %v7940_v55 = vld [vmem:[#allocation2 + $0x100] sm:$0xff]  }
 0x321   : > { %5726 = vmatprep.subr.bf16.mxu0 %v7833_v44 }
 0x322   : > { %v7909_v22 = vmax.f32 %v8347_v25, %v2718_v57  ;;  %v2721_v51 = vadd.f32 %v2720_v12, %v2672_v50  ;;  %v5362_v15 = vpop.f32.mrb[48].mxu1  ;;  %v8349_v12 = vld [vmem:[#allocation23_spill] sm:$0xff] }
 0x323   : > { %v5363_v6 = vpop.f32.mrb[49].mxu1  ;;  %v7936_v25 = vld [vmem:[#allocation2 + $0x140] sm:$0xff]   ;;  %8359 = vst [vmem:[#allocation23_spill] sm:$0xff] %v7940_v55 }
 0x324   : > { %v7914_v9 = vmax.f32 %v8348_v34, %v2721_v51  ;;  %5727 = vmatpush3.bf16.msra.mxu0 %v7837_v13  ;;  %v5364_v62 = vadd.f32 %v5363_v6, %v5362_v15  ;;  %v5365_v19 = vpop.f32.mrb[50].mxu1  ;;  %8357 = vst [vmem:[#allocation19_spill] sm:$0xff] %v7936_v25  ;;  %v8360_v51 = vld [vmem:[#allocation16_spill] sm:$0xff] }
 0x325   : > { %5728 = vmatprep.subr.bf16.mxu0 %v7843_v41  ;;  %v5366_v17 = vpop.f32.mrb[51].mxu1  ;;  %v7944_v15 = vld [vmem:[#allocation2 + $0x148] sm:$0xff]  }
 0x326   : > { %v2677_v32 = vadd.f32 %v5364_v62, %v2628_v49  ;;  %v5367_v45 = vadd.f32 %v5366_v17, %v5365_v19  ;;  %8361 = vst [vmem:[#allocation24_spill] sm:$0xff] %v7944_v15  ;;  %v6302_v19 = vld [vmem:[#allocation6 + $0x3a8] ss:$36 sps:$4 sm:$0xff]  }
 0x327   : > { %5979 = vmatmul.mubr.msk.bf16.vlgmr.msra.gmra.mrb[104].mxu1 %vm1748_vm8, %v6293_v35  ;;  %v8352_v35 = vld [vmem:[#allocation12_spill] sm:$0xff]  ;;  %v8362_v17 = vld [vmem:[#allocation25_spill] sm:$0xff] }
 0x328   : > { %v2726_v57 = vadd.f32 %v5962_v18, %v2677_v32  ;;  %v2680_v50 = vadd.f32 %v5367_v45, %v2631_v30  ;;  %5729 = vmatpush3.bf16.msra.mxu0 %v7849_v61  ;;  %5745 = vmatpush3.bf16.msra.mxu1 %v8349_v12  ;;  %v8353_v30 = vld [vmem:[#allocation17_spill] sm:$0xff]  ;;  %v8354_v18 = vld [vmem:[#allocation28_spill] sm:$0xff] }
 0x329   : > { %5730 = vmatprep.subr.bf16.mxu0 %v7853_v7  ;;  %5746 = vmatprep.subr.bf16.mxu1 %v8350_v52  ;;  %v8355_v33 = vmax.f32 %v8353_v30, %v8354_v18  ;;  %v7948_v32 = vld [vmem:[#allocation2 + $0x108] sm:$0xff]  }
 0x32a   : > { %v2729_v6 = vadd.f32 %v5963_v14, %v2680_v50  ;;  %4032 = vmatprep.mubr.bf16.mxu1 %v6301_v5  ;;  %v7926_v49 = vmax.f32 %v8351_v56, %v2726_v57  ;;  %v6297_v14 = vld [vmem:[#allocation6 + $0x3ac] ss:$36 sps:$4 sm:$0xff]   ;;  %8363 = vst [vmem:[#allocation12_spill] sm:$0xff] %v7948_v32  ;;  %v6305_v56 = vld [vmem:[#allocation6 + $0x374] ss:$36 sps:$4 sm:$0xff]   ;;  %v7955_v30 = vld [vmem:[#allocation2 + $0xe8] sm:$0xff]  }
 0x32b   : > { %v8364_v57 = vld [vmem:[#allocation26_spill] sm:$0xff] }
 0x32c   : > { %5731 = vmatpush3.bf16.msra.mxu0 %v7857_v29  ;;  %5747 = vmatpush3.bf16.msra.mxu1 %v8352_v35  ;;  %v7933_v3 = vmax.f32 %v8355_v33, %v2729_v6  ;;  %v7971_v29 = vld [vmem:[#allocation2 + $0xb0] sm:$0xff]  }
 0x32d   : > { %5748 = vmatprep.subr.bf16.mxu1 %v8356_v31  ;;  %5772 = vmatprep.subr.bf16.mxu0 %v7936_v25 }
 0x32f   : > { %3984 = vmatmul.mubr.bf16.vlgmr.msra.gmra.mrb[108].mxu0 %v6294_v0  ;;  %v8365_v0 = vld [vmem:[#allocation29_spill] sm:$0xff] }
 0x330   : > { %5749 = vmatpush3.bf16.msra.mxu1 %v8358_v58  ;;  %5773 = vmatpush3.bf16.msra.mxu0 %v7940_v55 }
 0x331   : > { %5750 = vmatprep.subr.bf16.mxu1 %v8360_v51  ;;  %5774 = vmatprep.subr.bf16.mxu0 %v7944_v15 }
 0x332   : > { %v5415_v34 = vpop.f32.mrb[56].mxu0  ;;  %3991 = vmatprep.mubr.bf16.mxu0 %v6297_v14 }
 0x333   : > { %v5416_v62 = vpop.f32.mrb[57].mxu0 }
 0x334   : > { %5751 = vmatpush3.bf16.msra.mxu1 %v8362_v17  ;;  %5775 = vmatpush3.bf16.msra.mxu0 %v7948_v32  ;;  %v5417_v45 = vadd.f32 %v5416_v62, %v5415_v34  ;;  %v5418_v5 = vpop.f32.mrb[58].mxu0 }
 0x335   : > { %5752 = vmatprep.subr.bf16.mxu1 %v8364_v57  ;;  %5776 = vmatprep.subr.bf16.mxu0 %v7585_v28  ;;  %v5419_v50 = vpop.f32.mrb[59].mxu0  ;;  %v7959_v28 = vld [vmem:[#allocation2 + $0xa8] sm:$0xff]  }
 0x336   : > { %v5420_v6 = vadd.f32 %v5419_v50, %v5418_v5  ;;  %v7963_v50 = vld [vmem:[#allocation2 + $0xf0] sm:$0xff]  }
 0x337   : > { %3992 = vmatmul.mubr.bf16.gmra.mrb[112].mxu0 %v6302_v19 }
 0x338   : > { %5753 = vmatpush3.bf16.msra.mxu1 %v8365_v0  ;;  %5777 = vmatpush3.bf16.msra.mxu0 %v7589_v39 }
 0x339   : > { %5754 = vmatprep.subr.bf16.mxu1 %v7955_v30  ;;  %5778 = vmatprep.subr.bf16.mxu0 %v7593_v36 }
 0x33a   : > { %v5387_v18 = vpop.f32.mrb[52].mxu1  ;;  %4081 = vmatprep.mubr.bf16.mxu0 %v6305_v56  ;;  %v5421_v33 = vpop.f32.mrb[60].mxu0 }
 0x33b   : > { %v5388_v14 = vpop.f32.mrb[53].mxu1  ;;  %v5422_v34 = vpop.f32.mrb[61].mxu0 }
 0x33c   : > { %5755 = vmatpush3.bf16.msra.mxu1 %v7959_v28  ;;  %5779 = vmatpush3.bf16.msra.mxu0 %v7597_v48  ;;  %v5389_v62 = vadd.f32 %v5388_v14, %v5387_v18  ;;  %v5390_v19 = vpop.f32.mrb[54].mxu1  ;;  %v5423_v39 = vadd.f32 %v5422_v34, %v5421_v33  ;;  %v5424_v5 = vpop.f32.mrb[62].mxu0  ;;  %v7975_v48 = vld [vmem:[#allocation2 + $0xf8] sm:$0xff]   ;;  %v6299_v18 = vld [vmem:[#allocation6 + $0x368] ss:$36 sps:$4 sm:$0xff]  }
 0x33d   : > { %5756 = vmatprep.subr.bf16.mxu1 %v7963_v50  ;;  %5780 = vmatprep.subr.bf16.mxu0 %v7601_v37  ;;  %v5391_v36 = vpop.f32.mrb[55].mxu1  ;;  %v5425_v56 = vpop.f32.mrb[63].mxu0  ;;  %v7979_v33 = vld [vmem:[#allocation2 + $0xb8] sm:$0xff]  }
 0x33e   : > { %v7967_v32 = vadd.f32 %v5417_v45, %v5389_v62  ;;  %v5392_v15 = vadd.f32 %v5391_v36, %v5390_v19  ;;  %v5426_v55 = vadd.f32 %v5425_v56, %v5424_v5  ;;  %v6306_v34 = vld [vmem:[#allocation6 + $0x3b4] ss:$36 sps:$4 sm:$0xff]   ;;  %v7990_v19 = vld [vmem:[#allocation2 + $0x180] sm:$0xff]   ;;  %v8000_v36 = vld [vmem:[#allocation2 + $0x188] sm:$0xff]  }
 0x33f   : > { %v6303_v5 = vld [vmem:[#allocation6 + $0x370] ss:$36 sps:$4 sm:$0xff]   ;;  %v6311_v56 = vld [vmem:[#allocation6 + $0x3b8] ss:$36 sps:$4 sm:$0xff]  }
 0x340   : > { %v7969_v25 = vadd.f32 %v5420_v6, %v5392_v15  ;;  %5757 = vmatpush3.bf16.msra.mxu1 %v7971_v29  ;;  %5781 = vmatpush3.bf16.msra.mxu0 %v7607_v23  ;;  %v7984_v23 = vld [vmem:[#allocation2 + $0x1c0] sm:$0xff]  }
 0x341   : > { %5758 = vmatprep.subr.bf16.mxu1 %v7975_v48  ;;  %5782 = vmatprep.subr.bf16.mxu0 %v7611_v53 }
 0x342   : > { %v5393_v37 = vpop.f32.mrb[56].mxu1 }
 0x343   : > { %v5394_v45 = vpop.f32.mrb[57].mxu1 }
 0x344   : > { %5759 = vmatpush3.bf16.msra.mxu1 %v7979_v33  ;;  %5783 = vmatpush3.bf16.msra.mxu0 %v7682_v46  ;;  %v5395_v15 = vadd.f32 %v5394_v45, %v5393_v37  ;;  %v5396_v6 = vpop.f32.mrb[58].mxu1 }
 0x345   : > { %5784 = vmatprep.subr.bf16.mxu0 %v7685_v8  ;;  %5800 = vmatprep.subr.bf16.mxu1 %v7984_v23  ;;  %v5397_v14 = vpop.f32.mrb[59].mxu1  ;;  %v7996_v8 = vld [vmem:[#allocation2 + $0x1c8] sm:$0xff]  }
 0x346   : > { %v7987_v53 = vadd.f32 %v5423_v39, %v5395_v15  ;;  %v5398_v62 = vadd.f32 %v5397_v14, %v5396_v6  ;;  %v6308_v39 = vld [vmem:[#allocation6 + $0x3b0] ss:$36 sps:$4 sm:$0xff]   ;;  %v8367_v14 = vld [vmem:[#allocation21_spill] sm:$0xff] }
 0x347   : > { %4033 = vmatmul.mubr.bf16.vlgmr.msra.gmra.mrb[108].mxu1 %v6299_v18 }
 0x348   : > { %5785 = vmatpush3.bf16.msra.mxu0 %v7691_v10  ;;  %5801 = vmatpush3.bf16.msra.mxu1 %v7990_v19  ;;  %v7993_v46 = vadd.f32 %v5426_v55, %v5398_v62  ;;  %v6309_v10 = vld [vmem:[#allocation6 + $0x3bc] ss:$36 sps:$4 sm:$0xff]   ;;  %v8366_v55 = vld [vmem:[#allocation18_spill] sm:$0xff] }
 0x349   : > { %5786 = vmatprep.subr.bf16.mxu0 %v7697_v42  ;;  %5802 = vmatprep.subr.bf16.mxu1 %v7996_v8  ;;  %v6316_v42 = vld [vmem:[#allocation6 + $0x37c] ss:$36 sps:$4 sm:$0xff]  }
 0x34a   : > { %4040 = vmatprep.mubr.bf16.mxu1 %v6306_v34 }
 0x34c   : > { %5787 = vmatpush3.bf16.msra.mxu0 %v7701_v2  ;;  %5803 = vmatpush3.bf16.msra.mxu1 %v8000_v36 }
 0x34d   : > { %5804 = vmatprep.subr.bf16.mxu1 %v7705_v4  ;;  %6000 = vmatprep.subr.msk.bf16.mxu0 %vm1755_vm7, %v7708_v26  ;;  %v6312_v26 = vld [vmem:[#allocation6 + $0x380] ss:$36 sps:$4 sm:$0xff]  }
 0x34f   : > { %4082 = vmatmul.mubr.bf16.vlgmr.msra.gmra.mrb[116].mxu0 %v6303_v5  ;;  %4041 = vmatmul.mubr.bf16.gmra.mrb[112].mxu1 %v6308_v39  ;;  %v6313_v39 = vld [vmem:[#allocation6 + $0x3c8] ss:$36 sps:$4 sm:$0xff]  }
 0x350   : > { %5805 = vmatpush3.bf16.msra.mxu1 %v7712_v27  ;;  %5983 = vmatpush3.bf16.msra.mxu0 %v7271_v59 }
 0x351   : > { %5806 = vmatprep.subr.bf16.mxu1 %v8366_v55  ;;  %5859 = vmatprep.subr.bf16.mxu0 %v8346_v1  ;;  %v8368_v1 = vld [vmem:[#allocation22_spill] sm:$0xff] }
 0x352   : > { %4089 = vmatprep.mubr.bf16.mxu0 %v6309_v10  ;;  %v5471_v2 = vpop.f32.mrb[64].mxu0  ;;  %4130 = vmatprep.mubr.bf16.mxu1 %v6316_v42 }
 0x353   : > { %v5472_v37 = vpop.f32.mrb[65].mxu0 }
 0x354   : > { %5807 = vmatpush3.bf16.msra.mxu1 %v7722_v63  ;;  %v5473_v18 = vadd.f32 %v5472_v37, %v5471_v2  ;;  %v5474_v45 = vpop.f32.mrb[66].mxu0 }
 0x355   : > { %5808 = vmatprep.subr.bf16.mxu1 %v7725_v47  ;;  %v5475_v15 = vpop.f32.mrb[67].mxu0 }
 0x356   : > { %v5476_v6 = vadd.f32 %v5475_v15, %v5474_v45 }
 0x357   : > { %4090 = vmatmul.mubr.bf16.gmra.mrb[120].mxu0 %v6311_v56 }
 0x358   : > { %5809 = vmatpush3.bf16.msra.mxu1 %v8367_v14  ;;  %5984 = vmatprep.mubr.msk.bf16.mxu0 %vm1748_vm8, %v6312_v26 }
 0x359   : > { %5810 = vmatprep.subr.bf16.mxu1 %v8368_v1  ;;  %v6322_v1 = vld [vmem:[#allocation6 + $0x3fc] ss:$36 sps:$4 sm:$0xff]  }
 0x35a   : > { %v5443_v34 = vpop.f32.mrb[60].mxu1  ;;  %v5477_v62 = vpop.f32.mrb[68].mxu0 }
 0x35b   : > { %v5444_v5 = vpop.f32.mrb[61].mxu1  ;;  %v5478_v10 = vpop.f32.mrb[69].mxu0 }
 0x35c   : > { %5811 = vmatpush3.bf16.msra.mxu1 %v7735_v24  ;;  %v5445_v42 = vadd.f32 %v5444_v5, %v5443_v34  ;;  %v5446_v2 = vpop.f32.mrb[62].mxu1  ;;  %v5479_v37 = vadd.f32 %v5478_v10, %v5477_v62  ;;  %v5480_v59 = vpop.f32.mrb[70].mxu0  ;;  %v6314_v10 = vld [vmem:[#allocation6 + $0x378] ss:$36 sps:$4 sm:$0xff]  }
 0x35d   : > { %5812 = vmatprep.subr.bf16.mxu1 %v7738_v11  ;;  %v5447_v56 = vpop.f32.mrb[63].mxu1  ;;  %v5481_v45 = vpop.f32.mrb[71].mxu0 }
 0x35e   : > { %v2986_v15 = vadd.f32 %v5445_v42, %v7967_v32  ;;  %v5448_v26 = vadd.f32 %v5447_v56, %v5446_v2  ;;  %v5482_v14 = vadd.f32 %v5481_v45, %v5480_v59  ;;  %v8371_v56 = vld [vmem:[#allocation31_spill] sm:$0xff] }
 0x35f   : > { %5985 = vmatmul.mubr.msk.bf16.vlgmr.msra.gmra.mrb[124].mxu0 %vm1748_vm8, %v6313_v39  ;;  %v6317_v39 = vld [vmem:[#allocation6 + $0x3c4] ss:$36 sps:$4 sm:$0xff]  }
 0x360   : > { %v2989_v47 = vadd.f32 %v5448_v26, %v7969_v25  ;;  %5860 = vmatpush3.bf16.msra.mxu0 %v8349_v12  ;;  %5813 = vmatpush3.bf16.msra.mxu1 %v7747_v16  ;;  %v3035_v34 = vadd.f32 %v5473_v18, %v2986_v15  ;;  %v8372_v26 = vld [vmem:[#allocation32_spill] sm:$0xff] }
 0x361   : > { %5861 = vmatprep.subr.bf16.mxu0 %v8350_v52  ;;  %5814 = vmatprep.subr.bf16.mxu1 %v7753_v20 }
 0x362   : > { %v5449_v62 = vpop.f32.mrb[64].mxu1  ;;  %v3038_v5 = vadd.f32 %v5476_v6, %v2989_v47  ;;  %4398 = vmatprep.mubr.bf16.mxu0 %v6322_v1  ;;  %v6319_v1 = vld [vmem:[#allocation6 + $0x3c0] ss:$36 sps:$4 sm:$0xff]  }
 0x363   : > { %v5450_v32 = vpop.f32.mrb[65].mxu1 }
 0x364   : > { %5862 = vmatpush3.bf16.msra.mxu0 %v8352_v35  ;;  %5815 = vmatpush3.bf16.msra.mxu1 %v7759_v54  ;;  %v5451_v59 = vadd.f32 %v5450_v32, %v5449_v62  ;;  %v5452_v25 = vpop.f32.mrb[66].mxu1 }
 0x365   : > { %5863 = vmatprep.subr.bf16.mxu0 %v8356_v31  ;;  %5831 = vmatprep.subr.bf16.mxu1 %v7765_v40  ;;  %v5453_v12 = vpop.f32.mrb[67].mxu1 }
 0x366   : > { %v2994_v52 = vadd.f32 %v5451_v59, %v7987_v53  ;;  %v5454_v18 = vadd.f32 %v5453_v12, %v5452_v25  ;;  %v6337_v25 = vld [vmem:[#allocation6 + $0x40c] ss:$36 sps:$4 sm:$0xff]   ;;  %v8378_v12 = vld [vmem:[#allocation12_spill] sm:$0xff] }
 0x367   : > { %4131 = vmatmul.mubr.bf16.vlgmr.msra.gmra.mrb[116].mxu1 %v6314_v10 }
 0x368   : > { %v2997_v47 = vadd.f32 %v5454_v18, %v7993_v46  ;;  %5864 = vmatpush3.bf16.msra.mxu0 %v8358_v58  ;;  %5832 = vmatpush3.bf16.msra.mxu1 %v7773_v43  ;;  %v3043_v35 = vadd.f32 %v5479_v37, %v2994_v52  ;;  %v8379_v18 = vld [vmem:[#allocation20_spill] sm:$0xff] }
 0x369   : > { %5865 = vmatprep.subr.bf16.mxu0 %v8360_v51  ;;  %5833 = vmatprep.subr.bf16.mxu1 %v7779_v60  ;;  %v8369_v60 = vld [vmem:[#allocation27_spill] sm:$0xff] }
 0x36a   : > { %v5968_v31 = vpop.f32.mrb[68].mxu1  ;;  %v3046_v6 = vadd.f32 %v5482_v14, %v2997_v47  ;;  %4138 = vmatprep.mubr.bf16.mxu1 %v6317_v39 }
 0x36b   : > { %v8034_v40 = vadd.f32 %v5968_v31, %v3043_v35  ;;  %v3083_v53 = vpop.f32.mrb[69].mxu1  ;;  %v6334_v35 = vld [vmem:[#allocation6 + $0x404] ss:$36 sps:$4 sm:$0xff]  }
 0x36c   : > { %5866 = vmatpush3.bf16.msra.mxu0 %v8362_v17  ;;  %5834 = vmatpush3.bf16.msra.mxu1 %v7787_v38  ;;  %v8038_v46 = vadd.f32 %v3083_v53, %v3035_v34  ;;  %v5969_v58 = vpop.f32.mrb[70].mxu1  ;;  %v6325_v17 = vld [vmem:[#allocation6 + $0x3f4] ss:$36 sps:$4 sm:$0xff]   ;;  %v6452_v53 = vld [vmem:[#allocation2 + $0x110] sm:$0xff]  }
 0x36d   : > { %v3100_v43 = vmax.f32 %v7926_v49, %v8034_v40  ;;  %5867 = vmatprep.subr.bf16.mxu0 %v8364_v57  ;;  %5835 = vmatprep.subr.bf16.mxu1 %v8369_v60  ;;  %v8044_v51 = vadd.f32 %v5969_v58, %v3046_v6  ;;  %v3086_v14 = vpop.f32.mrb[71].mxu1  ;;  %v8370_v57 = vld [vmem:[#allocation30_spill] sm:$0xff]  ;;  %v8380_v6 = vld [vmem:[#allocation21_spill] sm:$0xff] }
 0x36e   : > { %v3098_v42 = vmax.f32 %v7909_v22, %v8038_v46  ;;  %v8048_v2 = vadd.f32 %v3086_v14, %v3038_v5  ;;  %v8373_v5 = vld [vmem:[#allocation33_spill] sm:$0xff] }
 0x36f   : > { %v3101_v38 = vmax.f32 %v7933_v3, %v8044_v51  ;;  %4139 = vmatmul.mubr.bf16.gmra.mrb[120].mxu1 %v6319_v1  ;;  %v8381_v1 = vld [vmem:[#allocation22_spill] sm:$0xff] }
 0x370   : > { %v3099_v37 = vmax.f32 %v7914_v9, %v8048_v2  ;;  %5868 = vmatpush3.bf16.msra.mxu0 %v8365_v0  ;;  %5836 = vmatpush3.bf16.msra.mxu1 %v8370_v57 }
 0x371   : > { %5869 = vmatprep.subr.bf16.mxu0 %v7955_v30  ;;  %5837 = vmatprep.subr.bf16.mxu1 %v8371_v56  ;;  %v6454_v56 = vld [vmem:[#allocation2 + $0x118] sm:$0xff]  }
 0x372   : > { %v5502_v45 = vpop.f32.mrb[72].mxu0  ;;  %4349 = vmatprep.mubr.bf16.mxu1 %v6325_v17 }
 0x373   : > { %v5503_v15 = vpop.f32.mrb[73].mxu0 }
 0x374   : > { %5870 = vmatpush3.bf16.msra.mxu0 %v7959_v28  ;;  %5838 = vmatpush3.bf16.msra.mxu1 %v8372_v26  ;;  %v5504_v34 = vadd.f32 %v5503_v15, %v5502_v45  ;;  %v5505_v62 = vpop.f32.mrb[74].mxu0  ;;  %v6320_v28 = vld [vmem:[#allocation6 + $0x3f8] ss:$36 sps:$4 sm:$0xff]  }
 0x375   : > { %5871 = vmatprep.subr.bf16.mxu0 %v7963_v50  ;;  %5839 = vmatprep.subr.bf16.mxu1 %v8373_v5  ;;  %v5506_v0 = vpop.f32.mrb[75].mxu0 }
 0x376   : > { %v5507_v32 = vadd.f32 %v5506_v0, %v5505_v62 }
 0x378   : > { %5872 = vmatpush3.bf16.msra.mxu0 %v7971_v29  ;;  %5840 = vmatpush3.bf16.msra.mxu1 %v7829_v21 }
 0x379   : > { %5873 = vmatprep.subr.bf16.mxu0 %v7975_v48  ;;  %5841 = vmatprep.subr.bf16.mxu1 %v7833_v44  ;;  %v6328_v48 = vld [vmem:[#allocation6 + $0x444] ss:$36 sps:$4 sm:$0xff]  }
 0x37a   : > { %v5508_v30 = vpop.f32.mrb[76].mxu0  ;;  %v6331_v44 = vld [vmem:[#allocation6 + $0x440] ss:$36 sps:$4 sm:$0xff]  }
 0x37b   : > { %v5509_v10 = vpop.f32.mrb[77].mxu0 }
 0x37c   : > { %5874 = vmatpush3.bf16.msra.mxu0 %v7979_v33  ;;  %5842 = vmatpush3.bf16.msra.mxu1 %v7837_v13  ;;  %v8068_v50 = vadd.f32 %v5509_v10, %v5508_v30  ;;  %v5511_v59 = vpop.f32.mrb[78].mxu0  ;;  %v6323_v13 = vld [vmem:[#allocation6 + $0x3f0] ss:$36 sps:$4 sm:$0xff]  }
 0x37d   : > { %5915 = vmatprep.subr.bf16.mxu0 %v7984_v23  ;;  %5843 = vmatprep.subr.bf16.mxu1 %v7843_v41  ;;  %v5512_v29 = vpop.f32.mrb[79].mxu0  ;;  %v8374_v33 = vld [vmem:[#allocation34_spill] sm:$0xff]  ;;  %v8375_v41 = vld [vmem:[#allocation19_spill] sm:$0xff] }
 0x37e   : > { %v8072_v21 = vadd.f32 %v5512_v29, %v5511_v59  ;;  %v6326_v23 = vld [vmem:[#allocation6 + $0x43c] ss:$36 sps:$4 sm:$0xff]   ;;  %v6457_v29 = vld [vmem:[#allocation2 + $0x168] sm:$0xff]  }
 0x37f   : > { %4399 = vmatmul.mubr.bf16.vlgmr.msra.gmra.mrb[128].mxu0 %v6320_v28  ;;  %v6456_v59 = vld [vmem:[#allocation2 + $0x120] sm:$0xff]  }
 0x380   : > { %5916 = vmatpush3.bf16.msra.mxu0 %v7990_v19  ;;  %5844 = vmatpush3.bf16.msra.mxu1 %v7849_v61  ;;  %v8376_v61 = vld [vmem:[#allocation23_spill] sm:$0xff] }
 0x381   : > { %5917 = vmatprep.subr.bf16.mxu0 %v7996_v8  ;;  %5845 = vmatprep.subr.bf16.mxu1 %v7853_v7  ;;  %v8377_v7 = vld [vmem:[#allocation24_spill] sm:$0xff] }
 0x382   : > { %4406 = vmatprep.mubr.bf16.mxu0 %v6328_v48 }
 0x384   : > { %5918 = vmatpush3.bf16.msra.mxu0 %v8000_v36  ;;  %5846 = vmatpush3.bf16.msra.mxu1 %v8374_v33  ;;  %v6330_v36 = vld [vmem:[#allocation6 + $0x438] ss:$36 sps:$4 sm:$0xff]  }
 0x385   : > { %5919 = vmatprep.subr.bf16.mxu0 %v7705_v4  ;;  %5887 = vmatprep.subr.bf16.mxu1 %v8375_v41  ;;  %v6341_v41 = vld [vmem:[#allocation6 + $0x454] ss:$36 sps:$4 sm:$0xff]  }
 0x387   : > { %4350 = vmatmul.mubr.bf16.vlgmr.msra.gmra.mrb[124].mxu1 %v6323_v13  ;;  %4407 = vmatmul.mubr.bf16.gmra.mrb[132].mxu0 %v6331_v44  ;;  %v6335_v13 = vld [vmem:[#allocation6 + $0x408] ss:$36 sps:$4 sm:$0xff]  }
 0x388   : > { %5920 = vmatpush3.bf16.msra.mxu0 %v7712_v27  ;;  %5888 = vmatpush3.bf16.msra.mxu1 %v8376_v61  ;;  %v6451_v27 = vld [vmem:[#allocation2 + $0x150] sm:$0xff]  }
 0x389   : > { %5921 = vmatprep.subr.bf16.mxu0 %v8366_v55  ;;  %5889 = vmatprep.subr.bf16.mxu1 %v8377_v7  ;;  %v6461_v7 = vld [vmem:[#allocation2 + $0x178] sm:$0xff]  }
 0x38a   : > { %v5530_v19 = vpop.f32.mrb[72].mxu1  ;;  %4357 = vmatprep.mubr.bf16.mxu1 %v6326_v23  ;;  %4496 = vmatprep.mubr.bf16.mxu0 %v6337_v25  ;;  %v6459_v23 = vld [vmem:[#allocation2 + $0x170] sm:$0xff]  }
 0x38b   : > { %v5531_v8 = vpop.f32.mrb[73].mxu1 }
 0x38c   : > { %5922 = vmatpush3.bf16.msra.mxu0 %v7722_v63  ;;  %v5532_v4 = vadd.f32 %v5531_v8, %v5530_v19  ;;  %5890 = vmatpush3.bf16.msra.mxu1 %v8378_v12  ;;  %v5533_v52 = vpop.f32.mrb[74].mxu1  ;;  %v6453_v63 = vld [vmem:[#allocation2 + $0x158] sm:$0xff]   ;;  %v6332_v8 = vld [vmem:[#allocation6 + $0x400] ss:$36 sps:$4 sm:$0xff]   ;;  %v6338_v12 = vld [vmem:[#allocation6 + $0x44c] ss:$36 sps:$4 sm:$0xff]  }
 0x38d   : > { %5923 = vmatprep.subr.bf16.mxu0 %v8379_v18  ;;  %5891 = vmatprep.subr.bf16.mxu1 %v6451_v27  ;;  %v5534_v39 = vpop.f32.mrb[75].mxu1  ;;  %v6463_v18 = vld [vmem:[#allocation2 + $0x200] ss:$0 sps:$4 sm:$0xff]  }
 0x38e   : > { %v3303_v47 = vadd.f32 %v5532_v4, %v5504_v34  ;;  %v5535_v55 = vadd.f32 %v5534_v39, %v5533_v52  ;;  %v6455_v34 = vld [vmem:[#allocation2 + $0x160] sm:$0xff]   ;;  %v6462_v4 = vld [vmem:[#allocation2 + $0x138] sm:$0xff]   ;;  %v8382_v39 = vld [vmem:[#allocation13_spill] sm:$0xff] }
 0x38f   : > { %4358 = vmatmul.mubr.bf16.gmra.mrb[128].mxu1 %v6330_v36  ;;  %v6343_v36 = vld [vmem:[#allocation6 + $0x450] ss:$36 sps:$4 sm:$0xff]  }
 0x390   : > { %v3306_v31 = vadd.f32 %v5535_v55, %v5507_v32  ;;  %5924 = vmatpush3.bf16.msra.mxu0 %v8380_v6  ;;  %5892 = vmatpush3.bf16.msra.mxu1 %v6452_v53  ;;  %v6344_v53 = vld [vmem:[#allocation6 + $0x410] ss:$36 sps:$4 sm:$0xff]  }
 0x391   : > { %5925 = vmatprep.subr.bf16.mxu0 %v8381_v1  ;;  %5893 = vmatprep.subr.bf16.mxu1 %v6453_v63 }
 0x392   : > { %v5558_v58 = vpop.f32.mrb[80].mxu0  ;;  %v5536_v60 = vpop.f32.mrb[76].mxu1  ;;  %4447 = vmatprep.mubr.bf16.mxu1 %v6334_v35  ;;  %v6340_v35 = vld [vmem:[#allocation6 + $0x448] ss:$36 sps:$4 sm:$0xff]  }
 0x393   : > { %v5559_v14 = vpop.f32.mrb[81].mxu0  ;;  %v5537_v17 = vpop.f32.mrb[77].mxu1 }
 0x394   : > { %5926 = vmatpush3.bf16.msra.mxu0 %v7735_v24  ;;  %v5560_v57 = vadd.f32 %v5559_v14, %v5558_v58  ;;  %5894 = vmatpush3.bf16.msra.mxu1 %v6454_v56  ;;  %v5561_v45 = vpop.f32.mrb[82].mxu0  ;;  %v5538_v15 = vadd.f32 %v5537_v17, %v5536_v60  ;;  %v5539_v26 = vpop.f32.mrb[78].mxu1 }
 0x395   : > { %5927 = vmatprep.subr.bf16.mxu0 %v7738_v11  ;;  %5895 = vmatprep.subr.bf16.mxu1 %v6455_v34  ;;  %v5562_v62 = vpop.f32.mrb[83].mxu0  ;;  %v5540_v5 = vpop.f32.mrb[79].mxu1 }
 0x396   : > { %v3352_v0 = vadd.f32 %v5560_v57, %v3303_v47  ;;  %v3311_v32 = vadd.f32 %v5538_v15, %v8068_v50  ;;  %v5563_v30 = vadd.f32 %v5562_v62, %v5561_v45  ;;  %v5541_v28 = vadd.f32 %v5540_v5, %v5539_v26  ;;  %v6458_v50 = vld [vmem:[#allocation2 + $0x128] sm:$0xff]   ;;  %v6345_v15 = vld [vmem:[#allocation6 + $0x458] ss:$36 sps:$4 sm:$0xff]  }
 0x398   : > { %v3355_v10 = vadd.f32 %v5563_v30, %v3306_v31  ;;  %5928 = vmatpush3.bf16.msra.mxu0 %v7747_v16  ;;  %v3314_v24 = vadd.f32 %v5541_v28, %v8072_v21  ;;  %5896 = vmatpush3.bf16.msra.mxu1 %v6456_v59 }
 0x399   : > { %5929 = vmatprep.subr.bf16.mxu0 %v7753_v20  ;;  %5897 = vmatprep.subr.bf16.mxu1 %v6457_v29  ;;  %v6460_v20 = vld [vmem:[#allocation2 + $0x130] sm:$0xff]  }
 0x39a   : > { %v5564_v11 = vpop.f32.mrb[84].mxu0 }
 0x39b   : > { %v5565_v48 = vpop.f32.mrb[85].mxu0 }
 0x39c   : > { %5930 = vmatpush3.bf16.msra.mxu0 %v7759_v54  ;;  %v5566_v44 = vadd.f32 %v5565_v48, %v5564_v11  ;;  %5898 = vmatpush3.bf16.msra.mxu1 %v6458_v50  ;;  %v5567_v33 = vpop.f32.mrb[86].mxu0 }
 0x39d   : > { %5899 = vmatprep.subr.bf16.mxu1 %v6459_v23  ;;  %v5568_v16 = vpop.f32.mrb[87].mxu0 }
 0x39e   : > { %v3360_v21 = vadd.f32 %v5566_v44, %v3311_v32  ;;  %v5569_v25 = vadd.f32 %v5568_v16, %v5567_v33 }
 0x39f   : > { %4497 = vmatmul.mubr.bf16.vlgmr.msra.gmra.mrb[136].mxu0 %v6335_v13 }
 0x3a0   : > { %v3363_v61 = vadd.f32 %v5569_v25, %v3314_v24  ;;  %5900 = vmatpush3.bf16.msra.mxu1 %v6460_v20  ;;  %4504 = vmatprep.mubr.bf16.mxu0 %v6341_v41 }
 0x3a1   : > { %5901 = vmatprep.subr.bf16.mxu1 %v6461_v7 }
 0x3a2   : > { %v5974_v19 = vpop.f32.mrb[88].mxu0 }
 0x3a3   : > { %v3449_v54 = vpop.f32.mrb[89].mxu0 }
 0x3a4   : > { %5902 = vmatpush3.bf16.msra.mxu1 %v6462_v4  ;;  %v5975_v52 = vpop.f32.mrb[90].mxu0 }
 0x3a5   : > { %6001 = vmatprep.subr.msk.bf16.mxu1 %vm1755_vm7, %v6463_v18  ;;  %v3452_v27 = vpop.f32.mrb[91].mxu0 }
 0x3a7   : > { %4448 = vmatmul.mubr.bf16.vlgmr.msra.gmra.mrb[132].mxu1 %v6332_v8  ;;  %4505 = vmatmul.mubr.bf16.gmra.mrb[140].mxu0 %v6343_v36 }
 0x3a8   : > { %5989 = vmatpush3.bf16.msra.mxu1 %v8382_v39  ;;  %4455 = vmatprep.mubr.bf16.mxu1 %v6338_v12 }
 0x3aa   : > { %v5586_v47 = vpop.f32.mrb[80].mxu1 }
 0x3ab   : > { %v5587_v55 = vpop.f32.mrb[81].mxu1 }
 0x3ac   : > { %v5588_v31 = vadd.f32 %v5587_v55, %v5586_v47  ;;  %v5589_v6 = vpop.f32.mrb[82].mxu1 }
 0x3ad   : > { %v5590_v1 = vpop.f32.mrb[83].mxu1 }
 0x3ae   : > { %v5591_v63 = vadd.f32 %v5590_v1, %v5589_v6  ;;  %v3401_v58 = vadd.f32 %v5588_v31, %v3352_v0 }
 0x3af   : > { %4456 = vmatmul.mubr.bf16.gmra.mrb[136].mxu1 %v6340_v35 }
 0x3b0   : > { %v3450_v60 = vadd.f32 %v3449_v54, %v3401_v58  ;;  %v3404_v14 = vadd.f32 %v5591_v63, %v3355_v10  ;;  %5990 = vmatprep.mubr.msk.bf16.mxu1 %vm1748_vm8, %v6344_v53 }
 0x3b2   : > { %v8104_v17 = vmax.f32 %v3098_v42, %v3450_v60  ;;  %v3453_v57 = vadd.f32 %v3452_v27, %v3404_v14  ;;  %v5592_v56 = vpop.f32.mrb[84].mxu1 }
 0x3b3   : > { %v5593_v45 = vpop.f32.mrb[85].mxu1 }
 0x3b4   : > { %v8109_v26 = vmax.f32 %v3099_v37, %v3453_v57  ;;  %v5594_v34 = vadd.f32 %v5593_v45, %v5592_v56  ;;  %v5595_v62 = vpop.f32.mrb[86].mxu1 }
 0x3b5   : > { %v5596_v5 = vpop.f32.mrb[87].mxu1 }
 0x3b6   : > { %v3409_v0 = vadd.f32 %v5594_v34, %v3360_v21  ;;  %v5597_v32 = vadd.f32 %v5596_v5, %v5595_v62 }
 0x3b7   : > { %5991 = vmatmul.mubr.msk.bf16.vlgmr.msra.gmra.mrb[140].mxu1 %vm1748_vm8, %v6345_v15 }
 0x3b8   : > { %v3458_v30 = vadd.f32 %v5974_v19, %v3409_v0  ;;  %v3412_v22 = vadd.f32 %v5597_v32, %v3363_v61 }
 0x3ba   : > { %v3461_v46 = vadd.f32 %v5975_v52, %v3412_v22  ;;  %v8115_v42 = vmax.f32 %v3100_v43, %v3458_v30 }
 0x3bc   : > { %v8120_v9 = vmax.f32 %v3101_v38, %v3461_v46 }
 0x3c2   : > { %v5645_v2 = vpop.f32.mrb[92].mxu0 }
 0x3c3   : > { %v5646_v37 = vpop.f32.mrb[93].mxu0 }
 0x3c4   : > { %v5647_v28 = vadd.f32 %v5646_v37, %v5645_v2  ;;  %v5648_v10 = vpop.f32.mrb[94].mxu0 }
 0x3c5   : > { %v5649_v24 = vpop.f32.mrb[95].mxu0 }
 0x3c6   : > { %v5650_v59 = vadd.f32 %v5649_v24, %v5648_v10 }
 0x3ca   : > { %v5617_v29 = vpop.f32.mrb[88].mxu1  ;;  %v5651_v11 = vpop.f32.mrb[96].mxu0 }
 0x3cb   : > { %v5618_v48 = vpop.f32.mrb[89].mxu1  ;;  %v5652_v13 = vpop.f32.mrb[97].mxu0 }
 0x3cc   : > { %v5619_v44 = vadd.f32 %v5618_v48, %v5617_v29  ;;  %v5620_v50 = vpop.f32.mrb[90].mxu1  ;;  %v5653_v49 = vadd.f32 %v5652_v13, %v5651_v11  ;;  %v5654_v40 = vpop.f32.mrb[98].mxu0 }
 0x3cd   : > { %v5621_v43 = vpop.f32.mrb[91].mxu1  ;;  %v5655_v33 = vpop.f32.mrb[99].mxu0 }
 0x3ce   : > { %v3669_v41 = vadd.f32 %v5647_v28, %v5619_v44  ;;  %v5622_v3 = vadd.f32 %v5621_v43, %v5620_v50  ;;  %v5656_v51 = vadd.f32 %v5655_v33, %v5654_v40 }
 0x3d0   : > { %v3672_v38 = vadd.f32 %v5650_v59, %v5622_v3 }
 0x3d2   : > { %v5623_v23 = vpop.f32.mrb[92].mxu1 }
 0x3d3   : > { %v5624_v16 = vpop.f32.mrb[93].mxu1 }
 0x3d4   : > { %v5625_v21 = vadd.f32 %v5624_v16, %v5623_v23  ;;  %v5626_v25 = vpop.f32.mrb[94].mxu1 }
 0x3d5   : > { %v5627_v61 = vpop.f32.mrb[95].mxu1 }
 0x3d6   : > { %v3677_v20 = vadd.f32 %v5653_v49, %v5625_v21  ;;  %v5628_v7 = vadd.f32 %v5627_v61, %v5626_v25 }
 0x3d8   : > { %v3680_v19 = vadd.f32 %v5656_v51, %v5628_v7 }
 0x3e2   : > { %v5701_v8 = vpop.f32.mrb[100].mxu0 }
 0x3e3   : > { %v5702_v54 = vpop.f32.mrb[101].mxu0 }
 0x3e4   : > { %v5703_v36 = vadd.f32 %v5702_v54, %v5701_v8  ;;  %v5704_v4 = vpop.f32.mrb[102].mxu0 }
 0x3e5   : > { %v5705_v12 = vpop.f32.mrb[103].mxu0 }
 0x3e6   : > { %v5706_v52 = vadd.f32 %v5705_v12, %v5704_v4 }
 0x3ea   : > { %v5673_v18 = vpop.f32.mrb[96].mxu1  ;;  %v5707_v27 = vpop.f32.mrb[104].mxu0 }
 0x3eb   : > { %v5674_v39 = vpop.f32.mrb[97].mxu1  ;;  %v5708_v47 = vpop.f32.mrb[105].mxu0 }
 0x3ec   : > { %v5675_v55 = vadd.f32 %v5674_v39, %v5673_v18  ;;  %v5676_v35 = vpop.f32.mrb[98].mxu1  ;;  %v5709_v31 = vadd.f32 %v5708_v47, %v5707_v27  ;;  %v5710_v6 = vpop.f32.mrb[106].mxu0 }
 0x3ed   : > { %v5677_v53 = vpop.f32.mrb[99].mxu1  ;;  %v5711_v1 = vpop.f32.mrb[107].mxu0 }
 0x3ee   : > { %v3718_v63 = vadd.f32 %v5675_v55, %v3669_v41  ;;  %v5678_v58 = vadd.f32 %v5677_v53, %v5676_v35  ;;  %v5712_v60 = vadd.f32 %v5711_v1, %v5710_v6 }
 0x3f0   : > { %v3721_v14 = vadd.f32 %v5678_v58, %v3672_v38  ;;  %v3767_v57 = vadd.f32 %v5703_v36, %v3718_v63 }
 0x3f2   : > { %v5679_v56 = vpop.f32.mrb[100].mxu1  ;;  %v3770_v45 = vadd.f32 %v5706_v52, %v3721_v14 }
 0x3f3   : > { %v5680_v15 = vpop.f32.mrb[101].mxu1 }
 0x3f4   : > { %v5681_v34 = vadd.f32 %v5680_v15, %v5679_v56  ;;  %v5682_v62 = vpop.f32.mrb[102].mxu1 }
 0x3f5   : > { %v5683_v5 = vpop.f32.mrb[103].mxu1 }
 0x3f6   : > { %v3726_v0 = vadd.f32 %v5681_v34, %v3677_v20  ;;  %v5684_v32 = vadd.f32 %v5683_v5, %v5682_v62 }
 0x3f8   : > { %v3729_v30 = vadd.f32 %v5684_v32, %v3680_v19  ;;  %v3775_v22 = vadd.f32 %v5709_v31, %v3726_v0 }
 0x3fa   : > { %v5980_v46 = vpop.f32.mrb[104].mxu1  ;;  %v3778_v2 = vadd.f32 %v5712_v60, %v3729_v30 }
 0x3fb   : > { %v8122_v37 = vadd.f32 %v5980_v46, %v3775_v22  ;;  %v3815_v28 = vpop.f32.mrb[105].mxu1 }
 0x3fc   : > { %v8124_v10 = vadd.f32 %v3815_v28, %v3767_v57  ;;  %v5981_v24 = vpop.f32.mrb[106].mxu1 }
 0x3fd   : > { %v3832_v59 = vmax.f32 %v8115_v42, %v8122_v37  ;;  %v8128_v29 = vadd.f32 %v5981_v24, %v3778_v2  ;;  %v3818_v11 = vpop.f32.mrb[107].mxu1 }
 0x3fe   : > { %v3830_v48 = vmax.f32 %v8104_v17, %v8124_v10  ;;  %v8132_v13 = vadd.f32 %v3818_v11, %v3770_v45 }
 0x3ff   : > { %v3833_v44 = vmax.f32 %v8120_v9, %v8128_v29 }
 0x400   : > { %v3831_v50 = vmax.f32 %v8109_v26, %v8132_v13 }
 0x402   : > { %v5732_v49 = vpop.f32.mrb[108].mxu0 }
 0x403   : > { %v5733_v40 = vpop.f32.mrb[109].mxu0 }
 0x404   : > { %v5734_v43 = vadd.f32 %v5733_v40, %v5732_v49  ;;  %v5735_v33 = vpop.f32.mrb[110].mxu0 }
 0x405   : > { %v5736_v41 = vpop.f32.mrb[111].mxu0 }
 0x406   : > { %v5737_v3 = vadd.f32 %v5736_v41, %v5735_v33 }
 0x40a   : > { %v5738_v51 = vpop.f32.mrb[112].mxu0 }
 0x40b   : > { %v5739_v38 = vpop.f32.mrb[113].mxu0 }
 0x40c   : > { %v5740_v23 = vadd.f32 %v5739_v38, %v5738_v51  ;;  %v5741_v16 = vpop.f32.mrb[114].mxu0 }
 0x40d   : > { %v5742_v21 = vpop.f32.mrb[115].mxu0 }
 0x40e   : > { %v5743_v17 = vadd.f32 %v5742_v21, %v5741_v16 }
 0x41a   : > { %v5760_v25 = vpop.f32.mrb[108].mxu1 }
 0x41b   : > { %v5761_v61 = vpop.f32.mrb[109].mxu1 }
 0x41c   : > { %v5762_v20 = vadd.f32 %v5761_v61, %v5760_v25  ;;  %v5763_v7 = vpop.f32.mrb[110].mxu1 }
 0x41d   : > { %v5764_v19 = vpop.f32.mrb[111].mxu1 }
 0x41e   : > { %v4035_v8 = vadd.f32 %v5762_v20, %v5734_v43  ;;  %v5765_v54 = vadd.f32 %v5764_v19, %v5763_v7 }
 0x420   : > { %v4038_v26 = vadd.f32 %v5765_v54, %v5737_v3 }
 0x422   : > { %v5788_v36 = vpop.f32.mrb[116].mxu0  ;;  %v5766_v4 = vpop.f32.mrb[112].mxu1 }
 0x423   : > { %v5789_v12 = vpop.f32.mrb[117].mxu0  ;;  %v5767_v52 = vpop.f32.mrb[113].mxu1 }
 0x424   : > { %v5790_v18 = vadd.f32 %v5789_v12, %v5788_v36  ;;  %v5791_v27 = vpop.f32.mrb[118].mxu0  ;;  %v5768_v39 = vadd.f32 %v5767_v52, %v5766_v4  ;;  %v5769_v47 = vpop.f32.mrb[114].mxu1 }
 0x425   : > { %v5792_v55 = vpop.f32.mrb[119].mxu0  ;;  %v5770_v35 = vpop.f32.mrb[115].mxu1 }
 0x426   : > { %v4084_v31 = vadd.f32 %v5790_v18, %v4035_v8  ;;  %v5793_v6 = vadd.f32 %v5792_v55, %v5791_v27  ;;  %v4043_v53 = vadd.f32 %v5768_v39, %v5740_v23  ;;  %v5771_v1 = vadd.f32 %v5770_v35, %v5769_v47 }
 0x428   : > { %v4087_v63 = vadd.f32 %v5793_v6, %v4038_v26  ;;  %v4046_v58 = vadd.f32 %v5771_v1, %v5743_v17 }
 0x42a   : > { %v5794_v60 = vpop.f32.mrb[120].mxu0 }
 0x42b   : > { %v5795_v14 = vpop.f32.mrb[121].mxu0 }
 0x42c   : > { %v5796_v57 = vadd.f32 %v5795_v14, %v5794_v60  ;;  %v5797_v56 = vpop.f32.mrb[122].mxu0 }
 0x42d   : > { %v5798_v45 = vpop.f32.mrb[123].mxu0 }
 0x42e   : > { %v4092_v15 = vadd.f32 %v5796_v57, %v4043_v53  ;;  %v5799_v34 = vadd.f32 %v5798_v45, %v5797_v56 }
 0x430   : > { %v4095_v62 = vadd.f32 %v5799_v34, %v4046_v58 }
 0x432   : > { %v5986_v5 = vpop.f32.mrb[124].mxu0 }
 0x433   : > { %v4181_v0 = vpop.f32.mrb[125].mxu0 }
 0x434   : > { %v5987_v32 = vpop.f32.mrb[126].mxu0 }
 0x435   : > { %v4184_v30 = vpop.f32.mrb[127].mxu0 }
 0x43a   : > { %v5816_v22 = vpop.f32.mrb[116].mxu1 }
 0x43b   : > { %v5817_v46 = vpop.f32.mrb[117].mxu1 }
 0x43c   : > { %v5818_v2 = vadd.f32 %v5817_v46, %v5816_v22  ;;  %v5819_v28 = vpop.f32.mrb[118].mxu1 }
 0x43d   : > { %v5820_v10 = vpop.f32.mrb[119].mxu1 }
 0x43e   : > { %v5821_v24 = vadd.f32 %v5820_v10, %v5819_v28  ;;  %v4133_v11 = vadd.f32 %v5818_v2, %v4084_v31 }
 0x440   : > { %v4182_v13 = vadd.f32 %v4181_v0, %v4133_v11  ;;  %v4136_v49 = vadd.f32 %v5821_v24, %v4087_v63 }
 0x442   : > { %v8138_v40 = vmax.f32 %v3830_v48, %v4182_v13  ;;  %v4185_v43 = vadd.f32 %v4184_v30, %v4136_v49  ;;  %v5822_v33 = vpop.f32.mrb[120].mxu1 }
 0x443   : > { %v5823_v41 = vpop.f32.mrb[121].mxu1 }
 0x444   : > { %v8140_v3 = vmax.f32 %v3831_v50, %v4185_v43  ;;  %v5824_v51 = vadd.f32 %v5823_v41, %v5822_v33  ;;  %v5825_v38 = vpop.f32.mrb[122].mxu1 }
 0x445   : > { %v5826_v23 = vpop.f32.mrb[123].mxu1 }
 0x446   : > { %v4141_v16 = vadd.f32 %v5824_v51, %v4092_v15  ;;  %v5827_v21 = vadd.f32 %v5826_v23, %v5825_v38 }
 0x448   : > { %v4190_v17 = vadd.f32 %v5986_v5, %v4141_v16  ;;  %v4144_v25 = vadd.f32 %v5827_v21, %v4095_v62 }
 0x44a   : > { %v4193_v61 = vadd.f32 %v5987_v32, %v4144_v25  ;;  %v8145_v20 = vmax.f32 %v3832_v59, %v4190_v17 }
 0x44c   : > { %v8150_v48 = vmax.f32 %v3833_v44, %v4193_v61 }
 0x452   : > { %v5875_v50 = vpop.f32.mrb[128].mxu0 }
 0x453   : > { %v5876_v7 = vpop.f32.mrb[129].mxu0 }
 0x454   : > { %v5877_v19 = vadd.f32 %v5876_v7, %v5875_v50  ;;  %v5878_v8 = vpop.f32.mrb[130].mxu0 }
 0x455   : > { %v5879_v54 = vpop.f32.mrb[131].mxu0 }
 0x456   : > { %v5880_v26 = vadd.f32 %v5879_v54, %v5878_v8 }
 0x45a   : > { %v5847_v36 = vpop.f32.mrb[124].mxu1  ;;  %v5881_v4 = vpop.f32.mrb[132].mxu0 }
 0x45b   : > { %v5848_v12 = vpop.f32.mrb[125].mxu1  ;;  %v5882_v52 = vpop.f32.mrb[133].mxu0 }
 0x45c   : > { %v5849_v18 = vadd.f32 %v5848_v12, %v5847_v36  ;;  %v5850_v27 = vpop.f32.mrb[126].mxu1  ;;  %v5883_v42 = vadd.f32 %v5882_v52, %v5881_v4  ;;  %v5884_v37 = vpop.f32.mrb[134].mxu0 }
 0x45d   : > { %v5851_v59 = vpop.f32.mrb[127].mxu1  ;;  %v5885_v39 = vpop.f32.mrb[135].mxu0 }
 0x45e   : > { %v4401_v47 = vadd.f32 %v5877_v19, %v5849_v18  ;;  %v5852_v9 = vadd.f32 %v5851_v59, %v5850_v27  ;;  %v5886_v29 = vadd.f32 %v5885_v39, %v5884_v37 }
 0x460   : > { %v4404_v44 = vadd.f32 %v5880_v26, %v5852_v9 }
 0x462   : > { %v5853_v55 = vpop.f32.mrb[128].mxu1 }
 0x463   : > { %v5854_v35 = vpop.f32.mrb[129].mxu1 }
 0x464   : > { %v5855_v31 = vadd.f32 %v5854_v35, %v5853_v55  ;;  %v5856_v6 = vpop.f32.mrb[130].mxu1 }
 0x465   : > { %v5857_v53 = vpop.f32.mrb[131].mxu1 }
 0x466   : > { %v4409_v1 = vadd.f32 %v5883_v42, %v5855_v31  ;;  %v5858_v63 = vadd.f32 %v5857_v53, %v5856_v6 }
 0x468   : > { %v4412_v58 = vadd.f32 %v5886_v29, %v5858_v63 }
 0x472   : > { %v5931_v60 = vpop.f32.mrb[136].mxu0 }
 0x473   : > { %v5932_v14 = vpop.f32.mrb[137].mxu0 }
 0x474   : > { %v5933_v57 = vadd.f32 %v5932_v14, %v5931_v60  ;;  %v5934_v56 = vpop.f32.mrb[138].mxu0 }
 0x475   : > { %v5935_v45 = vpop.f32.mrb[139].mxu0 }
 0x476   : > { %v5936_v15 = vadd.f32 %v5935_v45, %v5934_v56 }
 0x47a   : > { %v5903_v34 = vpop.f32.mrb[132].mxu1  ;;  %v5937_v62 = vpop.f32.mrb[140].mxu0 }
 0x47b   : > { %v5904_v5 = vpop.f32.mrb[133].mxu1  ;;  %v5938_v0 = vpop.f32.mrb[141].mxu0 }
 0x47c   : > { %v5905_v32 = vadd.f32 %v5904_v5, %v5903_v34  ;;  %v5906_v30 = vpop.f32.mrb[134].mxu1  ;;  %v5939_v22 = vadd.f32 %v5938_v0, %v5937_v62  ;;  %v5940_v46 = vpop.f32.mrb[142].mxu0 }
 0x47d   : > { %v5907_v2 = vpop.f32.mrb[135].mxu1  ;;  %v5941_v28 = vpop.f32.mrb[143].mxu0 }
 0x47e   : > { %v4450_v10 = vadd.f32 %v5905_v32, %v4401_v47  ;;  %v5908_v24 = vadd.f32 %v5907_v2, %v5906_v30  ;;  %v5942_v11 = vadd.f32 %v5941_v28, %v5940_v46 }
 0x480   : > { %v4453_v13 = vadd.f32 %v5908_v24, %v4404_v44  ;;  %v4499_v49 = vadd.f32 %v5933_v57, %v4450_v10 }
 0x482   : > { %v5909_v43 = vpop.f32.mrb[136].mxu1  ;;  %v4502_v33 = vadd.f32 %v5936_v15, %v4453_v13 }
 0x483   : > { %v5910_v41 = vpop.f32.mrb[137].mxu1 }
 0x484   : > { %v5911_v51 = vadd.f32 %v5910_v41, %v5909_v43  ;;  %v5912_v38 = vpop.f32.mrb[138].mxu1 }
 0x485   : > { %v5913_v23 = vpop.f32.mrb[139].mxu1 }
 0x486   : > { %v4458_v16 = vadd.f32 %v5911_v51, %v4409_v1  ;;  %v5914_v21 = vadd.f32 %v5913_v23, %v5912_v38 }
 0x488   : > { %v4461_v17 = vadd.f32 %v5914_v21, %v4412_v58  ;;  %v4507_v25 = vadd.f32 %v5939_v22, %v4458_v16 }
 0x48a   : > { %v5992_v61 = vpop.f32.mrb[140].mxu1  ;;  %v4510_v50 = vadd.f32 %v5942_v11, %v4461_v17 }
 0x48b   : > { %v4556_v7 = vadd.f32 %v5992_v61, %v4507_v25  ;;  %v4547_v19 = vpop.f32.mrb[141].mxu1 }
 0x48c   : > { %v4548_v8 = vadd.f32 %v4547_v19, %v4499_v49  ;;  %v5993_v54 = vpop.f32.mrb[142].mxu1 }
 0x48d   : > { %v4564_v26 = vmax.f32 %v8145_v20, %v4556_v7  ;;  %v4559_v36 = vadd.f32 %v5993_v54, %v4510_v50  ;;  %v4550_v4 = vpop.f32.mrb[143].mxu1 }
 0x48e   : > { %v4562_v12 = vmax.f32 %v8138_v40, %v4548_v8  ;;  %v4551_v52 = vadd.f32 %v4550_v4, %v4502_v33 }
 0x48f   : > { %v4568_v18 = vmax.f32 %v4564_v26, 0.0  ;;  %v4565_v27 = vmax.f32 %v8150_v48, %v4559_v36 }
 0x490   : > { %v4566_v42 = vmax.f32 %v4562_v12, 0.0  ;;  %v4563_v20 = vmax.f32 %v8140_v3, %v4551_v52 }
 0x491   : > { %4572 = vst [vmem:[%s176_s6 + $0x10] sm:$0xff] %v4568_v18  ;;  %v4569_v37 = vmax.f32 %v4565_v27, 0.0 }
 0x492   : > { %4570 = vst [vmem:[%s176_s6] sm:$0xff] %v4566_v42  ;;  %v4567_v40 = vmax.f32 %v4563_v20, 0.0 }
 0x493   : > { %4573 = vst [vmem:[%s176_s6 + $0x18] sm:$0xff] %v4569_v37 }
 0x494   : > { %4571 = vst [vmem:[%s176_s6 + $0x8] sm:$0xff] %v4567_v40 }
 0x495   : > { %6535 = shalt.err (!%p6532_p7)
}
 0x496   : > { %s6536_s15 = scalar_lea.hbm %s8163_s20, 512  ;;  %s6540_s22 = scalar_lea.hbm %s8209_s2, 1024 }
 0x497   : > { %p6537_p9 = scmp.ne.s32.totalorder %s8163_s20, %s6536_s15  ;;  %p6541_p5 = scmp.lt.u32.totalorder %s8163_s20, %s8209_s2 }
 0x498   : > { %p6542_p11 = scmp.lt.u32.totalorder %s6540_s22, %s6536_s15  ;;  %p6544_p4 = scmp.lt.u32.totalorder %s6536_s15, %s8163_s20 }
 0x499   : > { %p6538_p2 = pnand %p6537_p9, %p6717_p12 }
 0x49a   : > { %p6543_p1 = por %p6542_p11, %p6541_p5 }
 0x49b   : > { %p6539_p0 = pneg %p6538_p2 }
 0x49c   : > { %p6545_p6 = por %p6544_p4, %p6543_p1 }
 0x49e   : > { %p6546_p8 = pnand %p6545_p6, %p6539_p0 }
 0x4a0   : > { %6549 = shalt.err (!%p6546_p8)
}
 0x4a1   : > { %s6609_s4 = smov 128   ;;  %s6610_s5 = smov 8  }
 0x4a2   : > { %6008 = dma.vmem_to_hbm [thread:$0]  (%p6717_p12), %s8157_s7, 512, %s8163_s20, %s4575_s13, %s6609_s4, %s6609_s4, %s6610_s5  }
 0x4a3 PF: > { %s4603_s6 = sand.u32 1, %s6580_s9   ;;  %p8383_p10 = scmp.ne.s32.totalorder %s8281_s16, 0 }
 0x4a4   : > { %p8384_p13 = scmp.ge.s32.totalorder %s6592_s12, 2  ;;  %s4604_s18 = scalar_lea.sflag [#allocation5], %s4603_s6 }
 0x4a6   : > { %p6019_p3 = pnand %p8384_p13, %p8383_p10 }
 0x4a8   : > { %6575 = dma.done.wait (!%p6019_p3), %s4604_s18, 512  }
 0x4a9   : > { %6577 = vsyncadd (!%p6019_p3), %s4604_s18, 4294966784  ;;  %p16_p7 = scmp.ge.s32.totalorder %s6682_s21, 4   ;;  %s8385_s9 = smov %s6584_s10 }
 0x4aa   : > { %s8386_s10 = smov %s6588_s11  ;;  %s8387_s11 = smov %s6713_s8 }
 0x4ab   : > { %s8388_s12 = smov %s6682_s21  ;;  %18 = sbr.rel (!%p16_p7) target bundleno = 6 (0x6), region = 91 }
 0x4b2   :  { %4609 = vsyncpa [#allocation4], 1 }
 0x4b3   :  { %4611 = vsyncpa [#allocation4 + $0x1], 1 }
 0x4b4   :  { %4612 = vsyncpa [#allocation7], 1 }
 0x4b5   :  { %4613 = vsyncpa [#allocation5], 1 }
 0x4b6   :  { %4615 = vsyncpa [#allocation5 + $0x1], 1 }

</bundles_post_ra>
